<compile_context>
chip_gen: v7x
topology: tpu7x:2x2x1
jax: 0.10.0
libtpu: 0.0.40
codegen_flags: <defaults>
</compile_context>

<pallas_src>
import functools

import jax
import jax.numpy as jnp
import numpy as np
from jax.experimental import pallas as pl
from jax.experimental.pallas import tpu as pltpu

BN_EPS = 1e-5
_K = 3
_SLAB_W = 128


# ===================================================================== host-side folding
def _shift_matrix(out_size, in_size, stride, k_off):
    """S[o, i] = 1  iff  i == o*stride + k_off - 1   (3x3 conv, pad=1)."""
    s = np.zeros((out_size, in_size), np.float32)
    for o in range(out_size):
        i = o * stride + k_off - 1
        if 0 <= i < in_size:
            s[o, i] = 1.0
    return s


def _interp_matrix(out_size, in_size):
    """Bilinear align_corners=True interpolation matrix, shape (out_size, in_size)."""
    m = np.zeros((out_size, in_size), np.float32)
    if in_size == 1 or out_size == 1:
        m[:, 0] = 1.0
        return m
    for j in range(out_size):
        src = j * (in_size - 1) / (out_size - 1)
        i0 = min(int(np.floor(src)), in_size - 1)
        i1 = min(i0 + 1, in_size - 1)
        f = src - i0
        m[j, i0] += 1.0 - f
        m[j, i1] += f
    return m


def _block_diag(mat, n):
    return np.kron(np.eye(n, dtype=np.float32), mat)


def _pool_matrix(w_out, c):
    """(w_out*c, c) 0/1 matrix summing interleaved (w, c) columns per channel."""
    p = np.zeros((w_out * c, c), np.float32)
    for w in range(w_out):
        p[w * c:(w + 1) * c, :] = np.eye(c, dtype=np.float32)
    return p


def _fold_r(w, w_in, stride):
    """R_kh = sum_kw kron(SW_kw^T, W[kh, kw]) for the interleaved (.., w*C + c) layout."""
    w = np.asarray(w, np.float32)
    cin, cout = w.shape[2], w.shape[3]
    wo = (w_in + 2 - _K) // stride + 1
    rs = []
    for kh in range(_K):
        r = np.zeros((w_in * cin, wo * cout), np.float32)
        for kw in range(_K):
            sw = _shift_matrix(wo, w_in, stride, kw)
            r += np.kron(sw.T, w[kh, kw])
        rs.append(r)
    return rs, wo


class _SlabBuilder:
    """Packs all folded constants into one lane-dense (rows, 128) f32 slab.

    One contiguous HBM->VMEM DMA; every section starts at an 8-row-aligned offset so the
    in-kernel static slices are tile-aligned views."""

    def __init__(self, width=_SLAB_W):
        self.width = width
        self.rows = 0
        self.chunks = []
        self._dedup = {}

    def add(self, arr, key=None):
        if key is not None and key in self._dedup:
            return self._dedup[key]
        arr = np.asarray(arr, np.float32)
        assert arr.ndim == 2 and arr.shape[1] <= self.width, arr.shape
        r, c = arr.shape
        pad_r = -(-r // 8) * 8
        chunk = np.zeros((pad_r, self.width), np.float32)
        chunk[:r, :c] = arr
        view = (self.rows, r, c)
        self.chunks.append(chunk)
        self.rows += pad_r
        if key is not None:
            self._dedup[key] = view
        return view

    def finalize(self):
        if not self.chunks:
            return np.zeros((8, self.width), np.float32)
        return np.concatenate(self.chunks, axis=0)


# ============================================================================ plan build
def build_plan(params, batch, height, width, channel, training=True):
    """Folds all parameters + spatial bookkeeping into one constant slab and a static op
    program executed by a single Pallas kernel."""
    slab = _SlabBuilder()
    program = []
    split = batch // 2
    bd = batch - split
    slot_counter = [1]                     # slot 0 = the input image (2-D layout)

    def new_slot():
        s = slot_counter[0]
        slot_counter[0] += 1
        return s

    out_ptr = [0]
    out_sections = {}

    def alloc_out(name, n_rows, n_cols):
        sec = (out_ptr[0], n_rows, n_cols)
        out_sections[name] = sec
        out_ptr[0] += -(-n_rows // 8) * 8
        return sec

    # ------------------------------------------------------------- generic conv emitter
    def emit_conv(terms_np, r_list, wo, cout, out_rows, store=None):
        """terms_np: [(x_slot, left_matrix|None, dedup_key|None)], r_list parallel.
        Emits conv + BatchNorm(training stats, gamma=1/beta=0) + ReLU."""
        # prune structurally-zero taps (e.g. 3x3 rows falling entirely outside a 1-row map)
        kept = [(t, r) for t, r in zip(terms_np, r_list)
                if t[1] is None or np.any(t[1])]
        terms_np = [t for t, _ in kept]
        r_list = [r for _, r in kept]

        terms = tuple((s, None if m is None else slab.add(m, key=k))
                      for s, m, k in terms_np)
        piece_w = r_list[0].shape[0]
        if piece_w % 128 == 0 and len(r_list) > 1:
            # lane-aligned pieces -> one K-stacked MXU matmul
            rmode, rinfo = "stack", slab.add(np.concatenate(r_list, axis=0))
        else:
            rmode, rinfo = "sum", tuple(slab.add(r) for r in r_list)
        if wo > 1:
            pool_v = slab.add(_pool_matrix(wo, cout), key=("pool", wo, cout))
            bcast_v = slab.add(_pool_matrix(wo, cout).T, key=("bcast", wo, cout))
        else:
            pool_v = bcast_v = None
        out_slot = new_slot()
        program.append(("conv", terms, rmode, rinfo, pool_v, bcast_v,
                        1.0 / float(out_rows * wo), out_slot, store))
        return out_slot

    def plain_conv(x_slot, w, nb, h_in, w_in, stride, store=None):
        """BasicConv2d(cin, cout, 3, stride, pad=1) on a (nb*h_in, w_in*cin) activation."""
        cout = np.asarray(w).shape[3]
        ho = (h_in + 2 - _K) // stride + 1
        r_list, wo = _fold_r(w, w_in, stride)
        terms = []
        for kh in range(_K):
            if stride == 1 and kh == 1:
                terms.append((x_slot, None, None))           # identity row shift
            else:
                sh = _block_diag(_shift_matrix(ho, h_in, stride, kh), nb)
                terms.append((x_slot, sh, ("sh", nb, h_in, stride, kh)))
        return emit_conv(terms, r_list, wo, cout, nb * ho, store=store), ho, wo

    def up_conv(src_slot, src_nb, select_half, hs, ws, hd, wd, w):
        """bilinear(align_corners=True) upsample to (hd, wd) + BasicConv2d fused into the
        conv's left (row interp+shift [+batch-half select]) / right (width interp x conv)
        matrices -> no separate upsample op at runtime."""
        cout = np.asarray(w).shape[3]
        ih = _interp_matrix(hd, hs)
        rwk = np.kron(_interp_matrix(wd, ws).T, np.eye(channel, dtype=np.float32))
        r_list, _ = _fold_r(w, wd, 1)
        terms, rl = [], []
        for kh in range(_K):
            m = _block_diag(_shift_matrix(hd, hd, 1, kh) @ ih, src_nb)
            if select_half:
                m = m[split * hd:, :]
            terms.append((src_slot, m, None))
            rl.append(rwk @ r_list[kh])
        return emit_conv(terms, rl, wd, cout, bd * hd)

    def cat_conv(xa_slot, xb_slot, w, h, wdt):
        """BasicConv2d(2C, C) on channel-concat(xa[second half], xb); both the channel
        concat and the batch-half selection are folded into the matrices."""
        w = np.asarray(w, np.float32)
        c = w.shape[3]
        ra, wo = _fold_r(w[:, :, :c, :], wdt, 1)
        rb, _ = _fold_r(w[:, :, c:, :], wdt, 1)
        terms, rl = [], []
        for kh in range(_K):                                  # skip-connection half
            sh = _block_diag(_shift_matrix(h, h, 1, kh), batch)[split * h:, :]
            terms.append((xa_slot, sh, ("selsh", batch, h, kh)))
            rl.append(ra[kh])
        for kh in range(_K):                                  # upsampled half
            if kh == 1:
                terms.append((xb_slot, None, None))
            else:
                terms.append((xb_slot, _block_diag(_shift_matrix(h, h, 1, kh), bd),
                              ("sh", bd, h, 1, kh)))
            rl.append(rb[kh])
        return emit_conv(terms, rl, wo, c, bd * h)

    # ------------------------------------------------------------------------- encoder
    enc_slots, enc_hw = [], []
    cur, h, w = 0, height, width
    for layers in [params["conv1"]] + params["conv"]:
        for li, (wgt, stride) in enumerate(layers):
            ho = (h + 2 - _K) // stride + 1
            wo = (w + 2 - _K) // stride + 1
            store = None
            if li == len(layers) - 1:
                n_rows = (split if training else batch) * ho
                store = alloc_out(("enc", len(enc_slots)), n_rows, wo * channel)
            cur, h, w = plain_conv(cur, wgt, batch, h, w, stride, store=store)
        enc_slots.append(cur)
        enc_hw.append((h, w))

    # ------------------------------------------------------------------------- decoder
    if training:
        src_slot, src_nb, select = enc_slots[4], batch, True
        hs, ws = enc_hw[4]
        for stage in range(4):
            skip = 3 - stage
            hd, wd = enc_hw[skip]
            u = up_conv(src_slot, src_nb, select, hs, ws, hd, wd,
                        params["conv_upsample"][stage])
            cc = params["conv_cat"][stage]
            s1 = cat_conv(enc_slots[skip], u, cc[0][0], hd, wd)
            s2, _, _ = plain_conv(s1, cc[1][0], bd, hd, wd, 1)
            src_slot, src_nb, select = s2, bd, False
            hs, ws = hd, wd

        # prediction head: BasicConv2d + 1x1 conv (bias folded to a (1, W) row)
        h1, w1 = enc_hw[0]
        p, _, _ = plain_conv(src_slot, params["pred_conv"], bd, h1, w1, 1)
        q = np.kron(np.eye(w1, dtype=np.float32),
                    np.asarray(params["pred_w"], np.float32))
        b_row = np.full((1, w1), float(np.asarray(params["pred_b"]).reshape(-1)[0]),
                        np.float32)
        store = alloc_out("pred", bd * h1, w1)
        program.append(("pred", p, slab.add(q), slab.add(b_row), store))

    return {
        "program": tuple(program),
        "slab": jnp.asarray(slab.finalize()),
        "out_shape": (max(out_ptr[0], 8), _SLAB_W),
        "out_sections": out_sections,
        "enc_hw": tuple(enc_hw),
        "channel": channel,
        "batch": batch,
        "split": split,
        "bd": bd,
        "training": training,
    }


# ====================================================================== the fused kernel
def _make_kernel(program, out_shape):
    def kernel(x_ref, slab_ref, out_ref):
        out_ref[...] = jnp.zeros(out_shape, jnp.float32)
        vals = {0: x_ref[...]}

        def ld(view):                       # static, 8-row-aligned slab slice (cheap view)
            off, r, c = view
            return slab_ref[off:off + r, 0:c]

        def mm(a, b):
            return jnp.dot(a, b, preferred_element_type=jnp.float32)

        for op in program:
            if op[0] == "conv":
                (_, terms, rmode, rinfo, pool_v, bcast_v, inv_n, out_slot, store) = op
                pieces = [vals[s] if lv is None else mm(ld(lv), vals[s])
                          for s, lv in terms]
                if rmode == "stack":
                    xk = pieces[0] if len(pieces) == 1 else jnp.concatenate(pieces, axis=-1)
                    y = mm(xk, ld(rinfo))
                else:
                    y = None
                    for piece, rv in zip(pieces, rinfo):
                        t = mm(piece, ld(rv))
                        y = t if y is None else y + t
                # BatchNorm (training statistics; gamma=1, beta=0) + ReLU.  Row sums on
                # the XLU; only tiny M=1 matmuls (pool / broadcast) touch the MXU.
                ysum = jnp.sum(y, axis=0, keepdims=True)
                ysq = jnp.sum(y * y, axis=0, keepdims=True)
                if pool_v is not None:
                    ysum = mm(ysum, ld(pool_v))
                    ysq = mm(ysq, ld(pool_v))
                mean = ysum * inv_n
                var = ysq * inv_n - mean * mean
                inv_std = jax.lax.rsqrt(var + BN_EPS)
                if bcast_v is not None:
                    mean = mm(mean, ld(bcast_v))
                    inv_std = mm(inv_std, ld(bcast_v))
                res = jnp.maximum((y - mean) * inv_std, 0.0)
                vals[out_slot] = res
                if store is not None:       # eager store into the packed output slab
                    r0, nr, nc = store
                    out_ref[r0:r0 + nr, 0:nc] = res[0:nr, :]
            elif op[0] == "pred":
                (_, x_slot, q_v, b_v, store) = op
                y = mm(vals[x_slot], ld(q_v)) + ld(b_v)
                r0, nr, nc = store
                out_ref[r0:r0 + nr, 0:nc] = y
            else:
                raise ValueError(op[0])

    return kernel


def _run_fused(plan, x2d):
    kernel = _make_kernel(plan["program"], plan["out_shape"])
    return pl.pallas_call(
        kernel,
        out_shape=jax.ShapeDtypeStruct(plan["out_shape"], jnp.float32),
        in_specs=[pl.BlockSpec(memory_space=pltpu.MemorySpace.VMEM),
                  pl.BlockSpec(memory_space=pltpu.MemorySpace.VMEM)],
        out_specs=pl.BlockSpec(memory_space=pltpu.MemorySpace.VMEM),
    )(x2d, plan["slab"])


# ============================================================================== forward
def encoder_decoder_forward(x_nchw, plan):
    x = jnp.transpose(x_nchw, (0, 2, 3, 1)).astype(jnp.float32)    # NCHW -> NHWC
    b, h, w, c = x.shape
    out = _run_fused(plan, x.reshape(b * h, w * c))
    ch = plan["channel"]
    nb = plan["split"] if plan["training"] else plan["batch"]
    feats = []
    for i, (hh, ww) in enumerate(plan["enc_hw"]):
        off, nr, nc = plan["out_sections"][("enc", i)]
        feats.append(out[off:off + nr, 0:nc].reshape(nb, hh, ww, ch))
    if not plan["training"]:
        # TODO(synk): eval-mode BatchNorm should use running statistics; this normalizes
        # with current-batch statistics (i.e. module.train() semantics).
        return feats
    off, nr, nc = plan["out_sections"]["pred"]
    h1, w1 = plan["enc_hw"][0]
    pred = out[off:off + nr, 0:nc].reshape(plan["bd"], h1, w1, 1)
    return feats, pred


# =========================================================================== parameters
def _make_conv_w(key, cin, cout, k=3):
    # matches BasicConv2d init: conv weight ~ Normal(std=0.01); BN gamma=1, beta=0.
    return 0.01 * jax.random.normal(key, (k, k, cin, cout), dtype=jnp.float32)


def init_params(key, channel):
    keys = iter(jax.random.split(key, 32))
    p = {}
    p["conv1"] = [(_make_conv_w(next(keys), 1, channel), 2),
                  (_make_conv_w(next(keys), channel, channel), 1)]
    p["conv"] = [[(_make_conv_w(next(keys), channel, channel), 2),
                  (_make_conv_w(next(keys), channel, channel), 1)] for _ in range(4)]
    p["conv_cat"] = [[(_make_conv_w(next(keys), 2 * channel, channel), 1),
                      (_make_conv_w(next(keys), channel, channel), 1)] for _ in range(4)]
    p["conv_upsample"] = [_make_conv_w(next(keys), channel, channel) for _ in range(4)]
    p["pred_conv"] = _make_conv_w(next(keys), channel, channel)
    p["pred_w"] = 0.01 * jax.random.normal(next(keys), (channel, 1), dtype=jnp.float32)
    p["pred_b"] = 0.01 * jax.random.normal(next(keys), (1, 1), dtype=jnp.float32)
    return p


# ========================================================== pure-JAX reference (checking)
def _bilinear_align_corners(x, out_h, out_w):
    b, h, w, c = x.shape
    if (h, w) == (out_h, out_w):
        return x

    def coords(in_size, out_size):
        if out_size == 1 or in_size == 1:
            src = jnp.zeros((out_size,), jnp.float32)
        else:
            src = jnp.arange(out_size, dtype=jnp.float32) * ((in_size - 1) / (out_size - 1))
        i0 = jnp.clip(jnp.floor(src).astype(jnp.int32), 0, in_size - 1)
        i1 = jnp.clip(i0 + 1, 0, in_size - 1)
        return i0, i1, src - i0.astype(jnp.float32)

    h0, h1, hf = coords(h, out_h)
    w0, w1, wf = coords(w, out_w)
    wf_ = wf[None, None, :, None]
    hf_ = hf[None, :, None, None]
    top = x[:, h0][:, :, w0] * (1.0 - wf_) + x[:, h0][:, :, w1] * wf_
    bot = x[:, h1][:, :, w0] * (1.0 - wf_) + x[:, h1][:, :, w1] * wf_
    return top * (1.0 - hf_) + bot * hf_


def reference_forward(x_nchw, params, training=True):
    x = jnp.transpose(x_nchw, (0, 2, 3, 1)).astype(jnp.float32)

    def basic(x, w, stride):
        y = jax.lax.conv_general_dilated(
            x, w, window_strides=(stride, stride), padding=((1, 1), (1, 1)),
            dimension_numbers=("NHWC", "HWIO", "NHWC"))
        mean = jnp.mean(y, axis=(0, 1, 2), keepdims=True)
        var = jnp.mean(jnp.square(y - mean), axis=(0, 1, 2), keepdims=True)
        return jnp.maximum((y - mean) * jax.lax.rsqrt(var + BN_EPS), 0.0)

    def seq(x, layers):
        for w, s in layers:
            x = basic(x, w, s)
        return x

    x1 = seq(x, params["conv1"])
    x2 = seq(x1, params["conv"][0])
    x3 = seq(x2, params["conv"][1])
    x4 = seq(x3, params["conv"][2])
    x5 = seq(x4, params["conv"][3])
    if not training:
        return [x1, x2, x3, x4, x5]

    split = x.shape[0] // 2
    xs = [t[:split] for t in (x1, x2, x3, x4, x5)]
    x1, x2, x3, x4, x5 = (t[split:] for t in (x1, x2, x3, x4, x5))

    def up(src, dst, w):
        return basic(_bilinear_align_corners(src, dst.shape[1], dst.shape[2]), w, 1)

    x4 = seq(jnp.concatenate([x4, up(x5, x4, params["conv_upsample"][0])], -1),
             params["conv_cat"][0])
    x3 = seq(jnp.concatenate([x3, up(x4, x3, params["conv_upsample"][1])], -1),
             params["conv_cat"][1])
    x2 = seq(jnp.concatenate([x2, up(x3, x2, params["conv_upsample"][2])], -1),
             params["conv_cat"][2])
    x1 = seq(jnp.concatenate([x1, up(x2, x1, params["conv_upsample"][3])], -1),
             params["conv_cat"][3])

    p = basic(x1, params["pred_conv"], 1)
    pred = jnp.einsum("bhwc,co->bhwo", p, params["pred_w"]) + params["pred_b"][0, 0]
    return xs, pred


# ================================================================================== main
if __name__ == "__main__":
    key = jax.random.PRNGKey(0)
    k_param, k_x = jax.random.split(key)

    channel = 8
    batch, height, width = 2, 32, 32           # PyTorch input: (B, 1, H, W) NCHW
    params = init_params(k_param, channel)
    plan = build_plan(params, batch, height, width, channel, training=True)
    x = jax.random.normal(k_x, (batch, 1, height, width), dtype=jnp.float32)

    fwd = jax.jit(functools.partial(encoder_decoder_forward, plan=plan))
    xs, pred = fwd(x)
    jax.block_until_ready((xs, pred))

    # shape sanity (training branch: first-half encoder features + prediction map)
    assert [t.shape for t in xs] == [(1, 16, 16, channel), (1, 8, 8, channel),
                                     (1, 4, 4, channel), (1, 2, 2, channel),
                                     (1, 1, 1, channel)]
    assert pred.shape == (1, 16, 16, 1)

    # numerical sanity vs. a pure-JAX reference of the PyTorch forward
    xs_ref, pred_ref = reference_forward(x, params, training=True)
    for got, want in zip(list(xs) + [pred], list(xs_ref) + [pred_ref]):
        err = float(jnp.max(jnp.abs(got - want)))
        scale = float(jnp.max(jnp.abs(want))) + 1e-6
        assert err <= 0.1 * scale, (err, scale)

    print("KERNEL_OK")
</pallas_src>

<mosaic_0001>
module attributes {stable_mosaic.version = 11 : i64} {
  func.func @kernel(%arg0: memref<64x32xf32, #tpu.memory_space<vmem>>, %arg1: memref<5496x128xf32, #tpu.memory_space<vmem>>, %arg2: memref<64x128xf32, #tpu.memory_space<vmem>>) attributes {dimension_semantics = [], scalar_prefetch = 0 : i64, scratch_operands = 0 : i64, tpu.core_type = #tpu.core_type<tc>} {
    %cst = arith.constant 0.000000e+00 : f32
    %0 = vector.broadcast %cst : f32 to vector<64x128xf32>
    %c0 = arith.constant 0 : index
    %c0_0 = arith.constant 0 : index
    %1 = vector.load %arg2[%c0, %c0_0] : memref<64x128xf32, #tpu.memory_space<vmem>>, vector<64x128xf32>
    tpu.vector_store %arg2[%c0, %c0_0], %0 {strides = array<i32>} : memref<64x128xf32, #tpu.memory_space<vmem>>, vector<64x128xf32>,
    %c0_1 = arith.constant 0 : index
    %c0_2 = arith.constant 0 : index
    %2 = vector.load %arg0[%c0_1, %c0_2] : memref<64x32xf32, #tpu.memory_space<vmem>>, vector<64x32xf32>
    %c0_3 = arith.constant 0 : index
    %c0_4 = arith.constant 0 : index
    %3 = vector.load %arg1[%c0_3, %c0_4] : memref<5496x128xf32, #tpu.memory_space<vmem>>, vector<32x64xf32>
    %cst_5 = arith.constant dense<0.000000e+00> : vector<32x32xf32>
    %4 = tpu.matmul %3, %2, %cst_5 {dimension_numbers = #tpu.dot_dimension_numbers<[1], [0], [0], [1], [0, 0, 1, 1], [], []>} : vector<32x64xf32>, vector<64x32xf32>, vector<32x32xf32> -> vector<32x32xf32>
    %c32 = arith.constant 32 : index
    %c0_6 = arith.constant 0 : index
    %5 = vector.load %arg1[%c32, %c0_6] : memref<5496x128xf32, #tpu.memory_space<vmem>>, vector<32x64xf32>
    %cst_7 = arith.constant dense<0.000000e+00> : vector<32x32xf32>
    %6 = tpu.matmul %5, %2, %cst_7 {dimension_numbers = #tpu.dot_dimension_numbers<[1], [0], [0], [1], [0, 0, 1, 1], [], []>} : vector<32x64xf32>, vector<64x32xf32>, vector<32x32xf32> -> vector<32x32xf32>
    %c64 = arith.constant 64 : index
    %c0_8 = arith.constant 0 : index
    %7 = vector.load %arg1[%c64, %c0_8] : memref<5496x128xf32, #tpu.memory_space<vmem>>, vector<32x64xf32>
    %cst_9 = arith.constant dense<0.000000e+00> : vector<32x32xf32>
    %8 = tpu.matmul %7, %2, %cst_9 {dimension_numbers = #tpu.dot_dimension_numbers<[1], [0], [0], [1], [0, 0, 1, 1], [], []>} : vector<32x64xf32>, vector<64x32xf32>, vector<32x32xf32> -> vector<32x32xf32>
    %c96 = arith.constant 96 : index
    %c0_10 = arith.constant 0 : index
    %9 = vector.load %arg1[%c96, %c0_10] : memref<5496x128xf32, #tpu.memory_space<vmem>>, vector<32x128xf32>
    %cst_11 = arith.constant dense<0.000000e+00> : vector<32x128xf32>
    %10 = tpu.matmul %4, %9, %cst_11 {dimension_numbers = #tpu.dot_dimension_numbers<[1], [0], [0], [1], [0, 0, 1, 1], [], []>} : vector<32x32xf32>, vector<32x128xf32>, vector<32x128xf32> -> vector<32x128xf32>
    %c128 = arith.constant 128 : index
    %c0_12 = arith.constant 0 : index
    %11 = vector.load %arg1[%c128, %c0_12] : memref<5496x128xf32, #tpu.memory_space<vmem>>, vector<32x128xf32>
    %cst_13 = arith.constant dense<0.000000e+00> : vector<32x128xf32>
    %12 = tpu.matmul %6, %11, %cst_13 {dimension_numbers = #tpu.dot_dimension_numbers<[1], [0], [0], [1], [0, 0, 1, 1], [], []>} : vector<32x32xf32>, vector<32x128xf32>, vector<32x128xf32> -> vector<32x128xf32>
    %13 = arith.addf %10, %12 : vector<32x128xf32>
    %c160 = arith.constant 160 : index
    %c0_14 = arith.constant 0 : index
    %14 = vector.load %arg1[%c160, %c0_14] : memref<5496x128xf32, #tpu.memory_space<vmem>>, vector<32x128xf32>
    %cst_15 = arith.constant dense<0.000000e+00> : vector<32x128xf32>
    %15 = tpu.matmul %8, %14, %cst_15 {dimension_numbers = #tpu.dot_dimension_numbers<[1], [0], [0], [1], [0, 0, 1, 1], [], []>} : vector<32x32xf32>, vector<32x128xf32>, vector<32x128xf32> -> vector<32x128xf32>
    %16 = arith.addf %13, %15 : vector<32x128xf32>
    %cst_16 = arith.constant dense<0.000000e+00> : vector<128xf32>
    %17 = vector.multi_reduction <add>, %16, %cst_16 [0] : vector<32x128xf32> to vector<128xf32>
    %18 = vector.shape_cast %17 : vector<128xf32> to vector<1x128xf32>
    %19 = arith.mulf %16, %16 : vector<32x128xf32>
    %cst_17 = arith.constant dense<0.000000e+00> : vector<128xf32>
    %20 = vector.multi_reduction <add>, %19, %cst_17 [0] : vector<32x128xf32> to vector<128xf32>
    %21 = vector.shape_cast %20 : vector<128xf32> to vector<1x128xf32>
    %c192 = arith.constant 192 : index
    %c0_18 = arith.constant 0 : index
    %22 = vector.load %arg1[%c192, %c0_18] : memref<5496x128xf32, #tpu.memory_space<vmem>>, vector<128x8xf32>
    %cst_19 = arith.constant dense<0.000000e+00> : vector<1x8xf32>
    %23 = tpu.matmul %18, %22, %cst_19 {dimension_numbers = #tpu.dot_dimension_numbers<[1], [0], [0], [1], [0, 0, 1, 1], [], []>} : vector<1x128xf32>, vector<128x8xf32>, vector<1x8xf32> -> vector<1x8xf32>
    %c192_20 = arith.constant 192 : index
    %c0_21 = arith.constant 0 : index
    %24 = vector.load %arg1[%c192_20, %c0_21] : memref<5496x128xf32, #tpu.memory_space<vmem>>, vector<128x8xf32>
    %cst_22 = arith.constant dense<0.000000e+00> : vector<1x8xf32>
    %25 = tpu.matmul %21, %24, %cst_22 {dimension_numbers = #tpu.dot_dimension_numbers<[1], [0], [0], [1], [0, 0, 1, 1], [], []>} : vector<1x128xf32>, vector<128x8xf32>, vector<1x8xf32> -> vector<1x8xf32>
    %cst_23 = arith.constant 0.001953125 : f32
    %26 = vector.broadcast %cst_23 : f32 to vector<1x8xf32>
    %27 = arith.mulf %23, %26 : vector<1x8xf32>
    %cst_24 = arith.constant 0.001953125 : f32
    %28 = vector.broadcast %cst_24 : f32 to vector<1x8xf32>
    %29 = arith.mulf %25, %28 : vector<1x8xf32>
    %30 = arith.mulf %27, %27 : vector<1x8xf32>
    %31 = arith.subf %29, %30 : vector<1x8xf32>
    %cst_25 = arith.constant 9.99999974E-6 : f32
    %32 = vector.broadcast %cst_25 : f32 to vector<1x8xf32>
    %33 = arith.addf %31, %32 : vector<1x8xf32>
    %34 = math.rsqrt %33 : vector<1x8xf32>
    %c320 = arith.constant 320 : index
    %c0_26 = arith.constant 0 : index
    %35 = vector.load %arg1[%c320, %c0_26] : memref<5496x128xf32, #tpu.memory_space<vmem>>, vector<8x128xf32>
    %cst_27 = arith.constant dense<0.000000e+00> : vector<1x128xf32>
    %36 = tpu.matmul %27, %35, %cst_27 {dimension_numbers = #tpu.dot_dimension_numbers<[1], [0], [0], [1], [0, 0, 1, 1], [], []>} : vector<1x8xf32>, vector<8x128xf32>, vector<1x128xf32> -> vector<1x128xf32>
    %c320_28 = arith.constant 320 : index
    %c0_29 = arith.constant 0 : index
    %37 = vector.load %arg1[%c320_28, %c0_29] : memref<5496x128xf32, #tpu.memory_space<vmem>>, vector<8x128xf32>
    %cst_30 = arith.constant dense<0.000000e+00> : vector<1x128xf32>
    %38 = tpu.matmul %34, %37, %cst_30 {dimension_numbers = #tpu.dot_dimension_numbers<[1], [0], [0], [1], [0, 0, 1, 1], [], []>} : vector<1x8xf32>, vector<8x128xf32>, vector<1x128xf32> -> vector<1x128xf32>
    %39 = vector.broadcast %36 : vector<1x128xf32> to vector<32x128xf32>
    %40 = arith.subf %16, %39 : vector<32x128xf32>
    %41 = vector.broadcast %38 : vector<1x128xf32> to vector<32x128xf32>
    %42 = arith.mulf %40, %41 : vector<32x128xf32>
    %cst_31 = arith.constant 0.000000e+00 : f32
    %43 = vector.broadcast %cst_31 : f32 to vector<32x128xf32>
    %44 = arith.maximumf %42, %43 : vector<32x128xf32>
    %c328 = arith.constant 328 : index
    %c0_32 = arith.constant 0 : index
    %45 = vector.load %arg1[%c328, %c0_32] : memref<5496x128xf32, #tpu.memory_space<vmem>>, vector<32x32xf32>
    %cst_33 = arith.constant dense<0.000000e+00> : vector<32x128xf32>
    %46 = tpu.matmul %45, %44, %cst_33 {dimension_numbers = #tpu.dot_dimension_numbers<[1], [0], [0], [1], [0, 0, 1, 1], [], []>} : vector<32x32xf32>, vector<32x128xf32>, vector<32x128xf32> -> vector<32x128xf32>
    %c360 = arith.constant 360 : index
    %c0_34 = arith.constant 0 : index
    %47 = vector.load %arg1[%c360, %c0_34] : memref<5496x128xf32, #tpu.memory_space<vmem>>, vector<32x32xf32>
    %cst_35 = arith.constant dense<0.000000e+00> : vector<32x128xf32>
    %48 = tpu.matmul %47, %44, %cst_35 {dimension_numbers = #tpu.dot_dimension_numbers<[1], [0], [0], [1], [0, 0, 1, 1], [], []>} : vector<32x32xf32>, vector<32x128xf32>, vector<32x128xf32> -> vector<32x128xf32>
    %49 = tpu.concatenate %46, %44, %48 in 1 : vector<32x128xf32>, vector<32x128xf32>, vector<32x128xf32> -> vector<32x384xf32>
    %c392 = arith.constant 392 : index
    %c0_36 = arith.constant 0 : index
    %50 = vector.load %arg1[%c392, %c0_36] : memref<5496x128xf32, #tpu.memory_space<vmem>>, vector<384x128xf32>
    %cst_37 = arith.constant dense<0.000000e+00> : vector<32x128xf32>
    %51 = tpu.matmul %49, %50, %cst_37 {dimension_numbers = #tpu.dot_dimension_numbers<[1], [0], [0], [1], [0, 0, 1, 1], [], []>} : vector<32x384xf32>, vector<384x128xf32>, vector<32x128xf32> -> vector<32x128xf32>
    %cst_38 = arith.constant dense<0.000000e+00> : vector<128xf32>
    %52 = vector.multi_reduction <add>, %51, %cst_38 [0] : vector<32x128xf32> to vector<128xf32>
    %53 = vector.shape_cast %52 : vector<128xf32> to vector<1x128xf32>
    %54 = arith.mulf %51, %51 : vector<32x128xf32>
    %cst_39 = arith.constant dense<0.000000e+00> : vector<128xf32>
    %55 = vector.multi_reduction <add>, %54, %cst_39 [0] : vector<32x128xf32> to vector<128xf32>
    %56 = vector.shape_cast %55 : vector<128xf32> to vector<1x128xf32>
    %c192_40 = arith.constant 192 : index
    %c0_41 = arith.constant 0 : index
    %57 = vector.load %arg1[%c192_40, %c0_41] : memref<5496x128xf32, #tpu.memory_space<vmem>>, vector<128x8xf32>
    %cst_42 = arith.constant dense<0.000000e+00> : vector<1x8xf32>
    %58 = tpu.matmul %53, %57, %cst_42 {dimension_numbers = #tpu.dot_dimension_numbers<[1], [0], [0], [1], [0, 0, 1, 1], [], []>} : vector<1x128xf32>, vector<128x8xf32>, vector<1x8xf32> -> vector<1x8xf32>
    %c192_43 = arith.constant 192 : index
    %c0_44 = arith.constant 0 : index
    %59 = vector.load %arg1[%c192_43, %c0_44] : memref<5496x128xf32, #tpu.memory_space<vmem>>, vector<128x8xf32>
    %cst_45 = arith.constant dense<0.000000e+00> : vector<1x8xf32>
    %60 = tpu.matmul %56, %59, %cst_45 {dimension_numbers = #tpu.dot_dimension_numbers<[1], [0], [0], [1], [0, 0, 1, 1], [], []>} : vector<1x128xf32>, vector<128x8xf32>, vector<1x8xf32> -> vector<1x8xf32>
    %cst_46 = arith.constant 0.001953125 : f32
    %61 = vector.broadcast %cst_46 : f32 to vector<1x8xf32>
    %62 = arith.mulf %58, %61 : vector<1x8xf32>
    %cst_47 = arith.constant 0.001953125 : f32
    %63 = vector.broadcast %cst_47 : f32 to vector<1x8xf32>
    %64 = arith.mulf %60, %63 : vector<1x8xf32>
    %65 = arith.mulf %62, %62 : vector<1x8xf32>
    %66 = arith.subf %64, %65 : vector<1x8xf32>
    %cst_48 = arith.constant 9.99999974E-6 : f32
    %67 = vector.broadcast %cst_48 : f32 to vector<1x8xf32>
    %68 = arith.addf %66, %67 : vector<1x8xf32>
    %69 = math.rsqrt %68 : vector<1x8xf32>
    %c320_49 = arith.constant 320 : index
    %c0_50 = arith.constant 0 : index
    %70 = vector.load %arg1[%c320_49, %c0_50] : memref<5496x128xf32, #tpu.memory_space<vmem>>, vector<8x128xf32>
    %cst_51 = arith.constant dense<0.000000e+00> : vector<1x128xf32>
    %71 = tpu.matmul %62, %70, %cst_51 {dimension_numbers = #tpu.dot_dimension_numbers<[1], [0], [0], [1], [0, 0, 1, 1], [], []>} : vector<1x8xf32>, vector<8x128xf32>, vector<1x128xf32> -> vector<1x128xf32>
    %c320_52 = arith.constant 320 : index
    %c0_53 = arith.constant 0 : index
    %72 = vector.load %arg1[%c320_52, %c0_53] : memref<5496x128xf32, #tpu.memory_space<vmem>>, vector<8x128xf32>
    %cst_54 = arith.constant dense<0.000000e+00> : vector<1x128xf32>
    %73 = tpu.matmul %69, %72, %cst_54 {dimension_numbers = #tpu.dot_dimension_numbers<[1], [0], [0], [1], [0, 0, 1, 1], [], []>} : vector<1x8xf32>, vector<8x128xf32>, vector<1x128xf32> -> vector<1x128xf32>
    %74 = vector.broadcast %71 : vector<1x128xf32> to vector<32x128xf32>
    %75 = arith.subf %51, %74 : vector<32x128xf32>
    %76 = vector.broadcast %73 : vector<1x128xf32> to vector<32x128xf32>
    %77 = arith.mulf %75, %76 : vector<32x128xf32>
    %cst_55 = arith.constant 0.000000e+00 : f32
    %78 = vector.broadcast %cst_55 : f32 to vector<32x128xf32>
    %79 = arith.maximumf %77, %78 : vector<32x128xf32>
    %80 = vector.extract_strided_slice %79 {offsets = [0, 0], sizes = [16, 128], strides = [1, 1]} : vector<32x128xf32> to vector<16x128xf32>
    %c0_56 = arith.constant 0 : index
    %c0_57 = arith.constant 0 : index
    %81 = vector.load %arg2[%c0_56, %c0_57] : memref<64x128xf32, #tpu.memory_space<vmem>>, vector<16x128xf32>
    tpu.vector_store %arg2[%c0_56, %c0_57], %80 {strides = array<i32>} : memref<64x128xf32, #tpu.memory_space<vmem>>, vector<16x128xf32>,
    %c776 = arith.constant 776 : index
    %c0_58 = arith.constant 0 : index
    %82 = vector.load %arg1[%c776, %c0_58] : memref<5496x128xf32, #tpu.memory_space<vmem>>, vector<16x32xf32>
    %cst_59 = arith.constant dense<0.000000e+00> : vector<16x128xf32>
    %83 = tpu.matmul %82, %79, %cst_59 {dimension_numbers = #tpu.dot_dimension_numbers<[1], [0], [0], [1], [0, 0, 1, 1], [], []>} : vector<16x32xf32>, vector<32x128xf32>, vector<16x128xf32> -> vector<16x128xf32>
    %c792 = arith.constant 792 : index
    %c0_60 = arith.constant 0 : index
    %84 = vector.load %arg1[%c792, %c0_60] : memref<5496x128xf32, #tpu.memory_space<vmem>>, vector<16x32xf32>
    %cst_61 = arith.constant dense<0.000000e+00> : vector<16x128xf32>
    %85 = tpu.matmul %84, %79, %cst_61 {dimension_numbers = #tpu.dot_dimension_numbers<[1], [0], [0], [1], [0, 0, 1, 1], [], []>} : vector<16x32xf32>, vector<32x128xf32>, vector<16x128xf32> -> vector<16x128xf32>
    %c808 = arith.constant 808 : index
    %c0_62 = arith.constant 0 : index
    %86 = vector.load %arg1[%c808, %c0_62] : memref<5496x128xf32, #tpu.memory_space<vmem>>, vector<16x32xf32>
    %cst_63 = arith.constant dense<0.000000e+00> : vector<16x128xf32>
    %87 = tpu.matmul %86, %79, %cst_63 {dimension_numbers = #tpu.dot_dimension_numbers<[1], [0], [0], [1], [0, 0, 1, 1], [], []>} : vector<16x32xf32>, vector<32x128xf32>, vector<16x128xf32> -> vector<16x128xf32>
    %88 = tpu.concatenate %83, %85, %87 in 1 : vector<16x128xf32>, vector<16x128xf32>, vector<16x128xf32> -> vector<16x384xf32>
    %c824 = arith.constant 824 : index
    %c0_64 = arith.constant 0 : index
    %89 = vector.load %arg1[%c824, %c0_64] : memref<5496x128xf32, #tpu.memory_space<vmem>>, vector<384x64xf32>
    %cst_65 = arith.constant dense<0.000000e+00> : vector<16x64xf32>
    %90 = tpu.matmul %88, %89, %cst_65 {dimension_numbers = #tpu.dot_dimension_numbers<[1], [0], [0], [1], [0, 0, 1, 1], [], []>} : vector<16x384xf32>, vector<384x64xf32>, vector<16x64xf32> -> vector<16x64xf32>
    %cst_66 = arith.constant dense<0.000000e+00> : vector<64xf32>
    %91 = vector.multi_reduction <add>, %90, %cst_66 [0] : vector<16x64xf32> to vector<64xf32>
    %92 = vector.shape_cast %91 : vector<64xf32> to vector<1x64xf32>
    %93 = arith.mulf %90, %90 : vector<16x64xf32>
    %cst_67 = arith.constant dense<0.000000e+00> : vector<64xf32>
    %94 = vector.multi_reduction <add>, %93, %cst_67 [0] : vector<16x64xf32> to vector<64xf32>
    %95 = vector.shape_cast %94 : vector<64xf32> to vector<1x64xf32>
    %c1208 = arith.constant 1208 : index
    %c0_68 = arith.constant 0 : index
    %96 = vector.load %arg1[%c1208, %c0_68] : memref<5496x128xf32, #tpu.memory_space<vmem>>, vector<64x8xf32>
    %cst_69 = arith.constant dense<0.000000e+00> : vector<1x8xf32>
    %97 = tpu.matmul %92, %96, %cst_69 {dimension_numbers = #tpu.dot_dimension_numbers<[1], [0], [0], [1], [0, 0, 1, 1], [], []>} : vector<1x64xf32>, vector<64x8xf32>, vector<1x8xf32> -> vector<1x8xf32>
    %c1208_70 = arith.constant 1208 : index
    %c0_71 = arith.constant 0 : index
    %98 = vector.load %arg1[%c1208_70, %c0_71] : memref<5496x128xf32, #tpu.memory_space<vmem>>, vector<64x8xf32>
    %cst_72 = arith.constant dense<0.000000e+00> : vector<1x8xf32>
    %99 = tpu.matmul %95, %98, %cst_72 {dimension_numbers = #tpu.dot_dimension_numbers<[1], [0], [0], [1], [0, 0, 1, 1], [], []>} : vector<1x64xf32>, vector<64x8xf32>, vector<1x8xf32> -> vector<1x8xf32>
    %cst_73 = arith.constant 7.812500e-03 : f32
    %100 = vector.broadcast %cst_73 : f32 to vector<1x8xf32>
    %101 = arith.mulf %97, %100 : vector<1x8xf32>
    %cst_74 = arith.constant 7.812500e-03 : f32
    %102 = vector.broadcast %cst_74 : f32 to vector<1x8xf32>
    %103 = arith.mulf %99, %102 : vector<1x8xf32>
    %104 = arith.mulf %101, %101 : vector<1x8xf32>
    %105 = arith.subf %103, %104 : vector<1x8xf32>
    %cst_75 = arith.constant 9.99999974E-6 : f32
    %106 = vector.broadcast %cst_75 : f32 to vector<1x8xf32>
    %107 = arith.addf %105, %106 : vector<1x8xf32>
    %108 = math.rsqrt %107 : vector<1x8xf32>
    %c1272 = arith.constant 1272 : index
    %c0_76 = arith.constant 0 : index
    %109 = vector.load %arg1[%c1272, %c0_76] : memref<5496x128xf32, #tpu.memory_space<vmem>>, vector<8x64xf32>
    %cst_77 = arith.constant dense<0.000000e+00> : vector<1x64xf32>
    %110 = tpu.matmul %101, %109, %cst_77 {dimension_numbers = #tpu.dot_dimension_numbers<[1], [0], [0], [1], [0, 0, 1, 1], [], []>} : vector<1x8xf32>, vector<8x64xf32>, vector<1x64xf32> -> vector<1x64xf32>
    %c1272_78 = arith.constant 1272 : index
    %c0_79 = arith.constant 0 : index
    %111 = vector.load %arg1[%c1272_78, %c0_79] : memref<5496x128xf32, #tpu.memory_space<vmem>>, vector<8x64xf32>
    %cst_80 = arith.constant dense<0.000000e+00> : vector<1x64xf32>
    %112 = tpu.matmul %108, %111, %cst_80 {dimension_numbers = #tpu.dot_dimension_numbers<[1], [0], [0], [1], [0, 0, 1, 1], [], []>} : vector<1x8xf32>, vector<8x64xf32>, vector<1x64xf32> -> vector<1x64xf32>
    %113 = vector.broadcast %110 : vector<1x64xf32> to vector<16x64xf32>
    %114 = arith.subf %90, %113 : vector<16x64xf32>
    %115 = vector.broadcast %112 : vector<1x64xf32> to vector<16x64xf32>
    %116 = arith.mulf %114, %115 : vector<16x64xf32>
    %cst_81 = arith.constant 0.000000e+00 : f32
    %117 = vector.broadcast %cst_81 : f32 to vector<16x64xf32>
    %118 = arith.maximumf %116, %117 : vector<16x64xf32>
    %c1280 = arith.constant 1280 : index
    %c0_82 = arith.constant 0 : index
    %119 = vector.load %arg1[%c1280, %c0_82] : memref<5496x128xf32, #tpu.memory_space<vmem>>, vector<16x16xf32>
    %cst_83 = arith.constant dense<0.000000e+00> : vector<16x64xf32>
    %120 = tpu.matmul %119, %118, %cst_83 {dimension_numbers = #tpu.dot_dimension_numbers<[1], [0], [0], [1], [0, 0, 1, 1], [], []>} : vector<16x16xf32>, vector<16x64xf32>, vector<16x64xf32> -> vector<16x64xf32>
    %c1296 = arith.constant 1296 : index
    %c0_84 = arith.constant 0 : index
    %121 = vector.load %arg1[%c1296, %c0_84] : memref<5496x128xf32, #tpu.memory_space<vmem>>, vector<16x16xf32>
    %cst_85 = arith.constant dense<0.000000e+00> : vector<16x64xf32>
    %122 = tpu.matmul %121, %118, %cst_85 {dimension_numbers = #tpu.dot_dimension_numbers<[1], [0], [0], [1], [0, 0, 1, 1], [], []>} : vector<16x16xf32>, vector<16x64xf32>, vector<16x64xf32> -> vector<16x64xf32>
    %c1312 = arith.constant 1312 : index
    %c0_86 = arith.constant 0 : index
    %123 = vector.load %arg1[%c1312, %c0_86] : memref<5496x128xf32, #tpu.memory_space<vmem>>, vector<64x64xf32>
    %cst_87 = arith.constant dense<0.000000e+00> : vector<16x64xf32>
    %124 = tpu.matmul %120, %123, %cst_87 {dimension_numbers = #tpu.dot_dimension_numbers<[1], [0], [0], [1], [0, 0, 1, 1], [], []>} : vector<16x64xf32>, vector<64x64xf32>, vector<16x64xf32> -> vector<16x64xf32>
    %c1376 = arith.constant 1376 : index
    %c0_88 = arith.constant 0 : index
    %125 = vector.load %arg1[%c1376, %c0_88] : memref<5496x128xf32, #tpu.memory_space<vmem>>, vector<64x64xf32>
    %cst_89 = arith.constant dense<0.000000e+00> : vector<16x64xf32>
    %126 = tpu.matmul %118, %125, %cst_89 {dimension_numbers = #tpu.dot_dimension_numbers<[1], [0], [0], [1], [0, 0, 1, 1], [], []>} : vector<16x64xf32>, vector<64x64xf32>, vector<16x64xf32> -> vector<16x64xf32>
    %127 = arith.addf %124, %126 : vector<16x64xf32>
    %c1440 = arith.constant 1440 : index
    %c0_90 = arith.constant 0 : index
    %128 = vector.load %arg1[%c1440, %c0_90] : memref<5496x128xf32, #tpu.memory_space<vmem>>, vector<64x64xf32>
    %cst_91 = arith.constant dense<0.000000e+00> : vector<16x64xf32>
    %129 = tpu.matmul %122, %128, %cst_91 {dimension_numbers = #tpu.dot_dimension_numbers<[1], [0], [0], [1], [0, 0, 1, 1], [], []>} : vector<16x64xf32>, vector<64x64xf32>, vector<16x64xf32> -> vector<16x64xf32>
    %130 = arith.addf %127, %129 : vector<16x64xf32>
    %cst_92 = arith.constant dense<0.000000e+00> : vector<64xf32>
    %131 = vector.multi_reduction <add>, %130, %cst_92 [0] : vector<16x64xf32> to vector<64xf32>
    %132 = vector.shape_cast %131 : vector<64xf32> to vector<1x64xf32>
    %133 = arith.mulf %130, %130 : vector<16x64xf32>
    %cst_93 = arith.constant dense<0.000000e+00> : vector<64xf32>
    %134 = vector.multi_reduction <add>, %133, %cst_93 [0] : vector<16x64xf32> to vector<64xf32>
    %135 = vector.shape_cast %134 : vector<64xf32> to vector<1x64xf32>
    %c1208_94 = arith.constant 1208 : index
    %c0_95 = arith.constant 0 : index
    %136 = vector.load %arg1[%c1208_94, %c0_95] : memref<5496x128xf32, #tpu.memory_space<vmem>>, vector<64x8xf32>
    %cst_96 = arith.constant dense<0.000000e+00> : vector<1x8xf32>
    %137 = tpu.matmul %132, %136, %cst_96 {dimension_numbers = #tpu.dot_dimension_numbers<[1], [0], [0], [1], [0, 0, 1, 1], [], []>} : vector<1x64xf32>, vector<64x8xf32>, vector<1x8xf32> -> vector<1x8xf32>
    %c1208_97 = arith.constant 1208 : index
    %c0_98 = arith.constant 0 : index
    %138 = vector.load %arg1[%c1208_97, %c0_98] : memref<5496x128xf32, #tpu.memory_space<vmem>>, vector<64x8xf32>
    %cst_99 = arith.constant dense<0.000000e+00> : vector<1x8xf32>
    %139 = tpu.matmul %135, %138, %cst_99 {dimension_numbers = #tpu.dot_dimension_numbers<[1], [0], [0], [1], [0, 0, 1, 1], [], []>} : vector<1x64xf32>, vector<64x8xf32>, vector<1x8xf32> -> vector<1x8xf32>
    %cst_100 = arith.constant 7.812500e-03 : f32
    %140 = vector.broadcast %cst_100 : f32 to vector<1x8xf32>
    %141 = arith.mulf %137, %140 : vector<1x8xf32>
    %cst_101 = arith.constant 7.812500e-03 : f32
    %142 = vector.broadcast %cst_101 : f32 to vector<1x8xf32>
    %143 = arith.mulf %139, %142 : vector<1x8xf32>
    %144 = arith.mulf %141, %141 : vector<1x8xf32>
    %145 = arith.subf %143, %144 : vector<1x8xf32>
    %cst_102 = arith.constant 9.99999974E-6 : f32
    %146 = vector.broadcast %cst_102 : f32 to vector<1x8xf32>
    %147 = arith.addf %145, %146 : vector<1x8xf32>
    %148 = math.rsqrt %147 : vector<1x8xf32>
    %c1272_103 = arith.constant 1272 : index
    %c0_104 = arith.constant 0 : index
    %149 = vector.load %arg1[%c1272_103, %c0_104] : memref<5496x128xf32, #tpu.memory_space<vmem>>, vector<8x64xf32>
    %cst_105 = arith.constant dense<0.000000e+00> : vector<1x64xf32>
    %150 = tpu.matmul %141, %149, %cst_105 {dimension_numbers = #tpu.dot_dimension_numbers<[1], [0], [0], [1], [0, 0, 1, 1], [], []>} : vector<1x8xf32>, vector<8x64xf32>, vector<1x64xf32> -> vector<1x64xf32>
    %c1272_106 = arith.constant 1272 : index
    %c0_107 = arith.constant 0 : index
    %151 = vector.load %arg1[%c1272_106, %c0_107] : memref<5496x128xf32, #tpu.memory_space<vmem>>, vector<8x64xf32>
    %cst_108 = arith.constant dense<0.000000e+00> : vector<1x64xf32>
    %152 = tpu.matmul %148, %151, %cst_108 {dimension_numbers = #tpu.dot_dimension_numbers<[1], [0], [0], [1], [0, 0, 1, 1], [], []>} : vector<1x8xf32>, vector<8x64xf32>, vector<1x64xf32> -> vector<1x64xf32>
    %153 = vector.broadcast %150 : vector<1x64xf32> to vector<16x64xf32>
    %154 = arith.subf %130, %153 : vector<16x64xf32>
    %155 = vector.broadcast %152 : vector<1x64xf32> to vector<16x64xf32>
    %156 = arith.mulf %154, %155 : vector<16x64xf32>
    %cst_109 = arith.constant 0.000000e+00 : f32
    %157 = vector.broadcast %cst_109 : f32 to vector<16x64xf32>
    %158 = arith.maximumf %156, %157 : vector<16x64xf32>
    %159 = vector.extract_strided_slice %158 {offsets = [0, 0], sizes = [8, 64], strides = [1, 1]} : vector<16x64xf32> to vector<8x64xf32>
    %c16 = arith.constant 16 : index
    %c0_110 = arith.constant 0 : index
    %160 = vector.load %arg2[%c16, %c0_110] : memref<64x128xf32, #tpu.memory_space<vmem>>, vector<8x64xf32>
    tpu.vector_store %arg2[%c16, %c0_110], %159 {strides = array<i32>} : memref<64x128xf32, #tpu.memory_space<vmem>>, vector<8x64xf32>,
    %c1504 = arith.constant 1504 : index
    %c0_111 = arith.constant 0 : index
    %161 = vector.load %arg1[%c1504, %c0_111] : memref<5496x128xf32, #tpu.memory_space<vmem>>, vector<8x16xf32>
    %cst_112 = arith.constant dense<0.000000e+00> : vector<8x64xf32>
    %162 = tpu.matmul %161, %158, %cst_112 {dimension_numbers = #tpu.dot_dimension_numbers<[1], [0], [0], [1], [0, 0, 1, 1], [], []>} : vector<8x16xf32>, vector<16x64xf32>, vector<8x64xf32> -> vector<8x64xf32>
    %c1512 = arith.constant 1512 : index
    %c0_113 = arith.constant 0 : index
    %163 = vector.load %arg1[%c1512, %c0_113] : memref<5496x128xf32, #tpu.memory_space<vmem>>, vector<8x16xf32>
    %cst_114 = arith.constant dense<0.000000e+00> : vector<8x64xf32>
    %164 = tpu.matmul %163, %158, %cst_114 {dimension_numbers = #tpu.dot_dimension_numbers<[1], [0], [0], [1], [0, 0, 1, 1], [], []>} : vector<8x16xf32>, vector<16x64xf32>, vector<8x64xf32> -> vector<8x64xf32>
    %c1520 = arith.constant 1520 : index
    %c0_115 = arith.constant 0 : index
    %165 = vector.load %arg1[%c1520, %c0_115] : memref<5496x128xf32, #tpu.memory_space<vmem>>, vector<8x16xf32>
    %cst_116 = arith.constant dense<0.000000e+00> : vector<8x64xf32>
    %166 = tpu.matmul %165, %158, %cst_116 {dimension_numbers = #tpu.dot_dimension_numbers<[1], [0], [0], [1], [0, 0, 1, 1], [], []>} : vector<8x16xf32>, vector<16x64xf32>, vector<8x64xf32> -> vector<8x64xf32>
    %c1528 = arith.constant 1528 : index
    %c0_117 = arith.constant 0 : index
    %167 = vector.load %arg1[%c1528, %c0_117] : memref<5496x128xf32, #tpu.memory_space<vmem>>, vector<64x32xf32>
    %cst_118 = arith.constant dense<0.000000e+00> : vector<8x32xf32>
    %168 = tpu.matmul %162, %167, %cst_118 {dimension_numbers = #tpu.dot_dimension_numbers<[1], [0], [0], [1], [0, 0, 1, 1], [], []>} : vector<8x64xf32>, vector<64x32xf32>, vector<8x32xf32> -> vector<8x32xf32>
    %c1592 = arith.constant 1592 : index
    %c0_119 = arith.constant 0 : index
    %169 = vector.load %arg1[%c1592, %c0_119] : memref<5496x128xf32, #tpu.memory_space<vmem>>, vector<64x32xf32>
    %cst_120 = arith.constant dense<0.000000e+00> : vector<8x32xf32>
    %170 = tpu.matmul %164, %169, %cst_120 {dimension_numbers = #tpu.dot_dimension_numbers<[1], [0], [0], [1], [0, 0, 1, 1], [], []>} : vector<8x64xf32>, vector<64x32xf32>, vector<8x32xf32> -> vector<8x32xf32>
    %171 = arith.addf %168, %170 : vector<8x32xf32>
    %c1656 = arith.constant 1656 : index
    %c0_121 = arith.constant 0 : index
    %172 = vector.load %arg1[%c1656, %c0_121] : memref<5496x128xf32, #tpu.memory_space<vmem>>, vector<64x32xf32>
    %cst_122 = arith.constant dense<0.000000e+00> : vector<8x32xf32>
    %173 = tpu.matmul %166, %172, %cst_122 {dimension_numbers = #tpu.dot_dimension_numbers<[1], [0], [0], [1], [0, 0, 1, 1], [], []>} : vector<8x64xf32>, vector<64x32xf32>, vector<8x32xf32> -> vector<8x32xf32>
    %174 = arith.addf %171, %173 : vector<8x32xf32>
    %cst_123 = arith.constant dense<0.000000e+00> : vector<32xf32>
    %175 = vector.multi_reduction <add>, %174, %cst_123 [0] : vector<8x32xf32> to vector<32xf32>
    %176 = vector.shape_cast %175 : vector<32xf32> to vector<1x32xf32>
    %177 = arith.mulf %174, %174 : vector<8x32xf32>
    %cst_124 = arith.constant dense<0.000000e+00> : vector<32xf32>
    %178 = vector.multi_reduction <add>, %177, %cst_124 [0] : vector<8x32xf32> to vector<32xf32>
    %179 = vector.shape_cast %178 : vector<32xf32> to vector<1x32xf32>
    %c1720 = arith.constant 1720 : index
    %c0_125 = arith.constant 0 : index
    %180 = vector.load %arg1[%c1720, %c0_125] : memref<5496x128xf32, #tpu.memory_space<vmem>>, vector<32x8xf32>
    %cst_126 = arith.constant dense<0.000000e+00> : vector<1x8xf32>
    %181 = tpu.matmul %176, %180, %cst_126 {dimension_numbers = #tpu.dot_dimension_numbers<[1], [0], [0], [1], [0, 0, 1, 1], [], []>} : vector<1x32xf32>, vector<32x8xf32>, vector<1x8xf32> -> vector<1x8xf32>
    %c1720_127 = arith.constant 1720 : index
    %c0_128 = arith.constant 0 : index
    %182 = vector.load %arg1[%c1720_127, %c0_128] : memref<5496x128xf32, #tpu.memory_space<vmem>>, vector<32x8xf32>
    %cst_129 = arith.constant dense<0.000000e+00> : vector<1x8xf32>
    %183 = tpu.matmul %179, %182, %cst_129 {dimension_numbers = #tpu.dot_dimension_numbers<[1], [0], [0], [1], [0, 0, 1, 1], [], []>} : vector<1x32xf32>, vector<32x8xf32>, vector<1x8xf32> -> vector<1x8xf32>
    %cst_130 = arith.constant 3.125000e-02 : f32
    %184 = vector.broadcast %cst_130 : f32 to vector<1x8xf32>
    %185 = arith.mulf %181, %184 : vector<1x8xf32>
    %cst_131 = arith.constant 3.125000e-02 : f32
    %186 = vector.broadcast %cst_131 : f32 to vector<1x8xf32>
    %187 = arith.mulf %183, %186 : vector<1x8xf32>
    %188 = arith.mulf %185, %185 : vector<1x8xf32>
    %189 = arith.subf %187, %188 : vector<1x8xf32>
    %cst_132 = arith.constant 9.99999974E-6 : f32
    %190 = vector.broadcast %cst_132 : f32 to vector<1x8xf32>
    %191 = arith.addf %189, %190 : vector<1x8xf32>
    %192 = math.rsqrt %191 : vector<1x8xf32>
    %c1752 = arith.constant 1752 : index
    %c0_133 = arith.constant 0 : index
    %193 = vector.load %arg1[%c1752, %c0_133] : memref<5496x128xf32, #tpu.memory_space<vmem>>, vector<8x32xf32>
    %cst_134 = arith.constant dense<0.000000e+00> : vector<1x32xf32>
    %194 = tpu.matmul %185, %193, %cst_134 {dimension_numbers = #tpu.dot_dimension_numbers<[1], [0], [0], [1], [0, 0, 1, 1], [], []>} : vector<1x8xf32>, vector<8x32xf32>, vector<1x32xf32> -> vector<1x32xf32>
    %c1752_135 = arith.constant 1752 : index
    %c0_136 = arith.constant 0 : index
    %195 = vector.load %arg1[%c1752_135, %c0_136] : memref<5496x128xf32, #tpu.memory_space<vmem>>, vector<8x32xf32>
    %cst_137 = arith.constant dense<0.000000e+00> : vector<1x32xf32>
    %196 = tpu.matmul %192, %195, %cst_137 {dimension_numbers = #tpu.dot_dimension_numbers<[1], [0], [0], [1], [0, 0, 1, 1], [], []>} : vector<1x8xf32>, vector<8x32xf32>, vector<1x32xf32> -> vector<1x32xf32>
    %197 = vector.broadcast %194 : vector<1x32xf32> to vector<8x32xf32>
    %198 = arith.subf %174, %197 : vector<8x32xf32>
    %199 = vector.broadcast %196 : vector<1x32xf32> to vector<8x32xf32>
    %200 = arith.mulf %198, %199 : vector<8x32xf32>
    %cst_138 = arith.constant 0.000000e+00 : f32
    %201 = vector.broadcast %cst_138 : f32 to vector<8x32xf32>
    %202 = arith.maximumf %200, %201 : vector<8x32xf32>
    %c1760 = arith.constant 1760 : index
    %c0_139 = arith.constant 0 : index
    %203 = vector.load %arg1[%c1760, %c0_139] : memref<5496x128xf32, #tpu.memory_space<vmem>>, vector<8x8xf32>
    %cst_140 = arith.constant dense<0.000000e+00> : vector<8x32xf32>
    %204 = tpu.matmul %203, %202, %cst_140 {dimension_numbers = #tpu.dot_dimension_numbers<[1], [0], [0], [1], [0, 0, 1, 1], [], []>} : vector<8x8xf32>, vector<8x32xf32>, vector<8x32xf32> -> vector<8x32xf32>
    %c1768 = arith.constant 1768 : index
    %c0_141 = arith.constant 0 : index
    %205 = vector.load %arg1[%c1768, %c0_141] : memref<5496x128xf32, #tpu.memory_space<vmem>>, vector<8x8xf32>
    %cst_142 = arith.constant dense<0.000000e+00> : vector<8x32xf32>
    %206 = tpu.matmul %205, %202, %cst_142 {dimension_numbers = #tpu.dot_dimension_numbers<[1], [0], [0], [1], [0, 0, 1, 1], [], []>} : vector<8x8xf32>, vector<8x32xf32>, vector<8x32xf32> -> vector<8x32xf32>
    %c1776 = arith.constant 1776 : index
    %c0_143 = arith.constant 0 : index
    %207 = vector.load %arg1[%c1776, %c0_143] : memref<5496x128xf32, #tpu.memory_space<vmem>>, vector<32x32xf32>
    %cst_144 = arith.constant dense<0.000000e+00> : vector<8x32xf32>
    %208 = tpu.matmul %204, %207, %cst_144 {dimension_numbers = #tpu.dot_dimension_numbers<[1], [0], [0], [1], [0, 0, 1, 1], [], []>} : vector<8x32xf32>, vector<32x32xf32>, vector<8x32xf32> -> vector<8x32xf32>
    %c1808 = arith.constant 1808 : index
    %c0_145 = arith.constant 0 : index
    %209 = vector.load %arg1[%c1808, %c0_145] : memref<5496x128xf32, #tpu.memory_space<vmem>>, vector<32x32xf32>
    %cst_146 = arith.constant dense<0.000000e+00> : vector<8x32xf32>
    %210 = tpu.matmul %202, %209, %cst_146 {dimension_numbers = #tpu.dot_dimension_numbers<[1], [0], [0], [1], [0, 0, 1, 1], [], []>} : vector<8x32xf32>, vector<32x32xf32>, vector<8x32xf32> -> vector<8x32xf32>
    %211 = arith.addf %208, %210 : vector<8x32xf32>
    %c1840 = arith.constant 1840 : index
    %c0_147 = arith.constant 0 : index
    %212 = vector.load %arg1[%c1840, %c0_147] : memref<5496x128xf32, #tpu.memory_space<vmem>>, vector<32x32xf32>
    %cst_148 = arith.constant dense<0.000000e+00> : vector<8x32xf32>
    %213 = tpu.matmul %206, %212, %cst_148 {dimension_numbers = #tpu.dot_dimension_numbers<[1], [0], [0], [1], [0, 0, 1, 1], [], []>} : vector<8x32xf32>, vector<32x32xf32>, vector<8x32xf32> -> vector<8x32xf32>
    %214 = arith.addf %211, %213 : vector<8x32xf32>
    %cst_149 = arith.constant dense<0.000000e+00> : vector<32xf32>
    %215 = vector.multi_reduction <add>, %214, %cst_149 [0] : vector<8x32xf32> to vector<32xf32>
    %216 = vector.shape_cast %215 : vector<32xf32> to vector<1x32xf32>
    %217 = arith.mulf %214, %214 : vector<8x32xf32>
    %cst_150 = arith.constant dense<0.000000e+00> : vector<32xf32>
    %218 = vector.multi_reduction <add>, %217, %cst_150 [0] : vector<8x32xf32> to vector<32xf32>
    %219 = vector.shape_cast %218 : vector<32xf32> to vector<1x32xf32>
    %c1720_151 = arith.constant 1720 : index
    %c0_152 = arith.constant 0 : index
    %220 = vector.load %arg1[%c1720_151, %c0_152] : memref<5496x128xf32, #tpu.memory_space<vmem>>, vector<32x8xf32>
    %cst_153 = arith.constant dense<0.000000e+00> : vector<1x8xf32>
    %221 = tpu.matmul %216, %220, %cst_153 {dimension_numbers = #tpu.dot_dimension_numbers<[1], [0], [0], [1], [0, 0, 1, 1], [], []>} : vector<1x32xf32>, vector<32x8xf32>, vector<1x8xf32> -> vector<1x8xf32>
    %c1720_154 = arith.constant 1720 : index
    %c0_155 = arith.constant 0 : index
    %222 = vector.load %arg1[%c1720_154, %c0_155] : memref<5496x128xf32, #tpu.memory_space<vmem>>, vector<32x8xf32>
    %cst_156 = arith.constant dense<0.000000e+00> : vector<1x8xf32>
    %223 = tpu.matmul %219, %222, %cst_156 {dimension_numbers = #tpu.dot_dimension_numbers<[1], [0], [0], [1], [0, 0, 1, 1], [], []>} : vector<1x32xf32>, vector<32x8xf32>, vector<1x8xf32> -> vector<1x8xf32>
    %cst_157 = arith.constant 3.125000e-02 : f32
    %224 = vector.broadcast %cst_157 : f32 to vector<1x8xf32>
    %225 = arith.mulf %221, %224 : vector<1x8xf32>
    %cst_158 = arith.constant 3.125000e-02 : f32
    %226 = vector.broadcast %cst_158 : f32 to vector<1x8xf32>
    %227 = arith.mulf %223, %226 : vector<1x8xf32>
    %228 = arith.mulf %225, %225 : vector<1x8xf32>
    %229 = arith.subf %227, %228 : vector<1x8xf32>
    %cst_159 = arith.constant 9.99999974E-6 : f32
    %230 = vector.broadcast %cst_159 : f32 to vector<1x8xf32>
    %231 = arith.addf %229, %230 : vector<1x8xf32>
    %232 = math.rsqrt %231 : vector<1x8xf32>
    %c1752_160 = arith.constant 1752 : index
    %c0_161 = arith.constant 0 : index
    %233 = vector.load %arg1[%c1752_160, %c0_161] : memref<5496x128xf32, #tpu.memory_space<vmem>>, vector<8x32xf32>
    %cst_162 = arith.constant dense<0.000000e+00> : vector<1x32xf32>
    %234 = tpu.matmul %225, %233, %cst_162 {dimension_numbers = #tpu.dot_dimension_numbers<[1], [0], [0], [1], [0, 0, 1, 1], [], []>} : vector<1x8xf32>, vector<8x32xf32>, vector<1x32xf32> -> vector<1x32xf32>
    %c1752_163 = arith.constant 1752 : index
    %c0_164 = arith.constant 0 : index
    %235 = vector.load %arg1[%c1752_163, %c0_164] : memref<5496x128xf32, #tpu.memory_space<vmem>>, vector<8x32xf32>
    %cst_165 = arith.constant dense<0.000000e+00> : vector<1x32xf32>
    %236 = tpu.matmul %232, %235, %cst_165 {dimension_numbers = #tpu.dot_dimension_numbers<[1], [0], [0], [1], [0, 0, 1, 1], [], []>} : vector<1x8xf32>, vector<8x32xf32>, vector<1x32xf32> -> vector<1x32xf32>
    %237 = vector.broadcast %234 : vector<1x32xf32> to vector<8x32xf32>
    %238 = arith.subf %214, %237 : vector<8x32xf32>
    %239 = vector.broadcast %236 : vector<1x32xf32> to vector<8x32xf32>
    %240 = arith.mulf %238, %239 : vector<8x32xf32>
    %cst_166 = arith.constant 0.000000e+00 : f32
    %241 = vector.broadcast %cst_166 : f32 to vector<8x32xf32>
    %242 = arith.maximumf %240, %241 : vector<8x32xf32>
    %243 = vector.extract_strided_slice %242 {offsets = [0, 0], sizes = [4, 32], strides = [1, 1]} : vector<8x32xf32> to vector<4x32xf32>
    %c24 = arith.constant 24 : index
    %c0_167 = arith.constant 0 : index
    %244 = vector.load %arg2[%c24, %c0_167] : memref<64x128xf32, #tpu.memory_space<vmem>>, vector<4x32xf32>
    tpu.vector_store %arg2[%c24, %c0_167], %243 {strides = array<i32>} : memref<64x128xf32, #tpu.memory_space<vmem>>, vector<4x32xf32>,
    %c1872 = arith.constant 1872 : index
    %c0_168 = arith.constant 0 : index
    %245 = vector.load %arg1[%c1872, %c0_168] : memref<5496x128xf32, #tpu.memory_space<vmem>>, vector<4x8xf32>
    %cst_169 = arith.constant dense<0.000000e+00> : vector<4x32xf32>
    %246 = tpu.matmul %245, %242, %cst_169 {dimension_numbers = #tpu.dot_dimension_numbers<[1], [0], [0], [1], [0, 0, 1, 1], [], []>} : vector<4x8xf32>, vector<8x32xf32>, vector<4x32xf32> -> vector<4x32xf32>
    %c1880 = arith.constant 1880 : index
    %c0_170 = arith.constant 0 : index
    %247 = vector.load %arg1[%c1880, %c0_170] : memref<5496x128xf32, #tpu.memory_space<vmem>>, vector<4x8xf32>
    %cst_171 = arith.constant dense<0.000000e+00> : vector<4x32xf32>
    %248 = tpu.matmul %247, %242, %cst_171 {dimension_numbers = #tpu.dot_dimension_numbers<[1], [0], [0], [1], [0, 0, 1, 1], [], []>} : vector<4x8xf32>, vector<8x32xf32>, vector<4x32xf32> -> vector<4x32xf32>
    %c1888 = arith.constant 1888 : index
    %c0_172 = arith.constant 0 : index
    %249 = vector.load %arg1[%c1888, %c0_172] : memref<5496x128xf32, #tpu.memory_space<vmem>>, vector<4x8xf32>
    %cst_173 = arith.constant dense<0.000000e+00> : vector<4x32xf32>
    %250 = tpu.matmul %249, %242, %cst_173 {dimension_numbers = #tpu.dot_dimension_numbers<[1], [0], [0], [1], [0, 0, 1, 1], [], []>} : vector<4x8xf32>, vector<8x32xf32>, vector<4x32xf32> -> vector<4x32xf32>
    %c1896 = arith.constant 1896 : index
    %c0_174 = arith.constant 0 : index
    %251 = vector.load %arg1[%c1896, %c0_174] : memref<5496x128xf32, #tpu.memory_space<vmem>>, vector<32x16xf32>
    %cst_175 = arith.constant dense<0.000000e+00> : vector<4x16xf32>
    %252 = tpu.matmul %246, %251, %cst_175 {dimension_numbers = #tpu.dot_dimension_numbers<[1], [0], [0], [1], [0, 0, 1, 1], [], []>} : vector<4x32xf32>, vector<32x16xf32>, vector<4x16xf32> -> vector<4x16xf32>
    %c1928 = arith.constant 1928 : index
    %c0_176 = arith.constant 0 : index
    %253 = vector.load %arg1[%c1928, %c0_176] : memref<5496x128xf32, #tpu.memory_space<vmem>>, vector<32x16xf32>
    %cst_177 = arith.constant dense<0.000000e+00> : vector<4x16xf32>
    %254 = tpu.matmul %248, %253, %cst_177 {dimension_numbers = #tpu.dot_dimension_numbers<[1], [0], [0], [1], [0, 0, 1, 1], [], []>} : vector<4x32xf32>, vector<32x16xf32>, vector<4x16xf32> -> vector<4x16xf32>
    %255 = arith.addf %252, %254 : vector<4x16xf32>
    %c1960 = arith.constant 1960 : index
    %c0_178 = arith.constant 0 : index
    %256 = vector.load %arg1[%c1960, %c0_178] : memref<5496x128xf32, #tpu.memory_space<vmem>>, vector<32x16xf32>
    %cst_179 = arith.constant dense<0.000000e+00> : vector<4x16xf32>
    %257 = tpu.matmul %250, %256, %cst_179 {dimension_numbers = #tpu.dot_dimension_numbers<[1], [0], [0], [1], [0, 0, 1, 1], [], []>} : vector<4x32xf32>, vector<32x16xf32>, vector<4x16xf32> -> vector<4x16xf32>
    %258 = arith.addf %255, %257 : vector<4x16xf32>
    %cst_180 = arith.constant dense<0.000000e+00> : vector<16xf32>
    %259 = vector.multi_reduction <add>, %258, %cst_180 [0] : vector<4x16xf32> to vector<16xf32>
    %260 = vector.shape_cast %259 : vector<16xf32> to vector<1x16xf32>
    %261 = arith.mulf %258, %258 : vector<4x16xf32>
    %cst_181 = arith.constant dense<0.000000e+00> : vector<16xf32>
    %262 = vector.multi_reduction <add>, %261, %cst_181 [0] : vector<4x16xf32> to vector<16xf32>
    %263 = vector.shape_cast %262 : vector<16xf32> to vector<1x16xf32>
    %c1992 = arith.constant 1992 : index
    %c0_182 = arith.constant 0 : index
    %264 = vector.load %arg1[%c1992, %c0_182] : memref<5496x128xf32, #tpu.memory_space<vmem>>, vector<16x8xf32>
    %cst_183 = arith.constant dense<0.000000e+00> : vector<1x8xf32>
    %265 = tpu.matmul %260, %264, %cst_183 {dimension_numbers = #tpu.dot_dimension_numbers<[1], [0], [0], [1], [0, 0, 1, 1], [], []>} : vector<1x16xf32>, vector<16x8xf32>, vector<1x8xf32> -> vector<1x8xf32>
    %c1992_184 = arith.constant 1992 : index
    %c0_185 = arith.constant 0 : index
    %266 = vector.load %arg1[%c1992_184, %c0_185] : memref<5496x128xf32, #tpu.memory_space<vmem>>, vector<16x8xf32>
    %cst_186 = arith.constant dense<0.000000e+00> : vector<1x8xf32>
    %267 = tpu.matmul %263, %266, %cst_186 {dimension_numbers = #tpu.dot_dimension_numbers<[1], [0], [0], [1], [0, 0, 1, 1], [], []>} : vector<1x16xf32>, vector<16x8xf32>, vector<1x8xf32> -> vector<1x8xf32>
    %cst_187 = arith.constant 1.250000e-01 : f32
    %268 = vector.broadcast %cst_187 : f32 to vector<1x8xf32>
    %269 = arith.mulf %265, %268 : vector<1x8xf32>
    %cst_188 = arith.constant 1.250000e-01 : f32
    %270 = vector.broadcast %cst_188 : f32 to vector<1x8xf32>
    %271 = arith.mulf %267, %270 : vector<1x8xf32>
    %272 = arith.mulf %269, %269 : vector<1x8xf32>
    %273 = arith.subf %271, %272 : vector<1x8xf32>
    %cst_189 = arith.constant 9.99999974E-6 : f32
    %274 = vector.broadcast %cst_189 : f32 to vector<1x8xf32>
    %275 = arith.addf %273, %274 : vector<1x8xf32>
    %276 = math.rsqrt %275 : vector<1x8xf32>
    %c2008 = arith.constant 2008 : index
    %c0_190 = arith.constant 0 : index
    %277 = vector.load %arg1[%c2008, %c0_190] : memref<5496x128xf32, #tpu.memory_space<vmem>>, vector<8x16xf32>
    %cst_191 = arith.constant dense<0.000000e+00> : vector<1x16xf32>
    %278 = tpu.matmul %269, %277, %cst_191 {dimension_numbers = #tpu.dot_dimension_numbers<[1], [0], [0], [1], [0, 0, 1, 1], [], []>} : vector<1x8xf32>, vector<8x16xf32>, vector<1x16xf32> -> vector<1x16xf32>
    %c2008_192 = arith.constant 2008 : index
    %c0_193 = arith.constant 0 : index
    %279 = vector.load %arg1[%c2008_192, %c0_193] : memref<5496x128xf32, #tpu.memory_space<vmem>>, vector<8x16xf32>
    %cst_194 = arith.constant dense<0.000000e+00> : vector<1x16xf32>
    %280 = tpu.matmul %276, %279, %cst_194 {dimension_numbers = #tpu.dot_dimension_numbers<[1], [0], [0], [1], [0, 0, 1, 1], [], []>} : vector<1x8xf32>, vector<8x16xf32>, vector<1x16xf32> -> vector<1x16xf32>
    %281 = vector.broadcast %278 : vector<1x16xf32> to vector<4x16xf32>
    %282 = arith.subf %258, %281 : vector<4x16xf32>
    %283 = vector.broadcast %280 : vector<1x16xf32> to vector<4x16xf32>
    %284 = arith.mulf %282, %283 : vector<4x16xf32>
    %cst_195 = arith.constant 0.000000e+00 : f32
    %285 = vector.broadcast %cst_195 : f32 to vector<4x16xf32>
    %286 = arith.maximumf %284, %285 : vector<4x16xf32>
    %c2016 = arith.constant 2016 : index
    %c0_196 = arith.constant 0 : index
    %287 = vector.load %arg1[%c2016, %c0_196] : memref<5496x128xf32, #tpu.memory_space<vmem>>, vector<4x4xf32>
    %cst_197 = arith.constant dense<0.000000e+00> : vector<4x16xf32>
    %288 = tpu.matmul %287, %286, %cst_197 {dimension_numbers = #tpu.dot_dimension_numbers<[1], [0], [0], [1], [0, 0, 1, 1], [], []>} : vector<4x4xf32>, vector<4x16xf32>, vector<4x16xf32> -> vector<4x16xf32>
    %c2024 = arith.constant 2024 : index
    %c0_198 = arith.constant 0 : index
    %289 = vector.load %arg1[%c2024, %c0_198] : memref<5496x128xf32, #tpu.memory_space<vmem>>, vector<4x4xf32>
    %cst_199 = arith.constant dense<0.000000e+00> : vector<4x16xf32>
    %290 = tpu.matmul %289, %286, %cst_199 {dimension_numbers = #tpu.dot_dimension_numbers<[1], [0], [0], [1], [0, 0, 1, 1], [], []>} : vector<4x4xf32>, vector<4x16xf32>, vector<4x16xf32> -> vector<4x16xf32>
    %c2032 = arith.constant 2032 : index
    %c0_200 = arith.constant 0 : index
    %291 = vector.load %arg1[%c2032, %c0_200] : memref<5496x128xf32, #tpu.memory_space<vmem>>, vector<16x16xf32>
    %cst_201 = arith.constant dense<0.000000e+00> : vector<4x16xf32>
    %292 = tpu.matmul %288, %291, %cst_201 {dimension_numbers = #tpu.dot_dimension_numbers<[1], [0], [0], [1], [0, 0, 1, 1], [], []>} : vector<4x16xf32>, vector<16x16xf32>, vector<4x16xf32> -> vector<4x16xf32>
    %c2048 = arith.constant 2048 : index
    %c0_202 = arith.constant 0 : index
    %293 = vector.load %arg1[%c2048, %c0_202] : memref<5496x128xf32, #tpu.memory_space<vmem>>, vector<16x16xf32>
    %cst_203 = arith.constant dense<0.000000e+00> : vector<4x16xf32>
    %294 = tpu.matmul %286, %293, %cst_203 {dimension_numbers = #tpu.dot_dimension_numbers<[1], [0], [0], [1], [0, 0, 1, 1], [], []>} : vector<4x16xf32>, vector<16x16xf32>, vector<4x16xf32> -> vector<4x16xf32>
    %295 = arith.addf %292, %294 : vector<4x16xf32>
    %c2064 = arith.constant 2064 : index
    %c0_204 = arith.constant 0 : index
    %296 = vector.load %arg1[%c2064, %c0_204] : memref<5496x128xf32, #tpu.memory_space<vmem>>, vector<16x16xf32>
    %cst_205 = arith.constant dense<0.000000e+00> : vector<4x16xf32>
    %297 = tpu.matmul %290, %296, %cst_205 {dimension_numbers = #tpu.dot_dimension_numbers<[1], [0], [0], [1], [0, 0, 1, 1], [], []>} : vector<4x16xf32>, vector<16x16xf32>, vector<4x16xf32> -> vector<4x16xf32>
    %298 = arith.addf %295, %297 : vector<4x16xf32>
    %cst_206 = arith.constant dense<0.000000e+00> : vector<16xf32>
    %299 = vector.multi_reduction <add>, %298, %cst_206 [0] : vector<4x16xf32> to vector<16xf32>
    %300 = vector.shape_cast %299 : vector<16xf32> to vector<1x16xf32>
    %301 = arith.mulf %298, %298 : vector<4x16xf32>
    %cst_207 = arith.constant dense<0.000000e+00> : vector<16xf32>
    %302 = vector.multi_reduction <add>, %301, %cst_207 [0] : vector<4x16xf32> to vector<16xf32>
    %303 = vector.shape_cast %302 : vector<16xf32> to vector<1x16xf32>
    %c1992_208 = arith.constant 1992 : index
    %c0_209 = arith.constant 0 : index
    %304 = vector.load %arg1[%c1992_208, %c0_209] : memref<5496x128xf32, #tpu.memory_space<vmem>>, vector<16x8xf32>
    %cst_210 = arith.constant dense<0.000000e+00> : vector<1x8xf32>
    %305 = tpu.matmul %300, %304, %cst_210 {dimension_numbers = #tpu.dot_dimension_numbers<[1], [0], [0], [1], [0, 0, 1, 1], [], []>} : vector<1x16xf32>, vector<16x8xf32>, vector<1x8xf32> -> vector<1x8xf32>
    %c1992_211 = arith.constant 1992 : index
    %c0_212 = arith.constant 0 : index
    %306 = vector.load %arg1[%c1992_211, %c0_212] : memref<5496x128xf32, #tpu.memory_space<vmem>>, vector<16x8xf32>
    %cst_213 = arith.constant dense<0.000000e+00> : vector<1x8xf32>
    %307 = tpu.matmul %303, %306, %cst_213 {dimension_numbers = #tpu.dot_dimension_numbers<[1], [0], [0], [1], [0, 0, 1, 1], [], []>} : vector<1x16xf32>, vector<16x8xf32>, vector<1x8xf32> -> vector<1x8xf32>
    %cst_214 = arith.constant 1.250000e-01 : f32
    %308 = vector.broadcast %cst_214 : f32 to vector<1x8xf32>
    %309 = arith.mulf %305, %308 : vector<1x8xf32>
    %cst_215 = arith.constant 1.250000e-01 : f32
    %310 = vector.broadcast %cst_215 : f32 to vector<1x8xf32>
    %311 = arith.mulf %307, %310 : vector<1x8xf32>
    %312 = arith.mulf %309, %309 : vector<1x8xf32>
    %313 = arith.subf %311, %312 : vector<1x8xf32>
    %cst_216 = arith.constant 9.99999974E-6 : f32
    %314 = vector.broadcast %cst_216 : f32 to vector<1x8xf32>
    %315 = arith.addf %313, %314 : vector<1x8xf32>
    %316 = math.rsqrt %315 : vector<1x8xf32>
    %c2008_217 = arith.constant 2008 : index
    %c0_218 = arith.constant 0 : index
    %317 = vector.load %arg1[%c2008_217, %c0_218] : memref<5496x128xf32, #tpu.memory_space<vmem>>, vector<8x16xf32>
    %cst_219 = arith.constant dense<0.000000e+00> : vector<1x16xf32>
    %318 = tpu.matmul %309, %317, %cst_219 {dimension_numbers = #tpu.dot_dimension_numbers<[1], [0], [0], [1], [0, 0, 1, 1], [], []>} : vector<1x8xf32>, vector<8x16xf32>, vector<1x16xf32> -> vector<1x16xf32>
    %c2008_220 = arith.constant 2008 : index
    %c0_221 = arith.constant 0 : index
    %319 = vector.load %arg1[%c2008_220, %c0_221] : memref<5496x128xf32, #tpu.memory_space<vmem>>, vector<8x16xf32>
    %cst_222 = arith.constant dense<0.000000e+00> : vector<1x16xf32>
    %320 = tpu.matmul %316, %319, %cst_222 {dimension_numbers = #tpu.dot_dimension_numbers<[1], [0], [0], [1], [0, 0, 1, 1], [], []>} : vector<1x8xf32>, vector<8x16xf32>, vector<1x16xf32> -> vector<1x16xf32>
    %321 = vector.broadcast %318 : vector<1x16xf32> to vector<4x16xf32>
    %322 = arith.subf %298, %321 : vector<4x16xf32>
    %323 = vector.broadcast %320 : vector<1x16xf32> to vector<4x16xf32>
    %324 = arith.mulf %322, %323 : vector<4x16xf32>
    %cst_223 = arith.constant 0.000000e+00 : f32
    %325 = vector.broadcast %cst_223 : f32 to vector<4x16xf32>
    %326 = arith.maximumf %324, %325 : vector<4x16xf32>
    %327 = vector.extract_strided_slice %326 {offsets = [0, 0], sizes = [2, 16], strides = [1, 1]} : vector<4x16xf32> to vector<2x16xf32>
    %c32_224 = arith.constant 32 : index
    %c0_225 = arith.constant 0 : index
    %328 = vector.load %arg2[%c32_224, %c0_225] : memref<64x128xf32, #tpu.memory_space<vmem>>, vector<2x16xf32>
    tpu.vector_store %arg2[%c32_224, %c0_225], %327 {strides = array<i32>} : memref<64x128xf32, #tpu.memory_space<vmem>>, vector<2x16xf32>,
    %c2080 = arith.constant 2080 : index
    %c0_226 = arith.constant 0 : index
    %329 = vector.load %arg1[%c2080, %c0_226] : memref<5496x128xf32, #tpu.memory_space<vmem>>, vector<2x4xf32>
    %cst_227 = arith.constant dense<0.000000e+00> : vector<2x16xf32>
    %330 = tpu.matmul %329, %326, %cst_227 {dimension_numbers = #tpu.dot_dimension_numbers<[1], [0], [0], [1], [0, 0, 1, 1], [], []>} : vector<2x4xf32>, vector<4x16xf32>, vector<2x16xf32> -> vector<2x16xf32>
    %c2088 = arith.constant 2088 : index
    %c0_228 = arith.constant 0 : index
    %331 = vector.load %arg1[%c2088, %c0_228] : memref<5496x128xf32, #tpu.memory_space<vmem>>, vector<2x4xf32>
    %cst_229 = arith.constant dense<0.000000e+00> : vector<2x16xf32>
    %332 = tpu.matmul %331, %326, %cst_229 {dimension_numbers = #tpu.dot_dimension_numbers<[1], [0], [0], [1], [0, 0, 1, 1], [], []>} : vector<2x4xf32>, vector<4x16xf32>, vector<2x16xf32> -> vector<2x16xf32>
    %c2096 = arith.constant 2096 : index
    %c0_230 = arith.constant 0 : index
    %333 = vector.load %arg1[%c2096, %c0_230] : memref<5496x128xf32, #tpu.memory_space<vmem>>, vector<16x8xf32>
    %cst_231 = arith.constant dense<0.000000e+00> : vector<2x8xf32>
    %334 = tpu.matmul %330, %333, %cst_231 {dimension_numbers = #tpu.dot_dimension_numbers<[1], [0], [0], [1], [0, 0, 1, 1], [], []>} : vector<2x16xf32>, vector<16x8xf32>, vector<2x8xf32> -> vector<2x8xf32>
    %c2112 = arith.constant 2112 : index
    %c0_232 = arith.constant 0 : index
    %335 = vector.load %arg1[%c2112, %c0_232] : memref<5496x128xf32, #tpu.memory_space<vmem>>, vector<16x8xf32>
    %cst_233 = arith.constant dense<0.000000e+00> : vector<2x8xf32>
    %336 = tpu.matmul %332, %335, %cst_233 {dimension_numbers = #tpu.dot_dimension_numbers<[1], [0], [0], [1], [0, 0, 1, 1], [], []>} : vector<2x16xf32>, vector<16x8xf32>, vector<2x8xf32> -> vector<2x8xf32>
    %337 = arith.addf %334, %336 : vector<2x8xf32>
    %cst_234 = arith.constant dense<0.000000e+00> : vector<8xf32>
    %338 = vector.multi_reduction <add>, %337, %cst_234 [0] : vector<2x8xf32> to vector<8xf32>
    %339 = vector.shape_cast %338 : vector<8xf32> to vector<1x8xf32>
    %340 = arith.mulf %337, %337 : vector<2x8xf32>
    %cst_235 = arith.constant dense<0.000000e+00> : vector<8xf32>
    %341 = vector.multi_reduction <add>, %340, %cst_235 [0] : vector<2x8xf32> to vector<8xf32>
    %342 = vector.shape_cast %341 : vector<8xf32> to vector<1x8xf32>
    %cst_236 = arith.constant 5.000000e-01 : f32
    %343 = vector.broadcast %cst_236 : f32 to vector<1x8xf32>
    %344 = arith.mulf %339, %343 : vector<1x8xf32>
    %cst_237 = arith.constant 5.000000e-01 : f32
    %345 = vector.broadcast %cst_237 : f32 to vector<1x8xf32>
    %346 = arith.mulf %342, %345 : vector<1x8xf32>
    %347 = arith.mulf %344, %344 : vector<1x8xf32>
    %348 = arith.subf %346, %347 : vector<1x8xf32>
    %cst_238 = arith.constant 9.99999974E-6 : f32
    %349 = vector.broadcast %cst_238 : f32 to vector<1x8xf32>
    %350 = arith.addf %348, %349 : vector<1x8xf32>
    %351 = math.rsqrt %350 : vector<1x8xf32>
    %352 = vector.broadcast %344 : vector<1x8xf32> to vector<2x8xf32>
    %353 = arith.subf %337, %352 : vector<2x8xf32>
    %354 = vector.broadcast %351 : vector<1x8xf32> to vector<2x8xf32>
    %355 = arith.mulf %353, %354 : vector<2x8xf32>
    %cst_239 = arith.constant 0.000000e+00 : f32
    %356 = vector.broadcast %cst_239 : f32 to vector<2x8xf32>
    %357 = arith.maximumf %355, %356 : vector<2x8xf32>
    %c2128 = arith.constant 2128 : index
    %c0_240 = arith.constant 0 : index
    %358 = vector.load %arg1[%c2128, %c0_240] : memref<5496x128xf32, #tpu.memory_space<vmem>>, vector<8x8xf32>
    %cst_241 = arith.constant dense<0.000000e+00> : vector<2x8xf32>
    %359 = tpu.matmul %357, %358, %cst_241 {dimension_numbers = #tpu.dot_dimension_numbers<[1], [0], [0], [1], [0, 0, 1, 1], [], []>} : vector<2x8xf32>, vector<8x8xf32>, vector<2x8xf32> -> vector<2x8xf32>
    %cst_242 = arith.constant dense<0.000000e+00> : vector<8xf32>
    %360 = vector.multi_reduction <add>, %359, %cst_242 [0] : vector<2x8xf32> to vector<8xf32>
    %361 = vector.shape_cast %360 : vector<8xf32> to vector<1x8xf32>
    %362 = arith.mulf %359, %359 : vector<2x8xf32>
    %cst_243 = arith.constant dense<0.000000e+00> : vector<8xf32>
    %363 = vector.multi_reduction <add>, %362, %cst_243 [0] : vector<2x8xf32> to vector<8xf32>
    %364 = vector.shape_cast %363 : vector<8xf32> to vector<1x8xf32>
    %cst_244 = arith.constant 5.000000e-01 : f32
    %365 = vector.broadcast %cst_244 : f32 to vector<1x8xf32>
    %366 = arith.mulf %361, %365 : vector<1x8xf32>
    %cst_245 = arith.constant 5.000000e-01 : f32
    %367 = vector.broadcast %cst_245 : f32 to vector<1x8xf32>
    %368 = arith.mulf %364, %367 : vector<1x8xf32>
    %369 = arith.mulf %366, %366 : vector<1x8xf32>
    %370 = arith.subf %368, %369 : vector<1x8xf32>
    %cst_246 = arith.constant 9.99999974E-6 : f32
    %371 = vector.broadcast %cst_246 : f32 to vector<1x8xf32>
    %372 = arith.addf %370, %371 : vector<1x8xf32>
    %373 = math.rsqrt %372 : vector<1x8xf32>
    %374 = vector.broadcast %366 : vector<1x8xf32> to vector<2x8xf32>
    %375 = arith.subf %359, %374 : vector<2x8xf32>
    %376 = vector.broadcast %373 : vector<1x8xf32> to vector<2x8xf32>
    %377 = arith.mulf %375, %376 : vector<2x8xf32>
    %cst_247 = arith.constant 0.000000e+00 : f32
    %378 = vector.broadcast %cst_247 : f32 to vector<2x8xf32>
    %379 = arith.maximumf %377, %378 : vector<2x8xf32>
    %380 = vector.extract_strided_slice %379 {offsets = [0, 0], sizes = [1, 8], strides = [1, 1]} : vector<2x8xf32> to vector<1x8xf32>
    %c40 = arith.constant 40 : index
    %c0_248 = arith.constant 0 : index
    %381 = vector.load %arg2[%c40, %c0_248] : memref<64x128xf32, #tpu.memory_space<vmem>>, vector<1x8xf32>
    tpu.vector_store %arg2[%c40, %c0_248], %380 {strides = array<i32>} : memref<64x128xf32, #tpu.memory_space<vmem>>, vector<1x8xf32>,
    %c2136 = arith.constant 2136 : index
    %c0_249 = arith.constant 0 : index
    %382 = vector.load %arg1[%c2136, %c0_249] : memref<5496x128xf32, #tpu.memory_space<vmem>>, vector<2x2xf32>
    %cst_250 = arith.constant dense<0.000000e+00> : vector<2x8xf32>
    %383 = tpu.matmul %382, %379, %cst_250 {dimension_numbers = #tpu.dot_dimension_numbers<[1], [0], [0], [1], [0, 0, 1, 1], [], []>} : vector<2x2xf32>, vector<2x8xf32>, vector<2x8xf32> -> vector<2x8xf32>
    %c2144 = arith.constant 2144 : index
    %c0_251 = arith.constant 0 : index
    %384 = vector.load %arg1[%c2144, %c0_251] : memref<5496x128xf32, #tpu.memory_space<vmem>>, vector<2x2xf32>
    %cst_252 = arith.constant dense<0.000000e+00> : vector<2x8xf32>
    %385 = tpu.matmul %384, %379, %cst_252 {dimension_numbers = #tpu.dot_dimension_numbers<[1], [0], [0], [1], [0, 0, 1, 1], [], []>} : vector<2x2xf32>, vector<2x8xf32>, vector<2x8xf32> -> vector<2x8xf32>
    %c2152 = arith.constant 2152 : index
    %c0_253 = arith.constant 0 : index
    %386 = vector.load %arg1[%c2152, %c0_253] : memref<5496x128xf32, #tpu.memory_space<vmem>>, vector<2x2xf32>
    %cst_254 = arith.constant dense<0.000000e+00> : vector<2x8xf32>
    %387 = tpu.matmul %386, %379, %cst_254 {dimension_numbers = #tpu.dot_dimension_numbers<[1], [0], [0], [1], [0, 0, 1, 1], [], []>} : vector<2x2xf32>, vector<2x8xf32>, vector<2x8xf32> -> vector<2x8xf32>
    %c2160 = arith.constant 2160 : index
    %c0_255 = arith.constant 0 : index
    %388 = vector.load %arg1[%c2160, %c0_255] : memref<5496x128xf32, #tpu.memory_space<vmem>>, vector<8x16xf32>
    %cst_256 = arith.constant dense<0.000000e+00> : vector<2x16xf32>
    %389 = tpu.matmul %383, %388, %cst_256 {dimension_numbers = #tpu.dot_dimension_numbers<[1], [0], [0], [1], [0, 0, 1, 1], [], []>} : vector<2x8xf32>, vector<8x16xf32>, vector<2x16xf32> -> vector<2x16xf32>
    %c2168 = arith.constant 2168 : index
    %c0_257 = arith.constant 0 : index
    %390 = vector.load %arg1[%c2168, %c0_257] : memref<5496x128xf32, #tpu.memory_space<vmem>>, vector<8x16xf32>
    %cst_258 = arith.constant dense<0.000000e+00> : vector<2x16xf32>
    %391 = tpu.matmul %385, %390, %cst_258 {dimension_numbers = #tpu.dot_dimension_numbers<[1], [0], [0], [1], [0, 0, 1, 1], [], []>} : vector<2x8xf32>, vector<8x16xf32>, vector<2x16xf32> -> vector<2x16xf32>
    %392 = arith.addf %389, %391 : vector<2x16xf32>
    %c2176 = arith.constant 2176 : index
    %c0_259 = arith.constant 0 : index
    %393 = vector.load %arg1[%c2176, %c0_259] : memref<5496x128xf32, #tpu.memory_space<vmem>>, vector<8x16xf32>
    %cst_260 = arith.constant dense<0.000000e+00> : vector<2x16xf32>
    %394 = tpu.matmul %387, %393, %cst_260 {dimension_numbers = #tpu.dot_dimension_numbers<[1], [0], [0], [1], [0, 0, 1, 1], [], []>} : vector<2x8xf32>, vector<8x16xf32>, vector<2x16xf32> -> vector<2x16xf32>
    %395 = arith.addf %392, %394 : vector<2x16xf32>
    %cst_261 = arith.constant dense<0.000000e+00> : vector<16xf32>
    %396 = vector.multi_reduction <add>, %395, %cst_261 [0] : vector<2x16xf32> to vector<16xf32>
    %397 = vector.shape_cast %396 : vector<16xf32> to vector<1x16xf32>
    %398 = arith.mulf %395, %395 : vector<2x16xf32>
    %cst_262 = arith.constant dense<0.000000e+00> : vector<16xf32>
    %399 = vector.multi_reduction <add>, %398, %cst_262 [0] : vector<2x16xf32> to vector<16xf32>
    %400 = vector.shape_cast %399 : vector<16xf32> to vector<1x16xf32>
    %c1992_263 = arith.constant 1992 : index
    %c0_264 = arith.constant 0 : index
    %401 = vector.load %arg1[%c1992_263, %c0_264] : memref<5496x128xf32, #tpu.memory_space<vmem>>, vector<16x8xf32>
    %cst_265 = arith.constant dense<0.000000e+00> : vector<1x8xf32>
    %402 = tpu.matmul %397, %401, %cst_265 {dimension_numbers = #tpu.dot_dimension_numbers<[1], [0], [0], [1], [0, 0, 1, 1], [], []>} : vector<1x16xf32>, vector<16x8xf32>, vector<1x8xf32> -> vector<1x8xf32>
    %c1992_266 = arith.constant 1992 : index
    %c0_267 = arith.constant 0 : index
    %403 = vector.load %arg1[%c1992_266, %c0_267] : memref<5496x128xf32, #tpu.memory_space<vmem>>, vector<16x8xf32>
    %cst_268 = arith.constant dense<0.000000e+00> : vector<1x8xf32>
    %404 = tpu.matmul %400, %403, %cst_268 {dimension_numbers = #tpu.dot_dimension_numbers<[1], [0], [0], [1], [0, 0, 1, 1], [], []>} : vector<1x16xf32>, vector<16x8xf32>, vector<1x8xf32> -> vector<1x8xf32>
    %cst_269 = arith.constant 2.500000e-01 : f32
    %405 = vector.broadcast %cst_269 : f32 to vector<1x8xf32>
    %406 = arith.mulf %402, %405 : vector<1x8xf32>
    %cst_270 = arith.constant 2.500000e-01 : f32
    %407 = vector.broadcast %cst_270 : f32 to vector<1x8xf32>
    %408 = arith.mulf %404, %407 : vector<1x8xf32>
    %409 = arith.mulf %406, %406 : vector<1x8xf32>
    %410 = arith.subf %408, %409 : vector<1x8xf32>
    %cst_271 = arith.constant 9.99999974E-6 : f32
    %411 = vector.broadcast %cst_271 : f32 to vector<1x8xf32>
    %412 = arith.addf %410, %411 : vector<1x8xf32>
    %413 = math.rsqrt %412 : vector<1x8xf32>
    %c2008_272 = arith.constant 2008 : index
    %c0_273 = arith.constant 0 : index
    %414 = vector.load %arg1[%c2008_272, %c0_273] : memref<5496x128xf32, #tpu.memory_space<vmem>>, vector<8x16xf32>
    %cst_274 = arith.constant dense<0.000000e+00> : vector<1x16xf32>
    %415 = tpu.matmul %406, %414, %cst_274 {dimension_numbers = #tpu.dot_dimension_numbers<[1], [0], [0], [1], [0, 0, 1, 1], [], []>} : vector<1x8xf32>, vector<8x16xf32>, vector<1x16xf32> -> vector<1x16xf32>
    %c2008_275 = arith.constant 2008 : index
    %c0_276 = arith.constant 0 : index
    %416 = vector.load %arg1[%c2008_275, %c0_276] : memref<5496x128xf32, #tpu.memory_space<vmem>>, vector<8x16xf32>
    %cst_277 = arith.constant dense<0.000000e+00> : vector<1x16xf32>
    %417 = tpu.matmul %413, %416, %cst_277 {dimension_numbers = #tpu.dot_dimension_numbers<[1], [0], [0], [1], [0, 0, 1, 1], [], []>} : vector<1x8xf32>, vector<8x16xf32>, vector<1x16xf32> -> vector<1x16xf32>
    %418 = vector.broadcast %415 : vector<1x16xf32> to vector<2x16xf32>
    %419 = arith.subf %395, %418 : vector<2x16xf32>
    %420 = vector.broadcast %417 : vector<1x16xf32> to vector<2x16xf32>
    %421 = arith.mulf %419, %420 : vector<2x16xf32>
    %cst_278 = arith.constant 0.000000e+00 : f32
    %422 = vector.broadcast %cst_278 : f32 to vector<2x16xf32>
    %423 = arith.maximumf %421, %422 : vector<2x16xf32>
    %c2184 = arith.constant 2184 : index
    %c0_279 = arith.constant 0 : index
    %424 = vector.load %arg1[%c2184, %c0_279] : memref<5496x128xf32, #tpu.memory_space<vmem>>, vector<2x4xf32>
    %cst_280 = arith.constant dense<0.000000e+00> : vector<2x16xf32>
    %425 = tpu.matmul %424, %326, %cst_280 {dimension_numbers = #tpu.dot_dimension_numbers<[1], [0], [0], [1], [0, 0, 1, 1], [], []>} : vector<2x4xf32>, vector<4x16xf32>, vector<2x16xf32> -> vector<2x16xf32>
    %c2192 = arith.constant 2192 : index
    %c0_281 = arith.constant 0 : index
    %426 = vector.load %arg1[%c2192, %c0_281] : memref<5496x128xf32, #tpu.memory_space<vmem>>, vector<2x4xf32>
    %cst_282 = arith.constant dense<0.000000e+00> : vector<2x16xf32>
    %427 = tpu.matmul %426, %326, %cst_282 {dimension_numbers = #tpu.dot_dimension_numbers<[1], [0], [0], [1], [0, 0, 1, 1], [], []>} : vector<2x4xf32>, vector<4x16xf32>, vector<2x16xf32> -> vector<2x16xf32>
    %c2200 = arith.constant 2200 : index
    %c0_283 = arith.constant 0 : index
    %428 = vector.load %arg1[%c2200, %c0_283] : memref<5496x128xf32, #tpu.memory_space<vmem>>, vector<2x4xf32>
    %cst_284 = arith.constant dense<0.000000e+00> : vector<2x16xf32>
    %429 = tpu.matmul %428, %326, %cst_284 {dimension_numbers = #tpu.dot_dimension_numbers<[1], [0], [0], [1], [0, 0, 1, 1], [], []>} : vector<2x4xf32>, vector<4x16xf32>, vector<2x16xf32> -> vector<2x16xf32>
    %c2208 = arith.constant 2208 : index
    %c0_285 = arith.constant 0 : index
    %430 = vector.load %arg1[%c2208, %c0_285] : memref<5496x128xf32, #tpu.memory_space<vmem>>, vector<2x2xf32>
    %cst_286 = arith.constant dense<0.000000e+00> : vector<2x16xf32>
    %431 = tpu.matmul %430, %423, %cst_286 {dimension_numbers = #tpu.dot_dimension_numbers<[1], [0], [0], [1], [0, 0, 1, 1], [], []>} : vector<2x2xf32>, vector<2x16xf32>, vector<2x16xf32> -> vector<2x16xf32>
    %c2216 = arith.constant 2216 : index
    %c0_287 = arith.constant 0 : index
    %432 = vector.load %arg1[%c2216, %c0_287] : memref<5496x128xf32, #tpu.memory_space<vmem>>, vector<2x2xf32>
    %cst_288 = arith.constant dense<0.000000e+00> : vector<2x16xf32>
    %433 = tpu.matmul %432, %423, %cst_288 {dimension_numbers = #tpu.dot_dimension_numbers<[1], [0], [0], [1], [0, 0, 1, 1], [], []>} : vector<2x2xf32>, vector<2x16xf32>, vector<2x16xf32> -> vector<2x16xf32>
    %c2224 = arith.constant 2224 : index
    %c0_289 = arith.constant 0 : index
    %434 = vector.load %arg1[%c2224, %c0_289] : memref<5496x128xf32, #tpu.memory_space<vmem>>, vector<16x16xf32>
    %cst_290 = arith.constant dense<0.000000e+00> : vector<2x16xf32>
    %435 = tpu.matmul %425, %434, %cst_290 {dimension_numbers = #tpu.dot_dimension_numbers<[1], [0], [0], [1], [0, 0, 1, 1], [], []>} : vector<2x16xf32>, vector<16x16xf32>, vector<2x16xf32> -> vector<2x16xf32>
    %c2240 = arith.constant 2240 : index
    %c0_291 = arith.constant 0 : index
    %436 = vector.load %arg1[%c2240, %c0_291] : memref<5496x128xf32, #tpu.memory_space<vmem>>, vector<16x16xf32>
    %cst_292 = arith.constant dense<0.000000e+00> : vector<2x16xf32>
    %437 = tpu.matmul %427, %436, %cst_292 {dimension_numbers = #tpu.dot_dimension_numbers<[1], [0], [0], [1], [0, 0, 1, 1], [], []>} : vector<2x16xf32>, vector<16x16xf32>, vector<2x16xf32> -> vector<2x16xf32>
    %438 = arith.addf %435, %437 : vector<2x16xf32>
    %c2256 = arith.constant 2256 : index
    %c0_293 = arith.constant 0 : index
    %439 = vector.load %arg1[%c2256, %c0_293] : memref<5496x128xf32, #tpu.memory_space<vmem>>, vector<16x16xf32>
    %cst_294 = arith.constant dense<0.000000e+00> : vector<2x16xf32>
    %440 = tpu.matmul %429, %439, %cst_294 {dimension_numbers = #tpu.dot_dimension_numbers<[1], [0], [0], [1], [0, 0, 1, 1], [], []>} : vector<2x16xf32>, vector<16x16xf32>, vector<2x16xf32> -> vector<2x16xf32>
    %441 = arith.addf %438, %440 : vector<2x16xf32>
    %c2272 = arith.constant 2272 : index
    %c0_295 = arith.constant 0 : index
    %442 = vector.load %arg1[%c2272, %c0_295] : memref<5496x128xf32, #tpu.memory_space<vmem>>, vector<16x16xf32>
    %cst_296 = arith.constant dense<0.000000e+00> : vector<2x16xf32>
    %443 = tpu.matmul %431, %442, %cst_296 {dimension_numbers = #tpu.dot_dimension_numbers<[1], [0], [0], [1], [0, 0, 1, 1], [], []>} : vector<2x16xf32>, vector<16x16xf32>, vector<2x16xf32> -> vector<2x16xf32>
    %444 = arith.addf %441, %443 : vector<2x16xf32>
    %c2288 = arith.constant 2288 : index
    %c0_297 = arith.constant 0 : index
    %445 = vector.load %arg1[%c2288, %c0_297] : memref<5496x128xf32, #tpu.memory_space<vmem>>, vector<16x16xf32>
    %cst_298 = arith.constant dense<0.000000e+00> : vector<2x16xf32>
    %446 = tpu.matmul %423, %445, %cst_298 {dimension_numbers = #tpu.dot_dimension_numbers<[1], [0], [0], [1], [0, 0, 1, 1], [], []>} : vector<2x16xf32>, vector<16x16xf32>, vector<2x16xf32> -> vector<2x16xf32>
    %447 = arith.addf %444, %446 : vector<2x16xf32>
    %c2304 = arith.constant 2304 : index
    %c0_299 = arith.constant 0 : index
    %448 = vector.load %arg1[%c2304, %c0_299] : memref<5496x128xf32, #tpu.memory_space<vmem>>, vector<16x16xf32>
    %cst_300 = arith.constant dense<0.000000e+00> : vector<2x16xf32>
    %449 = tpu.matmul %433, %448, %cst_300 {dimension_numbers = #tpu.dot_dimension_numbers<[1], [0], [0], [1], [0, 0, 1, 1], [], []>} : vector<2x16xf32>, vector<16x16xf32>, vector<2x16xf32> -> vector<2x16xf32>
    %450 = arith.addf %447, %449 : vector<2x16xf32>
    %cst_301 = arith.constant dense<0.000000e+00> : vector<16xf32>
    %451 = vector.multi_reduction <add>, %450, %cst_301 [0] : vector<2x16xf32> to vector<16xf32>
    %452 = vector.shape_cast %451 : vector<16xf32> to vector<1x16xf32>
    %453 = arith.mulf %450, %450 : vector<2x16xf32>
    %cst_302 = arith.constant dense<0.000000e+00> : vector<16xf32>
    %454 = vector.multi_reduction <add>, %453, %cst_302 [0] : vector<2x16xf32> to vector<16xf32>
    %455 = vector.shape_cast %454 : vector<16xf32> to vector<1x16xf32>
    %c1992_303 = arith.constant 1992 : index
    %c0_304 = arith.constant 0 : index
    %456 = vector.load %arg1[%c1992_303, %c0_304] : memref<5496x128xf32, #tpu.memory_space<vmem>>, vector<16x8xf32>
    %cst_305 = arith.constant dense<0.000000e+00> : vector<1x8xf32>
    %457 = tpu.matmul %452, %456, %cst_305 {dimension_numbers = #tpu.dot_dimension_numbers<[1], [0], [0], [1], [0, 0, 1, 1], [], []>} : vector<1x16xf32>, vector<16x8xf32>, vector<1x8xf32> -> vector<1x8xf32>
    %c1992_306 = arith.constant 1992 : index
    %c0_307 = arith.constant 0 : index
    %458 = vector.load %arg1[%c1992_306, %c0_307] : memref<5496x128xf32, #tpu.memory_space<vmem>>, vector<16x8xf32>
    %cst_308 = arith.constant dense<0.000000e+00> : vector<1x8xf32>
    %459 = tpu.matmul %455, %458, %cst_308 {dimension_numbers = #tpu.dot_dimension_numbers<[1], [0], [0], [1], [0, 0, 1, 1], [], []>} : vector<1x16xf32>, vector<16x8xf32>, vector<1x8xf32> -> vector<1x8xf32>
    %cst_309 = arith.constant 2.500000e-01 : f32
    %460 = vector.broadcast %cst_309 : f32 to vector<1x8xf32>
    %461 = arith.mulf %457, %460 : vector<1x8xf32>
    %cst_310 = arith.constant 2.500000e-01 : f32
    %462 = vector.broadcast %cst_310 : f32 to vector<1x8xf32>
    %463 = arith.mulf %459, %462 : vector<1x8xf32>
    %464 = arith.mulf %461, %461 : vector<1x8xf32>
    %465 = arith.subf %463, %464 : vector<1x8xf32>
    %cst_311 = arith.constant 9.99999974E-6 : f32
    %466 = vector.broadcast %cst_311 : f32 to vector<1x8xf32>
    %467 = arith.addf %465, %466 : vector<1x8xf32>
    %468 = math.rsqrt %467 : vector<1x8xf32>
    %c2008_312 = arith.constant 2008 : index
    %c0_313 = arith.constant 0 : index
    %469 = vector.load %arg1[%c2008_312, %c0_313] : memref<5496x128xf32, #tpu.memory_space<vmem>>, vector<8x16xf32>
    %cst_314 = arith.constant dense<0.000000e+00> : vector<1x16xf32>
    %470 = tpu.matmul %461, %469, %cst_314 {dimension_numbers = #tpu.dot_dimension_numbers<[1], [0], [0], [1], [0, 0, 1, 1], [], []>} : vector<1x8xf32>, vector<8x16xf32>, vector<1x16xf32> -> vector<1x16xf32>
    %c2008_315 = arith.constant 2008 : index
    %c0_316 = arith.constant 0 : index
    %471 = vector.load %arg1[%c2008_315, %c0_316] : memref<5496x128xf32, #tpu.memory_space<vmem>>, vector<8x16xf32>
    %cst_317 = arith.constant dense<0.000000e+00> : vector<1x16xf32>
    %472 = tpu.matmul %468, %471, %cst_317 {dimension_numbers = #tpu.dot_dimension_numbers<[1], [0], [0], [1], [0, 0, 1, 1], [], []>} : vector<1x8xf32>, vector<8x16xf32>, vector<1x16xf32> -> vector<1x16xf32>
    %473 = vector.broadcast %470 : vector<1x16xf32> to vector<2x16xf32>
    %474 = arith.subf %450, %473 : vector<2x16xf32>
    %475 = vector.broadcast %472 : vector<1x16xf32> to vector<2x16xf32>
    %476 = arith.mulf %474, %475 : vector<2x16xf32>
    %cst_318 = arith.constant 0.000000e+00 : f32
    %477 = vector.broadcast %cst_318 : f32 to vector<2x16xf32>
    %478 = arith.maximumf %476, %477 : vector<2x16xf32>
    %c2208_319 = arith.constant 2208 : index
    %c0_320 = arith.constant 0 : index
    %479 = vector.load %arg1[%c2208_319, %c0_320] : memref<5496x128xf32, #tpu.memory_space<vmem>>, vector<2x2xf32>
    %cst_321 = arith.constant dense<0.000000e+00> : vector<2x16xf32>
    %480 = tpu.matmul %479, %478, %cst_321 {dimension_numbers = #tpu.dot_dimension_numbers<[1], [0], [0], [1], [0, 0, 1, 1], [], []>} : vector<2x2xf32>, vector<2x16xf32>, vector<2x16xf32> -> vector<2x16xf32>
    %c2216_322 = arith.constant 2216 : index
    %c0_323 = arith.constant 0 : index
    %481 = vector.load %arg1[%c2216_322, %c0_323] : memref<5496x128xf32, #tpu.memory_space<vmem>>, vector<2x2xf32>
    %cst_324 = arith.constant dense<0.000000e+00> : vector<2x16xf32>
    %482 = tpu.matmul %481, %478, %cst_324 {dimension_numbers = #tpu.dot_dimension_numbers<[1], [0], [0], [1], [0, 0, 1, 1], [], []>} : vector<2x2xf32>, vector<2x16xf32>, vector<2x16xf32> -> vector<2x16xf32>
    %c2320 = arith.constant 2320 : index
    %c0_325 = arith.constant 0 : index
    %483 = vector.load %arg1[%c2320, %c0_325] : memref<5496x128xf32, #tpu.memory_space<vmem>>, vector<16x16xf32>
    %cst_326 = arith.constant dense<0.000000e+00> : vector<2x16xf32>
    %484 = tpu.matmul %480, %483, %cst_326 {dimension_numbers = #tpu.dot_dimension_numbers<[1], [0], [0], [1], [0, 0, 1, 1], [], []>} : vector<2x16xf32>, vector<16x16xf32>, vector<2x16xf32> -> vector<2x16xf32>
    %c2336 = arith.constant 2336 : index
    %c0_327 = arith.constant 0 : index
    %485 = vector.load %arg1[%c2336, %c0_327] : memref<5496x128xf32, #tpu.memory_space<vmem>>, vector<16x16xf32>
    %cst_328 = arith.constant dense<0.000000e+00> : vector<2x16xf32>
    %486 = tpu.matmul %478, %485, %cst_328 {dimension_numbers = #tpu.dot_dimension_numbers<[1], [0], [0], [1], [0, 0, 1, 1], [], []>} : vector<2x16xf32>, vector<16x16xf32>, vector<2x16xf32> -> vector<2x16xf32>
    %487 = arith.addf %484, %486 : vector<2x16xf32>
    %c2352 = arith.constant 2352 : index
    %c0_329 = arith.constant 0 : index
    %488 = vector.load %arg1[%c2352, %c0_329] : memref<5496x128xf32, #tpu.memory_space<vmem>>, vector<16x16xf32>
    %cst_330 = arith.constant dense<0.000000e+00> : vector<2x16xf32>
    %489 = tpu.matmul %482, %488, %cst_330 {dimension_numbers = #tpu.dot_dimension_numbers<[1], [0], [0], [1], [0, 0, 1, 1], [], []>} : vector<2x16xf32>, vector<16x16xf32>, vector<2x16xf32> -> vector<2x16xf32>
    %490 = arith.addf %487, %489 : vector<2x16xf32>
    %cst_331 = arith.constant dense<0.000000e+00> : vector<16xf32>
    %491 = vector.multi_reduction <add>, %490, %cst_331 [0] : vector<2x16xf32> to vector<16xf32>
    %492 = vector.shape_cast %491 : vector<16xf32> to vector<1x16xf32>
    %493 = arith.mulf %490, %490 : vector<2x16xf32>
    %cst_332 = arith.constant dense<0.000000e+00> : vector<16xf32>
    %494 = vector.multi_reduction <add>, %493, %cst_332 [0] : vector<2x16xf32> to vector<16xf32>
    %495 = vector.shape_cast %494 : vector<16xf32> to vector<1x16xf32>
    %c1992_333 = arith.constant 1992 : index
    %c0_334 = arith.constant 0 : index
    %496 = vector.load %arg1[%c1992_333, %c0_334] : memref<5496x128xf32, #tpu.memory_space<vmem>>, vector<16x8xf32>
    %cst_335 = arith.constant dense<0.000000e+00> : vector<1x8xf32>
    %497 = tpu.matmul %492, %496, %cst_335 {dimension_numbers = #tpu.dot_dimension_numbers<[1], [0], [0], [1], [0, 0, 1, 1], [], []>} : vector<1x16xf32>, vector<16x8xf32>, vector<1x8xf32> -> vector<1x8xf32>
    %c1992_336 = arith.constant 1992 : index
    %c0_337 = arith.constant 0 : index
    %498 = vector.load %arg1[%c1992_336, %c0_337] : memref<5496x128xf32, #tpu.memory_space<vmem>>, vector<16x8xf32>
    %cst_338 = arith.constant dense<0.000000e+00> : vector<1x8xf32>
    %499 = tpu.matmul %495, %498, %cst_338 {dimension_numbers = #tpu.dot_dimension_numbers<[1], [0], [0], [1], [0, 0, 1, 1], [], []>} : vector<1x16xf32>, vector<16x8xf32>, vector<1x8xf32> -> vector<1x8xf32>
    %cst_339 = arith.constant 2.500000e-01 : f32
    %500 = vector.broadcast %cst_339 : f32 to vector<1x8xf32>
    %501 = arith.mulf %497, %500 : vector<1x8xf32>
    %cst_340 = arith.constant 2.500000e-01 : f32
    %502 = vector.broadcast %cst_340 : f32 to vector<1x8xf32>
    %503 = arith.mulf %499, %502 : vector<1x8xf32>
    %504 = arith.mulf %501, %501 : vector<1x8xf32>
    %505 = arith.subf %503, %504 : vector<1x8xf32>
    %cst_341 = arith.constant 9.99999974E-6 : f32
    %506 = vector.broadcast %cst_341 : f32 to vector<1x8xf32>
    %507 = arith.addf %505, %506 : vector<1x8xf32>
    %508 = math.rsqrt %507 : vector<1x8xf32>
    %c2008_342 = arith.constant 2008 : index
    %c0_343 = arith.constant 0 : index
    %509 = vector.load %arg1[%c2008_342, %c0_343] : memref<5496x128xf32, #tpu.memory_space<vmem>>, vector<8x16xf32>
    %cst_344 = arith.constant dense<0.000000e+00> : vector<1x16xf32>
    %510 = tpu.matmul %501, %509, %cst_344 {dimension_numbers = #tpu.dot_dimension_numbers<[1], [0], [0], [1], [0, 0, 1, 1], [], []>} : vector<1x8xf32>, vector<8x16xf32>, vector<1x16xf32> -> vector<1x16xf32>
    %c2008_345 = arith.constant 2008 : index
    %c0_346 = arith.constant 0 : index
    %511 = vector.load %arg1[%c2008_345, %c0_346] : memref<5496x128xf32, #tpu.memory_space<vmem>>, vector<8x16xf32>
    %cst_347 = arith.constant dense<0.000000e+00> : vector<1x16xf32>
    %512 = tpu.matmul %508, %511, %cst_347 {dimension_numbers = #tpu.dot_dimension_numbers<[1], [0], [0], [1], [0, 0, 1, 1], [], []>} : vector<1x8xf32>, vector<8x16xf32>, vector<1x16xf32> -> vector<1x16xf32>
    %513 = vector.broadcast %510 : vector<1x16xf32> to vector<2x16xf32>
    %514 = arith.subf %490, %513 : vector<2x16xf32>
    %515 = vector.broadcast %512 : vector<1x16xf32> to vector<2x16xf32>
    %516 = arith.mulf %514, %515 : vector<2x16xf32>
    %cst_348 = arith.constant 0.000000e+00 : f32
    %517 = vector.broadcast %cst_348 : f32 to vector<2x16xf32>
    %518 = arith.maximumf %516, %517 : vector<2x16xf32>
    %c2368 = arith.constant 2368 : index
    %c0_349 = arith.constant 0 : index
    %519 = vector.load %arg1[%c2368, %c0_349] : memref<5496x128xf32, #tpu.memory_space<vmem>>, vector<4x2xf32>
    %cst_350 = arith.constant dense<0.000000e+00> : vector<4x16xf32>
    %520 = tpu.matmul %519, %518, %cst_350 {dimension_numbers = #tpu.dot_dimension_numbers<[1], [0], [0], [1], [0, 0, 1, 1], [], []>} : vector<4x2xf32>, vector<2x16xf32>, vector<4x16xf32> -> vector<4x16xf32>
    %c2376 = arith.constant 2376 : index
    %c0_351 = arith.constant 0 : index
    %521 = vector.load %arg1[%c2376, %c0_351] : memref<5496x128xf32, #tpu.memory_space<vmem>>, vector<4x2xf32>
    %cst_352 = arith.constant dense<0.000000e+00> : vector<4x16xf32>
    %522 = tpu.matmul %521, %518, %cst_352 {dimension_numbers = #tpu.dot_dimension_numbers<[1], [0], [0], [1], [0, 0, 1, 1], [], []>} : vector<4x2xf32>, vector<2x16xf32>, vector<4x16xf32> -> vector<4x16xf32>
    %c2384 = arith.constant 2384 : index
    %c0_353 = arith.constant 0 : index
    %523 = vector.load %arg1[%c2384, %c0_353] : memref<5496x128xf32, #tpu.memory_space<vmem>>, vector<4x2xf32>
    %cst_354 = arith.constant dense<0.000000e+00> : vector<4x16xf32>
    %524 = tpu.matmul %523, %518, %cst_354 {dimension_numbers = #tpu.dot_dimension_numbers<[1], [0], [0], [1], [0, 0, 1, 1], [], []>} : vector<4x2xf32>, vector<2x16xf32>, vector<4x16xf32> -> vector<4x16xf32>
    %c2392 = arith.constant 2392 : index
    %c0_355 = arith.constant 0 : index
    %525 = vector.load %arg1[%c2392, %c0_355] : memref<5496x128xf32, #tpu.memory_space<vmem>>, vector<16x32xf32>
    %cst_356 = arith.constant dense<0.000000e+00> : vector<4x32xf32>
    %526 = tpu.matmul %520, %525, %cst_356 {dimension_numbers = #tpu.dot_dimension_numbers<[1], [0], [0], [1], [0, 0, 1, 1], [], []>} : vector<4x16xf32>, vector<16x32xf32>, vector<4x32xf32> -> vector<4x32xf32>
    %c2408 = arith.constant 2408 : index
    %c0_357 = arith.constant 0 : index
    %527 = vector.load %arg1[%c2408, %c0_357] : memref<5496x128xf32, #tpu.memory_space<vmem>>, vector<16x32xf32>
    %cst_358 = arith.constant dense<0.000000e+00> : vector<4x32xf32>
    %528 = tpu.matmul %522, %527, %cst_358 {dimension_numbers = #tpu.dot_dimension_numbers<[1], [0], [0], [1], [0, 0, 1, 1], [], []>} : vector<4x16xf32>, vector<16x32xf32>, vector<4x32xf32> -> vector<4x32xf32>
    %529 = arith.addf %526, %528 : vector<4x32xf32>
    %c2424 = arith.constant 2424 : index
    %c0_359 = arith.constant 0 : index
    %530 = vector.load %arg1[%c2424, %c0_359] : memref<5496x128xf32, #tpu.memory_space<vmem>>, vector<16x32xf32>
    %cst_360 = arith.constant dense<0.000000e+00> : vector<4x32xf32>
    %531 = tpu.matmul %524, %530, %cst_360 {dimension_numbers = #tpu.dot_dimension_numbers<[1], [0], [0], [1], [0, 0, 1, 1], [], []>} : vector<4x16xf32>, vector<16x32xf32>, vector<4x32xf32> -> vector<4x32xf32>
    %532 = arith.addf %529, %531 : vector<4x32xf32>
    %cst_361 = arith.constant dense<0.000000e+00> : vector<32xf32>
    %533 = vector.multi_reduction <add>, %532, %cst_361 [0] : vector<4x32xf32> to vector<32xf32>
    %534 = vector.shape_cast %533 : vector<32xf32> to vector<1x32xf32>
    %535 = arith.mulf %532, %532 : vector<4x32xf32>
    %cst_362 = arith.constant dense<0.000000e+00> : vector<32xf32>
    %536 = vector.multi_reduction <add>, %535, %cst_362 [0] : vector<4x32xf32> to vector<32xf32>
    %537 = vector.shape_cast %536 : vector<32xf32> to vector<1x32xf32>
    %c1720_363 = arith.constant 1720 : index
    %c0_364 = arith.constant 0 : index
    %538 = vector.load %arg1[%c1720_363, %c0_364] : memref<5496x128xf32, #tpu.memory_space<vmem>>, vector<32x8xf32>
    %cst_365 = arith.constant dense<0.000000e+00> : vector<1x8xf32>
    %539 = tpu.matmul %534, %538, %cst_365 {dimension_numbers = #tpu.dot_dimension_numbers<[1], [0], [0], [1], [0, 0, 1, 1], [], []>} : vector<1x32xf32>, vector<32x8xf32>, vector<1x8xf32> -> vector<1x8xf32>
    %c1720_366 = arith.constant 1720 : index
    %c0_367 = arith.constant 0 : index
    %540 = vector.load %arg1[%c1720_366, %c0_367] : memref<5496x128xf32, #tpu.memory_space<vmem>>, vector<32x8xf32>
    %cst_368 = arith.constant dense<0.000000e+00> : vector<1x8xf32>
    %541 = tpu.matmul %537, %540, %cst_368 {dimension_numbers = #tpu.dot_dimension_numbers<[1], [0], [0], [1], [0, 0, 1, 1], [], []>} : vector<1x32xf32>, vector<32x8xf32>, vector<1x8xf32> -> vector<1x8xf32>
    %cst_369 = arith.constant 6.250000e-02 : f32
    %542 = vector.broadcast %cst_369 : f32 to vector<1x8xf32>
    %543 = arith.mulf %539, %542 : vector<1x8xf32>
    %cst_370 = arith.constant 6.250000e-02 : f32
    %544 = vector.broadcast %cst_370 : f32 to vector<1x8xf32>
    %545 = arith.mulf %541, %544 : vector<1x8xf32>
    %546 = arith.mulf %543, %543 : vector<1x8xf32>
    %547 = arith.subf %545, %546 : vector<1x8xf32>
    %cst_371 = arith.constant 9.99999974E-6 : f32
    %548 = vector.broadcast %cst_371 : f32 to vector<1x8xf32>
    %549 = arith.addf %547, %548 : vector<1x8xf32>
    %550 = math.rsqrt %549 : vector<1x8xf32>
    %c1752_372 = arith.constant 1752 : index
    %c0_373 = arith.constant 0 : index
    %551 = vector.load %arg1[%c1752_372, %c0_373] : memref<5496x128xf32, #tpu.memory_space<vmem>>, vector<8x32xf32>
    %cst_374 = arith.constant dense<0.000000e+00> : vector<1x32xf32>
    %552 = tpu.matmul %543, %551, %cst_374 {dimension_numbers = #tpu.dot_dimension_numbers<[1], [0], [0], [1], [0, 0, 1, 1], [], []>} : vector<1x8xf32>, vector<8x32xf32>, vector<1x32xf32> -> vector<1x32xf32>
    %c1752_375 = arith.constant 1752 : index
    %c0_376 = arith.constant 0 : index
    %553 = vector.load %arg1[%c1752_375, %c0_376] : memref<5496x128xf32, #tpu.memory_space<vmem>>, vector<8x32xf32>
    %cst_377 = arith.constant dense<0.000000e+00> : vector<1x32xf32>
    %554 = tpu.matmul %550, %553, %cst_377 {dimension_numbers = #tpu.dot_dimension_numbers<[1], [0], [0], [1], [0, 0, 1, 1], [], []>} : vector<1x8xf32>, vector<8x32xf32>, vector<1x32xf32> -> vector<1x32xf32>
    %555 = vector.broadcast %552 : vector<1x32xf32> to vector<4x32xf32>
    %556 = arith.subf %532, %555 : vector<4x32xf32>
    %557 = vector.broadcast %554 : vector<1x32xf32> to vector<4x32xf32>
    %558 = arith.mulf %556, %557 : vector<4x32xf32>
    %cst_378 = arith.constant 0.000000e+00 : f32
    %559 = vector.broadcast %cst_378 : f32 to vector<4x32xf32>
    %560 = arith.maximumf %558, %559 : vector<4x32xf32>
    %c2440 = arith.constant 2440 : index
    %c0_379 = arith.constant 0 : index
    %561 = vector.load %arg1[%c2440, %c0_379] : memref<5496x128xf32, #tpu.memory_space<vmem>>, vector<4x8xf32>
    %cst_380 = arith.constant dense<0.000000e+00> : vector<4x32xf32>
    %562 = tpu.matmul %561, %242, %cst_380 {dimension_numbers = #tpu.dot_dimension_numbers<[1], [0], [0], [1], [0, 0, 1, 1], [], []>} : vector<4x8xf32>, vector<8x32xf32>, vector<4x32xf32> -> vector<4x32xf32>
    %c2448 = arith.constant 2448 : index
    %c0_381 = arith.constant 0 : index
    %563 = vector.load %arg1[%c2448, %c0_381] : memref<5496x128xf32, #tpu.memory_space<vmem>>, vector<4x8xf32>
    %cst_382 = arith.constant dense<0.000000e+00> : vector<4x32xf32>
    %564 = tpu.matmul %563, %242, %cst_382 {dimension_numbers = #tpu.dot_dimension_numbers<[1], [0], [0], [1], [0, 0, 1, 1], [], []>} : vector<4x8xf32>, vector<8x32xf32>, vector<4x32xf32> -> vector<4x32xf32>
    %c2456 = arith.constant 2456 : index
    %c0_383 = arith.constant 0 : index
    %565 = vector.load %arg1[%c2456, %c0_383] : memref<5496x128xf32, #tpu.memory_space<vmem>>, vector<4x8xf32>
    %cst_384 = arith.constant dense<0.000000e+00> : vector<4x32xf32>
    %566 = tpu.matmul %565, %242, %cst_384 {dimension_numbers = #tpu.dot_dimension_numbers<[1], [0], [0], [1], [0, 0, 1, 1], [], []>} : vector<4x8xf32>, vector<8x32xf32>, vector<4x32xf32> -> vector<4x32xf32>
    %c2464 = arith.constant 2464 : index
    %c0_385 = arith.constant 0 : index
    %567 = vector.load %arg1[%c2464, %c0_385] : memref<5496x128xf32, #tpu.memory_space<vmem>>, vector<4x4xf32>
    %cst_386 = arith.constant dense<0.000000e+00> : vector<4x32xf32>
    %568 = tpu.matmul %567, %560, %cst_386 {dimension_numbers = #tpu.dot_dimension_numbers<[1], [0], [0], [1], [0, 0, 1, 1], [], []>} : vector<4x4xf32>, vector<4x32xf32>, vector<4x32xf32> -> vector<4x32xf32>
    %c2472 = arith.constant 2472 : index
    %c0_387 = arith.constant 0 : index
    %569 = vector.load %arg1[%c2472, %c0_387] : memref<5496x128xf32, #tpu.memory_space<vmem>>, vector<4x4xf32>
    %cst_388 = arith.constant dense<0.000000e+00> : vector<4x32xf32>
    %570 = tpu.matmul %569, %560, %cst_388 {dimension_numbers = #tpu.dot_dimension_numbers<[1], [0], [0], [1], [0, 0, 1, 1], [], []>} : vector<4x4xf32>, vector<4x32xf32>, vector<4x32xf32> -> vector<4x32xf32>
    %c2480 = arith.constant 2480 : index
    %c0_389 = arith.constant 0 : index
    %571 = vector.load %arg1[%c2480, %c0_389] : memref<5496x128xf32, #tpu.memory_space<vmem>>, vector<32x32xf32>
    %cst_390 = arith.constant dense<0.000000e+00> : vector<4x32xf32>
    %572 = tpu.matmul %562, %571, %cst_390 {dimension_numbers = #tpu.dot_dimension_numbers<[1], [0], [0], [1], [0, 0, 1, 1], [], []>} : vector<4x32xf32>, vector<32x32xf32>, vector<4x32xf32> -> vector<4x32xf32>
    %c2512 = arith.constant 2512 : index
    %c0_391 = arith.constant 0 : index
    %573 = vector.load %arg1[%c2512, %c0_391] : memref<5496x128xf32, #tpu.memory_space<vmem>>, vector<32x32xf32>
    %cst_392 = arith.constant dense<0.000000e+00> : vector<4x32xf32>
    %574 = tpu.matmul %564, %573, %cst_392 {dimension_numbers = #tpu.dot_dimension_numbers<[1], [0], [0], [1], [0, 0, 1, 1], [], []>} : vector<4x32xf32>, vector<32x32xf32>, vector<4x32xf32> -> vector<4x32xf32>
    %575 = arith.addf %572, %574 : vector<4x32xf32>
    %c2544 = arith.constant 2544 : index
    %c0_393 = arith.constant 0 : index
    %576 = vector.load %arg1[%c2544, %c0_393] : memref<5496x128xf32, #tpu.memory_space<vmem>>, vector<32x32xf32>
    %cst_394 = arith.constant dense<0.000000e+00> : vector<4x32xf32>
    %577 = tpu.matmul %566, %576, %cst_394 {dimension_numbers = #tpu.dot_dimension_numbers<[1], [0], [0], [1], [0, 0, 1, 1], [], []>} : vector<4x32xf32>, vector<32x32xf32>, vector<4x32xf32> -> vector<4x32xf32>
    %578 = arith.addf %575, %577 : vector<4x32xf32>
    %c2576 = arith.constant 2576 : index
    %c0_395 = arith.constant 0 : index
    %579 = vector.load %arg1[%c2576, %c0_395] : memref<5496x128xf32, #tpu.memory_space<vmem>>, vector<32x32xf32>
    %cst_396 = arith.constant dense<0.000000e+00> : vector<4x32xf32>
    %580 = tpu.matmul %568, %579, %cst_396 {dimension_numbers = #tpu.dot_dimension_numbers<[1], [0], [0], [1], [0, 0, 1, 1], [], []>} : vector<4x32xf32>, vector<32x32xf32>, vector<4x32xf32> -> vector<4x32xf32>
    %581 = arith.addf %578, %580 : vector<4x32xf32>
    %c2608 = arith.constant 2608 : index
    %c0_397 = arith.constant 0 : index
    %582 = vector.load %arg1[%c2608, %c0_397] : memref<5496x128xf32, #tpu.memory_space<vmem>>, vector<32x32xf32>
    %cst_398 = arith.constant dense<0.000000e+00> : vector<4x32xf32>
    %583 = tpu.matmul %560, %582, %cst_398 {dimension_numbers = #tpu.dot_dimension_numbers<[1], [0], [0], [1], [0, 0, 1, 1], [], []>} : vector<4x32xf32>, vector<32x32xf32>, vector<4x32xf32> -> vector<4x32xf32>
    %584 = arith.addf %581, %583 : vector<4x32xf32>
    %c2640 = arith.constant 2640 : index
    %c0_399 = arith.constant 0 : index
    %585 = vector.load %arg1[%c2640, %c0_399] : memref<5496x128xf32, #tpu.memory_space<vmem>>, vector<32x32xf32>
    %cst_400 = arith.constant dense<0.000000e+00> : vector<4x32xf32>
    %586 = tpu.matmul %570, %585, %cst_400 {dimension_numbers = #tpu.dot_dimension_numbers<[1], [0], [0], [1], [0, 0, 1, 1], [], []>} : vector<4x32xf32>, vector<32x32xf32>, vector<4x32xf32> -> vector<4x32xf32>
    %587 = arith.addf %584, %586 : vector<4x32xf32>
    %cst_401 = arith.constant dense<0.000000e+00> : vector<32xf32>
    %588 = vector.multi_reduction <add>, %587, %cst_401 [0] : vector<4x32xf32> to vector<32xf32>
    %589 = vector.shape_cast %588 : vector<32xf32> to vector<1x32xf32>
    %590 = arith.mulf %587, %587 : vector<4x32xf32>
    %cst_402 = arith.constant dense<0.000000e+00> : vector<32xf32>
    %591 = vector.multi_reduction <add>, %590, %cst_402 [0] : vector<4x32xf32> to vector<32xf32>
    %592 = vector.shape_cast %591 : vector<32xf32> to vector<1x32xf32>
    %c1720_403 = arith.constant 1720 : index
    %c0_404 = arith.constant 0 : index
    %593 = vector.load %arg1[%c1720_403, %c0_404] : memref<5496x128xf32, #tpu.memory_space<vmem>>, vector<32x8xf32>
    %cst_405 = arith.constant dense<0.000000e+00> : vector<1x8xf32>
    %594 = tpu.matmul %589, %593, %cst_405 {dimension_numbers = #tpu.dot_dimension_numbers<[1], [0], [0], [1], [0, 0, 1, 1], [], []>} : vector<1x32xf32>, vector<32x8xf32>, vector<1x8xf32> -> vector<1x8xf32>
    %c1720_406 = arith.constant 1720 : index
    %c0_407 = arith.constant 0 : index
    %595 = vector.load %arg1[%c1720_406, %c0_407] : memref<5496x128xf32, #tpu.memory_space<vmem>>, vector<32x8xf32>
    %cst_408 = arith.constant dense<0.000000e+00> : vector<1x8xf32>
    %596 = tpu.matmul %592, %595, %cst_408 {dimension_numbers = #tpu.dot_dimension_numbers<[1], [0], [0], [1], [0, 0, 1, 1], [], []>} : vector<1x32xf32>, vector<32x8xf32>, vector<1x8xf32> -> vector<1x8xf32>
    %cst_409 = arith.constant 6.250000e-02 : f32
    %597 = vector.broadcast %cst_409 : f32 to vector<1x8xf32>
    %598 = arith.mulf %594, %597 : vector<1x8xf32>
    %cst_410 = arith.constant 6.250000e-02 : f32
    %599 = vector.broadcast %cst_410 : f32 to vector<1x8xf32>
    %600 = arith.mulf %596, %599 : vector<1x8xf32>
    %601 = arith.mulf %598, %598 : vector<1x8xf32>
    %602 = arith.subf %600, %601 : vector<1x8xf32>
    %cst_411 = arith.constant 9.99999974E-6 : f32
    %603 = vector.broadcast %cst_411 : f32 to vector<1x8xf32>
    %604 = arith.addf %602, %603 : vector<1x8xf32>
    %605 = math.rsqrt %604 : vector<1x8xf32>
    %c1752_412 = arith.constant 1752 : index
    %c0_413 = arith.constant 0 : index
    %606 = vector.load %arg1[%c1752_412, %c0_413] : memref<5496x128xf32, #tpu.memory_space<vmem>>, vector<8x32xf32>
    %cst_414 = arith.constant dense<0.000000e+00> : vector<1x32xf32>
    %607 = tpu.matmul %598, %606, %cst_414 {dimension_numbers = #tpu.dot_dimension_numbers<[1], [0], [0], [1], [0, 0, 1, 1], [], []>} : vector<1x8xf32>, vector<8x32xf32>, vector<1x32xf32> -> vector<1x32xf32>
    %c1752_415 = arith.constant 1752 : index
    %c0_416 = arith.constant 0 : index
    %608 = vector.load %arg1[%c1752_415, %c0_416] : memref<5496x128xf32, #tpu.memory_space<vmem>>, vector<8x32xf32>
    %cst_417 = arith.constant dense<0.000000e+00> : vector<1x32xf32>
    %609 = tpu.matmul %605, %608, %cst_417 {dimension_numbers = #tpu.dot_dimension_numbers<[1], [0], [0], [1], [0, 0, 1, 1], [], []>} : vector<1x8xf32>, vector<8x32xf32>, vector<1x32xf32> -> vector<1x32xf32>
    %610 = vector.broadcast %607 : vector<1x32xf32> to vector<4x32xf32>
    %611 = arith.subf %587, %610 : vector<4x32xf32>
    %612 = vector.broadcast %609 : vector<1x32xf32> to vector<4x32xf32>
    %613 = arith.mulf %611, %612 : vector<4x32xf32>
    %cst_418 = arith.constant 0.000000e+00 : f32
    %614 = vector.broadcast %cst_418 : f32 to vector<4x32xf32>
    %615 = arith.maximumf %613, %614 : vector<4x32xf32>
    %c2464_419 = arith.constant 2464 : index
    %c0_420 = arith.constant 0 : index
    %616 = vector.load %arg1[%c2464_419, %c0_420] : memref<5496x128xf32, #tpu.memory_space<vmem>>, vector<4x4xf32>
    %cst_421 = arith.constant dense<0.000000e+00> : vector<4x32xf32>
    %617 = tpu.matmul %616, %615, %cst_421 {dimension_numbers = #tpu.dot_dimension_numbers<[1], [0], [0], [1], [0, 0, 1, 1], [], []>} : vector<4x4xf32>, vector<4x32xf32>, vector<4x32xf32> -> vector<4x32xf32>
    %c2472_422 = arith.constant 2472 : index
    %c0_423 = arith.constant 0 : index
    %618 = vector.load %arg1[%c2472_422, %c0_423] : memref<5496x128xf32, #tpu.memory_space<vmem>>, vector<4x4xf32>
    %cst_424 = arith.constant dense<0.000000e+00> : vector<4x32xf32>
    %619 = tpu.matmul %618, %615, %cst_424 {dimension_numbers = #tpu.dot_dimension_numbers<[1], [0], [0], [1], [0, 0, 1, 1], [], []>} : vector<4x4xf32>, vector<4x32xf32>, vector<4x32xf32> -> vector<4x32xf32>
    %c2672 = arith.constant 2672 : index
    %c0_425 = arith.constant 0 : index
    %620 = vector.load %arg1[%c2672, %c0_425] : memref<5496x128xf32, #tpu.memory_space<vmem>>, vector<32x32xf32>
    %cst_426 = arith.constant dense<0.000000e+00> : vector<4x32xf32>
    %621 = tpu.matmul %617, %620, %cst_426 {dimension_numbers = #tpu.dot_dimension_numbers<[1], [0], [0], [1], [0, 0, 1, 1], [], []>} : vector<4x32xf32>, vector<32x32xf32>, vector<4x32xf32> -> vector<4x32xf32>
    %c2704 = arith.constant 2704 : index
    %c0_427 = arith.constant 0 : index
    %622 = vector.load %arg1[%c2704, %c0_427] : memref<5496x128xf32, #tpu.memory_space<vmem>>, vector<32x32xf32>
    %cst_428 = arith.constant dense<0.000000e+00> : vector<4x32xf32>
    %623 = tpu.matmul %615, %622, %cst_428 {dimension_numbers = #tpu.dot_dimension_numbers<[1], [0], [0], [1], [0, 0, 1, 1], [], []>} : vector<4x32xf32>, vector<32x32xf32>, vector<4x32xf32> -> vector<4x32xf32>
    %624 = arith.addf %621, %623 : vector<4x32xf32>
    %c2736 = arith.constant 2736 : index
    %c0_429 = arith.constant 0 : index
    %625 = vector.load %arg1[%c2736, %c0_429] : memref<5496x128xf32, #tpu.memory_space<vmem>>, vector<32x32xf32>
    %cst_430 = arith.constant dense<0.000000e+00> : vector<4x32xf32>
    %626 = tpu.matmul %619, %625, %cst_430 {dimension_numbers = #tpu.dot_dimension_numbers<[1], [0], [0], [1], [0, 0, 1, 1], [], []>} : vector<4x32xf32>, vector<32x32xf32>, vector<4x32xf32> -> vector<4x32xf32>
    %627 = arith.addf %624, %626 : vector<4x32xf32>
    %cst_431 = arith.constant dense<0.000000e+00> : vector<32xf32>
    %628 = vector.multi_reduction <add>, %627, %cst_431 [0] : vector<4x32xf32> to vector<32xf32>
    %629 = vector.shape_cast %628 : vector<32xf32> to vector<1x32xf32>
    %630 = arith.mulf %627, %627 : vector<4x32xf32>
    %cst_432 = arith.constant dense<0.000000e+00> : vector<32xf32>
    %631 = vector.multi_reduction <add>, %630, %cst_432 [0] : vector<4x32xf32> to vector<32xf32>
    %632 = vector.shape_cast %631 : vector<32xf32> to vector<1x32xf32>
    %c1720_433 = arith.constant 1720 : index
    %c0_434 = arith.constant 0 : index
    %633 = vector.load %arg1[%c1720_433, %c0_434] : memref<5496x128xf32, #tpu.memory_space<vmem>>, vector<32x8xf32>
    %cst_435 = arith.constant dense<0.000000e+00> : vector<1x8xf32>
    %634 = tpu.matmul %629, %633, %cst_435 {dimension_numbers = #tpu.dot_dimension_numbers<[1], [0], [0], [1], [0, 0, 1, 1], [], []>} : vector<1x32xf32>, vector<32x8xf32>, vector<1x8xf32> -> vector<1x8xf32>
    %c1720_436 = arith.constant 1720 : index
    %c0_437 = arith.constant 0 : index
    %635 = vector.load %arg1[%c1720_436, %c0_437] : memref<5496x128xf32, #tpu.memory_space<vmem>>, vector<32x8xf32>
    %cst_438 = arith.constant dense<0.000000e+00> : vector<1x8xf32>
    %636 = tpu.matmul %632, %635, %cst_438 {dimension_numbers = #tpu.dot_dimension_numbers<[1], [0], [0], [1], [0, 0, 1, 1], [], []>} : vector<1x32xf32>, vector<32x8xf32>, vector<1x8xf32> -> vector<1x8xf32>
    %cst_439 = arith.constant 6.250000e-02 : f32
    %637 = vector.broadcast %cst_439 : f32 to vector<1x8xf32>
    %638 = arith.mulf %634, %637 : vector<1x8xf32>
    %cst_440 = arith.constant 6.250000e-02 : f32
    %639 = vector.broadcast %cst_440 : f32 to vector<1x8xf32>
    %640 = arith.mulf %636, %639 : vector<1x8xf32>
    %641 = arith.mulf %638, %638 : vector<1x8xf32>
    %642 = arith.subf %640, %641 : vector<1x8xf32>
    %cst_441 = arith.constant 9.99999974E-6 : f32
    %643 = vector.broadcast %cst_441 : f32 to vector<1x8xf32>
    %644 = arith.addf %642, %643 : vector<1x8xf32>
    %645 = math.rsqrt %644 : vector<1x8xf32>
    %c1752_442 = arith.constant 1752 : index
    %c0_443 = arith.constant 0 : index
    %646 = vector.load %arg1[%c1752_442, %c0_443] : memref<5496x128xf32, #tpu.memory_space<vmem>>, vector<8x32xf32>
    %cst_444 = arith.constant dense<0.000000e+00> : vector<1x32xf32>
    %647 = tpu.matmul %638, %646, %cst_444 {dimension_numbers = #tpu.dot_dimension_numbers<[1], [0], [0], [1], [0, 0, 1, 1], [], []>} : vector<1x8xf32>, vector<8x32xf32>, vector<1x32xf32> -> vector<1x32xf32>
    %c1752_445 = arith.constant 1752 : index
    %c0_446 = arith.constant 0 : index
    %648 = vector.load %arg1[%c1752_445, %c0_446] : memref<5496x128xf32, #tpu.memory_space<vmem>>, vector<8x32xf32>
    %cst_447 = arith.constant dense<0.000000e+00> : vector<1x32xf32>
    %649 = tpu.matmul %645, %648, %cst_447 {dimension_numbers = #tpu.dot_dimension_numbers<[1], [0], [0], [1], [0, 0, 1, 1], [], []>} : vector<1x8xf32>, vector<8x32xf32>, vector<1x32xf32> -> vector<1x32xf32>
    %650 = vector.broadcast %647 : vector<1x32xf32> to vector<4x32xf32>
    %651 = arith.subf %627, %650 : vector<4x32xf32>
    %652 = vector.broadcast %649 : vector<1x32xf32> to vector<4x32xf32>
    %653 = arith.mulf %651, %652 : vector<4x32xf32>
    %cst_448 = arith.constant 0.000000e+00 : f32
    %654 = vector.broadcast %cst_448 : f32 to vector<4x32xf32>
    %655 = arith.maximumf %653, %654 : vector<4x32xf32>
    %c2768 = arith.constant 2768 : index
    %c0_449 = arith.constant 0 : index
    %656 = vector.load %arg1[%c2768, %c0_449] : memref<5496x128xf32, #tpu.memory_space<vmem>>, vector<8x4xf32>
    %cst_450 = arith.constant dense<0.000000e+00> : vector<8x32xf32>
    %657 = tpu.matmul %656, %655, %cst_450 {dimension_numbers = #tpu.dot_dimension_numbers<[1], [0], [0], [1], [0, 0, 1, 1], [], []>} : vector<8x4xf32>, vector<4x32xf32>, vector<8x32xf32> -> vector<8x32xf32>
    %c2776 = arith.constant 2776 : index
    %c0_451 = arith.constant 0 : index
    %658 = vector.load %arg1[%c2776, %c0_451] : memref<5496x128xf32, #tpu.memory_space<vmem>>, vector<8x4xf32>
    %cst_452 = arith.constant dense<0.000000e+00> : vector<8x32xf32>
    %659 = tpu.matmul %658, %655, %cst_452 {dimension_numbers = #tpu.dot_dimension_numbers<[1], [0], [0], [1], [0, 0, 1, 1], [], []>} : vector<8x4xf32>, vector<4x32xf32>, vector<8x32xf32> -> vector<8x32xf32>
    %c2784 = arith.constant 2784 : index
    %c0_453 = arith.constant 0 : index
    %660 = vector.load %arg1[%c2784, %c0_453] : memref<5496x128xf32, #tpu.memory_space<vmem>>, vector<8x4xf32>
    %cst_454 = arith.constant dense<0.000000e+00> : vector<8x32xf32>
    %661 = tpu.matmul %660, %655, %cst_454 {dimension_numbers = #tpu.dot_dimension_numbers<[1], [0], [0], [1], [0, 0, 1, 1], [], []>} : vector<8x4xf32>, vector<4x32xf32>, vector<8x32xf32> -> vector<8x32xf32>
    %c2792 = arith.constant 2792 : index
    %c0_455 = arith.constant 0 : index
    %662 = vector.load %arg1[%c2792, %c0_455] : memref<5496x128xf32, #tpu.memory_space<vmem>>, vector<32x64xf32>
    %cst_456 = arith.constant dense<0.000000e+00> : vector<8x64xf32>
    %663 = tpu.matmul %657, %662, %cst_456 {dimension_numbers = #tpu.dot_dimension_numbers<[1], [0], [0], [1], [0, 0, 1, 1], [], []>} : vector<8x32xf32>, vector<32x64xf32>, vector<8x64xf32> -> vector<8x64xf32>
    %c2824 = arith.constant 2824 : index
    %c0_457 = arith.constant 0 : index
    %664 = vector.load %arg1[%c2824, %c0_457] : memref<5496x128xf32, #tpu.memory_space<vmem>>, vector<32x64xf32>
    %cst_458 = arith.constant dense<0.000000e+00> : vector<8x64xf32>
    %665 = tpu.matmul %659, %664, %cst_458 {dimension_numbers = #tpu.dot_dimension_numbers<[1], [0], [0], [1], [0, 0, 1, 1], [], []>} : vector<8x32xf32>, vector<32x64xf32>, vector<8x64xf32> -> vector<8x64xf32>
    %666 = arith.addf %663, %665 : vector<8x64xf32>
    %c2856 = arith.constant 2856 : index
    %c0_459 = arith.constant 0 : index
    %667 = vector.load %arg1[%c2856, %c0_459] : memref<5496x128xf32, #tpu.memory_space<vmem>>, vector<32x64xf32>
    %cst_460 = arith.constant dense<0.000000e+00> : vector<8x64xf32>
    %668 = tpu.matmul %661, %667, %cst_460 {dimension_numbers = #tpu.dot_dimension_numbers<[1], [0], [0], [1], [0, 0, 1, 1], [], []>} : vector<8x32xf32>, vector<32x64xf32>, vector<8x64xf32> -> vector<8x64xf32>
    %669 = arith.addf %666, %668 : vector<8x64xf32>
    %cst_461 = arith.constant dense<0.000000e+00> : vector<64xf32>
    %670 = vector.multi_reduction <add>, %669, %cst_461 [0] : vector<8x64xf32> to vector<64xf32>
    %671 = vector.shape_cast %670 : vector<64xf32> to vector<1x64xf32>
    %672 = arith.mulf %669, %669 : vector<8x64xf32>
    %cst_462 = arith.constant dense<0.000000e+00> : vector<64xf32>
    %673 = vector.multi_reduction <add>, %672, %cst_462 [0] : vector<8x64xf32> to vector<64xf32>
    %674 = vector.shape_cast %673 : vector<64xf32> to vector<1x64xf32>
    %c1208_463 = arith.constant 1208 : index
    %c0_464 = arith.constant 0 : index
    %675 = vector.load %arg1[%c1208_463, %c0_464] : memref<5496x128xf32, #tpu.memory_space<vmem>>, vector<64x8xf32>
    %cst_465 = arith.constant dense<0.000000e+00> : vector<1x8xf32>
    %676 = tpu.matmul %671, %675, %cst_465 {dimension_numbers = #tpu.dot_dimension_numbers<[1], [0], [0], [1], [0, 0, 1, 1], [], []>} : vector<1x64xf32>, vector<64x8xf32>, vector<1x8xf32> -> vector<1x8xf32>
    %c1208_466 = arith.constant 1208 : index
    %c0_467 = arith.constant 0 : index
    %677 = vector.load %arg1[%c1208_466, %c0_467] : memref<5496x128xf32, #tpu.memory_space<vmem>>, vector<64x8xf32>
    %cst_468 = arith.constant dense<0.000000e+00> : vector<1x8xf32>
    %678 = tpu.matmul %674, %677, %cst_468 {dimension_numbers = #tpu.dot_dimension_numbers<[1], [0], [0], [1], [0, 0, 1, 1], [], []>} : vector<1x64xf32>, vector<64x8xf32>, vector<1x8xf32> -> vector<1x8xf32>
    %cst_469 = arith.constant 1.562500e-02 : f32
    %679 = vector.broadcast %cst_469 : f32 to vector<1x8xf32>
    %680 = arith.mulf %676, %679 : vector<1x8xf32>
    %cst_470 = arith.constant 1.562500e-02 : f32
    %681 = vector.broadcast %cst_470 : f32 to vector<1x8xf32>
    %682 = arith.mulf %678, %681 : vector<1x8xf32>
    %683 = arith.mulf %680, %680 : vector<1x8xf32>
    %684 = arith.subf %682, %683 : vector<1x8xf32>
    %cst_471 = arith.constant 9.99999974E-6 : f32
    %685 = vector.broadcast %cst_471 : f32 to vector<1x8xf32>
    %686 = arith.addf %684, %685 : vector<1x8xf32>
    %687 = math.rsqrt %686 : vector<1x8xf32>
    %c1272_472 = arith.constant 1272 : index
    %c0_473 = arith.constant 0 : index
    %688 = vector.load %arg1[%c1272_472, %c0_473] : memref<5496x128xf32, #tpu.memory_space<vmem>>, vector<8x64xf32>
    %cst_474 = arith.constant dense<0.000000e+00> : vector<1x64xf32>
    %689 = tpu.matmul %680, %688, %cst_474 {dimension_numbers = #tpu.dot_dimension_numbers<[1], [0], [0], [1], [0, 0, 1, 1], [], []>} : vector<1x8xf32>, vector<8x64xf32>, vector<1x64xf32> -> vector<1x64xf32>
    %c1272_475 = arith.constant 1272 : index
    %c0_476 = arith.constant 0 : index
    %690 = vector.load %arg1[%c1272_475, %c0_476] : memref<5496x128xf32, #tpu.memory_space<vmem>>, vector<8x64xf32>
    %cst_477 = arith.constant dense<0.000000e+00> : vector<1x64xf32>
    %691 = tpu.matmul %687, %690, %cst_477 {dimension_numbers = #tpu.dot_dimension_numbers<[1], [0], [0], [1], [0, 0, 1, 1], [], []>} : vector<1x8xf32>, vector<8x64xf32>, vector<1x64xf32> -> vector<1x64xf32>
    %692 = vector.broadcast %689 : vector<1x64xf32> to vector<8x64xf32>
    %693 = arith.subf %669, %692 : vector<8x64xf32>
    %694 = vector.broadcast %691 : vector<1x64xf32> to vector<8x64xf32>
    %695 = arith.mulf %693, %694 : vector<8x64xf32>
    %cst_478 = arith.constant 0.000000e+00 : f32
    %696 = vector.broadcast %cst_478 : f32 to vector<8x64xf32>
    %697 = arith.maximumf %695, %696 : vector<8x64xf32>
    %c2888 = arith.constant 2888 : index
    %c0_479 = arith.constant 0 : index
    %698 = vector.load %arg1[%c2888, %c0_479] : memref<5496x128xf32, #tpu.memory_space<vmem>>, vector<8x16xf32>
    %cst_480 = arith.constant dense<0.000000e+00> : vector<8x64xf32>
    %699 = tpu.matmul %698, %158, %cst_480 {dimension_numbers = #tpu.dot_dimension_numbers<[1], [0], [0], [1], [0, 0, 1, 1], [], []>} : vector<8x16xf32>, vector<16x64xf32>, vector<8x64xf32> -> vector<8x64xf32>
    %c2896 = arith.constant 2896 : index
    %c0_481 = arith.constant 0 : index
    %700 = vector.load %arg1[%c2896, %c0_481] : memref<5496x128xf32, #tpu.memory_space<vmem>>, vector<8x16xf32>
    %cst_482 = arith.constant dense<0.000000e+00> : vector<8x64xf32>
    %701 = tpu.matmul %700, %158, %cst_482 {dimension_numbers = #tpu.dot_dimension_numbers<[1], [0], [0], [1], [0, 0, 1, 1], [], []>} : vector<8x16xf32>, vector<16x64xf32>, vector<8x64xf32> -> vector<8x64xf32>
    %c2904 = arith.constant 2904 : index
    %c0_483 = arith.constant 0 : index
    %702 = vector.load %arg1[%c2904, %c0_483] : memref<5496x128xf32, #tpu.memory_space<vmem>>, vector<8x16xf32>
    %cst_484 = arith.constant dense<0.000000e+00> : vector<8x64xf32>
    %703 = tpu.matmul %702, %158, %cst_484 {dimension_numbers = #tpu.dot_dimension_numbers<[1], [0], [0], [1], [0, 0, 1, 1], [], []>} : vector<8x16xf32>, vector<16x64xf32>, vector<8x64xf32> -> vector<8x64xf32>
    %c2912 = arith.constant 2912 : index
    %c0_485 = arith.constant 0 : index
    %704 = vector.load %arg1[%c2912, %c0_485] : memref<5496x128xf32, #tpu.memory_space<vmem>>, vector<8x8xf32>
    %cst_486 = arith.constant dense<0.000000e+00> : vector<8x64xf32>
    %705 = tpu.matmul %704, %697, %cst_486 {dimension_numbers = #tpu.dot_dimension_numbers<[1], [0], [0], [1], [0, 0, 1, 1], [], []>} : vector<8x8xf32>, vector<8x64xf32>, vector<8x64xf32> -> vector<8x64xf32>
    %c2920 = arith.constant 2920 : index
    %c0_487 = arith.constant 0 : index
    %706 = vector.load %arg1[%c2920, %c0_487] : memref<5496x128xf32, #tpu.memory_space<vmem>>, vector<8x8xf32>
    %cst_488 = arith.constant dense<0.000000e+00> : vector<8x64xf32>
    %707 = tpu.matmul %706, %697, %cst_488 {dimension_numbers = #tpu.dot_dimension_numbers<[1], [0], [0], [1], [0, 0, 1, 1], [], []>} : vector<8x8xf32>, vector<8x64xf32>, vector<8x64xf32> -> vector<8x64xf32>
    %c2928 = arith.constant 2928 : index
    %c0_489 = arith.constant 0 : index
    %708 = vector.load %arg1[%c2928, %c0_489] : memref<5496x128xf32, #tpu.memory_space<vmem>>, vector<64x64xf32>
    %cst_490 = arith.constant dense<0.000000e+00> : vector<8x64xf32>
    %709 = tpu.matmul %699, %708, %cst_490 {dimension_numbers = #tpu.dot_dimension_numbers<[1], [0], [0], [1], [0, 0, 1, 1], [], []>} : vector<8x64xf32>, vector<64x64xf32>, vector<8x64xf32> -> vector<8x64xf32>
    %c2992 = arith.constant 2992 : index
    %c0_491 = arith.constant 0 : index
    %710 = vector.load %arg1[%c2992, %c0_491] : memref<5496x128xf32, #tpu.memory_space<vmem>>, vector<64x64xf32>
    %cst_492 = arith.constant dense<0.000000e+00> : vector<8x64xf32>
    %711 = tpu.matmul %701, %710, %cst_492 {dimension_numbers = #tpu.dot_dimension_numbers<[1], [0], [0], [1], [0, 0, 1, 1], [], []>} : vector<8x64xf32>, vector<64x64xf32>, vector<8x64xf32> -> vector<8x64xf32>
    %712 = arith.addf %709, %711 : vector<8x64xf32>
    %c3056 = arith.constant 3056 : index
    %c0_493 = arith.constant 0 : index
    %713 = vector.load %arg1[%c3056, %c0_493] : memref<5496x128xf32, #tpu.memory_space<vmem>>, vector<64x64xf32>
    %cst_494 = arith.constant dense<0.000000e+00> : vector<8x64xf32>
    %714 = tpu.matmul %703, %713, %cst_494 {dimension_numbers = #tpu.dot_dimension_numbers<[1], [0], [0], [1], [0, 0, 1, 1], [], []>} : vector<8x64xf32>, vector<64x64xf32>, vector<8x64xf32> -> vector<8x64xf32>
    %715 = arith.addf %712, %714 : vector<8x64xf32>
    %c3120 = arith.constant 3120 : index
    %c0_495 = arith.constant 0 : index
    %716 = vector.load %arg1[%c3120, %c0_495] : memref<5496x128xf32, #tpu.memory_space<vmem>>, vector<64x64xf32>
    %cst_496 = arith.constant dense<0.000000e+00> : vector<8x64xf32>
    %717 = tpu.matmul %705, %716, %cst_496 {dimension_numbers = #tpu.dot_dimension_numbers<[1], [0], [0], [1], [0, 0, 1, 1], [], []>} : vector<8x64xf32>, vector<64x64xf32>, vector<8x64xf32> -> vector<8x64xf32>
    %718 = arith.addf %715, %717 : vector<8x64xf32>
    %c3184 = arith.constant 3184 : index
    %c0_497 = arith.constant 0 : index
    %719 = vector.load %arg1[%c3184, %c0_497] : memref<5496x128xf32, #tpu.memory_space<vmem>>, vector<64x64xf32>
    %cst_498 = arith.constant dense<0.000000e+00> : vector<8x64xf32>
    %720 = tpu.matmul %697, %719, %cst_498 {dimension_numbers = #tpu.dot_dimension_numbers<[1], [0], [0], [1], [0, 0, 1, 1], [], []>} : vector<8x64xf32>, vector<64x64xf32>, vector<8x64xf32> -> vector<8x64xf32>
    %721 = arith.addf %718, %720 : vector<8x64xf32>
    %c3248 = arith.constant 3248 : index
    %c0_499 = arith.constant 0 : index
    %722 = vector.load %arg1[%c3248, %c0_499] : memref<5496x128xf32, #tpu.memory_space<vmem>>, vector<64x64xf32>
    %cst_500 = arith.constant dense<0.000000e+00> : vector<8x64xf32>
    %723 = tpu.matmul %707, %722, %cst_500 {dimension_numbers = #tpu.dot_dimension_numbers<[1], [0], [0], [1], [0, 0, 1, 1], [], []>} : vector<8x64xf32>, vector<64x64xf32>, vector<8x64xf32> -> vector<8x64xf32>
    %724 = arith.addf %721, %723 : vector<8x64xf32>
    %cst_501 = arith.constant dense<0.000000e+00> : vector<64xf32>
    %725 = vector.multi_reduction <add>, %724, %cst_501 [0] : vector<8x64xf32> to vector<64xf32>
    %726 = vector.shape_cast %725 : vector<64xf32> to vector<1x64xf32>
    %727 = arith.mulf %724, %724 : vector<8x64xf32>
    %cst_502 = arith.constant dense<0.000000e+00> : vector<64xf32>
    %728 = vector.multi_reduction <add>, %727, %cst_502 [0] : vector<8x64xf32> to vector<64xf32>
    %729 = vector.shape_cast %728 : vector<64xf32> to vector<1x64xf32>
    %c1208_503 = arith.constant 1208 : index
    %c0_504 = arith.constant 0 : index
    %730 = vector.load %arg1[%c1208_503, %c0_504] : memref<5496x128xf32, #tpu.memory_space<vmem>>, vector<64x8xf32>
    %cst_505 = arith.constant dense<0.000000e+00> : vector<1x8xf32>
    %731 = tpu.matmul %726, %730, %cst_505 {dimension_numbers = #tpu.dot_dimension_numbers<[1], [0], [0], [1], [0, 0, 1, 1], [], []>} : vector<1x64xf32>, vector<64x8xf32>, vector<1x8xf32> -> vector<1x8xf32>
    %c1208_506 = arith.constant 1208 : index
    %c0_507 = arith.constant 0 : index
    %732 = vector.load %arg1[%c1208_506, %c0_507] : memref<5496x128xf32, #tpu.memory_space<vmem>>, vector<64x8xf32>
    %cst_508 = arith.constant dense<0.000000e+00> : vector<1x8xf32>
    %733 = tpu.matmul %729, %732, %cst_508 {dimension_numbers = #tpu.dot_dimension_numbers<[1], [0], [0], [1], [0, 0, 1, 1], [], []>} : vector<1x64xf32>, vector<64x8xf32>, vector<1x8xf32> -> vector<1x8xf32>
    %cst_509 = arith.constant 1.562500e-02 : f32
    %734 = vector.broadcast %cst_509 : f32 to vector<1x8xf32>
    %735 = arith.mulf %731, %734 : vector<1x8xf32>
    %cst_510 = arith.constant 1.562500e-02 : f32
    %736 = vector.broadcast %cst_510 : f32 to vector<1x8xf32>
    %737 = arith.mulf %733, %736 : vector<1x8xf32>
    %738 = arith.mulf %735, %735 : vector<1x8xf32>
    %739 = arith.subf %737, %738 : vector<1x8xf32>
    %cst_511 = arith.constant 9.99999974E-6 : f32
    %740 = vector.broadcast %cst_511 : f32 to vector<1x8xf32>
    %741 = arith.addf %739, %740 : vector<1x8xf32>
    %742 = math.rsqrt %741 : vector<1x8xf32>
    %c1272_512 = arith.constant 1272 : index
    %c0_513 = arith.constant 0 : index
    %743 = vector.load %arg1[%c1272_512, %c0_513] : memref<5496x128xf32, #tpu.memory_space<vmem>>, vector<8x64xf32>
    %cst_514 = arith.constant dense<0.000000e+00> : vector<1x64xf32>
    %744 = tpu.matmul %735, %743, %cst_514 {dimension_numbers = #tpu.dot_dimension_numbers<[1], [0], [0], [1], [0, 0, 1, 1], [], []>} : vector<1x8xf32>, vector<8x64xf32>, vector<1x64xf32> -> vector<1x64xf32>
    %c1272_515 = arith.constant 1272 : index
    %c0_516 = arith.constant 0 : index
    %745 = vector.load %arg1[%c1272_515, %c0_516] : memref<5496x128xf32, #tpu.memory_space<vmem>>, vector<8x64xf32>
    %cst_517 = arith.constant dense<0.000000e+00> : vector<1x64xf32>
    %746 = tpu.matmul %742, %745, %cst_517 {dimension_numbers = #tpu.dot_dimension_numbers<[1], [0], [0], [1], [0, 0, 1, 1], [], []>} : vector<1x8xf32>, vector<8x64xf32>, vector<1x64xf32> -> vector<1x64xf32>
    %747 = vector.broadcast %744 : vector<1x64xf32> to vector<8x64xf32>
    %748 = arith.subf %724, %747 : vector<8x64xf32>
    %749 = vector.broadcast %746 : vector<1x64xf32> to vector<8x64xf32>
    %750 = arith.mulf %748, %749 : vector<8x64xf32>
    %cst_518 = arith.constant 0.000000e+00 : f32
    %751 = vector.broadcast %cst_518 : f32 to vector<8x64xf32>
    %752 = arith.maximumf %750, %751 : vector<8x64xf32>
    %c2912_519 = arith.constant 2912 : index
    %c0_520 = arith.constant 0 : index
    %753 = vector.load %arg1[%c2912_519, %c0_520] : memref<5496x128xf32, #tpu.memory_space<vmem>>, vector<8x8xf32>
    %cst_521 = arith.constant dense<0.000000e+00> : vector<8x64xf32>
    %754 = tpu.matmul %753, %752, %cst_521 {dimension_numbers = #tpu.dot_dimension_numbers<[1], [0], [0], [1], [0, 0, 1, 1], [], []>} : vector<8x8xf32>, vector<8x64xf32>, vector<8x64xf32> -> vector<8x64xf32>
    %c2920_522 = arith.constant 2920 : index
    %c0_523 = arith.constant 0 : index
    %755 = vector.load %arg1[%c2920_522, %c0_523] : memref<5496x128xf32, #tpu.memory_space<vmem>>, vector<8x8xf32>
    %cst_524 = arith.constant dense<0.000000e+00> : vector<8x64xf32>
    %756 = tpu.matmul %755, %752, %cst_524 {dimension_numbers = #tpu.dot_dimension_numbers<[1], [0], [0], [1], [0, 0, 1, 1], [], []>} : vector<8x8xf32>, vector<8x64xf32>, vector<8x64xf32> -> vector<8x64xf32>
    %c3312 = arith.constant 3312 : index
    %c0_525 = arith.constant 0 : index
    %757 = vector.load %arg1[%c3312, %c0_525] : memref<5496x128xf32, #tpu.memory_space<vmem>>, vector<64x64xf32>
    %cst_526 = arith.constant dense<0.000000e+00> : vector<8x64xf32>
    %758 = tpu.matmul %754, %757, %cst_526 {dimension_numbers = #tpu.dot_dimension_numbers<[1], [0], [0], [1], [0, 0, 1, 1], [], []>} : vector<8x64xf32>, vector<64x64xf32>, vector<8x64xf32> -> vector<8x64xf32>
    %c3376 = arith.constant 3376 : index
    %c0_527 = arith.constant 0 : index
    %759 = vector.load %arg1[%c3376, %c0_527] : memref<5496x128xf32, #tpu.memory_space<vmem>>, vector<64x64xf32>
    %cst_528 = arith.constant dense<0.000000e+00> : vector<8x64xf32>
    %760 = tpu.matmul %752, %759, %cst_528 {dimension_numbers = #tpu.dot_dimension_numbers<[1], [0], [0], [1], [0, 0, 1, 1], [], []>} : vector<8x64xf32>, vector<64x64xf32>, vector<8x64xf32> -> vector<8x64xf32>
    %761 = arith.addf %758, %760 : vector<8x64xf32>
    %c3440 = arith.constant 3440 : index
    %c0_529 = arith.constant 0 : index
    %762 = vector.load %arg1[%c3440, %c0_529] : memref<5496x128xf32, #tpu.memory_space<vmem>>, vector<64x64xf32>
    %cst_530 = arith.constant dense<0.000000e+00> : vector<8x64xf32>
    %763 = tpu.matmul %756, %762, %cst_530 {dimension_numbers = #tpu.dot_dimension_numbers<[1], [0], [0], [1], [0, 0, 1, 1], [], []>} : vector<8x64xf32>, vector<64x64xf32>, vector<8x64xf32> -> vector<8x64xf32>
    %764 = arith.addf %761, %763 : vector<8x64xf32>
    %cst_531 = arith.constant dense<0.000000e+00> : vector<64xf32>
    %765 = vector.multi_reduction <add>, %764, %cst_531 [0] : vector<8x64xf32> to vector<64xf32>
    %766 = vector.shape_cast %765 : vector<64xf32> to vector<1x64xf32>
    %767 = arith.mulf %764, %764 : vector<8x64xf32>
    %cst_532 = arith.constant dense<0.000000e+00> : vector<64xf32>
    %768 = vector.multi_reduction <add>, %767, %cst_532 [0] : vector<8x64xf32> to vector<64xf32>
    %769 = vector.shape_cast %768 : vector<64xf32> to vector<1x64xf32>
    %c1208_533 = arith.constant 1208 : index
    %c0_534 = arith.constant 0 : index
    %770 = vector.load %arg1[%c1208_533, %c0_534] : memref<5496x128xf32, #tpu.memory_space<vmem>>, vector<64x8xf32>
    %cst_535 = arith.constant dense<0.000000e+00> : vector<1x8xf32>
    %771 = tpu.matmul %766, %770, %cst_535 {dimension_numbers = #tpu.dot_dimension_numbers<[1], [0], [0], [1], [0, 0, 1, 1], [], []>} : vector<1x64xf32>, vector<64x8xf32>, vector<1x8xf32> -> vector<1x8xf32>
    %c1208_536 = arith.constant 1208 : index
    %c0_537 = arith.constant 0 : index
    %772 = vector.load %arg1[%c1208_536, %c0_537] : memref<5496x128xf32, #tpu.memory_space<vmem>>, vector<64x8xf32>
    %cst_538 = arith.constant dense<0.000000e+00> : vector<1x8xf32>
    %773 = tpu.matmul %769, %772, %cst_538 {dimension_numbers = #tpu.dot_dimension_numbers<[1], [0], [0], [1], [0, 0, 1, 1], [], []>} : vector<1x64xf32>, vector<64x8xf32>, vector<1x8xf32> -> vector<1x8xf32>
    %cst_539 = arith.constant 1.562500e-02 : f32
    %774 = vector.broadcast %cst_539 : f32 to vector<1x8xf32>
    %775 = arith.mulf %771, %774 : vector<1x8xf32>
    %cst_540 = arith.constant 1.562500e-02 : f32
    %776 = vector.broadcast %cst_540 : f32 to vector<1x8xf32>
    %777 = arith.mulf %773, %776 : vector<1x8xf32>
    %778 = arith.mulf %775, %775 : vector<1x8xf32>
    %779 = arith.subf %777, %778 : vector<1x8xf32>
    %cst_541 = arith.constant 9.99999974E-6 : f32
    %780 = vector.broadcast %cst_541 : f32 to vector<1x8xf32>
    %781 = arith.addf %779, %780 : vector<1x8xf32>
    %782 = math.rsqrt %781 : vector<1x8xf32>
    %c1272_542 = arith.constant 1272 : index
    %c0_543 = arith.constant 0 : index
    %783 = vector.load %arg1[%c1272_542, %c0_543] : memref<5496x128xf32, #tpu.memory_space<vmem>>, vector<8x64xf32>
    %cst_544 = arith.constant dense<0.000000e+00> : vector<1x64xf32>
    %784 = tpu.matmul %775, %783, %cst_544 {dimension_numbers = #tpu.dot_dimension_numbers<[1], [0], [0], [1], [0, 0, 1, 1], [], []>} : vector<1x8xf32>, vector<8x64xf32>, vector<1x64xf32> -> vector<1x64xf32>
    %c1272_545 = arith.constant 1272 : index
    %c0_546 = arith.constant 0 : index
    %785 = vector.load %arg1[%c1272_545, %c0_546] : memref<5496x128xf32, #tpu.memory_space<vmem>>, vector<8x64xf32>
    %cst_547 = arith.constant dense<0.000000e+00> : vector<1x64xf32>
    %786 = tpu.matmul %782, %785, %cst_547 {dimension_numbers = #tpu.dot_dimension_numbers<[1], [0], [0], [1], [0, 0, 1, 1], [], []>} : vector<1x8xf32>, vector<8x64xf32>, vector<1x64xf32> -> vector<1x64xf32>
    %787 = vector.broadcast %784 : vector<1x64xf32> to vector<8x64xf32>
    %788 = arith.subf %764, %787 : vector<8x64xf32>
    %789 = vector.broadcast %786 : vector<1x64xf32> to vector<8x64xf32>
    %790 = arith.mulf %788, %789 : vector<8x64xf32>
    %cst_548 = arith.constant 0.000000e+00 : f32
    %791 = vector.broadcast %cst_548 : f32 to vector<8x64xf32>
    %792 = arith.maximumf %790, %791 : vector<8x64xf32>
    %c3504 = arith.constant 3504 : index
    %c0_549 = arith.constant 0 : index
    %793 = vector.load %arg1[%c3504, %c0_549] : memref<5496x128xf32, #tpu.memory_space<vmem>>, vector<16x8xf32>
    %cst_550 = arith.constant dense<0.000000e+00> : vector<16x64xf32>
    %794 = tpu.matmul %793, %792, %cst_550 {dimension_numbers = #tpu.dot_dimension_numbers<[1], [0], [0], [1], [0, 0, 1, 1], [], []>} : vector<16x8xf32>, vector<8x64xf32>, vector<16x64xf32> -> vector<16x64xf32>
    %c3520 = arith.constant 3520 : index
    %c0_551 = arith.constant 0 : index
    %795 = vector.load %arg1[%c3520, %c0_551] : memref<5496x128xf32, #tpu.memory_space<vmem>>, vector<16x8xf32>
    %cst_552 = arith.constant dense<0.000000e+00> : vector<16x64xf32>
    %796 = tpu.matmul %795, %792, %cst_552 {dimension_numbers = #tpu.dot_dimension_numbers<[1], [0], [0], [1], [0, 0, 1, 1], [], []>} : vector<16x8xf32>, vector<8x64xf32>, vector<16x64xf32> -> vector<16x64xf32>
    %c3536 = arith.constant 3536 : index
    %c0_553 = arith.constant 0 : index
    %797 = vector.load %arg1[%c3536, %c0_553] : memref<5496x128xf32, #tpu.memory_space<vmem>>, vector<16x8xf32>
    %cst_554 = arith.constant dense<0.000000e+00> : vector<16x64xf32>
    %798 = tpu.matmul %797, %792, %cst_554 {dimension_numbers = #tpu.dot_dimension_numbers<[1], [0], [0], [1], [0, 0, 1, 1], [], []>} : vector<16x8xf32>, vector<8x64xf32>, vector<16x64xf32> -> vector<16x64xf32>
    %c3552 = arith.constant 3552 : index
    %c0_555 = arith.constant 0 : index
    %799 = vector.load %arg1[%c3552, %c0_555] : memref<5496x128xf32, #tpu.memory_space<vmem>>, vector<64x128xf32>
    %cst_556 = arith.constant dense<0.000000e+00> : vector<16x128xf32>
    %800 = tpu.matmul %794, %799, %cst_556 {dimension_numbers = #tpu.dot_dimension_numbers<[1], [0], [0], [1], [0, 0, 1, 1], [], []>} : vector<16x64xf32>, vector<64x128xf32>, vector<16x128xf32> -> vector<16x128xf32>
    %c3616 = arith.constant 3616 : index
    %c0_557 = arith.constant 0 : index
    %801 = vector.load %arg1[%c3616, %c0_557] : memref<5496x128xf32, #tpu.memory_space<vmem>>, vector<64x128xf32>
    %cst_558 = arith.constant dense<0.000000e+00> : vector<16x128xf32>
    %802 = tpu.matmul %796, %801, %cst_558 {dimension_numbers = #tpu.dot_dimension_numbers<[1], [0], [0], [1], [0, 0, 1, 1], [], []>} : vector<16x64xf32>, vector<64x128xf32>, vector<16x128xf32> -> vector<16x128xf32>
    %803 = arith.addf %800, %802 : vector<16x128xf32>
    %c3680 = arith.constant 3680 : index
    %c0_559 = arith.constant 0 : index
    %804 = vector.load %arg1[%c3680, %c0_559] : memref<5496x128xf32, #tpu.memory_space<vmem>>, vector<64x128xf32>
    %cst_560 = arith.constant dense<0.000000e+00> : vector<16x128xf32>
    %805 = tpu.matmul %798, %804, %cst_560 {dimension_numbers = #tpu.dot_dimension_numbers<[1], [0], [0], [1], [0, 0, 1, 1], [], []>} : vector<16x64xf32>, vector<64x128xf32>, vector<16x128xf32> -> vector<16x128xf32>
    %806 = arith.addf %803, %805 : vector<16x128xf32>
    %cst_561 = arith.constant dense<0.000000e+00> : vector<128xf32>
    %807 = vector.multi_reduction <add>, %806, %cst_561 [0] : vector<16x128xf32> to vector<128xf32>
    %808 = vector.shape_cast %807 : vector<128xf32> to vector<1x128xf32>
    %809 = arith.mulf %806, %806 : vector<16x128xf32>
    %cst_562 = arith.constant dense<0.000000e+00> : vector<128xf32>
    %810 = vector.multi_reduction <add>, %809, %cst_562 [0] : vector<16x128xf32> to vector<128xf32>
    %811 = vector.shape_cast %810 : vector<128xf32> to vector<1x128xf32>
    %c192_563 = arith.constant 192 : index
    %c0_564 = arith.constant 0 : index
    %812 = vector.load %arg1[%c192_563, %c0_564] : memref<5496x128xf32, #tpu.memory_space<vmem>>, vector<128x8xf32>
    %cst_565 = arith.constant dense<0.000000e+00> : vector<1x8xf32>
    %813 = tpu.matmul %808, %812, %cst_565 {dimension_numbers = #tpu.dot_dimension_numbers<[1], [0], [0], [1], [0, 0, 1, 1], [], []>} : vector<1x128xf32>, vector<128x8xf32>, vector<1x8xf32> -> vector<1x8xf32>
    %c192_566 = arith.constant 192 : index
    %c0_567 = arith.constant 0 : index
    %814 = vector.load %arg1[%c192_566, %c0_567] : memref<5496x128xf32, #tpu.memory_space<vmem>>, vector<128x8xf32>
    %cst_568 = arith.constant dense<0.000000e+00> : vector<1x8xf32>
    %815 = tpu.matmul %811, %814, %cst_568 {dimension_numbers = #tpu.dot_dimension_numbers<[1], [0], [0], [1], [0, 0, 1, 1], [], []>} : vector<1x128xf32>, vector<128x8xf32>, vector<1x8xf32> -> vector<1x8xf32>
    %cst_569 = arith.constant 3.906250e-03 : f32
    %816 = vector.broadcast %cst_569 : f32 to vector<1x8xf32>
    %817 = arith.mulf %813, %816 : vector<1x8xf32>
    %cst_570 = arith.constant 3.906250e-03 : f32
    %818 = vector.broadcast %cst_570 : f32 to vector<1x8xf32>
    %819 = arith.mulf %815, %818 : vector<1x8xf32>
    %820 = arith.mulf %817, %817 : vector<1x8xf32>
    %821 = arith.subf %819, %820 : vector<1x8xf32>
    %cst_571 = arith.constant 9.99999974E-6 : f32
    %822 = vector.broadcast %cst_571 : f32 to vector<1x8xf32>
    %823 = arith.addf %821, %822 : vector<1x8xf32>
    %824 = math.rsqrt %823 : vector<1x8xf32>
    %c320_572 = arith.constant 320 : index
    %c0_573 = arith.constant 0 : index
    %825 = vector.load %arg1[%c320_572, %c0_573] : memref<5496x128xf32, #tpu.memory_space<vmem>>, vector<8x128xf32>
    %cst_574 = arith.constant dense<0.000000e+00> : vector<1x128xf32>
    %826 = tpu.matmul %817, %825, %cst_574 {dimension_numbers = #tpu.dot_dimension_numbers<[1], [0], [0], [1], [0, 0, 1, 1], [], []>} : vector<1x8xf32>, vector<8x128xf32>, vector<1x128xf32> -> vector<1x128xf32>
    %c320_575 = arith.constant 320 : index
    %c0_576 = arith.constant 0 : index
    %827 = vector.load %arg1[%c320_575, %c0_576] : memref<5496x128xf32, #tpu.memory_space<vmem>>, vector<8x128xf32>
    %cst_577 = arith.constant dense<0.000000e+00> : vector<1x128xf32>
    %828 = tpu.matmul %824, %827, %cst_577 {dimension_numbers = #tpu.dot_dimension_numbers<[1], [0], [0], [1], [0, 0, 1, 1], [], []>} : vector<1x8xf32>, vector<8x128xf32>, vector<1x128xf32> -> vector<1x128xf32>
    %829 = vector.broadcast %826 : vector<1x128xf32> to vector<16x128xf32>
    %830 = arith.subf %806, %829 : vector<16x128xf32>
    %831 = vector.broadcast %828 : vector<1x128xf32> to vector<16x128xf32>
    %832 = arith.mulf %830, %831 : vector<16x128xf32>
    %cst_578 = arith.constant 0.000000e+00 : f32
    %833 = vector.broadcast %cst_578 : f32 to vector<16x128xf32>
    %834 = arith.maximumf %832, %833 : vector<16x128xf32>
    %c3744 = arith.constant 3744 : index
    %c0_579 = arith.constant 0 : index
    %835 = vector.load %arg1[%c3744, %c0_579] : memref<5496x128xf32, #tpu.memory_space<vmem>>, vector<16x32xf32>
    %cst_580 = arith.constant dense<0.000000e+00> : vector<16x128xf32>
    %836 = tpu.matmul %835, %79, %cst_580 {dimension_numbers = #tpu.dot_dimension_numbers<[1], [0], [0], [1], [0, 0, 1, 1], [], []>} : vector<16x32xf32>, vector<32x128xf32>, vector<16x128xf32> -> vector<16x128xf32>
    %c3760 = arith.constant 3760 : index
    %c0_581 = arith.constant 0 : index
    %837 = vector.load %arg1[%c3760, %c0_581] : memref<5496x128xf32, #tpu.memory_space<vmem>>, vector<16x32xf32>
    %cst_582 = arith.constant dense<0.000000e+00> : vector<16x128xf32>
    %838 = tpu.matmul %837, %79, %cst_582 {dimension_numbers = #tpu.dot_dimension_numbers<[1], [0], [0], [1], [0, 0, 1, 1], [], []>} : vector<16x32xf32>, vector<32x128xf32>, vector<16x128xf32> -> vector<16x128xf32>
    %c3776 = arith.constant 3776 : index
    %c0_583 = arith.constant 0 : index
    %839 = vector.load %arg1[%c3776, %c0_583] : memref<5496x128xf32, #tpu.memory_space<vmem>>, vector<16x32xf32>
    %cst_584 = arith.constant dense<0.000000e+00> : vector<16x128xf32>
    %840 = tpu.matmul %839, %79, %cst_584 {dimension_numbers = #tpu.dot_dimension_numbers<[1], [0], [0], [1], [0, 0, 1, 1], [], []>} : vector<16x32xf32>, vector<32x128xf32>, vector<16x128xf32> -> vector<16x128xf32>
    %c3792 = arith.constant 3792 : index
    %c0_585 = arith.constant 0 : index
    %841 = vector.load %arg1[%c3792, %c0_585] : memref<5496x128xf32, #tpu.memory_space<vmem>>, vector<16x16xf32>
    %cst_586 = arith.constant dense<0.000000e+00> : vector<16x128xf32>
    %842 = tpu.matmul %841, %834, %cst_586 {dimension_numbers = #tpu.dot_dimension_numbers<[1], [0], [0], [1], [0, 0, 1, 1], [], []>} : vector<16x16xf32>, vector<16x128xf32>, vector<16x128xf32> -> vector<16x128xf32>
    %c3808 = arith.constant 3808 : index
    %c0_587 = arith.constant 0 : index
    %843 = vector.load %arg1[%c3808, %c0_587] : memref<5496x128xf32, #tpu.memory_space<vmem>>, vector<16x16xf32>
    %cst_588 = arith.constant dense<0.000000e+00> : vector<16x128xf32>
    %844 = tpu.matmul %843, %834, %cst_588 {dimension_numbers = #tpu.dot_dimension_numbers<[1], [0], [0], [1], [0, 0, 1, 1], [], []>} : vector<16x16xf32>, vector<16x128xf32>, vector<16x128xf32> -> vector<16x128xf32>
    %845 = tpu.concatenate %836, %838, %840, %842, %834, %844 in 1 : vector<16x128xf32>, vector<16x128xf32>, vector<16x128xf32>, vector<16x128xf32>, vector<16x128xf32>, vector<16x128xf32> -> vector<16x768xf32>
    %c3824 = arith.constant 3824 : index
    %c0_589 = arith.constant 0 : index
    %846 = vector.load %arg1[%c3824, %c0_589] : memref<5496x128xf32, #tpu.memory_space<vmem>>, vector<768x128xf32>
    %cst_590 = arith.constant dense<0.000000e+00> : vector<16x128xf32>
    %847 = tpu.matmul %845, %846, %cst_590 {dimension_numbers = #tpu.dot_dimension_numbers<[1], [0], [0], [1], [0, 0, 1, 1], [], []>} : vector<16x768xf32>, vector<768x128xf32>, vector<16x128xf32> -> vector<16x128xf32>
    %cst_591 = arith.constant dense<0.000000e+00> : vector<128xf32>
    %848 = vector.multi_reduction <add>, %847, %cst_591 [0] : vector<16x128xf32> to vector<128xf32>
    %849 = vector.shape_cast %848 : vector<128xf32> to vector<1x128xf32>
    %850 = arith.mulf %847, %847 : vector<16x128xf32>
    %cst_592 = arith.constant dense<0.000000e+00> : vector<128xf32>
    %851 = vector.multi_reduction <add>, %850, %cst_592 [0] : vector<16x128xf32> to vector<128xf32>
    %852 = vector.shape_cast %851 : vector<128xf32> to vector<1x128xf32>
    %c192_593 = arith.constant 192 : index
    %c0_594 = arith.constant 0 : index
    %853 = vector.load %arg1[%c192_593, %c0_594] : memref<5496x128xf32, #tpu.memory_space<vmem>>, vector<128x8xf32>
    %cst_595 = arith.constant dense<0.000000e+00> : vector<1x8xf32>
    %854 = tpu.matmul %849, %853, %cst_595 {dimension_numbers = #tpu.dot_dimension_numbers<[1], [0], [0], [1], [0, 0, 1, 1], [], []>} : vector<1x128xf32>, vector<128x8xf32>, vector<1x8xf32> -> vector<1x8xf32>
    %c192_596 = arith.constant 192 : index
    %c0_597 = arith.constant 0 : index
    %855 = vector.load %arg1[%c192_596, %c0_597] : memref<5496x128xf32, #tpu.memory_space<vmem>>, vector<128x8xf32>
    %cst_598 = arith.constant dense<0.000000e+00> : vector<1x8xf32>
    %856 = tpu.matmul %852, %855, %cst_598 {dimension_numbers = #tpu.dot_dimension_numbers<[1], [0], [0], [1], [0, 0, 1, 1], [], []>} : vector<1x128xf32>, vector<128x8xf32>, vector<1x8xf32> -> vector<1x8xf32>
    %cst_599 = arith.constant 3.906250e-03 : f32
    %857 = vector.broadcast %cst_599 : f32 to vector<1x8xf32>
    %858 = arith.mulf %854, %857 : vector<1x8xf32>
    %cst_600 = arith.constant 3.906250e-03 : f32
    %859 = vector.broadcast %cst_600 : f32 to vector<1x8xf32>
    %860 = arith.mulf %856, %859 : vector<1x8xf32>
    %861 = arith.mulf %858, %858 : vector<1x8xf32>
    %862 = arith.subf %860, %861 : vector<1x8xf32>
    %cst_601 = arith.constant 9.99999974E-6 : f32
    %863 = vector.broadcast %cst_601 : f32 to vector<1x8xf32>
    %864 = arith.addf %862, %863 : vector<1x8xf32>
    %865 = math.rsqrt %864 : vector<1x8xf32>
    %c320_602 = arith.constant 320 : index
    %c0_603 = arith.constant 0 : index
    %866 = vector.load %arg1[%c320_602, %c0_603] : memref<5496x128xf32, #tpu.memory_space<vmem>>, vector<8x128xf32>
    %cst_604 = arith.constant dense<0.000000e+00> : vector<1x128xf32>
    %867 = tpu.matmul %858, %866, %cst_604 {dimension_numbers = #tpu.dot_dimension_numbers<[1], [0], [0], [1], [0, 0, 1, 1], [], []>} : vector<1x8xf32>, vector<8x128xf32>, vector<1x128xf32> -> vector<1x128xf32>
    %c320_605 = arith.constant 320 : index
    %c0_606 = arith.constant 0 : index
    %868 = vector.load %arg1[%c320_605, %c0_606] : memref<5496x128xf32, #tpu.memory_space<vmem>>, vector<8x128xf32>
    %cst_607 = arith.constant dense<0.000000e+00> : vector<1x128xf32>
    %869 = tpu.matmul %865, %868, %cst_607 {dimension_numbers = #tpu.dot_dimension_numbers<[1], [0], [0], [1], [0, 0, 1, 1], [], []>} : vector<1x8xf32>, vector<8x128xf32>, vector<1x128xf32> -> vector<1x128xf32>
    %870 = vector.broadcast %867 : vector<1x128xf32> to vector<16x128xf32>
    %871 = arith.subf %847, %870 : vector<16x128xf32>
    %872 = vector.broadcast %869 : vector<1x128xf32> to vector<16x128xf32>
    %873 = arith.mulf %871, %872 : vector<16x128xf32>
    %cst_608 = arith.constant 0.000000e+00 : f32
    %874 = vector.broadcast %cst_608 : f32 to vector<16x128xf32>
    %875 = arith.maximumf %873, %874 : vector<16x128xf32>
    %c3792_609 = arith.constant 3792 : index
    %c0_610 = arith.constant 0 : index
    %876 = vector.load %arg1[%c3792_609, %c0_610] : memref<5496x128xf32, #tpu.memory_space<vmem>>, vector<16x16xf32>
    %cst_611 = arith.constant dense<0.000000e+00> : vector<16x128xf32>
    %877 = tpu.matmul %876, %875, %cst_611 {dimension_numbers = #tpu.dot_dimension_numbers<[1], [0], [0], [1], [0, 0, 1, 1], [], []>} : vector<16x16xf32>, vector<16x128xf32>, vector<16x128xf32> -> vector<16x128xf32>
    %c3808_612 = arith.constant 3808 : index
    %c0_613 = arith.constant 0 : index
    %878 = vector.load %arg1[%c3808_612, %c0_613] : memref<5496x128xf32, #tpu.memory_space<vmem>>, vector<16x16xf32>
    %cst_614 = arith.constant dense<0.000000e+00> : vector<16x128xf32>
    %879 = tpu.matmul %878, %875, %cst_614 {dimension_numbers = #tpu.dot_dimension_numbers<[1], [0], [0], [1], [0, 0, 1, 1], [], []>} : vector<16x16xf32>, vector<16x128xf32>, vector<16x128xf32> -> vector<16x128xf32>
    %880 = tpu.concatenate %877, %875, %879 in 1 : vector<16x128xf32>, vector<16x128xf32>, vector<16x128xf32> -> vector<16x384xf32>
    %c4592 = arith.constant 4592 : index
    %c0_615 = arith.constant 0 : index
    %881 = vector.load %arg1[%c4592, %c0_615] : memref<5496x128xf32, #tpu.memory_space<vmem>>, vector<384x128xf32>
    %cst_616 = arith.constant dense<0.000000e+00> : vector<16x128xf32>
    %882 = tpu.matmul %880, %881, %cst_616 {dimension_numbers = #tpu.dot_dimension_numbers<[1], [0], [0], [1], [0, 0, 1, 1], [], []>} : vector<16x384xf32>, vector<384x128xf32>, vector<16x128xf32> -> vector<16x128xf32>
    %cst_617 = arith.constant dense<0.000000e+00> : vector<128xf32>
    %883 = vector.multi_reduction <add>, %882, %cst_617 [0] : vector<16x128xf32> to vector<128xf32>
    %884 = vector.shape_cast %883 : vector<128xf32> to vector<1x128xf32>
    %885 = arith.mulf %882, %882 : vector<16x128xf32>
    %cst_618 = arith.constant dense<0.000000e+00> : vector<128xf32>
    %886 = vector.multi_reduction <add>, %885, %cst_618 [0] : vector<16x128xf32> to vector<128xf32>
    %887 = vector.shape_cast %886 : vector<128xf32> to vector<1x128xf32>
    %c192_619 = arith.constant 192 : index
    %c0_620 = arith.constant 0 : index
    %888 = vector.load %arg1[%c192_619, %c0_620] : memref<5496x128xf32, #tpu.memory_space<vmem>>, vector<128x8xf32>
    %cst_621 = arith.constant dense<0.000000e+00> : vector<1x8xf32>
    %889 = tpu.matmul %884, %888, %cst_621 {dimension_numbers = #tpu.dot_dimension_numbers<[1], [0], [0], [1], [0, 0, 1, 1], [], []>} : vector<1x128xf32>, vector<128x8xf32>, vector<1x8xf32> -> vector<1x8xf32>
    %c192_622 = arith.constant 192 : index
    %c0_623 = arith.constant 0 : index
    %890 = vector.load %arg1[%c192_622, %c0_623] : memref<5496x128xf32, #tpu.memory_space<vmem>>, vector<128x8xf32>
    %cst_624 = arith.constant dense<0.000000e+00> : vector<1x8xf32>
    %891 = tpu.matmul %887, %890, %cst_624 {dimension_numbers = #tpu.dot_dimension_numbers<[1], [0], [0], [1], [0, 0, 1, 1], [], []>} : vector<1x128xf32>, vector<128x8xf32>, vector<1x8xf32> -> vector<1x8xf32>
    %cst_625 = arith.constant 3.906250e-03 : f32
    %892 = vector.broadcast %cst_625 : f32 to vector<1x8xf32>
    %893 = arith.mulf %889, %892 : vector<1x8xf32>
    %cst_626 = arith.constant 3.906250e-03 : f32
    %894 = vector.broadcast %cst_626 : f32 to vector<1x8xf32>
    %895 = arith.mulf %891, %894 : vector<1x8xf32>
    %896 = arith.mulf %893, %893 : vector<1x8xf32>
    %897 = arith.subf %895, %896 : vector<1x8xf32>
    %cst_627 = arith.constant 9.99999974E-6 : f32
    %898 = vector.broadcast %cst_627 : f32 to vector<1x8xf32>
    %899 = arith.addf %897, %898 : vector<1x8xf32>
    %900 = math.rsqrt %899 : vector<1x8xf32>
    %c320_628 = arith.constant 320 : index
    %c0_629 = arith.constant 0 : index
    %901 = vector.load %arg1[%c320_628, %c0_629] : memref<5496x128xf32, #tpu.memory_space<vmem>>, vector<8x128xf32>
    %cst_630 = arith.constant dense<0.000000e+00> : vector<1x128xf32>
    %902 = tpu.matmul %893, %901, %cst_630 {dimension_numbers = #tpu.dot_dimension_numbers<[1], [0], [0], [1], [0, 0, 1, 1], [], []>} : vector<1x8xf32>, vector<8x128xf32>, vector<1x128xf32> -> vector<1x128xf32>
    %c320_631 = arith.constant 320 : index
    %c0_632 = arith.constant 0 : index
    %903 = vector.load %arg1[%c320_631, %c0_632] : memref<5496x128xf32, #tpu.memory_space<vmem>>, vector<8x128xf32>
    %cst_633 = arith.constant dense<0.000000e+00> : vector<1x128xf32>
    %904 = tpu.matmul %900, %903, %cst_633 {dimension_numbers = #tpu.dot_dimension_numbers<[1], [0], [0], [1], [0, 0, 1, 1], [], []>} : vector<1x8xf32>, vector<8x128xf32>, vector<1x128xf32> -> vector<1x128xf32>
    %905 = vector.broadcast %902 : vector<1x128xf32> to vector<16x128xf32>
    %906 = arith.subf %882, %905 : vector<16x128xf32>
    %907 = vector.broadcast %904 : vector<1x128xf32> to vector<16x128xf32>
    %908 = arith.mulf %906, %907 : vector<16x128xf32>
    %cst_634 = arith.constant 0.000000e+00 : f32
    %909 = vector.broadcast %cst_634 : f32 to vector<16x128xf32>
    %910 = arith.maximumf %908, %909 : vector<16x128xf32>
    %c3792_635 = arith.constant 3792 : index
    %c0_636 = arith.constant 0 : index
    %911 = vector.load %arg1[%c3792_635, %c0_636] : memref<5496x128xf32, #tpu.memory_space<vmem>>, vector<16x16xf32>
    %cst_637 = arith.constant dense<0.000000e+00> : vector<16x128xf32>
    %912 = tpu.matmul %911, %910, %cst_637 {dimension_numbers = #tpu.dot_dimension_numbers<[1], [0], [0], [1], [0, 0, 1, 1], [], []>} : vector<16x16xf32>, vector<16x128xf32>, vector<16x128xf32> -> vector<16x128xf32>
    %c3808_638 = arith.constant 3808 : index
    %c0_639 = arith.constant 0 : index
    %913 = vector.load %arg1[%c3808_638, %c0_639] : memref<5496x128xf32, #tpu.memory_space<vmem>>, vector<16x16xf32>
    %cst_640 = arith.constant dense<0.000000e+00> : vector<16x128xf32>
    %914 = tpu.matmul %913, %910, %cst_640 {dimension_numbers = #tpu.dot_dimension_numbers<[1], [0], [0], [1], [0, 0, 1, 1], [], []>} : vector<16x16xf32>, vector<16x128xf32>, vector<16x128xf32> -> vector<16x128xf32>
    %915 = tpu.concatenate %912, %910, %914 in 1 : vector<16x128xf32>, vector<16x128xf32>, vector<16x128xf32> -> vector<16x384xf32>
    %c4976 = arith.constant 4976 : index
    %c0_641 = arith.constant 0 : index
    %916 = vector.load %arg1[%c4976, %c0_641] : memref<5496x128xf32, #tpu.memory_space<vmem>>, vector<384x128xf32>
    %cst_642 = arith.constant dense<0.000000e+00> : vector<16x128xf32>
    %917 = tpu.matmul %915, %916, %cst_642 {dimension_numbers = #tpu.dot_dimension_numbers<[1], [0], [0], [1], [0, 0, 1, 1], [], []>} : vector<16x384xf32>, vector<384x128xf32>, vector<16x128xf32> -> vector<16x128xf32>
    %cst_643 = arith.constant dense<0.000000e+00> : vector<128xf32>
    %918 = vector.multi_reduction <add>, %917, %cst_643 [0] : vector<16x128xf32> to vector<128xf32>
    %919 = vector.shape_cast %918 : vector<128xf32> to vector<1x128xf32>
    %920 = arith.mulf %917, %917 : vector<16x128xf32>
    %cst_644 = arith.constant dense<0.000000e+00> : vector<128xf32>
    %921 = vector.multi_reduction <add>, %920, %cst_644 [0] : vector<16x128xf32> to vector<128xf32>
    %922 = vector.shape_cast %921 : vector<128xf32> to vector<1x128xf32>
    %c192_645 = arith.constant 192 : index
    %c0_646 = arith.constant 0 : index
    %923 = vector.load %arg1[%c192_645, %c0_646] : memref<5496x128xf32, #tpu.memory_space<vmem>>, vector<128x8xf32>
    %cst_647 = arith.constant dense<0.000000e+00> : vector<1x8xf32>
    %924 = tpu.matmul %919, %923, %cst_647 {dimension_numbers = #tpu.dot_dimension_numbers<[1], [0], [0], [1], [0, 0, 1, 1], [], []>} : vector<1x128xf32>, vector<128x8xf32>, vector<1x8xf32> -> vector<1x8xf32>
    %c192_648 = arith.constant 192 : index
    %c0_649 = arith.constant 0 : index
    %925 = vector.load %arg1[%c192_648, %c0_649] : memref<5496x128xf32, #tpu.memory_space<vmem>>, vector<128x8xf32>
    %cst_650 = arith.constant dense<0.000000e+00> : vector<1x8xf32>
    %926 = tpu.matmul %922, %925, %cst_650 {dimension_numbers = #tpu.dot_dimension_numbers<[1], [0], [0], [1], [0, 0, 1, 1], [], []>} : vector<1x128xf32>, vector<128x8xf32>, vector<1x8xf32> -> vector<1x8xf32>
    %cst_651 = arith.constant 3.906250e-03 : f32
    %927 = vector.broadcast %cst_651 : f32 to vector<1x8xf32>
    %928 = arith.mulf %924, %927 : vector<1x8xf32>
    %cst_652 = arith.constant 3.906250e-03 : f32
    %929 = vector.broadcast %cst_652 : f32 to vector<1x8xf32>
    %930 = arith.mulf %926, %929 : vector<1x8xf32>
    %931 = arith.mulf %928, %928 : vector<1x8xf32>
    %932 = arith.subf %930, %931 : vector<1x8xf32>
    %cst_653 = arith.constant 9.99999974E-6 : f32
    %933 = vector.broadcast %cst_653 : f32 to vector<1x8xf32>
    %934 = arith.addf %932, %933 : vector<1x8xf32>
    %935 = math.rsqrt %934 : vector<1x8xf32>
    %c320_654 = arith.constant 320 : index
    %c0_655 = arith.constant 0 : index
    %936 = vector.load %arg1[%c320_654, %c0_655] : memref<5496x128xf32, #tpu.memory_space<vmem>>, vector<8x128xf32>
    %cst_656 = arith.constant dense<0.000000e+00> : vector<1x128xf32>
    %937 = tpu.matmul %928, %936, %cst_656 {dimension_numbers = #tpu.dot_dimension_numbers<[1], [0], [0], [1], [0, 0, 1, 1], [], []>} : vector<1x8xf32>, vector<8x128xf32>, vector<1x128xf32> -> vector<1x128xf32>
    %c320_657 = arith.constant 320 : index
    %c0_658 = arith.constant 0 : index
    %938 = vector.load %arg1[%c320_657, %c0_658] : memref<5496x128xf32, #tpu.memory_space<vmem>>, vector<8x128xf32>
    %cst_659 = arith.constant dense<0.000000e+00> : vector<1x128xf32>
    %939 = tpu.matmul %935, %938, %cst_659 {dimension_numbers = #tpu.dot_dimension_numbers<[1], [0], [0], [1], [0, 0, 1, 1], [], []>} : vector<1x8xf32>, vector<8x128xf32>, vector<1x128xf32> -> vector<1x128xf32>
    %940 = vector.broadcast %937 : vector<1x128xf32> to vector<16x128xf32>
    %941 = arith.subf %917, %940 : vector<16x128xf32>
    %942 = vector.broadcast %939 : vector<1x128xf32> to vector<16x128xf32>
    %943 = arith.mulf %941, %942 : vector<16x128xf32>
    %cst_660 = arith.constant 0.000000e+00 : f32
    %944 = vector.broadcast %cst_660 : f32 to vector<16x128xf32>
    %945 = arith.maximumf %943, %944 : vector<16x128xf32>
    %c5360 = arith.constant 5360 : index
    %c0_661 = arith.constant 0 : index
    %946 = vector.load %arg1[%c5360, %c0_661] : memref<5496x128xf32, #tpu.memory_space<vmem>>, vector<128x16xf32>
    %cst_662 = arith.constant dense<0.000000e+00> : vector<16x16xf32>
    %947 = tpu.matmul %945, %946, %cst_662 {dimension_numbers = #tpu.dot_dimension_numbers<[1], [0], [0], [1], [0, 0, 1, 1], [], []>} : vector<16x128xf32>, vector<128x16xf32>, vector<16x16xf32> -> vector<16x16xf32>
    %c5488 = arith.constant 5488 : index
    %c0_663 = arith.constant 0 : index
    %948 = vector.load %arg1[%c5488, %c0_663] : memref<5496x128xf32, #tpu.memory_space<vmem>>, vector<1x16xf32>
    %949 = vector.broadcast %948 : vector<1x16xf32> to vector<16x16xf32>
    %950 = arith.addf %947, %949 : vector<16x16xf32>
    %c48 = arith.constant 48 : index
    %c0_664 = arith.constant 0 : index
    %951 = vector.load %arg2[%c48, %c0_664] : memref<64x128xf32, #tpu.memory_space<vmem>>, vector<16x16xf32>
    tpu.vector_store %arg2[%c48, %c0_664], %950 {strides = array<i32>} : memref<64x128xf32, #tpu.memory_space<vmem>>, vector<16x16xf32>,
    return
  }
}

</mosaic_0001>

<bundles_post_ra>
// kernel: encoder_decoder_forward.1
= control target key start
LH: loop header
LB: loop body
LE: loop exit
PB: predicated region body
PF: predicated region fallthrough
CT: control target
= control target key end

     0   :  { %7 = vsyncpa [#allocation3], 0  ;;  %s25436_s0 = inlined_call_operand.hbm [shape: f32[64,32], index: 0, kind: input, shape index: {}]   ;;  %s25437_s1 = inlined_call_operand.hbm [shape: f32[5496,128], index: 1, kind: input, shape index: {}]   ;;  %s25438_s2 = inlined_call_operand.vmem [shape: f32[64,128], index: 2, kind: output, shape index: {}]  }
   0x1   :  { %8 = vsyncpa [#allocation5], 0  ;;  %s23714_s9 = smov [#allocation2]   ;;  %s23666_s13 = scalar_lea.hbm %s25436_s0, 1024 }
   0x2   :  { %s14_s10 = sshll.u32 %s23714_s9, 4  ;;  %p23667_p0 = scmp.ne.s32.totalorder %s25436_s0, %s23666_s13  ;;  %s15_s10 = int_to_ptr.vmem [resolvable:$true] %s14_s10 }
   0x3   :  { %p23670_p1 = scmp.lt.u32.totalorder %s23666_s13, %s25436_s0 }
   0x5   :  { %p23672_p2 = pnand %p23670_p1, %p23667_p0 }
   0x7   :  { %23675 = shalt.err (!%p23672_p2)
}
   0x8   :  { %s23676_s18 = scalar_lea.vmem %s15_s10, 1024  ;;  %p23681_p4 = scmp.lt.s32.totalorder %s15_s10, %s15_s10 }
   0x9   :  { %p23677_p3 = scmp.ne.s32.totalorder %s15_s10, %s23676_s18  ;;  %p23682_p5 = scmp.lt.s32.totalorder %s23676_s18, %s23676_s18 }
   0xb   :  { %p23683_p6 = por %p23682_p5, %p23681_p4 }
   0xd   :  { %p23684_p7 = pnand %p23683_p6, %p23677_p3 }
   0xf   :  { %23687 = shalt.err (!%p23684_p7)
}
  0x10   :  { %s23715_s19 = smov 128   ;;  %s23716_s20 = smov 8  }
  0x11   :  { %20 = dma.hbm_to_vmem [thread:$0]  %s25436_s0, 1024, %s15_s10, [#allocation3], %s23715_s19, %s23715_s19, %s23716_s20  }
  0x12   :  { %s23717_s23 = smov [#allocation4]   ;;  %s23688_s27 = scalar_lea.hbm %s25437_s1, 87936 }
  0x13   :  { %s26_s24 = sshll.u32 %s23717_s23, 4  ;;  %p23689_p8 = scmp.ne.s32.totalorder %s25437_s1, %s23688_s27  ;;  %s27_s24 = int_to_ptr.vmem [resolvable:$true] %s26_s24 }
  0x14   :  { %p23692_p9 = scmp.lt.u32.totalorder %s23688_s27, %s25437_s1 }
  0x16   :  { %p23694_p10 = pnand %p23692_p9, %p23689_p8 }
  0x18   :  { %23697 = shalt.err (!%p23694_p10)
}
  0x19   :  { %s23698_s4 = scalar_lea.vmem %s27_s24, 87936  ;;  %p23703_p12 = scmp.lt.s32.totalorder %s27_s24, %s27_s24 }
  0x1a   :  { %p23699_p11 = scmp.ne.s32.totalorder %s27_s24, %s23698_s4  ;;  %p23704_p13 = scmp.lt.s32.totalorder %s23698_s4, %s23698_s4 }
  0x1c   :  { %p23705_p0 = por %p23704_p13, %p23703_p12 }
  0x1e   :  { %p23706_p1 = pnand %p23705_p0, %p23699_p11 }
  0x20   :  { %23709 = shalt.err (!%p23706_p1)
}
  0x21   :  { %32 = dma.hbm_to_vmem [thread:$0]  %s25437_s1, 87936, %s27_s24, [#allocation5], %s23715_s19, %s23715_s19, %s23716_s20  }
  0x22   :  { %23710 = dma.done.wait [#allocation3], 1024  }
  0x23   :  { %23711 = vsyncadd [#allocation3], 4294966272 }
  0x24   :  { %23712 = dma.done.wait [#allocation5], 87936  }
  0x25   :  { %23713 = vsyncadd [#allocation5], 4294879360  ;;  %v47_v0 = vld [vmem:[#allocation2] sm:$0xff]  ;;  %v48_v1 = vld [vmem:[#allocation2 + $0x8] sm:$0xff]  ;;  %vm59_vm0 = vcmask 523264   ;;  %v23718_v36 = vmov 0.0|0.0  }
  0x26   :  { %v49_v2 = vld [vmem:[#allocation2 + $0x10] sm:$0xff]  ;;  %v22047_v3 = vpack.c.bf16 %v48_v1, %v47_v0  ;;  %v50_v4 = vld [vmem:[#allocation2 + $0x18] sm:$0xff]  ;;  %v51_v6 = vld [vmem:[#allocation2 + $0x20] sm:$0xff]  ;;  %vm367_vm1 = vcmask 261120   ;;  %vm23719_vm2 = vmmov 0   ;;  %vm852_vm3 = vcmask 64512  }
  0x27   :  { %v22051_v5 = vpack.c.bf16 %v50_v4, %v49_v2  ;;  %v52_v7 = vld [vmem:[#allocation2 + $0x28] sm:$0xff]  ;;  %v55_v8 = vld [vmem:[#allocation4] sm:$0xff]  ;;  %v53_v11 = vld [vmem:[#allocation2 + $0x30] sm:$0xff]  ;;  %vm2565_vm4 = vcmask 130048   ;;  %vm4831_vm5 = vcmask 257024   ;;  %vm5287_vm6 = vcmask 125952  }
  0x28   :  { %22048 = vmatprep.subr.bf16.mxu1 %v22047_v3  ;;  %19711 = vmatprep.mubr.msk.f32.mxu1 %vm59_vm0, %v55_v8  ;;  %v22055_v9 = vpack.c.bf16 %v52_v7, %v51_v6  ;;  %v258_v10 = vld [vmem:[#allocation4 + $0x40] sm:$0xff]  ;;  %v54_v12 = vld [vmem:[#allocation2 + $0x38] sm:$0xff]  ;;  %v56_v14 = vld [vmem:[#allocation4 + $0x8] sm:$0xff]  ;;  %vm5620_vm7 = vcmask 1043456   ;;  %vm5616_vm8 = vcmask 31744   ;;  %vm6317_vm9 = vcmask 123904  }
  0x29   :  { %22050 = vmatpush3.bf16.msra.mxu1 %v22047_v3  ;;  %22080 = vmatprep.subr.bf16.mxu0 %v22047_v3  ;;  %v22059_v13 = vpack.c.bf16 %v54_v12, %v53_v11  ;;  %v57_v15 = vld [vmem:[#allocation4 + $0x10] sm:$0xff]  ;;  %v259_v16 = vld [vmem:[#allocation4 + $0x48] sm:$0xff]  ;;  %v58_v18 = vld [vmem:[#allocation4 + $0x18] sm:$0xff]  ;;  %vm6620_vm10 = vcmask 58368   ;;  %vm6743_vm11 = vcmask 57344   ;;  %vm6750_vm12 = vcmask 1041408  }
  0x2a   :  { %22052 = vmatprep.subr.bf16.mxu1 %v22051_v5  ;;  %22082 = vmatpush3.bf16.msra.mxu0 %v22047_v3  ;;  %v260_v17 = vld [vmem:[#allocation4 + $0x50] sm:$0xff]  ;;  %v157_v19 = vld [vmem:[#allocation4 + $0x20] sm:$0xff]  ;;  %v261_v20 = vld [vmem:[#allocation4 + $0x58] sm:$0xff]  ;;  %vm6746_vm13 = vcmask 15360  }
  0x2b   :  { %22084 = vmatprep.subr.bf16.mxu0 %v22051_v5  ;;  %19755 = vmatprep.mubr.msk.f32.mxu0 %vm59_vm0, %v258_v10  ;;  %v158_v21 = vld [vmem:[#allocation4 + $0x28] sm:$0xff]  ;;  %v159_v22 = vld [vmem:[#allocation4 + $0x30] sm:$0xff]  ;;  %v160_v23 = vld [vmem:[#allocation4 + $0x38] sm:$0xff] }
  0x2c   :  { %v363_v24 = vld [vmem:[#allocation4 + $0x80] sm:$0xff]  ;;  %v364_v25 = vld [vmem:[#allocation4 + $0x88] sm:$0xff]  ;;  %v365_v27 = vld [vmem:[#allocation4 + $0x90] sm:$0xff] }
  0x2d   :  { %22054 = vmatpush3.bf16.msra.mxu1 %v22051_v5  ;;  %v22095_v26 = vpack.c.bf16 %v364_v25, %v363_v24  ;;  %v366_v28 = vld [vmem:[#allocation4 + $0x98] sm:$0xff]  ;;  %v359_v30 = vld [vmem:[#allocation4 + $0x60] sm:$0xff]  ;;  %v360_v31 = vld [vmem:[#allocation4 + $0x68] sm:$0xff] }
  0x2e   :  { %22056 = vmatprep.subr.bf16.mxu1 %v22055_v9  ;;  %22086 = vmatpush3.bf16.msra.mxu0 %v22051_v5  ;;  %v22099_v29 = vpack.c.bf16 %v366_v28, %v365_v27  ;;  %v22103_v32 = vpack.c.bf16 %v360_v31, %v359_v30  ;;  %v689_v33 = vld [vmem:[#allocation4 + $0xc0] sm:$0xff]  ;;  %v690_v34 = vld [vmem:[#allocation4 + $0xc8] sm:$0xff]  ;;  %v691_v35 = vld [vmem:[#allocation4 + $0xd0] sm:$0xff] }
  0x2f   :  { %22088 = vmatprep.subr.bf16.mxu0 %v22055_v9  ;;  %v23773_v37 = vpack.c.bf16 %v690_v34, %v689_v33  ;;  %v692_v38 = vld [vmem:[#allocation4 + $0xd8] sm:$0xff]  ;;  %v693_v40 = vld [vmem:[#allocation4 + $0xe0] sm:$0xff]  ;;  %v694_v41 = vld [vmem:[#allocation4 + $0xe8] sm:$0xff] }
  0x30   :  { %v23776_v39 = vpack.c.bf16 %v692_v38, %v691_v35  ;;  %v23780_v42 = vpack.c.bf16 %v694_v41, %v693_v40  ;;  %v361_v51 = vld [vmem:[#allocation4 + $0x70] sm:$0xff]  ;;  %v362_v52 = vld [vmem:[#allocation4 + $0x78] sm:$0xff]  ;;  %v562_v56 = vld [vmem:[#allocation4 + $0xa0] sm:$0xff] }
  0x31   :  { %22058 = vmatpush3.bf16.msra.mxu1 %v22055_v9  ;;  %v22107_v55 = vpack.c.bf16 %v362_v52, %v361_v51  ;;  %v563_v57 = vld [vmem:[#allocation4 + $0xa8] sm:$0xff]  ;;  %v564_v61 = vld [vmem:[#allocation4 + $0xb0] sm:$0xff]  ;;  %v565_v62 = vld [vmem:[#allocation4 + $0xb8] sm:$0xff] }
  0x32   :  { %22060 = vmatprep.subr.bf16.mxu1 %v22059_v13  ;;  %22090 = vmatpush3.bf16.msra.mxu0 %v22055_v9  ;;  %v22111_v60 = vpack.c.bf16 %v563_v57, %v562_v56  ;;  %v22115_v63 = vpack.c.bf16 %v565_v62, %v564_v61  ;;  %v695_v0 = vld [vmem:[#allocation4 + $0xf0] sm:$0xff]  ;;  %v696_v1 = vld [vmem:[#allocation4 + $0xf8] sm:$0xff]  ;;  %v698_v4 = vld [vmem:[#allocation4 + $0x108] sm:$0xff] }
  0x33   :  { %22092 = vmatprep.subr.bf16.mxu0 %v22059_v13  ;;  %v23804_v2 = vpack.c.bf16 %v696_v1, %v695_v0  ;;  %v699_v6 = vld [vmem:[#allocation4 + $0x110] sm:$0xff]  ;;  %v700_v7 = vld [vmem:[#allocation4 + $0x118] sm:$0xff]  ;;  %v702_v10 = vld [vmem:[#allocation4 + $0x128] sm:$0xff] }
  0x34   :  { %v23816_v8 = vpack.c.bf16 %v700_v7, %v699_v6  ;;  %v703_v12 = vld [vmem:[#allocation4 + $0x130] sm:$0xff]  ;;  %v1019_v57 = vld [vmem:[#allocation4 + $0x148] sm:$0xff] }
  0x35   :  { %22062 = vmatpush3.bf16.msra.mxu1 %v22059_v13 }
  0x36   :  { %22064 = vmatprep.subr.bf16.mxu1 %v22047_v3  ;;  %22094 = vmatpush3.bf16.msra.mxu0 %v22059_v13 }
  0x37   :  { %22119 = vmatprep.subr.bf16.mxu0 %v23718_v36 }
  0x38   :  { %19712 = vmatmul.mubr.msk.f32.vlgmr.msra.gmra.mrb[0].mxu1 %vm59_vm0, %v56_v14 }
  0x39   :  { %22066 = vmatpush3.bf16.msra.mxu1 %v22047_v3  ;;  %19714 = vmatprep.mubr.msk.f32.mxu1 %vm59_vm0, %v57_v15  ;;  %v697_v3 = vld [vmem:[#allocation4 + $0x100] sm:$0xff]  ;;  %v23720_v15 = vmov 0.0  }
  0x3a   :  { %22068 = vmatprep.subr.bf16.mxu1 %v22051_v5  ;;  %19756 = vmatmul.mubr.msk.f32.vlgmr.msra.gmra.mrb[0].mxu0 %vm59_vm0, %v259_v16  ;;  %41 = vst [vmem:[%s25438_s2 + $0x10] sm:$0xff] %v23720_v15  ;;  %42 = vst [vmem:[%s25438_s2 + $0x18] sm:$0xff] %v23720_v15 }
  0x3b   :  { %19758 = vmatprep.mubr.msk.f32.mxu0 %vm59_vm0, %v260_v17  ;;  %22121 = vmatpush3.bf16.msra.mxu0 %v23773_v37  ;;  %43 = vst [vmem:[%s25438_s2 + $0x20] sm:$0xff] %v23720_v15  ;;  %44 = vst [vmem:[%s25438_s2 + $0x28] sm:$0xff] %v23720_v15 }
  0x3c   :  { %19715 = vmatmul.mubr.msk.f32.gmra.mrb[2].mxu1 %vm59_vm0, %v58_v18  ;;  %22122 = vmatprep.subr.bf16.mxu0 %v23718_v36  ;;  %45 = vst [vmem:[%s25438_s2 + $0x30] sm:$0xff] %v23720_v15  ;;  %46 = vst [vmem:[%s25438_s2 + $0x38] sm:$0xff] %v23720_v15 }
  0x3d   :  { %22070 = vmatpush3.bf16.msra.mxu1 %v22051_v5  ;;  %19733 = vmatprep.mubr.msk.f32.mxu1 %vm59_vm0, %v157_v19  ;;  %v23810_v5 = vpack.c.bf16 %v698_v4, %v697_v3 }
  0x3e   :  { %22072 = vmatprep.subr.bf16.mxu1 %v22055_v9  ;;  %19759 = vmatmul.mubr.msk.f32.gmra.mrb[2].mxu0 %vm59_vm0, %v261_v20 }
  0x3f   :  { %22124 = vmatpush3.bf16.msra.mxu0 %v23776_v39  ;;  %19835 = vmatprep.mubr.msk.f32.mxu0 %vm23719_vm2, %v23720_v15 }
  0x40   :  { %22125 = vmatprep.subr.bf16.mxu0 %v23718_v36 }
  0x41   :  { %22074 = vmatpush3.bf16.msra.mxu1 %v22055_v9  ;;  %v701_v9 = vld [vmem:[#allocation4 + $0x120] sm:$0xff] }
  0x42   :  { %22076 = vmatprep.subr.bf16.mxu1 %v22059_v13  ;;  %v23822_v11 = vpack.c.bf16 %v702_v10, %v701_v9 }
  0x43   :  { %22127 = vmatpush3.bf16.msra.mxu0 %v23780_v42 }
  0x44   :  { %22128 = vmatprep.subr.bf16.mxu0 %v23718_v36 }
  0x45   :  { %22078 = vmatpush3.bf16.msra.mxu1 %v22059_v13  ;;  %v704_v13 = vld [vmem:[#allocation4 + $0x138] sm:$0xff] }
  0x46   :  { %22096 = vmatprep.subr.bf16.mxu1 %v22095_v26  ;;  %v23828_v14 = vpack.c.bf16 %v704_v13, %v703_v12 }
  0x47   :  { %22130 = vmatpush3.bf16.msra.mxu0 %v23804_v2 }
  0x48   :  { %19734 = vmatmul.mubr.msk.f32.vlgmr.msra.gmra.mrb[4].mxu1 %vm59_vm0, %v158_v21  ;;  %22131 = vmatprep.subr.bf16.mxu0 %v23718_v36 }
  0x49   :  { %19736 = vmatprep.mubr.msk.f32.mxu1 %vm59_vm0, %v159_v22  ;;  %22098 = vmatpush3.bf16.msra.mxu1 %v22095_v26 }
  0x4a   :  { %22100 = vmatprep.subr.bf16.mxu1 %v22099_v29 }
  0x4b   :  { %22133 = vmatpush3.bf16.msra.mxu0 %v23810_v5 }
  0x4c   :  { %19737 = vmatmul.mubr.msk.f32.gmra.mrb[6].mxu1 %vm59_vm0, %v160_v23  ;;  %22134 = vmatprep.subr.bf16.mxu0 %v23718_v36 }
  0x4d   :  { %22102 = vmatpush3.bf16.msra.mxu1 %v22099_v29 }
  0x4e   :  { %22104 = vmatprep.subr.bf16.mxu1 %v22103_v32 }
  0x4f   :  { %22136 = vmatpush3.bf16.msra.mxu0 %v23816_v8 }
  0x50   :  { %22137 = vmatprep.subr.bf16.mxu0 %v23718_v36 }
  0x53   :  { %22139 = vmatpush3.bf16.msra.mxu0 %v23822_v11 }
  0x54   :  { %22140 = vmatprep.subr.bf16.mxu0 %v23718_v36 }
  0x57   :  { %22142 = vmatpush3.bf16.msra.mxu0 %v23828_v14 }
  0x58   :  { %19873 = vmatprep.subr.mxu0 %v23720_v15 }
 0x10b   :  { %v19713_v43 = vpop.f32.mrb[0].mxu1 }
 0x10c   :  { %v138_v44 = vpop.f32.mrb[1].mxu1 }
 0x10d   :  { %v19757_v45 = vpop.f32.mrb[0].mxu0 }
 0x10e   :  { %v340_v46 = vpop.f32.mrb[1].mxu0 }
 0x10f   :  { %v19716_v47 = vpop.f32.mrb[2].mxu1 }
 0x110   :  { %v148_v48 = vpop.f32.mrb[3].mxu1 }
 0x111   :  { %v19760_v49 = vpop.f32.mrb[2].mxu0 }
 0x112   :  { %v350_v50 = vpop.f32.mrb[3].mxu0 }
 0x11b   :  { %v19735_v53 = vpop.f32.mrb[4].mxu1 }
 0x11c   :  { %v239_v54 = vpop.f32.mrb[5].mxu1 }
 0x11d   :  { %19769 = vmatprep.mubr.msk.f32.mxu1 %vm367_vm1, %v239_v54 }
 0x11e   :  { %19770 = vmatmul.mubr.msk.f32.vlgmr.msra.gmra.mrb[8].mxu1 %vm367_vm1, %v19735_v53 }
 0x11f   :  { %v19738_v58 = vpop.f32.mrb[6].mxu1  ;;  %22106 = vmatpush3.bf16.msra.mxu1 %v22103_v32 }
 0x120   :  { %v249_v59 = vpop.f32.mrb[7].mxu1  ;;  %22108 = vmatprep.subr.bf16.mxu1 %v22107_v55 }
 0x121   :  { %19772 = vmatprep.mubr.msk.f32.mxu1 %vm367_vm1, %v249_v59  ;;  %v999_v59 = vlaneseq }
 0x122   :  { %19773 = vmatmul.mubr.msk.f32.gmra.mrb[10].mxu1 %vm367_vm1, %v19738_v58  ;;  %v1120_v58 = vld [vmem:[#allocation4 + $0x168] sm:$0xff] }
 0x123   :  { %22110 = vmatpush3.bf16.msra.mxu1 %v22107_v55  ;;  %19783 = vmatprep.mubr.msk.f32.mxu1 %vm367_vm1, %v138_v44 }
 0x124   :  { %22112 = vmatprep.subr.bf16.mxu1 %v22111_v60 }
 0x126   :  { %19784 = vmatmul.mubr.msk.f32.vlgmr.msra.gmra.mrb[8].mxu1 %vm367_vm1, %v19713_v43 }
 0x127   :  { %19786 = vmatprep.mubr.msk.f32.mxu1 %vm367_vm1, %v148_v48  ;;  %22114 = vmatpush3.bf16.msra.mxu1 %v22111_v60  ;;  %v1000_v60 = vshrl.u32 %v999_v59, 7  ;;  %v1226_v59 = vld [vmem:[#allocation4 + $0x1b0] sm:$0xff] }
 0x128   :  { %22116 = vmatprep.subr.bf16.mxu1 %v22115_v63 }
 0x129   :  { %v23889_v61 = vsub.s32 0, %v1000_v60 }
 0x12a   :  { %19787 = vmatmul.mubr.msk.f32.gmra.mrb[10].mxu1 %vm367_vm1, %v19716_v47 }
 0x12b   :  { %22118 = vmatpush3.bf16.msra.mxu1 %v22115_v63  ;;  %19797 = vmatprep.mubr.msk.f32.mxu1 %vm367_vm1, %v340_v46  ;;  %v23878_v46 = vld [vmem:[#allocation4 + $0x140] sm:$0xff] }
 0x12c   :  { %22143 = vmatprep.subr.bf16.mxu1 %v23718_v36 }
 0x12e   :  { %19798 = vmatmul.mubr.msk.f32.vlgmr.msra.gmra.mrb[8].mxu1 %vm367_vm1, %v19757_v45 }
 0x12f   :  { %19800 = vmatprep.mubr.msk.f32.mxu1 %vm367_vm1, %v350_v50  ;;  %22145 = vmatpush3.bf16.msra.mxu1 %v23773_v37 }
 0x130   :  { %22146 = vmatprep.subr.bf16.mxu1 %v23718_v36 }
 0x132   :  { %19801 = vmatmul.mubr.msk.f32.gmra.mrb[10].mxu1 %vm367_vm1, %v19760_v49 }
 0x133   :  { %22148 = vmatpush3.bf16.msra.mxu1 %v23776_v39  ;;  %19870 = vmatprep.mubr.msk.f32.mxu1 %vm23719_vm2, %v23720_v15 }
 0x134   :  { %22149 = vmatprep.subr.bf16.mxu1 %v23718_v36 }
 0x137   :  { %22151 = vmatpush3.bf16.msra.mxu1 %v23780_v42 }
 0x138   :  { %22152 = vmatprep.subr.bf16.mxu1 %v23718_v36 }
 0x13b   :  { %22154 = vmatpush3.bf16.msra.mxu1 %v23804_v2 }
 0x13c   :  { %22155 = vmatprep.subr.bf16.mxu1 %v23718_v36 }
 0x13f   :  { %22157 = vmatpush3.bf16.msra.mxu1 %v23810_v5 }
 0x140   :  { %22158 = vmatprep.subr.bf16.mxu1 %v23718_v36 }
 0x143   :  { %22160 = vmatpush3.bf16.msra.mxu1 %v23816_v8 }
 0x144   :  { %22161 = vmatprep.subr.bf16.mxu1 %v23718_v36 }
 0x147   :  { %22163 = vmatpush3.bf16.msra.mxu1 %v23822_v11 }
 0x148   :  { %22164 = vmatprep.subr.bf16.mxu1 %v23718_v36 }
 0x14b   :  { %22166 = vmatpush3.bf16.msra.mxu1 %v23828_v14 }
 0x201   :  { %v23861_v16 = vpop.f32.mrb[8].mxu1 }
 0x202   :  { %v677_v17 = vmul.f32 %v23861_v16, %v23861_v16  ;;  %v23865_v18 = vpop.f32.mrb[9].mxu1 }
 0x203   :  { %v667_v19 = vadd.f32 %v23861_v16, %v23865_v18  ;;  %v676_v20 = vmul.f32 %v23865_v18, %v23865_v18 }
 0x205   :  { %v680_v21 = vadd.f32 %v677_v17, %v676_v20  ;;  %v23871_v22 = vpop.f32.mrb[10].mxu1 }
 0x206   :  { %v654_v23 = vpop.f32.mrb[11].mxu1  ;;  %v679_v26 = vmul.f32 %v23871_v22, %v23871_v22 }
 0x207   :  { %v668_v24 = vadd.f32 %v667_v19, %v654_v23  ;;  %v678_v25 = vmul.f32 %v654_v23, %v654_v23 }
 0x209   :  { %v669_v27 = vadd.f32 %v23871_v22, %v668_v24  ;;  %v681_v28 = vadd.f32 %v680_v21, %v678_v25  ;;  %v1238_v24 = vld [vmem:[#allocation4 + $0x210] sm:$0xff]  ;;  %v1253_v25 = vld [vmem:[#allocation4 + $0x288] sm:$0xff] }
 0x20b   :  { %v670_v29 = vrot.slane %v669_v27, 4  ;;  %v682_v30 = vadd.f32 %v681_v28, %v679_v26  ;;  %v1254_v26 = vld [vmem:[#allocation4 + $0x290] sm:$0xff] }
 0x20d   :  { %v671_v31 = vadd.f32 %v670_v29, %v669_v27  ;;  %v683_v32 = vrot.slane %v682_v30, 4  ;;  %v22215_v29 = vpack.c.bf16 %v1254_v26, %v1253_v25  ;;  %v1230_v26 = vld [vmem:[#allocation4 + $0x1d0] sm:$0xff] }
 0x20f   :  { %v672_v33 = vrot.slane %v671_v31, 2  ;;  %v684_v34 = vadd.f32 %v683_v32, %v682_v30  ;;  %v1221_v30 = vld [vmem:[#allocation4 + $0x188] sm:$0xff]  ;;  %v1239_v32 = vld [vmem:[#allocation4 + $0x218] sm:$0xff] }
 0x211   :  { %v673_v35 = vadd.f32 %v672_v33, %v671_v31  ;;  %v685_v38 = vrot.slane %v684_v34, 2  ;;  %v1222_v31 = vld [vmem:[#allocation4 + $0x190] sm:$0xff]  ;;  %v1240_v33 = vld [vmem:[#allocation4 + $0x220] sm:$0xff] }
 0x213   :  { %v674_v40 = vrot.slane %v673_v35, 1  ;;  %v686_v41 = vadd.f32 %v685_v38, %v684_v34  ;;  %v1255_v34 = vld [vmem:[#allocation4 + $0x298] sm:$0xff]  ;;  %v1020_v38 = vld [vmem:[#allocation4 + $0x150] sm:$0xff] }
 0x215   :  { %v675_v43 = vadd.f32 %v674_v40, %v673_v35  ;;  %v687_v44 = vrot.slane %v686_v41, 1  ;;  %v1256_v35 = vld [vmem:[#allocation4 + $0x2a0] sm:$0xff]  ;;  %v1121_v40 = vld [vmem:[#allocation4 + $0x170] sm:$0xff] }
 0x217   :  { %19836 = vmatmul.mubr.f32.vlgmr.msra.gmra.mrb[4].mxu0 %v675_v43  ;;  %v688_v45 = vadd.f32 %v687_v44, %v686_v41  ;;  %v1021_v41 = vld [vmem:[#allocation4 + $0x158] sm:$0xff]  ;;  %v22185_v44 = vpack.c.bf16 %v1222_v31, %v1221_v30  ;;  %v1264_v31 = vld [vmem:[#allocation4 + $0x2e0] sm:$0xff] }
 0x218   :  { %19875 = vmatprep.mubr.msk.f32.mxu0 %vm23719_vm2, %v23720_v15  ;;  %19874 = vmatpush3.msra.mxu0 %v23878_v46  ;;  %v1122_v43 = vld [vmem:[#allocation4 + $0x178] sm:$0xff] }
 0x219   :  { %19871 = vmatmul.mubr.f32.vlgmr.msra.gmra.mrb[12].mxu1 %v688_v45  ;;  %19878 = vmatprep.subr.mxu0 %v23720_v15  ;;  %v22187_v45 = vpack.c.bf16 %v1240_v33, %v1239_v32  ;;  %v1263_v30 = vld [vmem:[#allocation4 + $0x2d8] sm:$0xff] }
 0x21a   :  { %19905 = vmatprep.mubr.msk.f32.mxu1 %vm367_vm1, %v1120_v58  ;;  %v1225_v58 = vld [vmem:[#allocation4 + $0x1a8] sm:$0xff] }
 0x2ea   :  { %v771_v47 = vpop.f32.mrb[4].mxu0 }
 0x2eb   :  { %v845_v48 = vmul.f32 0.001953125, %v771_v47  ;;  %v19837_v49 = vpop.f32.mrb[5].mxu0  ;;  %v1223_v47 = vld [vmem:[#allocation4 + $0x198] sm:$0xff] }
 0x2ec   :  { %v841_v50 = vpop.f32.mrb[12].mxu1  ;;  %v22219_v49 = vpack.c.bf16 %v1256_v35, %v1255_v34  ;;  %v1231_v34 = vld [vmem:[#allocation4 + $0x1d8] sm:$0xff]  ;;  %v1232_v35 = vld [vmem:[#allocation4 + $0x1e0] sm:$0xff] }
 0x2ed   :  { %v847_v51 = vmul.f32 %v845_v48, %v845_v48  ;;  %v846_v52 = vmul.f32 0.001953125, %v841_v50  ;;  %v19872_v53 = vpop.f32.mrb[13].mxu1  ;;  %19876 = vmatmul.mubr.msk.f32.vlgmr.msra.gmra.mrb[6].mxu0 %vm852_vm3, %v845_v48  ;;  %v1224_v48 = vld [vmem:[#allocation4 + $0x1a0] sm:$0xff]  ;;  %v1241_v50 = vld [vmem:[#allocation4 + $0x228] sm:$0xff] }
 0x2ee   :  { %19879 = vmatpush3.msra.mxu0 %v23878_v46  ;;  %19880 = vmatprep.mubr.msk.f32.mxu0 %vm23719_vm2, %v23720_v15  ;;  %v1258_v53 = vld [vmem:[#allocation4 + $0x2b0] sm:$0xff] }
 0x2ef   :  { %v848_v54 = vsub.f32 %v846_v52, %v847_v51  ;;  %v1242_v51 = vld [vmem:[#allocation4 + $0x230] sm:$0xff]  ;;  %v1257_v52 = vld [vmem:[#allocation4 + $0x2a8] sm:$0xff] }
 0x2f0   :  { %v22223_v60 = vpack.c.bf16 %v1258_v53, %v1257_v52  ;;  %v1252_v52 = vld [vmem:[#allocation4 + $0x280] sm:$0xff] }
 0x2f1   :  { %v849_v55 = vadd.f32 1e-05, %v848_v54  ;;  %v1022_v54 = vld [vmem:[#allocation4 + $0x160] sm:$0xff] }
 0x2f3   :  { %23609 = vrsqrt.f32 %v849_v55  ;;  %v1123_v55 = vld [vmem:[#allocation4 + $0x180] sm:$0xff] }
 0x2fd   :  { %v23610_v56 = vpop.eup %23609 }
 0x2fe   :  { %19881 = vmatmul.mubr.msk.f32.vlgmr.msra.gmra.mrb[8].mxu0 %vm852_vm3, %v23610_v56  ;;  %v22189_v56 = vpack.c.bf16 %v1224_v48, %v1223_v47  ;;  %v1233_v48 = vld [vmem:[#allocation4 + $0x1e8] sm:$0xff] }
 0x2ff   :  { %19891 = vmatprep.mubr.msk.f32.mxu0 %vm367_vm1, %v1019_v57  ;;  %v22191_v57 = vpack.c.bf16 %v1242_v51, %v1241_v50  ;;  %v1251_v51 = vld [vmem:[#allocation4 + $0x278] sm:$0xff] }
 0x3c0   :  { %v922_v62 = vpop.f32.mrb[6].mxu0 }
 0x3c1   :  { %v1002_v63 = vrot.slane %v922_v62, %v23889_v61  ;;  %v19877_v0 = vpop.f32.mrb[7].mxu0  ;;  %v1243_v62 = vld [vmem:[#allocation4 + $0x238] sm:$0xff] }
 0x3c2   :  { %v1259_v0 = vld [vmem:[#allocation4 + $0x2b8] sm:$0xff] }
 0x3c3   :  { %v1003_v1 = vsub.f32 %v23865_v18, %v1002_v63  ;;  %v1004_v3 = vsub.f32 %v23861_v16, %v1002_v63  ;;  %v1005_v4 = vsub.f32 %v654_v23, %v1002_v63  ;;  %v1006_v6 = vsub.f32 %v23871_v22, %v1002_v63  ;;  %v1237_v23 = vld [vmem:[#allocation4 + $0x208] sm:$0xff]  ;;  %v1244_v63 = vld [vmem:[#allocation4 + $0x240] sm:$0xff] }
 0x3c4   :  { %v22183_v28 = vpack.c.bf16 %v1238_v24, %v1237_v23  ;;  %v1262_v23 = vld [vmem:[#allocation4 + $0x2d0] sm:$0xff] }
 0x3d1   :  { %v995_v7 = vpop.f32.mrb[8].mxu0 }
 0x3d2   :  { %v1010_v9 = vrot.slane %v995_v7, %v23889_v61  ;;  %v19882_v10 = vpop.f32.mrb[9].mxu0  ;;  %v1228_v7 = vld [vmem:[#allocation4 + $0x1c0] sm:$0xff] }
 0x3d3   :  { %v1245_v10 = vld [vmem:[#allocation4 + $0x248] sm:$0xff] }
 0x3d4   :  { %v23896_v12 = vmul.f32 %v1010_v9, %v1003_v1  ;;  %v23898_v13 = vmul.f32 %v1010_v9, %v1004_v3  ;;  %v23900_v17 = vmul.f32 %v1010_v9, %v1005_v4  ;;  %v23902_v19 = vmul.f32 %v1010_v9, %v1006_v6  ;;  %v1260_v1 = vld [vmem:[#allocation4 + $0x2c0] sm:$0xff]  ;;  %v1227_v6 = vld [vmem:[#allocation4 + $0x1b8] sm:$0xff] }
 0x3d5   :  { %v22193_v3 = vpack.c.bf16 %v1226_v59, %v1225_v58  ;;  %v22195_v4 = vpack.c.bf16 %v1244_v63, %v1243_v62  ;;  %v22227_v9 = vpack.c.bf16 %v1260_v1, %v1259_v0  ;;  %v22197_v24 = vpack.c.bf16 %v1228_v7, %v1227_v6  ;;  %v1267_v58 = vld [vmem:[#allocation4 + $0x2f8] sm:$0xff]  ;;  %v1268_v59 = vld [vmem:[#allocation4 + $0x300] sm:$0xff] }
 0x3d6   :  { %v1015_v20 = vmax.f32 %v23896_v12, 0.0  ;;  %v1016_v18 = vmax.f32 %v23898_v13, 0.0  ;;  %v1017_v16 = vmax.f32 %v23900_v17, 0.0  ;;  %v1018_v21 = vmax.f32 %v23902_v19, 0.0  ;;  %v1246_v12 = vld [vmem:[#allocation4 + $0x250] sm:$0xff] }
 0x3d7   :  { %v22199_v25 = vpack.c.bf16 %v1246_v12, %v1245_v10 }
 0x3d8   :  { %v22167_v22 = vpack.c.bf16 %v1016_v18, %v1015_v20  ;;  %v22171_v27 = vpack.c.bf16 %v1018_v21, %v1017_v16 }
 0x3da   :  { %22168 = vmatprep.subr.bf16.mxu0 %v22167_v22  ;;  %22176 = vmatprep.subr.bf16.mxu1 %v22167_v22 }
 0x3db   :  { %22170 = vmatpush3.bf16.msra.mxu0 %v22167_v22  ;;  %22178 = vmatpush3.bf16.msra.mxu1 %v22167_v22  ;;  %v1261_v22 = vld [vmem:[#allocation4 + $0x2c8] sm:$0xff] }
 0x3dc   :  { %22172 = vmatprep.subr.bf16.mxu0 %v22171_v27  ;;  %22180 = vmatprep.subr.bf16.mxu1 %v22171_v27 }
 0x3df   :  { %22174 = vmatpush3.bf16.msra.mxu0 %v22171_v27  ;;  %22182 = vmatpush3.bf16.msra.mxu1 %v22171_v27  ;;  %v22231_v27 = vpack.c.bf16 %v1262_v23, %v1261_v22 }
 0x3e0   :  { %22184 = vmatprep.subr.bf16.mxu0 %v22183_v28  ;;  %22216 = vmatprep.subr.bf16.mxu1 %v22215_v29  ;;  %v1247_v28 = vld [vmem:[#allocation4 + $0x258] sm:$0xff] }
 0x3e2   :  { %19892 = vmatmul.mubr.msk.f32.vlgmr.msra.gmra.mrb[10].mxu0 %vm367_vm1, %v1020_v38  ;;  %19906 = vmatmul.mubr.msk.f32.vlgmr.msra.gmra.mrb[14].mxu1 %vm367_vm1, %v1121_v40  ;;  %v22235_v38 = vpack.c.bf16 %v1264_v31, %v1263_v30  ;;  %v1249_v40 = vld [vmem:[#allocation4 + $0x268] sm:$0xff] }
 0x3e3   :  { %19894 = vmatprep.mubr.msk.f32.mxu0 %vm367_vm1, %v1021_v41  ;;  %19908 = vmatprep.mubr.msk.f32.mxu1 %vm367_vm1, %v1122_v43  ;;  %v1250_v41 = vld [vmem:[#allocation4 + $0x270] sm:$0xff]  ;;  %v1265_v43 = vld [vmem:[#allocation4 + $0x2e8] sm:$0xff] }
 0x3e4   :  { %22186 = vmatpush3.bf16.msra.mxu0 %v22185_v44  ;;  %22218 = vmatpush3.bf16.msra.mxu1 %v22215_v29  ;;  %v1248_v29 = vld [vmem:[#allocation4 + $0x260] sm:$0xff]  ;;  %v1266_v44 = vld [vmem:[#allocation4 + $0x2f0] sm:$0xff]  ;;  %v22207_v47 = vpack.c.bf16 %v1250_v41, %v1249_v40 }
 0x3e5   :  { %22188 = vmatprep.subr.bf16.mxu0 %v22187_v45  ;;  %22220 = vmatprep.subr.bf16.mxu1 %v22219_v49  ;;  %v22203_v33 = vpack.c.bf16 %v1248_v29, %v1247_v28  ;;  %v22205_v45 = vpack.c.bf16 %v1232_v35, %v1231_v34  ;;  %v22239_v50 = vpack.c.bf16 %v1266_v44, %v1265_v43 }
 0x3e6   :  { %19895 = vmatmul.mubr.msk.f32.gmra.mrb[12].mxu0 %vm367_vm1, %v1022_v54  ;;  %19909 = vmatmul.mubr.msk.f32.gmra.mrb[16].mxu1 %vm367_vm1, %v1123_v55  ;;  %v22211_v54 = vpack.c.bf16 %v1252_v52, %v1251_v51  ;;  %v1235_v55 = vld [vmem:[#allocation4 + $0x1f8] sm:$0xff] }
 0x3e7   :  { %1333 = vmatprep.mubr.f32.mxu0 %v1015_v20  ;;  %v1229_v20 = vld [vmem:[#allocation4 + $0x1c8] sm:$0xff] }
 0x3e8   :  { %22190 = vmatpush3.bf16.msra.mxu0 %v22189_v56  ;;  %22222 = vmatpush3.bf16.msra.mxu1 %v22219_v49  ;;  %v22201_v32 = vpack.c.bf16 %v1230_v26, %v1229_v20  ;;  %v1234_v49 = vld [vmem:[#allocation4 + $0x1f0] sm:$0xff]  ;;  %v1236_v56 = vld [vmem:[#allocation4 + $0x200] sm:$0xff] }
 0x3e9   :  { %22192 = vmatprep.subr.bf16.mxu0 %v22191_v57  ;;  %22224 = vmatprep.subr.bf16.mxu1 %v22223_v60  ;;  %v22209_v53 = vpack.c.bf16 %v1234_v49, %v1233_v48  ;;  %v22213_v57 = vpack.c.bf16 %v1236_v56, %v1235_v55 }
 0x3ec   :  { %22194 = vmatpush3.bf16.msra.mxu0 %v22193_v3  ;;  %22226 = vmatpush3.bf16.msra.mxu1 %v22223_v60  ;;  %v22243_v60 = vpack.c.bf16 %v1268_v59, %v1267_v58 }
 0x3ed   :  { %22196 = vmatprep.subr.bf16.mxu0 %v22195_v4  ;;  %22228 = vmatprep.subr.bf16.mxu1 %v22227_v9 }
 0x3f0   :  { %22198 = vmatpush3.bf16.msra.mxu0 %v22197_v24  ;;  %22230 = vmatpush3.bf16.msra.mxu1 %v22227_v9 }
 0x3f1   :  { %22200 = vmatprep.subr.bf16.mxu0 %v22199_v25  ;;  %22232 = vmatprep.subr.bf16.mxu1 %v22231_v27 }
 0x3f4   :  { %22202 = vmatpush3.bf16.msra.mxu0 %v22201_v32  ;;  %22234 = vmatpush3.bf16.msra.mxu1 %v22231_v27 }
 0x3f5   :  { %22204 = vmatprep.subr.bf16.mxu0 %v22203_v33  ;;  %22236 = vmatprep.subr.bf16.mxu1 %v22235_v38 }
 0x3f8   :  { %22206 = vmatpush3.bf16.msra.mxu0 %v22205_v45  ;;  %22238 = vmatpush3.bf16.msra.mxu1 %v22235_v38 }
 0x3f9   :  { %22208 = vmatprep.subr.bf16.mxu0 %v22207_v47  ;;  %22240 = vmatprep.subr.bf16.mxu1 %v22239_v50 }
 0x3fc   :  { %22210 = vmatpush3.bf16.msra.mxu0 %v22209_v53  ;;  %22242 = vmatpush3.bf16.msra.mxu1 %v22239_v50 }
 0x3fd   :  { %22212 = vmatprep.subr.bf16.mxu0 %v22211_v54  ;;  %22244 = vmatprep.subr.bf16.mxu1 %v22243_v60 }
 0x400   :  { %22214 = vmatpush3.bf16.msra.mxu0 %v22213_v57  ;;  %22246 = vmatpush3.bf16.msra.mxu1 %v22243_v60 }
 0x401   :  { %22247 = vmatprep.subr.bf16.mxu0 %v23718_v36  ;;  %22271 = vmatprep.subr.bf16.mxu1 %v23718_v36 }
 0x4b5   :  { %v19893_v62 = vpop.f32.mrb[10].mxu0  ;;  %v19907_v63 = vpop.f32.mrb[14].mxu1 }
 0x4b6   :  { %v1101_v0 = vpop.f32.mrb[11].mxu0  ;;  %v1202_v1 = vpop.f32.mrb[15].mxu1 }
 0x4b7   :  { %1334 = vmatmul.mubr.f32.vlgmr.msra.gmra.mrb[14].mxu0 %v1101_v0  ;;  %19943 = vmatprep.mubr.f32.mxu1 %v1202_v1 }
 0x4b8   :  { %1338 = vmatprep.mubr.f32.mxu0 %v1016_v18  ;;  %19944 = vmatmul.mubr.f32.vlgmr.msra.gmra.mrb[18].mxu1 %v19907_v63 }
 0x4b9   :  { %v19896_v3 = vpop.f32.mrb[12].mxu0  ;;  %v19910_v4 = vpop.f32.mrb[16].mxu1  ;;  %22249 = vmatpush3.bf16.msra.mxu0 %v23773_v37  ;;  %22273 = vmatpush3.bf16.msra.mxu1 %v23773_v37 }
 0x4ba   :  { %v1111_v6 = vpop.f32.mrb[13].mxu0  ;;  %v1212_v7 = vpop.f32.mrb[17].mxu1  ;;  %22250 = vmatprep.subr.bf16.mxu0 %v23718_v36  ;;  %22274 = vmatprep.subr.bf16.mxu1 %v23718_v36 }
 0x4bb   :  { %1339 = vmatmul.mubr.f32.gmra.mrb[16].mxu0 %v19893_v62  ;;  %19946 = vmatprep.mubr.f32.mxu1 %v1212_v7  ;;  %v1775_v62 = vld [vmem:[#allocation4 + $0x308] sm:$0xff] }
 0x4bc   :  { %1343 = vmatprep.mubr.f32.mxu0 %v1017_v16  ;;  %19947 = vmatmul.mubr.f32.gmra.mrb[20].mxu1 %v19910_v4 }
 0x4bd   :  { %22252 = vmatpush3.bf16.msra.mxu0 %v23776_v39  ;;  %22276 = vmatpush3.bf16.msra.mxu1 %v23776_v39 }
 0x4be   :  { %22253 = vmatprep.subr.bf16.mxu0 %v23718_v36  ;;  %22277 = vmatprep.subr.bf16.mxu1 %v23718_v36 }
 0x4bf   :  { %1344 = vmatmul.mubr.f32.gmra.mrb[18].mxu0 %v1111_v6  ;;  %20016 = vmatprep.mubr.msk.f32.mxu1 %vm23719_vm2, %v23720_v15 }
 0x4c0   :  { %1348 = vmatprep.mubr.f32.mxu0 %v1018_v21 }
 0x4c1   :  { %22255 = vmatpush3.bf16.msra.mxu0 %v23780_v42  ;;  %22279 = vmatpush3.bf16.msra.mxu1 %v23780_v42 }
 0x4c2   :  { %22256 = vmatprep.subr.bf16.mxu0 %v23718_v36  ;;  %22280 = vmatprep.subr.bf16.mxu1 %v23718_v36 }
 0x4c3   :  { %1349 = vmatmul.mubr.f32.gmra.mrb[20].mxu0 %v19896_v3 }
 0x4c4   :  { %19981 = vmatprep.mubr.msk.f32.mxu0 %vm23719_vm2, %v23720_v15 }
 0x4c5   :  { %22258 = vmatpush3.bf16.msra.mxu0 %v23804_v2  ;;  %22282 = vmatpush3.bf16.msra.mxu1 %v23804_v2 }
 0x4c6   :  { %22259 = vmatprep.subr.bf16.mxu0 %v23718_v36  ;;  %22283 = vmatprep.subr.bf16.mxu1 %v23718_v36 }
 0x4c9   :  { %22261 = vmatpush3.bf16.msra.mxu0 %v23810_v5  ;;  %22285 = vmatpush3.bf16.msra.mxu1 %v23810_v5 }
 0x4ca   :  { %22262 = vmatprep.subr.bf16.mxu0 %v23718_v36  ;;  %22286 = vmatprep.subr.bf16.mxu1 %v23718_v36 }
 0x4cd   :  { %22264 = vmatpush3.bf16.msra.mxu0 %v23816_v8  ;;  %22288 = vmatpush3.bf16.msra.mxu1 %v23816_v8 }
 0x4ce   :  { %22265 = vmatprep.subr.bf16.mxu0 %v23718_v36  ;;  %22289 = vmatprep.subr.bf16.mxu1 %v23718_v36 }
 0x4d1   :  { %22267 = vmatpush3.bf16.msra.mxu0 %v23822_v11  ;;  %22291 = vmatpush3.bf16.msra.mxu1 %v23822_v11 }
 0x4d2   :  { %22268 = vmatprep.subr.bf16.mxu0 %v23718_v36  ;;  %22292 = vmatprep.subr.bf16.mxu1 %v23718_v36 }
 0x4d5   :  { %22270 = vmatpush3.bf16.msra.mxu0 %v23828_v14  ;;  %22294 = vmatpush3.bf16.msra.mxu1 %v23828_v14 }
 0x4d6   :  { %20019 = vmatprep.subr.mxu0 %v23720_v15  ;;  %20024 = vmatprep.subr.mxu1 %v23720_v15 }
 0x58a   :  { %v18459_v37 = vpop.f32.mrb[14].mxu0 }
 0x58b   :  { %v18460_v39 = vpop.f32.mrb[15].mxu0  ;;  %v19945_v42 = vpop.f32.mrb[18].mxu1 }
 0x58c   :  { %v18461_v2 = vadd.f32 %v18460_v39, %v18459_v37  ;;  %v1420_v5 = vpop.f32.mrb[19].mxu1 }
 0x58e   :  { %v23964_v8 = vadd.f32 %v18461_v2, %v1420_v5  ;;  %v18462_v11 = vpop.f32.mrb[16].mxu0 }
 0x58f   :  { %v18463_v13 = vpop.f32.mrb[17].mxu0  ;;  %v19948_v17 = vpop.f32.mrb[20].mxu1 }
 0x590   :  { %v18464_v19 = vadd.f32 %v18463_v13, %v18462_v11  ;;  %v1430_v18 = vpop.f32.mrb[21].mxu1  ;;  %v1448_v24 = vmul.f32 %v23964_v8, %v23964_v8 }
 0x592   :  { %v23966_v16 = vadd.f32 %v19945_v42, %v18464_v19  ;;  %v18465_v21 = vpop.f32.mrb[18].mxu0 }
 0x593   :  { %v18466_v14 = vpop.f32.mrb[19].mxu0 }
 0x594   :  { %v18467_v9 = vadd.f32 %v18466_v14, %v18465_v21  ;;  %v1449_v10 = vmul.f32 %v23966_v16, %v23966_v16  ;;  %v1439_v25 = vadd.f32 %v23966_v16, %v23964_v8  ;;  %v2040_v14 = vld [vmem:[#allocation4 + $0x3b8] sm:$0xff] }
 0x596   :  { %v1431_v12 = vadd.f32 %v18467_v9, %v1430_v18  ;;  %v18468_v22 = vpop.f32.mrb[20].mxu0  ;;  %v1452_v28 = vadd.f32 %v1449_v10, %v1448_v24  ;;  %v2041_v9 = vld [vmem:[#allocation4 + $0x3c0] sm:$0xff]  ;;  %v2043_v24 = vld [vmem:[#allocation4 + $0x3d0] sm:$0xff] }
 0x597   :  { %v18469_v23 = vpop.f32.mrb[21].mxu0  ;;  %v22319_v10 = vpack.c.bf16 %v2041_v9, %v2040_v14  ;;  %v2037_v14 = vld [vmem:[#allocation4 + $0x3a0] sm:$0xff]  ;;  %v2066_v9 = vld [vmem:[#allocation4 + $0x488] sm:$0xff] }
 0x598   :  { %v1450_v20 = vmul.f32 %v1431_v12, %v1431_v12  ;;  %v18470_v26 = vadd.f32 %v18469_v23, %v18468_v22  ;;  %v1440_v27 = vadd.f32 %v1439_v25, %v1431_v12  ;;  %v2025_v22 = vld [vmem:[#allocation4 + $0x340] sm:$0xff]  ;;  %v2042_v23 = vld [vmem:[#allocation4 + $0x3c8] sm:$0xff]  ;;  %v1776_v25 = vld [vmem:[#allocation4 + $0x310] sm:$0xff] }
 0x59a   :  { %v1436_v29 = vadd.f32 %v19948_v17, %v18470_v26  ;;  %v1453_v30 = vadd.f32 %v1452_v28, %v1450_v20  ;;  %v1859_v20 = vld [vmem:[#allocation4 + $0x320] sm:$0xff]  ;;  %v1941_v26 = vld [vmem:[#allocation4 + $0x328] sm:$0xff] }
 0x59b   :  { %v2026_v28 = vld [vmem:[#allocation4 + $0x348] sm:$0xff] }
 0x59c   :  { %v1441_v31 = vadd.f32 %v1440_v27, %v1436_v29  ;;  %v1451_v32 = vmul.f32 %v1436_v29, %v1436_v29 }
 0x59e   :  { %v1442_v33 = vrot.slane %v1441_v31, 4  ;;  %v1454_v34 = vadd.f32 %v1453_v30, %v1451_v32  ;;  %v2027_v30 = vld [vmem:[#allocation4 + $0x350] sm:$0xff]  ;;  %v2057_v32 = vld [vmem:[#allocation4 + $0x440] sm:$0xff] }
 0x5a0   :  { %v1443_v35 = vadd.f32 %v1442_v33, %v1441_v31  ;;  %v1455_v38 = vrot.slane %v1454_v34, 4  ;;  %v2056_v31 = vld [vmem:[#allocation4 + $0x438] sm:$0xff] }
 0x5a1   :  { %v2044_v33 = vld [vmem:[#allocation4 + $0x3d8] sm:$0xff] }
 0x5a2   :  { %v1444_v40 = vrot.slane %v1443_v35, 2  ;;  %v1456_v41 = vadd.f32 %v1455_v38, %v1454_v34  ;;  %v2045_v34 = vld [vmem:[#allocation4 + $0x3e0] sm:$0xff]  ;;  %v22351_v38 = vpack.c.bf16 %v2057_v32, %v2056_v31  ;;  %v2070_v31 = vld [vmem:[#allocation4 + $0x4a8] sm:$0xff]  ;;  %v2071_v32 = vld [vmem:[#allocation4 + $0x4b0] sm:$0xff] }
 0x5a4   :  { %v1445_v43 = vadd.f32 %v1444_v40, %v1443_v35  ;;  %v1457_v44 = vrot.slane %v1456_v41, 2  ;;  %v22325_v35 = vpack.c.bf16 %v2027_v30, %v2026_v28  ;;  %v2028_v40 = vld [vmem:[#allocation4 + $0x358] sm:$0xff] }
 0x5a5   :  { %v2068_v28 = vld [vmem:[#allocation4 + $0x498] sm:$0xff] }
 0x5a6   :  { %v1446_v45 = vrot.slane %v1445_v43, 1  ;;  %v1458_v47 = vadd.f32 %v1457_v44, %v1456_v41  ;;  %v22327_v41 = vpack.c.bf16 %v2045_v34, %v2044_v33  ;;  %v2058_v44 = vld [vmem:[#allocation4 + $0x448] sm:$0xff]  ;;  %v22379_v33 = vpack.c.bf16 %v2071_v32, %v2070_v31 }
 0x5a8   :  { %v1447_v48 = vadd.f32 %v1446_v45, %v1445_v43  ;;  %v1459_v49 = vrot.slane %v1458_v47, 1  ;;  %v2029_v43 = vld [vmem:[#allocation4 + $0x360] sm:$0xff]  ;;  %v2059_v45 = vld [vmem:[#allocation4 + $0x450] sm:$0xff] }
 0x5aa   :  { %19982 = vmatmul.mubr.f32.vlgmr.msra.gmra.mrb[22].mxu0 %v1447_v48  ;;  %v1460_v50 = vadd.f32 %v1459_v49, %v1458_v47  ;;  %v2046_v47 = vld [vmem:[#allocation4 + $0x3e8] sm:$0xff]  ;;  %v2047_v48 = vld [vmem:[#allocation4 + $0x3f0] sm:$0xff] }
 0x5ab   :  { %20020 = vmatpush3.msra.mxu0 %v23878_v46  ;;  %20021 = vmatprep.mubr.msk.f32.mxu0 %vm23719_vm2, %v23720_v15  ;;  %v1942_v49 = vld [vmem:[#allocation4 + $0x330] sm:$0xff] }
 0x5ac   :  { %20017 = vmatmul.mubr.f32.vlgmr.msra.gmra.mrb[22].mxu1 %v1460_v50  ;;  %v22329_v50 = vpack.c.bf16 %v2029_v43, %v2028_v40 }
 0x5ad   :  { %20025 = vmatpush3.msra.mxu1 %v23878_v46  ;;  %20026 = vmatprep.mubr.msk.f32.mxu1 %vm23719_vm2, %v23720_v15  ;;  %v1858_v46 = vld [vmem:[#allocation4 + $0x318] sm:$0xff] }
 0x67d   :  { %v1527_v51 = vpop.f32.mrb[22].mxu0 }
 0x67e   :  { %v1601_v52 = vmul.f32 0.001953125, %v1527_v51  ;;  %v19983_v53 = vpop.f32.mrb[23].mxu0  ;;  %v22355_v51 = vpack.c.bf16 %v2059_v45, %v2058_v44  ;;  %v2242_v44 = vld [vmem:[#allocation4 + $0x4b8] sm:$0xff]  ;;  %v2243_v45 = vld [vmem:[#allocation4 + $0x4c0] sm:$0xff] }
 0x67f   :  { %v1597_v54 = vpop.f32.mrb[22].mxu1  ;;  %v22331_v53 = vpack.c.bf16 %v2047_v48, %v2046_v47  ;;  %v24020_v47 = vpack.c.bf16 %v2243_v45, %v2242_v44  ;;  %v2244_v48 = vld [vmem:[#allocation4 + $0x4c8] sm:$0xff] }
 0x680   :  { %v1603_v55 = vmul.f32 %v1601_v52, %v1601_v52  ;;  %v1602_v56 = vmul.f32 0.001953125, %v1597_v54  ;;  %v20018_v57 = vpop.f32.mrb[23].mxu1  ;;  %20022 = vmatmul.mubr.msk.f32.vlgmr.msra.gmra.mrb[24].mxu0 %vm852_vm3, %v1601_v52  ;;  %v2030_v52 = vld [vmem:[#allocation4 + $0x368] sm:$0xff]  ;;  %v2031_v54 = vld [vmem:[#allocation4 + $0x370] sm:$0xff] }
 0x681   :  { %20037 = vmatprep.mubr.msk.f32.mxu0 %vm367_vm1, %v1775_v62  ;;  %v2048_v57 = vld [vmem:[#allocation4 + $0x3f8] sm:$0xff] }
 0x682   :  { %v1604_v58 = vsub.f32 %v1602_v56, %v1603_v55  ;;  %v2060_v55 = vld [vmem:[#allocation4 + $0x458] sm:$0xff]  ;;  %v2061_v56 = vld [vmem:[#allocation4 + $0x460] sm:$0xff] }
 0x683   :  { %v2032_v62 = vld [vmem:[#allocation4 + $0x378] sm:$0xff] }
 0x684   :  { %v1605_v59 = vadd.f32 1e-05, %v1604_v58  ;;  %v2049_v58 = vld [vmem:[#allocation4 + $0x400] sm:$0xff] }
 0x686   :  { %23611 = vrsqrt.f32 %v1605_v59  ;;  %v22333_v59 = vpack.c.bf16 %v2031_v54, %v2030_v52  ;;  %v2249_v54 = vld [vmem:[#allocation4 + $0x4f0] sm:$0xff] }
 0x690   :  { %v23612_v60 = vpop.eup %23611 }
 0x691   :  { %20027 = vmatmul.mubr.msk.f32.vlgmr.msra.gmra.mrb[24].mxu1 %vm852_vm3, %v23612_v60  ;;  %v22359_v60 = vpack.c.bf16 %v2061_v56, %v2060_v55  ;;  %v24045_v56 = vld [vmem:[%s25438_s2 + $0x10] sm:$0xff] }
 0x692   :  { %20048 = vmatprep.mubr.msk.f32.mxu1 %vm367_vm1, %v1858_v46  ;;  %v22335_v46 = vpack.c.bf16 %v2049_v58, %v2048_v57 }
 0x753   :  { %v1676_v63 = vpop.f32.mrb[24].mxu0 }
 0x754   :  { %v20023_v0 = vpop.f32.mrb[25].mxu0  ;;  %v1756_v1 = vrot.slane %v1676_v63, %v23889_v61  ;;  %v2033_v63 = vld [vmem:[#allocation4 + $0x380] sm:$0xff] }
 0x755   :  { %v2062_v0 = vld [vmem:[#allocation4 + $0x468] sm:$0xff] }
 0x756   :  { %v1757_v3 = vsub.f32 %v23964_v8, %v1756_v1  ;;  %v1758_v6 = vsub.f32 %v23966_v16, %v1756_v1  ;;  %v1759_v7 = vsub.f32 %v1431_v12, %v1756_v1  ;;  %v1760_v37 = vsub.f32 %v1436_v29, %v1756_v1  ;;  %v2024_v12 = vld [vmem:[#allocation4 + $0x338] sm:$0xff]  ;;  %v2063_v1 = vld [vmem:[#allocation4 + $0x470] sm:$0xff] }
 0x757   :  { %v22321_v27 = vpack.c.bf16 %v2025_v22, %v2024_v12  ;;  %v22323_v29 = vpack.c.bf16 %v2043_v24, %v2042_v23  ;;  %v2054_v12 = vld [vmem:[#allocation4 + $0x428] sm:$0xff]  ;;  %v2055_v22 = vld [vmem:[#allocation4 + $0x430] sm:$0xff] }
 0x764   :  { %v1749_v4 = vpop.f32.mrb[24].mxu1 }
 0x765   :  { %v1764_v39 = vrot.slane %v1749_v4, %v23889_v61  ;;  %v20028_v42 = vpop.f32.mrb[25].mxu1  ;;  %v2051_v4 = vld [vmem:[#allocation4 + $0x410] sm:$0xff] }
 0x766   :  { %v2035_v42 = vld [vmem:[#allocation4 + $0x390] sm:$0xff] }
 0x767   :  { %v1765_v2 = vmul.f32 %v1764_v39, %v1757_v3  ;;  %v1766_v5 = vmul.f32 %v1764_v39, %v1758_v6  ;;  %v1767_v11 = vmul.f32 %v1764_v39, %v1759_v7  ;;  %v1768_v13 = vmul.f32 %v1764_v39, %v1760_v37  ;;  %v2050_v3 = vld [vmem:[#allocation4 + $0x408] sm:$0xff] }
 0x768   :  { %v22337_v6 = vpack.c.bf16 %v2033_v63, %v2032_v62  ;;  %v22363_v7 = vpack.c.bf16 %v2063_v1, %v2062_v0  ;;  %v2034_v37 = vld [vmem:[#allocation4 + $0x388] sm:$0xff]  ;;  %v22339_v39 = vpack.c.bf16 %v2051_v4, %v2050_v3 }
 0x769   :  { %v1769_v17 = vmax.f32 %v1765_v2, 0.0  ;;  %v1770_v19 = vmax.f32 %v1766_v5, 0.0  ;;  %v1771_v18 = vmax.f32 %v1767_v11, 0.0  ;;  %v1772_v21 = vmax.f32 %v1768_v13, 0.0  ;;  %v2064_v2 = vld [vmem:[#allocation4 + $0x478] sm:$0xff]  ;;  %v2065_v5 = vld [vmem:[#allocation4 + $0x480] sm:$0xff] }
 0x76a   :  { %v2052_v11 = vld [vmem:[#allocation4 + $0x418] sm:$0xff]  ;;  %v2053_v13 = vld [vmem:[#allocation4 + $0x420] sm:$0xff] }
 0x76b   :  { %1773 = vst [vmem:[%s25438_s2] sm:$0xff] %v1769_v17  ;;  %1774 = vst [vmem:[%s25438_s2 + $0x8] sm:$0xff] %v1770_v19  ;;  %v23994_v8 = vpack.c.bf16 %v1770_v19, %v1769_v17  ;;  %v23996_v16 = vpack.c.bf16 %v1772_v21, %v1771_v18  ;;  %v22341_v17 = vpack.c.bf16 %v2035_v42, %v2034_v37  ;;  %v2036_v18 = vld [vmem:[#allocation4 + $0x398] sm:$0xff] }
 0x76c   :  { %v22367_v19 = vpack.c.bf16 %v2065_v5, %v2064_v2  ;;  %v22343_v21 = vpack.c.bf16 %v2053_v13, %v2052_v11  ;;  %v22345_v23 = vpack.c.bf16 %v2037_v14, %v2036_v18 }
 0x76d   :  { %22296 = vmatprep.subr.bf16.mxu0 %v23994_v8  ;;  %22304 = vmatprep.subr.bf16.mxu1 %v23994_v8 }
 0x76e   :  { %22298 = vmatpush3.bf16.msra.mxu0 %v23994_v8  ;;  %22306 = vmatpush3.bf16.msra.mxu1 %v23994_v8 }
 0x76f   :  { %22300 = vmatprep.subr.bf16.mxu0 %v23996_v16  ;;  %22308 = vmatprep.subr.bf16.mxu1 %v23996_v16 }
 0x772   :  { %22302 = vmatpush3.bf16.msra.mxu0 %v23996_v16  ;;  %22310 = vmatpush3.bf16.msra.mxu1 %v23996_v16 }
 0x773   :  { %22312 = vmatprep.subr.bf16.mxu0 %v23994_v8  ;;  %22320 = vmatprep.subr.bf16.mxu1 %v22319_v10  ;;  %v2067_v10 = vld [vmem:[#allocation4 + $0x490] sm:$0xff] }
 0x774   :  { %v22371_v24 = vpack.c.bf16 %v2067_v10, %v2066_v9 }
 0x775   :  { %20038 = vmatmul.mubr.msk.f32.vlgmr.msra.gmra.mrb[26].mxu0 %vm367_vm1, %v1776_v25  ;;  %20049 = vmatmul.mubr.msk.f32.vlgmr.msra.gmra.mrb[26].mxu1 %vm367_vm1, %v1859_v20  ;;  %v22347_v25 = vpack.c.bf16 %v2055_v22, %v2054_v12  ;;  %v2038_v20 = vld [vmem:[#allocation4 + $0x3a8] sm:$0xff] }
 0x776   :  { %22314 = vmatpush3.bf16.msra.mxu0 %v23994_v8  ;;  %20059 = vmatprep.mubr.msk.f32.mxu0 %vm367_vm1, %v1941_v26  ;;  %v2039_v26 = vld [vmem:[#allocation4 + $0x3b0] sm:$0xff] }
 0x777   :  { %22316 = vmatprep.subr.bf16.mxu0 %v23996_v16  ;;  %22322 = vmatpush3.bf16.msra.mxu1 %v22321_v27  ;;  %v22349_v27 = vpack.c.bf16 %v2039_v26, %v2038_v20 }
 0x778   :  { %22324 = vmatprep.subr.bf16.mxu1 %v22323_v29  ;;  %v2069_v29 = vld [vmem:[#allocation4 + $0x4a0] sm:$0xff] }
 0x779   :  { %v22375_v30 = vpack.c.bf16 %v2069_v29, %v2068_v28 }
 0x77a   :  { %22318 = vmatpush3.bf16.msra.mxu0 %v23996_v16 }
 0x77b   :  { %22326 = vmatpush3.bf16.msra.mxu1 %v22325_v35  ;;  %22352 = vmatprep.subr.bf16.mxu0 %v22351_v38 }
 0x77c   :  { %22328 = vmatprep.subr.bf16.mxu1 %v22327_v41 }
 0x77d   :  { %20060 = vmatmul.mubr.msk.f32.vlgmr.msra.gmra.mrb[28].mxu0 %vm367_vm1, %v1942_v49  ;;  %v2245_v49 = vld [vmem:[#allocation4 + $0x4d0] sm:$0xff] }
 0x77e   :  { %22354 = vmatpush3.bf16.msra.mxu0 %v22351_v38 }
 0x77f   :  { %22330 = vmatpush3.bf16.msra.mxu1 %v22329_v50  ;;  %22356 = vmatprep.subr.bf16.mxu0 %v22355_v51  ;;  %v24026_v50 = vpack.c.bf16 %v2245_v49, %v2244_v48 }
 0x780   :  { %22332 = vmatprep.subr.bf16.mxu1 %v22331_v53  ;;  %v2248_v53 = vld [vmem:[#allocation4 + $0x4e8] sm:$0xff] }
 0x781   :  { %v24038_v55 = vpack.c.bf16 %v2249_v54, %v2248_v53  ;;  %v2738_v53 = vld [vmem:[#allocation4 + $0x560] sm:$0xff]  ;;  %v2739_v54 = vld [vmem:[#allocation4 + $0x568] sm:$0xff] }
 0x782   :  { %22358 = vmatpush3.bf16.msra.mxu0 %v22355_v51  ;;  %v2247_v51 = vld [vmem:[#allocation4 + $0x4e0] sm:$0xff] }
 0x783   :  { %22334 = vmatpush3.bf16.msra.mxu1 %v22333_v59  ;;  %22360 = vmatprep.subr.bf16.mxu0 %v22359_v60 }
 0x784   :  { %22336 = vmatprep.subr.bf16.mxu1 %v22335_v46 }
 0x786   :  { %22362 = vmatpush3.bf16.msra.mxu0 %v22359_v60 }
 0x787   :  { %22338 = vmatpush3.bf16.msra.mxu1 %v22337_v6  ;;  %22364 = vmatprep.subr.bf16.mxu0 %v22363_v7 }
 0x788   :  { %22340 = vmatprep.subr.bf16.mxu1 %v22339_v39 }
 0x78a   :  { %22366 = vmatpush3.bf16.msra.mxu0 %v22363_v7 }
 0x78b   :  { %22342 = vmatpush3.bf16.msra.mxu1 %v22341_v17  ;;  %22368 = vmatprep.subr.bf16.mxu0 %v22367_v19 }
 0x78c   :  { %22344 = vmatprep.subr.bf16.mxu1 %v22343_v21 }
 0x78e   :  { %22370 = vmatpush3.bf16.msra.mxu0 %v22367_v19 }
 0x78f   :  { %22346 = vmatpush3.bf16.msra.mxu1 %v22345_v23  ;;  %22372 = vmatprep.subr.bf16.mxu0 %v22371_v24 }
 0x790   :  { %22348 = vmatprep.subr.bf16.mxu1 %v22347_v25 }
 0x792   :  { %22374 = vmatpush3.bf16.msra.mxu0 %v22371_v24  ;;  %v24056_v24 = vld [vmem:[#allocation4 + $0x4f8] sm:$0xff] }
 0x793   :  { %22350 = vmatpush3.bf16.msra.mxu1 %v22349_v27  ;;  %22376 = vmatprep.subr.bf16.mxu0 %v22375_v30 }
 0x794   :  { %22383 = vmatprep.subr.bf16.mxu1 %v23718_v36 }
 0x796   :  { %22378 = vmatpush3.bf16.msra.mxu0 %v22375_v30 }
 0x797   :  { %22380 = vmatprep.subr.bf16.mxu0 %v22379_v33 }
 0x79a   :  { %22382 = vmatpush3.bf16.msra.mxu0 %v22379_v33 }
 0x79b   :  { %22395 = vmatprep.subr.bf16.mxu0 %v23718_v36 }
 0x848   :  { %v20039_v34 = vpop.f32.mrb[26].mxu0  ;;  %v20050_v35 = vpop.f32.mrb[26].mxu1 }
 0x849   :  { %v1849_v38 = vpop.f32.mrb[27].mxu0  ;;  %v1932_v40 = vpop.f32.mrb[27].mxu1 }
 0x84a   :  { %2136 = vmatprep.mubr.f32.mxu1 %v1932_v40 }
 0x84b   :  { %2137 = vmatmul.mubr.f32.vlgmr.msra.gmra.mrb[28].mxu1 %v1849_v38 }
 0x84c   :  { %2141 = vmatprep.mubr.f32.mxu1 %v20050_v35  ;;  %22385 = vmatpush3.bf16.msra.mxu1 %v24020_v47  ;;  %v2647_v35 = vld [vmem:[#allocation4 + $0x510] sm:$0xff] }
 0x84d   :  { %22386 = vmatprep.subr.bf16.mxu1 %v23718_v36 }
 0x84f   :  { %2142 = vmatmul.mubr.f32.gmra.mrb[30].mxu1 %v20039_v34  ;;  %v2563_v34 = vld [vmem:[#allocation4 + $0x500] sm:$0xff] }
 0x850   :  { %v20061_v41 = vpop.f32.mrb[28].mxu0  ;;  %20113 = vmatprep.mubr.msk.f32.mxu1 %vm23719_vm2, %v23720_v15  ;;  %22388 = vmatpush3.bf16.msra.mxu1 %v24026_v50 }
 0x851   :  { %v2015_v43 = vpop.f32.mrb[29].mxu0  ;;  %22389 = vmatprep.subr.bf16.mxu1 %v23718_v36 }
 0x852   :  { %20094 = vmatprep.mubr.f32.mxu0 %v2015_v43 }
 0x853   :  { %20095 = vmatmul.mubr.f32.vlgmr.msra.gmra.mrb[30].mxu0 %v20061_v41 }
 0x854   :  { %20132 = vmatprep.mubr.msk.f32.mxu0 %vm23719_vm2, %v23720_v15  ;;  %22397 = vmatpush3.bf16.msra.mxu0 %v24020_v47  ;;  %v2246_v15 = vld [vmem:[#allocation4 + $0x4d8] sm:$0xff] }
 0x855   :  { %22398 = vmatprep.subr.bf16.mxu0 %v23718_v36  ;;  %v24032_v52 = vpack.c.bf16 %v2247_v51, %v2246_v15 }
 0x857   :  { %22391 = vmatpush3.bf16.msra.mxu1 %v24032_v52 }
 0x858   :  { %22400 = vmatpush3.bf16.msra.mxu0 %v24026_v50  ;;  %22392 = vmatprep.subr.bf16.mxu1 %v23718_v36 }
 0x859   :  { %22401 = vmatprep.subr.bf16.mxu0 %v23718_v36 }
 0x85b   :  { %22394 = vmatpush3.bf16.msra.mxu1 %v24038_v55 }
 0x85c   :  { %22403 = vmatpush3.bf16.msra.mxu0 %v24032_v52  ;;  %20135 = vmatprep.subr.mxu1 %v24045_v56 }
 0x85d   :  { %22404 = vmatprep.subr.bf16.mxu0 %v23718_v36 }
 0x860   :  { %22406 = vmatpush3.bf16.msra.mxu0 %v24038_v55 }
 0x91e   :  { %v18579_v57 = vpop.f32.mrb[28].mxu1 }
 0x91f   :  { %v18580_v58 = vpop.f32.mrb[29].mxu1 }
 0x920   :  { %v18581_v59 = vadd.f32 %v18580_v58, %v18579_v57 }
 0x922   :  { %v18582_v60 = vpop.f32.mrb[30].mxu1 }
 0x923   :  { %v18583_v62 = vpop.f32.mrb[31].mxu1 }
 0x924   :  { %v18584_v46 = vadd.f32 %v18583_v62, %v18582_v60  ;;  %v22415_v60 = vpack.c.bf16 %v2739_v54, %v2738_v53  ;;  %v2740_v62 = vld [vmem:[#allocation4 + $0x570] sm:$0xff] }
 0x926   :  { %v20096_v63 = vpop.f32.mrb[30].mxu0 }
 0x927   :  { %v2219_v0 = vadd.f32 %v20096_v63, %v18584_v46  ;;  %v2213_v1 = vpop.f32.mrb[31].mxu0  ;;  %v2741_v46 = vld [vmem:[#allocation4 + $0x578] sm:$0xff]  ;;  %v2564_v63 = vld [vmem:[#allocation4 + $0x508] sm:$0xff] }
 0x928   :  { %v2214_v3 = vadd.f32 %v18581_v59, %v2213_v1  ;;  %v2648_v1 = vld [vmem:[#allocation4 + $0x518] sm:$0xff] }
 0x929   :  { %v2223_v4 = vsel %vm59_vm0, %v2219_v0, 0.0  ;;  %v2232_v6 = vmul.f32 %v2219_v0, %v2219_v0 }
 0x92a   :  { %v2222_v7 = vsel %vm59_vm0, %v2214_v3, 0.0  ;;  %v2231_v37 = vmul.f32 %v2214_v3, %v2214_v3 }
 0x92b   :  { %v2234_v39 = vsel %vm59_vm0, %v2232_v6, 0.0  ;;  %v2224_v42 = vadd.f32 %v2223_v4, %v2222_v7  ;;  %v2743_v4 = vld [vmem:[#allocation4 + $0x588] sm:$0xff]  ;;  %v2744_v7 = vld [vmem:[#allocation4 + $0x590] sm:$0xff] }
 0x92c   :  { %v2233_v2 = vsel %vm59_vm0, %v2231_v37, 0.0  ;;  %v2745_v37 = vld [vmem:[#allocation4 + $0x598] sm:$0xff] }
 0x92d   :  { %v2225_v5 = vrot.slane %v2224_v42, 4  ;;  %v2235_v11 = vadd.f32 %v2234_v39, %v2233_v2  ;;  %v22427_v39 = vpack.c.bf16 %v2745_v37, %v2744_v7  ;;  %v2731_v2 = vld [vmem:[#allocation4 + $0x528] sm:$0xff] }
 0x92f   :  { %v2226_v13 = vadd.f32 %v2225_v5, %v2224_v42  ;;  %v2236_v17 = vrot.slane %v2235_v11, 4  ;;  %v2730_v42 = vld [vmem:[#allocation4 + $0x520] sm:$0xff] }
 0x930   :  { %v22431_v5 = vpack.c.bf16 %v2731_v2, %v2730_v42 }
 0x931   :  { %v2227_v19 = vrot.slane %v2226_v13, 2  ;;  %v2237_v18 = vadd.f32 %v2236_v17, %v2235_v11  ;;  %v2732_v11 = vld [vmem:[#allocation4 + $0x530] sm:$0xff] }
 0x933   :  { %v2228_v21 = vadd.f32 %v2227_v19, %v2226_v13  ;;  %v2238_v14 = vrot.slane %v2237_v18, 2  ;;  %v2733_v13 = vld [vmem:[#allocation4 + $0x538] sm:$0xff]  ;;  %v2734_v19 = vld [vmem:[#allocation4 + $0x540] sm:$0xff] }
 0x934   :  { %v22435_v17 = vpack.c.bf16 %v2733_v13, %v2732_v11 }
 0x935   :  { %v2229_v9 = vrot.slane %v2228_v21, 1  ;;  %v2239_v10 = vadd.f32 %v2238_v14, %v2237_v18  ;;  %v2735_v18 = vld [vmem:[#allocation4 + $0x548] sm:$0xff]  ;;  %v2736_v14 = vld [vmem:[#allocation4 + $0x550] sm:$0xff] }
 0x937   :  { %v2230_v12 = vadd.f32 %v2229_v9, %v2228_v21  ;;  %v2240_v22 = vrot.slane %v2239_v10, 1  ;;  %v22439_v21 = vpack.c.bf16 %v2735_v18, %v2734_v19  ;;  %v2737_v9 = vld [vmem:[#allocation4 + $0x558] sm:$0xff] }
 0x939   :  { %20114 = vmatmul.mubr.msk.f32.vlgmr.msra.gmra.mrb[32].mxu1 %vm59_vm0, %v2230_v12  ;;  %v2241_v23 = vadd.f32 %v2240_v22, %v2239_v10  ;;  %v22443_v10 = vpack.c.bf16 %v2737_v9, %v2736_v14  ;;  %v2908_v12 = vld [vmem:[#allocation4 + $0x5a0] sm:$0xff]  ;;  %v2909_v22 = vld [vmem:[#allocation4 + $0x5a8] sm:$0xff] }
 0x93a   :  { %20137 = vmatprep.mubr.msk.f32.mxu1 %vm23719_vm2, %v24045_v56  ;;  %20136 = vmatpush3.msra.mxu1 %v24056_v24 }
 0x93b   :  { %20133 = vmatmul.mubr.msk.f32.vlgmr.msra.gmra.mrb[32].mxu0 %vm59_vm0, %v2241_v23  ;;  %20140 = vmatprep.subr.mxu1 %v24045_v56  ;;  %v22447_v23 = vpack.c.bf16 %v2909_v22, %v2908_v12 }
 0x93c   :  { %20149 = vmatprep.mubr.msk.f32.mxu0 %vm2565_vm4, %v2563_v34  ;;  %v2914_v34 = vld [vmem:[#allocation4 + $0x5d0] sm:$0xff] }
 0xa0c   :  { %v2319_v25 = vpop.f32.mrb[32].mxu1 }
 0xa0d   :  { %v2396_v20 = vmul.f32 0.0078125, %v2319_v25  ;;  %v20115_v26 = vpop.f32.mrb[33].mxu1  ;;  %v2910_v25 = vld [vmem:[#allocation4 + $0x5b0] sm:$0xff] }
 0xa0e   :  { %v2392_v27 = vpop.f32.mrb[32].mxu0 }
 0xa0f   :  { %v2398_v28 = vmul.f32 %v2396_v20, %v2396_v20  ;;  %v2397_v29 = vmul.f32 0.0078125, %v2392_v27  ;;  %v20134_v30 = vpop.f32.mrb[33].mxu0  ;;  %20138 = vmatmul.mubr.msk.f32.vlgmr.msra.gmra.mrb[34].mxu1 %vm852_vm3, %v2396_v20  ;;  %v2911_v20 = vld [vmem:[#allocation4 + $0x5b8] sm:$0xff] }
 0xa10   :  { %20141 = vmatpush3.msra.mxu1 %v24056_v24  ;;  %20142 = vmatprep.mubr.msk.f32.mxu1 %vm23719_vm2, %v24045_v56 }
 0xa11   :  { %v2399_v31 = vsub.f32 %v2397_v29, %v2398_v28  ;;  %v22451_v29 = vpack.c.bf16 %v2911_v20, %v2910_v25  ;;  %v3480_v25 = vld [vmem:[#allocation4 + $0x5f0] sm:$0xff]  ;;  %v3562_v20 = vld [vmem:[#allocation4 + $0x638] sm:$0xff] }
 0xa13   :  { %v2400_v32 = vadd.f32 1e-05, %v2399_v31  ;;  %v2912_v31 = vld [vmem:[#allocation4 + $0x5c0] sm:$0xff] }
 0xa15   :  { %23613 = vrsqrt.f32 %v2400_v32  ;;  %v2913_v32 = vld [vmem:[#allocation4 + $0x5c8] sm:$0xff] }
 0xa1f   :  { %v23614_v33 = vpop.eup %23613 }
 0xa20   :  { %20143 = vmatmul.mubr.msk.f32.vlgmr.msra.gmra.mrb[36].mxu1 %vm852_vm3, %v23614_v33  ;;  %v22455_v33 = vpack.c.bf16 %v2913_v32, %v2912_v31  ;;  %v3566_v32 = vld [vmem:[#allocation4 + $0x658] sm:$0xff] }
 0xa21   :  { %20156 = vmatprep.mubr.msk.f32.mxu1 %vm2565_vm4, %v2647_v35  ;;  %v2915_v35 = vld [vmem:[#allocation4 + $0x5d8] sm:$0xff] }
 0xae2   :  { %v2472_v38 = vpop.f32.mrb[34].mxu1 }
 0xae3   :  { %v20139_v40 = vpop.f32.mrb[35].mxu1  ;;  %v2552_v41 = vrot.slane %v2472_v38, %v23889_v61  ;;  %v22459_v38 = vpack.c.bf16 %v2915_v35, %v2914_v34  ;;  %v3568_v35 = vld [vmem:[#allocation4 + $0x668] sm:$0xff] }
 0xae5   :  { %v2553_v44 = vsub.f32 %v2214_v3, %v2552_v41  ;;  %v2554_v45 = vsub.f32 %v2219_v0, %v2552_v41  ;;  %v22419_v0 = vpack.c.bf16 %v2741_v46, %v2740_v62  ;;  %v2742_v3 = vld [vmem:[#allocation4 + $0x580] sm:$0xff] }
 0xae6   :  { %v22423_v6 = vpack.c.bf16 %v2743_v4, %v2742_v3 }
 0xaf3   :  { %v2545_v43 = vpop.f32.mrb[36].mxu1 }
 0xaf4   :  { %v2558_v48 = vrot.slane %v2545_v43, %v23889_v61  ;;  %v20144_v49 = vpop.f32.mrb[37].mxu1 }
 0xaf6   :  { %v2559_v15 = vmul.f32 %v2558_v48, %v2553_v44  ;;  %v2560_v51 = vmul.f32 %v2558_v48, %v2554_v45 }
 0xaf8   :  { %v2561_v57 = vmax.f32 %v2559_v15, 0.0  ;;  %v2562_v58 = vmax.f32 %v2560_v51, 0.0 }
 0xafa   :  { %v22407_v59 = vpack.c.bf16 %v2562_v58, %v2561_v57 }
 0xafc   :  { %22408 = vmatprep.subr.bf16.mxu0 %v22407_v59  ;;  %22412 = vmatprep.subr.bf16.mxu1 %v22407_v59 }
 0xafd   :  { %22410 = vmatpush3.bf16.msra.mxu0 %v22407_v59  ;;  %22414 = vmatpush3.bf16.msra.mxu1 %v22407_v59 }
 0xafe   :  { %22416 = vmatprep.subr.bf16.mxu0 %v22415_v60  ;;  %22463 = vmatprep.subr.bf16.mxu1 %v23718_v36 }
 0xb00   :  { %20150 = vmatmul.mubr.msk.f32.vlgmr.msra.gmra.mrb[34].mxu0 %vm2565_vm4, %v2564_v63  ;;  %20157 = vmatmul.mubr.msk.f32.vlgmr.msra.gmra.mrb[38].mxu1 %vm2565_vm4, %v2648_v1 }
 0xb01   :  { %22418 = vmatpush3.bf16.msra.mxu0 %v22415_v60  ;;  %20175 = vmatprep.mubr.msk.f32.mxu0 %vm59_vm0, %v2561_v57 }
 0xb02   :  { %22420 = vmatprep.subr.bf16.mxu0 %v22419_v0  ;;  %22465 = vmatpush3.bf16.msra.mxu1 %v24020_v47 }
 0xb03   :  { %22466 = vmatprep.subr.bf16.mxu1 %v23718_v36  ;;  %20232 = vmatprep.mubr.msk.f32.mxu1 %vm23719_vm2, %v24045_v56 }
 0xb05   :  { %22422 = vmatpush3.bf16.msra.mxu0 %v22419_v0 }
 0xb06   :  { %22424 = vmatprep.subr.bf16.mxu0 %v22423_v6  ;;  %22468 = vmatpush3.bf16.msra.mxu1 %v24026_v50 }
 0xb07   :  { %22469 = vmatprep.subr.bf16.mxu1 %v23718_v36 }
 0xb09   :  { %22426 = vmatpush3.bf16.msra.mxu0 %v22423_v6 }
 0xb0a   :  { %22428 = vmatprep.subr.bf16.mxu0 %v22427_v39  ;;  %22471 = vmatpush3.bf16.msra.mxu1 %v24032_v52 }
 0xb0b   :  { %22472 = vmatprep.subr.bf16.mxu1 %v23718_v36 }
 0xb0d   :  { %22430 = vmatpush3.bf16.msra.mxu0 %v22427_v39 }
 0xb0e   :  { %22432 = vmatprep.subr.bf16.mxu0 %v22431_v5  ;;  %22474 = vmatpush3.bf16.msra.mxu1 %v24038_v55 }
 0xb0f   :  { %22475 = vmatprep.subr.bf16.mxu1 %v23718_v36 }
 0xb10   :  { %20176 = vmatmul.mubr.msk.f32.vlgmr.msra.gmra.mrb[36].mxu0 %vm59_vm0, %v2562_v58 }
 0xb11   :  { %22434 = vmatpush3.bf16.msra.mxu0 %v22431_v5 }
 0xb12   :  { %22436 = vmatprep.subr.bf16.mxu0 %v22435_v17 }
 0xb15   :  { %22438 = vmatpush3.bf16.msra.mxu0 %v22435_v17 }
 0xb16   :  { %22440 = vmatprep.subr.bf16.mxu0 %v22439_v21 }
 0xb19   :  { %22442 = vmatpush3.bf16.msra.mxu0 %v22439_v21 }
 0xb1a   :  { %22444 = vmatprep.subr.bf16.mxu0 %v22443_v10 }
 0xb1d   :  { %22446 = vmatpush3.bf16.msra.mxu0 %v22443_v10 }
 0xb1e   :  { %22448 = vmatprep.subr.bf16.mxu0 %v22447_v23 }
 0xbd3   :  { %v20151_v26 = vpop.f32.mrb[34].mxu0  ;;  %v20158_v27 = vpop.f32.mrb[38].mxu1 }
 0xbd4   :  { %v2638_v28 = vpop.f32.mrb[35].mxu0  ;;  %v2721_v30 = vpop.f32.mrb[39].mxu1 }
 0xbd5   :  { %20194 = vmatprep.mubr.msk.f32.mxu0 %vm59_vm0, %v2638_v28 }
 0xbd6   :  { %20195 = vmatmul.mubr.msk.f32.vlgmr.msra.gmra.mrb[36].mxu0 %vm59_vm0, %v20151_v26  ;;  %v3563_v26 = vld [vmem:[#allocation4 + $0x640] sm:$0xff] }
 0xbd7   :  { %22450 = vmatpush3.bf16.msra.mxu0 %v22447_v23  ;;  %20213 = vmatprep.mubr.msk.f32.mxu0 %vm59_vm0, %v2721_v30  ;;  %v3332_v23 = vld [vmem:[#allocation4 + $0x5e0] sm:$0xff]  ;;  %v22497_v28 = vpack.c.bf16 %v3563_v26, %v3562_v20  ;;  %v3565_v30 = vld [vmem:[#allocation4 + $0x650] sm:$0xff] }
 0xbd8   :  { %22452 = vmatprep.subr.bf16.mxu0 %v22451_v29 }
 0xbdb   :  { %22454 = vmatpush3.bf16.msra.mxu0 %v22451_v29  ;;  %v3564_v29 = vld [vmem:[#allocation4 + $0x648] sm:$0xff] }
 0xbdc   :  { %22456 = vmatprep.subr.bf16.mxu0 %v22455_v33  ;;  %v22500_v31 = vpack.c.bf16 %v3565_v30, %v3564_v29 }
 0xbdf   :  { %22458 = vmatpush3.bf16.msra.mxu0 %v22455_v33  ;;  %v3567_v33 = vld [vmem:[#allocation4 + $0x660] sm:$0xff] }
 0xbe0   :  { %22460 = vmatprep.subr.bf16.mxu0 %v22459_v38  ;;  %v22503_v34 = vpack.c.bf16 %v3567_v33, %v3566_v32  ;;  %v24193_v33 = vld [vmem:[#allocation4 + $0x6d8] sm:$0xff] }
 0xbe3   :  { %22462 = vmatpush3.bf16.msra.mxu0 %v22459_v38  ;;  %v3569_v38 = vld [vmem:[#allocation4 + $0x670] sm:$0xff] }
 0xbe4   :  { %22493 = vmatprep.subr.bf16.mxu0 %v23718_v36 }
 0xbe6   :  { %20214 = vmatmul.mubr.msk.f32.vlgmr.msra.gmra.mrb[36].mxu0 %vm59_vm0, %v20158_v27  ;;  %v3406_v27 = vld [vmem:[#allocation4 + $0x5e8] sm:$0xff] }
 0xbe7   :  { %20282 = vmatprep.mubr.msk.f32.mxu0 %vm23719_vm2, %v24045_v56 }
 0xcb9   :  { %v24091_v40 = vpop.f32.mrb[36].mxu0 }
 0xcba   :  { %v3000_v41 = vsel %vm59_vm0, %v24091_v40, 0.0  ;;  %v3009_v43 = vmul.f32 %v24091_v40, %v24091_v40  ;;  %v2988_v44 = vpop.f32.mrb[37].mxu0 }
 0xcbb   :  { %v2999_v45 = vsel %vm59_vm0, %v2988_v44, 0.0  ;;  %v3008_v48 = vmul.f32 %v2988_v44, %v2988_v44 }
 0xcbc   :  { %v3011_v49 = vsel %vm59_vm0, %v3009_v43, 0.0  ;;  %v3001_v15 = vadd.f32 %v3000_v41, %v2999_v45  ;;  %v3554_v41 = vld [vmem:[#allocation4 + $0x5f8] sm:$0xff]  ;;  %v3555_v43 = vld [vmem:[#allocation4 + $0x600] sm:$0xff] }
 0xcbd   :  { %v3010_v51 = vsel %vm59_vm0, %v3008_v48, 0.0 }
 0xcbe   :  { %v3002_v53 = vrot.slane %v3001_v15, 4  ;;  %v3012_v54 = vadd.f32 %v3011_v49, %v3010_v51  ;;  %v3556_v51 = vld [vmem:[#allocation4 + $0x608] sm:$0xff] }
 0xcc0   :  { %v3003_v57 = vadd.f32 %v3002_v53, %v3001_v15  ;;  %v3013_v60 = vrot.slane %v3012_v54, 4  ;;  %v22509_v15 = vpack.c.bf16 %v3555_v43, %v3554_v41  ;;  %v3557_v53 = vld [vmem:[#allocation4 + $0x610] sm:$0xff] }
 0xcc2   :  { %v3004_v58 = vrot.slane %v3003_v57, 2  ;;  %v3014_v63 = vadd.f32 %v3013_v60, %v3012_v54  ;;  %v3559_v60 = vld [vmem:[#allocation4 + $0x620] sm:$0xff] }
 0xcc4   :  { %v3005_v59 = vadd.f32 %v3004_v58, %v3003_v57  ;;  %v3015_v1 = vrot.slane %v3014_v63, 2  ;;  %v22512_v58 = vpack.c.bf16 %v3557_v53, %v3556_v51 }
 0xcc6   :  { %v3006_v62 = vrot.slane %v3005_v59, 1  ;;  %v3016_v0 = vadd.f32 %v3015_v1, %v3014_v63  ;;  %v3561_v63 = vld [vmem:[#allocation4 + $0x630] sm:$0xff] }
 0xcc8   :  { %v3007_v46 = vadd.f32 %v3006_v62, %v3005_v59  ;;  %v3017_v3 = vrot.slane %v3016_v0, 1  ;;  %v3558_v59 = vld [vmem:[#allocation4 + $0x618] sm:$0xff] }
 0xcc9   :  { %v22515_v62 = vpack.c.bf16 %v3559_v60, %v3558_v59 }
 0xcca   :  { %20233 = vmatmul.mubr.msk.f32.vlgmr.msra.gmra.mrb[40].mxu1 %vm59_vm0, %v3007_v46  ;;  %v3018_v4 = vadd.f32 %v3017_v3, %v3016_v0  ;;  %v3560_v46 = vld [vmem:[#allocation4 + $0x628] sm:$0xff]  ;;  %v3716_v0 = vld [vmem:[#allocation4 + $0x678] sm:$0xff]  ;;  %v3717_v3 = vld [vmem:[#allocation4 + $0x680] sm:$0xff] }
 0xccb   :  { %22477 = vmatpush3.bf16.msra.mxu1 %v24020_v47  ;;  %20251 = vmatprep.mubr.msk.f32.mxu1 %vm23719_vm2, %v24045_v56  ;;  %v22518_v1 = vpack.c.bf16 %v3561_v63, %v3560_v46  ;;  %v4127_v46 = vld [vmem:[#allocation4 + $0x6e0] sm:$0xff]  ;;  %v4279_v63 = vld [vmem:[#allocation4 + $0x710] sm:$0xff] }
 0xccc   :  { %22478 = vmatprep.subr.bf16.mxu1 %v23718_v36 }
 0xccf   :  { %22480 = vmatpush3.bf16.msra.mxu1 %v24026_v50 }
 0xcd0   :  { %22481 = vmatprep.subr.bf16.mxu1 %v23718_v36 }
 0xcd3   :  { %22483 = vmatpush3.bf16.msra.mxu1 %v24032_v52 }
 0xcd4   :  { %22484 = vmatprep.subr.bf16.mxu1 %v23718_v36 }
 0xcd7   :  { %22486 = vmatpush3.bf16.msra.mxu1 %v24038_v55 }
 0xcd8   :  { %20254 = vmatprep.subr.mxu1 %v24045_v56 }
 0xcda   :  { %20252 = vmatmul.mubr.msk.f32.vlgmr.msra.gmra.mrb[42].mxu1 %vm59_vm0, %v3018_v4  ;;  %v22521_v4 = vpack.c.bf16 %v3717_v3, %v3716_v0  ;;  %v4201_v0 = vld [vmem:[#allocation4 + $0x6e8] sm:$0xff] }
 0xcdb   :  { %20255 = vmatpush3.msra.mxu1 %v24056_v24  ;;  %20256 = vmatprep.mubr.msk.f32.mxu1 %vm23719_vm2, %v24045_v56 }
 0xcdc   :  { %20259 = vmatprep.subr.mxu1 %v24045_v56 }
 0xd9d   :  { %v3088_v47 = vpop.f32.mrb[40].mxu1 }
 0xd9e   :  { %v3165_v50 = vmul.f32 0.0078125, %v3088_v47  ;;  %v20234_v52 = vpop.f32.mrb[41].mxu1  ;;  %v3718_v47 = vld [vmem:[#allocation4 + $0x688] sm:$0xff] }
 0xda0   :  { %20257 = vmatmul.mubr.msk.f32.vlgmr.msra.gmra.mrb[44].mxu1 %vm852_vm3, %v3165_v50  ;;  %v3167_v6 = vmul.f32 %v3165_v50, %v3165_v50  ;;  %v3719_v50 = vld [vmem:[#allocation4 + $0x690] sm:$0xff] }
 0xda1   :  { %20260 = vmatpush3.msra.mxu1 %v24056_v24  ;;  %20261 = vmatprep.mubr.msk.f32.mxu1 %vm23719_vm2, %v24045_v56  ;;  %v22524_v52 = vpack.c.bf16 %v3719_v50, %v3718_v47  ;;  %v4282_v47 = vld [vmem:[#allocation4 + $0x728] sm:$0xff] }
 0xda2   :  { %22487 = vmatprep.subr.bf16.mxu1 %v23718_v36 }
 0xdad   :  { %v3161_v55 = vpop.f32.mrb[42].mxu1 }
 0xdae   :  { %v3166_v7 = vmul.f32 0.0078125, %v3161_v55  ;;  %v20253_v37 = vpop.f32.mrb[43].mxu1  ;;  %v3720_v55 = vld [vmem:[#allocation4 + $0x698] sm:$0xff] }
 0xdaf   :  { %v3722_v37 = vld [vmem:[#allocation4 + $0x6a8] sm:$0xff] }
 0xdb0   :  { %v3168_v39 = vsub.f32 %v3166_v7, %v3167_v6  ;;  %v3721_v6 = vld [vmem:[#allocation4 + $0x6a0] sm:$0xff] }
 0xdb1   :  { %v22527_v7 = vpack.c.bf16 %v3721_v6, %v3720_v55  ;;  %v4276_v55 = vld [vmem:[#allocation4 + $0x6f8] sm:$0xff] }
 0xdb2   :  { %v3169_v42 = vadd.f32 1e-05, %v3168_v39  ;;  %v3723_v39 = vld [vmem:[#allocation4 + $0x6b0] sm:$0xff] }
 0xdb4   :  { %23615 = vrsqrt.f32 %v3169_v42  ;;  %v22530_v42 = vpack.c.bf16 %v3723_v39, %v3722_v37  ;;  %v4278_v37 = vld [vmem:[#allocation4 + $0x708] sm:$0xff] }
 0xdbe   :  { %v23616_v2 = vpop.eup %23615 }
 0xdbf   :  { %20262 = vmatmul.mubr.msk.f32.vlgmr.msra.gmra.mrb[46].mxu1 %vm852_vm3, %v23616_v2  ;;  %v3813_v2 = vld [vmem:[#allocation4 + $0x6b8] sm:$0xff] }
 0xdc0   :  { %20268 = vmatprep.mubr.msk.f32.mxu1 %vm23719_vm2, %v24045_v56 }
 0xe73   :  { %v3240_v5 = vpop.f32.mrb[44].mxu1 }
 0xe74   :  { %v3320_v24 = vrot.slane %v3240_v5, %v23889_v61  ;;  %v20258_v11 = vpop.f32.mrb[45].mxu1  ;;  %v3814_v5 = vld [vmem:[#allocation4 + $0x6c0] sm:$0xff] }
 0xe75   :  { %v3815_v11 = vld [vmem:[#allocation4 + $0x6c8] sm:$0xff] }
 0xe76   :  { %v3321_v13 = vsub.f32 %v2988_v44, %v3320_v24  ;;  %v3322_v17 = vsub.f32 %v24091_v40, %v3320_v24  ;;  %v22506_v40 = vpack.c.bf16 %v3569_v38, %v3568_v35  ;;  %v24169_v24 = vpack.c.bf16 %v3814_v5, %v3813_v2  ;;  %v4430_v2 = vld [vmem:[#allocation4 + $0x738] sm:$0xff] }
 0xe92   :  { %v3313_v19 = vpop.f32.mrb[46].mxu1 }
 0xe93   :  { %v3326_v18 = vrot.slane %v3313_v19, %v23889_v61  ;;  %v20263_v21 = vpop.f32.mrb[47].mxu1 }
 0xe95   :  { %v3327_v14 = vmul.f32 %v3326_v18, %v3321_v13  ;;  %v3328_v9 = vmul.f32 %v3326_v18, %v3322_v17  ;;  %v3816_v13 = vld [vmem:[#allocation4 + $0x6d0] sm:$0xff] }
 0xe96   :  { %v24175_v17 = vpack.c.bf16 %v3816_v13, %v3815_v11  ;;  %v4431_v11 = vld [vmem:[#allocation4 + $0x740] sm:$0xff]  ;;  %v4432_v13 = vld [vmem:[#allocation4 + $0x748] sm:$0xff] }
 0xe97   :  { %v3329_v10 = vmax.f32 %v3327_v14, 0.0  ;;  %v3330_v12 = vmax.f32 %v3328_v9, 0.0 }
 0xe99   :  { %3331 = vst.msk [vmem:[%s25438_s2 + $0x10] sm:$0xff] %vm59_vm0, %v3329_v10  ;;  %v24131_v22 = vpack.c.bf16 %v3330_v12, %v3329_v10 }
 0xe9b   :  { %22489 = vmatpush3.bf16.msra.mxu1 %v24131_v22  ;;  %22495 = vmatpush3.bf16.msra.mxu0 %v24131_v22 }
 0xe9c   :  { %22490 = vmatprep.subr.bf16.mxu1 %v23718_v36  ;;  %22532 = vmatprep.subr.bf16.mxu0 %v23718_v36 }
 0xe9e   :  { %20269 = vmatmul.mubr.msk.f32.vlgmr.msra.gmra.mrb[48].mxu1 %vm2565_vm4, %v3332_v23  ;;  %20283 = vmatmul.mubr.msk.f32.vlgmr.msra.gmra.mrb[38].mxu0 %vm2565_vm4, %v3480_v25 }
 0xe9f   :  { %22492 = vmatpush3.bf16.msra.mxu1 %v24131_v22  ;;  %20275 = vmatprep.mubr.msk.f32.mxu1 %vm23719_vm2, %v24045_v56 }
 0xea0   :  { %22496 = vmatprep.subr.bf16.mxu1 %v23718_v36  ;;  %20350 = vmatprep.mubr.msk.f32.mxu0 %vm23719_vm2, %v24045_v56 }
 0xea1   :  { %22534 = vmatpush3.bf16.msra.mxu0 %v24169_v24 }
 0xea2   :  { %20276 = vmatmul.mubr.msk.f32.vlgmr.msra.gmra.mrb[50].mxu1 %vm2565_vm4, %v3406_v27  ;;  %22535 = vmatprep.subr.bf16.mxu0 %v23718_v36 }
 0xea3   :  { %22498 = vmatpush3.bf16.msra.mxu1 %v22497_v28  ;;  %20301 = vmatprep.mubr.msk.f32.mxu1 %vm23719_vm2, %v24045_v56 }
 0xea4   :  { %22499 = vmatprep.subr.bf16.mxu1 %v23718_v36 }
 0xea5   :  { %22537 = vmatpush3.bf16.msra.mxu0 %v24175_v17 }
 0xea6   :  { %22538 = vmatprep.subr.bf16.mxu0 %v23718_v36 }
 0xea7   :  { %22501 = vmatpush3.bf16.msra.mxu1 %v22500_v31 }
 0xea8   :  { %22502 = vmatprep.subr.bf16.mxu1 %v23718_v36 }
 0xeab   :  { %22504 = vmatpush3.bf16.msra.mxu1 %v22503_v34 }
 0xeac   :  { %22505 = vmatprep.subr.bf16.mxu1 %v23718_v36 }
 0xeaf   :  { %22507 = vmatpush3.bf16.msra.mxu1 %v22506_v40 }
 0xeb0   :  { %22508 = vmatprep.subr.bf16.mxu1 %v23718_v36 }
 0xf71   :  { %v3402_v44 = vpop.f32.mrb[48].mxu1  ;;  %v3550_v45 = vpop.f32.mrb[38].mxu0 }
 0xf72   :  { %v20270_v48 = vpop.f32.mrb[49].mxu1  ;;  %v20284_v49 = vpop.f32.mrb[39].mxu0 }
 0xf75   :  { %v3476_v54 = vpop.f32.mrb[50].mxu1 }
 0xf76   :  { %v20277_v57 = vpop.f32.mrb[51].mxu1  ;;  %20302 = vmatmul.mubr.msk.f32.vlgmr.msra.gmra.mrb[52].mxu1 %vm59_vm0, %v3476_v54 }
 0xf77   :  { %22510 = vmatpush3.bf16.msra.mxu1 %v22509_v15  ;;  %20320 = vmatprep.mubr.msk.f32.mxu1 %vm23719_vm2, %v24045_v56 }
 0xf78   :  { %22511 = vmatprep.subr.bf16.mxu1 %v23718_v36 }
 0xf7b   :  { %22513 = vmatpush3.bf16.msra.mxu1 %v22512_v58 }
 0xf7c   :  { %22514 = vmatprep.subr.bf16.mxu1 %v23718_v36 }
 0xf7f   :  { %22516 = vmatpush3.bf16.msra.mxu1 %v22515_v62 }
 0xf80   :  { %22517 = vmatprep.subr.bf16.mxu1 %v23718_v36 }
 0xf83   :  { %22519 = vmatpush3.bf16.msra.mxu1 %v22518_v1  ;;  %v4280_v1 = vld [vmem:[#allocation4 + $0x718] sm:$0xff] }
 0xf84   :  { %22520 = vmatprep.subr.bf16.mxu1 %v23718_v36  ;;  %v22545_v3 = vpack.c.bf16 %v4280_v1, %v4279_v63  ;;  %v5059_v63 = vld [vmem:[#allocation4 + $0x788] sm:$0xff]  ;;  %v5060_v1 = vld [vmem:[#allocation4 + $0x790] sm:$0xff] }
 0xf86   :  { %20321 = vmatmul.mubr.msk.f32.vlgmr.msra.gmra.mrb[52].mxu1 %vm59_vm0, %v3402_v44 }
 0xf87   :  { %22522 = vmatpush3.bf16.msra.mxu1 %v22521_v4  ;;  %20339 = vmatprep.mubr.msk.f32.mxu1 %vm23719_vm2, %v24045_v56  ;;  %v4281_v4 = vld [vmem:[#allocation4 + $0x720] sm:$0xff] }
 0xf88   :  { %22523 = vmatprep.subr.bf16.mxu1 %v23718_v36  ;;  %v22548_v50 = vpack.c.bf16 %v4282_v47, %v4281_v4  ;;  %v4833_v4 = vld [vmem:[#allocation4 + $0x750] sm:$0xf]  ;;  %v22575_v47 = vpack.c.bf16 %v5060_v1, %v5059_v63  ;;  %v5770_v1 = vld [vmem:[#allocation4 + $0x800] sm:$0xff] }
 0xf8b   :  { %22525 = vmatpush3.bf16.msra.mxu1 %v22524_v52  ;;  %v4275_v52 = vld [vmem:[#allocation4 + $0x6f0] sm:$0xff] }
 0xf8c   :  { %22526 = vmatprep.subr.bf16.mxu1 %v23718_v36  ;;  %v22551_v6 = vpack.c.bf16 %v4276_v55, %v4275_v52  ;;  %v5062_v52 = vld [vmem:[#allocation4 + $0x7a0] sm:$0xff] }
 0xf8d   :  { %v4981_v55 = vld [vmem:[#allocation4 + $0x760] sm:$0xf] }
 0xf8f   :  { %22528 = vmatpush3.bf16.msra.mxu1 %v22527_v7  ;;  %v4277_v7 = vld [vmem:[#allocation4 + $0x700] sm:$0xff] }
 0xf90   :  { %22529 = vmatprep.subr.bf16.mxu1 %v23718_v36  ;;  %v22554_v39 = vpack.c.bf16 %v4278_v37, %v4277_v7  ;;  %v5055_v7 = vld [vmem:[#allocation4 + $0x768] sm:$0xff]  ;;  %v5056_v37 = vld [vmem:[#allocation4 + $0x770] sm:$0xff] }
 0xf93   :  { %22531 = vmatpush3.bf16.msra.mxu1 %v22530_v42  ;;  %v4429_v42 = vld [vmem:[#allocation4 + $0x730] sm:$0xff] }
 0xf94   :  { %22562 = vmatprep.subr.bf16.mxu1 %v23718_v36  ;;  %v22557_v5 = vpack.c.bf16 %v4430_v2, %v4429_v42  ;;  %v5057_v42 = vld [vmem:[#allocation4 + $0x778] sm:$0xff]  ;;  %v5058_v2 = vld [vmem:[#allocation4 + $0x780] sm:$0xff] }
 0xf96   :  { %20340 = vmatmul.mubr.msk.f32.vlgmr.msra.gmra.mrb[52].mxu1 %vm59_vm0, %v3550_v45 }
 0xf97   :  { %20425 = vmatprep.mubr.msk.f32.mxu1 %vm23719_vm2, %v24045_v56  ;;  %22564 = vmatpush3.bf16.msra.mxu1 %v24169_v24 }
 0xf98   :  { %22565 = vmatprep.subr.bf16.mxu1 %v23718_v36 }
 0xf9b   :  { %22567 = vmatpush3.bf16.msra.mxu1 %v24175_v17 }
 0xf9c   :  { %22568 = vmatprep.subr.bf16.mxu1 %v23718_v36 }
0x1069   :  { %v3793_v19 = vpop.f32.mrb[52].mxu1 }
0x106a   :  { %v3798_v18 = vsel %vm367_vm1, %v3793_v19, 0.0  ;;  %v3805_v21 = vmul.f32 %v3793_v19, %v3793_v19  ;;  %v20341_v14 = vpop.f32.mrb[53].mxu1 }
0x106b   :  { %v3799_v9 = vrot.slane %v3798_v18, 4 }
0x106c   :  { %v3806_v10 = vsel %vm367_vm1, %v3805_v21, 0.0  ;;  %v22560_v21 = vpack.c.bf16 %v4432_v13, %v4431_v11 }
0x106d   :  { %v3800_v12 = vadd.f32 %v3799_v9, %v3798_v18  ;;  %v3807_v23 = vrot.slane %v3806_v10, 4 }
0x106f   :  { %v3801_v25 = vrot.slane %v3800_v12, 2  ;;  %v3808_v20 = vadd.f32 %v3807_v23, %v3806_v10 }
0x1071   :  { %v3802_v26 = vadd.f32 %v3801_v25, %v3800_v12  ;;  %v3809_v27 = vrot.slane %v3808_v20, 2 }
0x1073   :  { %v3803_v28 = vrot.slane %v3802_v26, 1  ;;  %v3810_v30 = vadd.f32 %v3809_v27, %v3808_v20 }
0x1075   :  { %v3804_v29 = vadd.f32 %v3803_v28, %v3802_v26  ;;  %v3811_v31 = vrot.slane %v3810_v30, 1 }
0x1077   :  { %20351 = vmatmul.mubr.msk.f32.vlgmr.msra.gmra.mrb[40].mxu0 %vm367_vm1, %v3804_v29  ;;  %v3812_v32 = vadd.f32 %v3811_v31, %v3810_v30 }
0x1078   :  { %22540 = vmatpush3.bf16.msra.mxu0 %v24169_v24  ;;  %20361 = vmatprep.mubr.msk.f32.mxu0 %vm23719_vm2, %v24045_v56 }
0x1079   :  { %22541 = vmatprep.subr.bf16.mxu0 %v23718_v36 }
0x107c   :  { %22543 = vmatpush3.bf16.msra.mxu0 %v24175_v17 }
0x107d   :  { %20364 = vmatprep.subr.mxu0 %v24045_v56 }
0x107f   :  { %20362 = vmatmul.mubr.msk.f32.vlgmr.msra.gmra.mrb[42].mxu0 %vm367_vm1, %v3812_v32 }
0x1080   :  { %20366 = vmatprep.mubr.msk.f32.mxu0 %vm23719_vm2, %v24045_v56  ;;  %20365 = vmatpush3.msra.mxu0 %v24193_v33 }
0x1081   :  { %20369 = vmatprep.subr.mxu0 %v24045_v56 }
0x114a   :  { %v3886_v34 = vpop.f32.mrb[40].mxu0 }
0x114b   :  { %v3963_v35 = vmul.f32 0.03125, %v3886_v34  ;;  %v20352_v38 = vpop.f32.mrb[41].mxu0 }
0x114d   :  { %20367 = vmatmul.mubr.msk.f32.vlgmr.msra.gmra.mrb[44].mxu0 %vm852_vm3, %v3963_v35  ;;  %v3965_v41 = vmul.f32 %v3963_v35, %v3963_v35 }
0x114e   :  { %20370 = vmatpush3.msra.mxu0 %v24193_v33  ;;  %20371 = vmatprep.mubr.msk.f32.mxu0 %vm23719_vm2, %v24045_v56 }
0x114f   :  { %20374 = vmatprep.subr.mxu0 %v24045_v56 }
0x1152   :  { %v3959_v40 = vpop.f32.mrb[42].mxu0 }
0x1153   :  { %v3964_v43 = vmul.f32 0.03125, %v3959_v40  ;;  %v20363_v44 = vpop.f32.mrb[43].mxu0 }
0x1155   :  { %v3966_v45 = vsub.f32 %v3964_v43, %v3965_v41 }
0x1157   :  { %v3967_v48 = vadd.f32 1e-05, %v3966_v45 }
0x1159   :  { %23617 = vrsqrt.f32 %v3967_v48 }
0x1163   :  { %v23618_v49 = vpop.eup %23617 }
0x1164   :  { %20372 = vmatmul.mubr.msk.f32.vlgmr.msra.gmra.mrb[46].mxu0 %vm852_vm3, %v23618_v49 }
0x1165   :  { %20376 = vmatprep.mubr.msk.f32.mxu0 %vm23719_vm2, %v24045_v56 }
0x1220   :  { %v4039_v15 = vpop.f32.mrb[44].mxu0 }
0x1221   :  { %v4119_v51 = vrot.slane %v4039_v15, %v23889_v61  ;;  %v20368_v53 = vpop.f32.mrb[45].mxu0 }
0x1223   :  { %v4120_v54 = vsub.f32 %v3793_v19, %v4119_v51 }
0x1237   :  { %v4112_v57 = vpop.f32.mrb[46].mxu0 }
0x1238   :  { %v4124_v58 = vrot.slane %v4112_v57, %v23889_v61  ;;  %v20373_v59 = vpop.f32.mrb[47].mxu0 }
0x123a   :  { %v4125_v60 = vmul.f32 %v4124_v58, %v4120_v54 }
0x123c   :  { %v4126_v62 = vmax.f32 %v4125_v60, 0.0 }
0x123e   :  { %20375 = vmatpush3.msra.mxu0 %v4126_v62 }
0x123f   :  { %20377 = vmatmul.mubr.msk.f32.vlgmr.msra.gmra.mrb[48].mxu0 %vm852_vm3, %v4127_v46  ;;  %20379 = vmatprep.subr.mxu0 %v24045_v56 }
0x1240   :  { %20380 = vmatpush3.msra.mxu0 %v4126_v62  ;;  %20381 = vmatprep.mubr.msk.f32.mxu0 %vm23719_vm2, %v24045_v56 }
0x1241   :  { %22544 = vmatprep.subr.bf16.mxu0 %v23718_v36 }
0x1243   :  { %20382 = vmatmul.mubr.msk.f32.vlgmr.msra.gmra.mrb[50].mxu0 %vm852_vm3, %v4201_v0 }
0x1244   :  { %22546 = vmatpush3.bf16.msra.mxu0 %v22545_v3  ;;  %20392 = vmatprep.mubr.msk.f32.mxu0 %vm23719_vm2, %v24045_v56  ;;  %v4907_v3 = vld [vmem:[#allocation4 + $0x758] sm:$0xf] }
0x1245   :  { %22547 = vmatprep.subr.bf16.mxu0 %v23718_v36 }
0x1248   :  { %22549 = vmatpush3.bf16.msra.mxu0 %v22548_v50  ;;  %v5061_v50 = vld [vmem:[#allocation4 + $0x798] sm:$0xff] }
0x1249   :  { %22550 = vmatprep.subr.bf16.mxu0 %v23718_v36 }
0x124b   :  { %20393 = vmatmul.mubr.msk.f32.vlgmr.msra.gmra.mrb[52].mxu0 %vm367_vm1, %v4126_v62 }
0x124c   :  { %22552 = vmatpush3.bf16.msra.mxu0 %v22551_v6  ;;  %20403 = vmatprep.mubr.msk.f32.mxu0 %vm23719_vm2, %v24045_v56  ;;  %v22578_v6 = vpack.c.bf16 %v5062_v52, %v5061_v50 }
0x124d   :  { %22553 = vmatprep.subr.bf16.mxu0 %v23718_v36 }
0x1250   :  { %22555 = vmatpush3.bf16.msra.mxu0 %v22554_v39  ;;  %v22581_v39 = vpack.c.bf16 %v5056_v37, %v5055_v7 }
0x1251   :  { %22556 = vmatprep.subr.bf16.mxu0 %v23718_v36 }
0x1312   :  { %v4197_v19 = vpop.f32.mrb[48].mxu0 }
0x1313   :  { %v20378_v18 = vpop.f32.mrb[49].mxu0  ;;  %20404 = vmatmul.mubr.msk.f32.vlgmr.msra.gmra.mrb[52].mxu0 %vm367_vm1, %v4197_v19  ;;  %v22584_v19 = vpack.c.bf16 %v5058_v2, %v5057_v42  ;;  %v5768_v42 = vld [vmem:[#allocation4 + $0x7f0] sm:$0xff]  ;;  %v5769_v2 = vld [vmem:[#allocation4 + $0x7f8] sm:$0xff] }
0x1314   :  { %22558 = vmatpush3.bf16.msra.mxu0 %v22557_v5  ;;  %20414 = vmatprep.mubr.msk.f32.mxu0 %vm23719_vm2, %v24045_v56 }
0x1315   :  { %22559 = vmatprep.subr.bf16.mxu0 %v23718_v36 }
0x1316   :  { %v4271_v14 = vpop.f32.mrb[50].mxu0 }
0x1317   :  { %v20383_v9 = vpop.f32.mrb[51].mxu0 }
0x1318   :  { %22561 = vmatpush3.bf16.msra.mxu0 %v22560_v21  ;;  %v5209_v21 = vld [vmem:[#allocation4 + $0x7a8] sm:$0xff] }
0x1319   :  { %20439 = vmatprep.subr.mxu0 %v24045_v56 }
0x131b   :  { %20415 = vmatmul.mubr.msk.f32.vlgmr.msra.gmra.mrb[52].mxu0 %vm367_vm1, %v4271_v14  ;;  %v5210_v14 = vld [vmem:[#allocation4 + $0x7b0] sm:$0xff] }
0x131c   :  { %20440 = vmatpush3.msra.mxu0 %v24193_v33  ;;  %20441 = vmatprep.mubr.msk.f32.mxu0 %vm23719_vm2, %v24045_v56 }
0x131d   :  { %20444 = vmatprep.subr.mxu0 %v24045_v56 }
0x13ee   :  { %v4502_v10 = vpop.f32.mrb[52].mxu0 }
0x13ef   :  { %v4507_v12 = vsel %vm367_vm1, %v4502_v10, 0.0  ;;  %v4514_v23 = vmul.f32 %v4502_v10, %v4502_v10  ;;  %v20416_v25 = vpop.f32.mrb[53].mxu0 }
0x13f0   :  { %v4508_v20 = vrot.slane %v4507_v12, 4  ;;  %v5212_v25 = vld [vmem:[#allocation4 + $0x7c0] sm:$0xff] }
0x13f1   :  { %v4515_v26 = vsel %vm367_vm1, %v4514_v23, 0.0  ;;  %v5211_v23 = vld [vmem:[#allocation4 + $0x7b8] sm:$0xff] }
0x13f2   :  { %v4509_v27 = vadd.f32 %v4508_v20, %v4507_v12  ;;  %v4516_v28 = vrot.slane %v4515_v26, 4  ;;  %v22590_v20 = vpack.c.bf16 %v5212_v25, %v5211_v23 }
0x13f4   :  { %v4510_v29 = vrot.slane %v4509_v27, 2  ;;  %v4517_v30 = vadd.f32 %v4516_v28, %v4515_v26  ;;  %v5303_v26 = vld [vmem:[#allocation4 + $0x7c8] sm:$0xff] }
0x13f6   :  { %v4511_v31 = vadd.f32 %v4510_v29, %v4509_v27  ;;  %v4518_v32 = vrot.slane %v4517_v30, 2  ;;  %v5304_v27 = vld [vmem:[#allocation4 + $0x7d0] sm:$0xff] }
0x13f7   :  { %v24296_v28 = vpack.c.bf16 %v5304_v27, %v5303_v26 }
0x13f8   :  { %v4512_v34 = vrot.slane %v4511_v31, 1  ;;  %v4519_v38 = vadd.f32 %v4518_v32, %v4517_v30 }
0x13fa   :  { %v4513_v35 = vadd.f32 %v4512_v34, %v4511_v31  ;;  %v4520_v40 = vrot.slane %v4519_v38, 1 }
0x13fc   :  { %20426 = vmatmul.mubr.msk.f32.vlgmr.msra.gmra.mrb[54].mxu1 %vm367_vm1, %v4513_v35  ;;  %v4521_v41 = vadd.f32 %v4520_v40, %v4519_v38 }
0x13fd   :  { %22570 = vmatpush3.bf16.msra.mxu1 %v24169_v24  ;;  %20436 = vmatprep.mubr.msk.f32.mxu1 %vm23719_vm2, %v24045_v56 }
0x13fe   :  { %22571 = vmatprep.subr.bf16.mxu1 %v23718_v36 }
0x1401   :  { %22573 = vmatpush3.bf16.msra.mxu1 %v24175_v17 }
0x1402   :  { %20449 = vmatprep.subr.mxu1 %v24045_v56 }
0x1404   :  { %20437 = vmatmul.mubr.msk.f32.vlgmr.msra.gmra.mrb[56].mxu1 %vm367_vm1, %v4521_v41 }
0x1405   :  { %20451 = vmatprep.mubr.msk.f32.mxu1 %vm23719_vm2, %v24045_v56 }
0x14cf   :  { %v4591_v43 = vpop.f32.mrb[54].mxu1 }
0x14d0   :  { %v4668_v44 = vmul.f32 0.03125, %v4591_v43  ;;  %v20427_v45 = vpop.f32.mrb[55].mxu1 }
0x14d2   :  { %20442 = vmatmul.mubr.msk.f32.vlgmr.msra.gmra.mrb[54].mxu0 %vm852_vm3, %v4668_v44  ;;  %v4670_v17 = vmul.f32 %v4668_v44, %v4668_v44 }
0x14d3   :  { %20445 = vmatpush3.msra.mxu0 %v24193_v33  ;;  %20446 = vmatprep.mubr.msk.f32.mxu0 %vm23719_vm2, %v24045_v56 }
0x14d4   :  { %20454 = vmatprep.subr.mxu0 %v24045_v56 }
0x14d7   :  { %v4664_v24 = vpop.f32.mrb[56].mxu1 }
0x14d8   :  { %v4669_v48 = vmul.f32 0.03125, %v4664_v24  ;;  %v20438_v49 = vpop.f32.mrb[57].mxu1 }
0x14da   :  { %v4671_v15 = vsub.f32 %v4669_v48, %v4670_v17 }
0x14dc   :  { %v4672_v51 = vadd.f32 1e-05, %v4671_v15 }
0x14de   :  { %23619 = vrsqrt.f32 %v4672_v51  ;;  %v24310_v51 = vld [vmem:[#allocation4 + $0x7d8] sm:$0xff] }
0x14e8   :  { %v23620_v53 = vpop.eup %23619 }
0x14e9   :  { %20447 = vmatmul.mubr.msk.f32.vlgmr.msra.gmra.mrb[56].mxu0 %vm852_vm3, %v23620_v53 }
0x14ea   :  { %20456 = vmatprep.mubr.msk.f32.mxu0 %vm23719_vm2, %v24045_v56 }
0x15a5   :  { %v4743_v54 = vpop.f32.mrb[54].mxu0 }
0x15a6   :  { %v4823_v33 = vrot.slane %v4743_v54, %v23889_v61  ;;  %v20443_v57 = vpop.f32.mrb[55].mxu0 }
0x15a8   :  { %v4824_v58 = vsub.f32 %v4502_v10, %v4823_v33  ;;  %v22587_v10 = vpack.c.bf16 %v5210_v14, %v5209_v21  ;;  %v5918_v21 = vld [vmem:[#allocation4 + $0x818] sm:$0xff] }
0x15bc   :  { %v4816_v59 = vpop.f32.mrb[56].mxu0 }
0x15bd   :  { %v4828_v60 = vrot.slane %v4816_v59, %v23889_v61  ;;  %v20448_v62 = vpop.f32.mrb[57].mxu0 }
0x15bf   :  { %v4829_v46 = vmul.f32 %v4828_v60, %v4824_v58 }
0x15c1   :  { %v24254_v0 = vmax.f32 %v4829_v46, 0.0 }
0x15c3   :  { %20450 = vmatpush3.msra.mxu1 %v24254_v0  ;;  %20455 = vmatpush3.msra.mxu0 %v24254_v0  ;;  %4832 = vst.msk [vmem:[%s25438_s2 + $0x18] sm:$0xf] %vm4831_vm5, %v24254_v0 }
0x15c4   :  { %20457 = vmatmul.mubr.msk.f32.vlgmr.msra.gmra.mrb[58].mxu0 %vm852_vm3, %v4907_v3  ;;  %20459 = vmatprep.subr.mxu1 %v24045_v56  ;;  %v5771_v3 = vld [vmem:[#allocation4 + $0x808] sm:$0xff] }
0x15c5   :  { %20452 = vmatmul.mubr.msk.f32.vlgmr.msra.gmra.mrb[58].mxu1 %vm852_vm3, %v4833_v4  ;;  %22574 = vmatprep.subr.bf16.mxu0 %v23718_v36  ;;  %v22599_v4 = vpack.c.bf16 %v5771_v3, %v5770_v1 }
0x15c6   :  { %20460 = vmatpush3.msra.mxu1 %v24254_v0  ;;  %20461 = vmatprep.mubr.msk.f32.mxu1 %vm23719_vm2, %v24045_v56 }
0x15c7   :  { %22576 = vmatpush3.bf16.msra.mxu0 %v22575_v47  ;;  %20472 = vmatprep.mubr.msk.f32.mxu0 %vm23719_vm2, %v24045_v56 }
0x15c8   :  { %22577 = vmatprep.subr.bf16.mxu0 %v23718_v36  ;;  %22592 = vmatprep.subr.bf16.mxu1 %v23718_v36 }
0x15c9   :  { %20462 = vmatmul.mubr.msk.f32.vlgmr.msra.gmra.mrb[60].mxu1 %vm852_vm3, %v4981_v55 }
0x15ca   :  { %20501 = vmatprep.mubr.msk.f32.mxu1 %vm23719_vm2, %v24045_v56  ;;  %v24282_v56 = vld [vmem:[%s25438_s2 + $0x20] sm:$0xff]  ;;  %22594 = vmatpush3.bf16.msra.mxu1 %v24296_v28 }
0x15cb   :  { %22579 = vmatpush3.bf16.msra.mxu0 %v22578_v6  ;;  %22595 = vmatprep.subr.bf16.mxu1 %v23718_v36 }
0x15cc   :  { %22580 = vmatprep.subr.bf16.mxu0 %v23718_v36 }
0x1697   :  { %v4977_v5 = vpop.f32.mrb[58].mxu0 }
0x1698   :  { %v20458_v11 = vpop.f32.mrb[59].mxu0  ;;  %20473 = vmatmul.mubr.msk.f32.vlgmr.msra.gmra.mrb[60].mxu0 %vm367_vm1, %v4977_v5  ;;  %v4903_v13 = vpop.f32.mrb[58].mxu1 }
0x1699   :  { %22582 = vmatpush3.bf16.msra.mxu0 %v22581_v39  ;;  %v20453_v18 = vpop.f32.mrb[59].mxu1  ;;  %20483 = vmatprep.mubr.msk.f32.mxu0 %vm23719_vm2, %v24282_v56  ;;  %v5615_v11 = vld [vmem:[#allocation4 + $0x7e0] sm:$0xf] }
0x169a   :  { %22583 = vmatprep.subr.bf16.mxu0 %v23718_v36  ;;  %v5917_v18 = vld [vmem:[#allocation4 + $0x810] sm:$0xff] }
0x169b   :  { %v22605_v14 = vpack.c.bf16 %v5918_v21, %v5917_v18  ;;  %v6645_v18 = vld [vmem:[#allocation4 + $0x850] sm:$0xff] }
0x169c   :  { %v5051_v9 = vpop.f32.mrb[60].mxu1 }
0x169d   :  { %22585 = vmatpush3.bf16.msra.mxu0 %v22584_v19  ;;  %v20463_v12 = vpop.f32.mrb[61].mxu1  ;;  %v5694_v19 = vld [vmem:[#allocation4 + $0x7e8] sm:$0xf] }
0x169e   :  { %22586 = vmatprep.subr.bf16.mxu0 %v23718_v36 }
0x16a0   :  { %20484 = vmatmul.mubr.msk.f32.vlgmr.msra.gmra.mrb[60].mxu0 %vm367_vm1, %v4903_v13  ;;  %v22602_v13 = vpack.c.bf16 %v5769_v2, %v5768_v42  ;;  %v6471_v42 = vld [vmem:[#allocation4 + $0x838] sm:$0xff] }
0x16a1   :  { %22588 = vmatpush3.bf16.msra.mxu0 %v22587_v10  ;;  %20494 = vmatprep.mubr.msk.f32.mxu0 %vm23719_vm2, %v24282_v56 }
0x16a2   :  { %22589 = vmatprep.subr.bf16.mxu0 %v23718_v36 }
0x16a5   :  { %22591 = vmatpush3.bf16.msra.mxu0 %v22590_v20 }
0x16a6   :  { %22598 = vmatprep.subr.bf16.mxu0 %v23718_v36 }
0x16a8   :  { %20495 = vmatmul.mubr.msk.f32.vlgmr.msra.gmra.mrb[60].mxu0 %vm367_vm1, %v5051_v9 }
0x16a9   :  { %20535 = vmatprep.mubr.msk.f32.mxu0 %vm23719_vm2, %v24282_v56  ;;  %22600 = vmatpush3.bf16.msra.mxu0 %v22599_v4 }
0x16aa   :  { %22601 = vmatprep.subr.bf16.mxu0 %v23718_v36 }
0x177b   :  { %v5282_v29 = vpop.f32.mrb[60].mxu0 }
0x177c   :  { %v5288_v30 = vsel %vm5287_vm6, %v5282_v29, 0.0  ;;  %v5295_v31 = vmul.f32 %v5282_v29, %v5282_v29  ;;  %v20496_v32 = vpop.f32.mrb[61].mxu0 }
0x177d   :  { %v5289_v34 = vrot.slane %v5288_v30, 4 }
0x177e   :  { %v5296_v35 = vsel %vm5287_vm6, %v5295_v31, 0.0 }
0x177f   :  { %v5290_v38 = vadd.f32 %v5289_v34, %v5288_v30  ;;  %v5297_v40 = vrot.slane %v5296_v35, 4 }
0x1781   :  { %v5291_v41 = vrot.slane %v5290_v38, 2  ;;  %v5298_v43 = vadd.f32 %v5297_v40, %v5296_v35 }
0x1783   :  { %v5292_v44 = vadd.f32 %v5291_v41, %v5290_v38  ;;  %v5299_v45 = vrot.slane %v5298_v43, 2 }
0x1785   :  { %v5293_v24 = vrot.slane %v5292_v44, 1  ;;  %v5300_v17 = vadd.f32 %v5299_v45, %v5298_v43 }
0x1787   :  { %v5294_v48 = vadd.f32 %v5293_v24, %v5292_v44  ;;  %v5301_v49 = vrot.slane %v5300_v17, 1 }
0x1789   :  { %20502 = vmatmul.mubr.msk.f32.vlgmr.msra.gmra.mrb[62].mxu1 %vm2565_vm4, %v5294_v48  ;;  %v5302_v15 = vadd.f32 %v5301_v49, %v5300_v17 }
0x178a   :  { %22597 = vmatpush3.bf16.msra.mxu1 %v24296_v28  ;;  %20508 = vmatprep.mubr.msk.f32.mxu1 %vm23719_vm2, %v24282_v56 }
0x178b   :  { %20511 = vmatprep.subr.mxu1 %v24282_v56 }
0x178d   :  { %20509 = vmatmul.mubr.msk.f32.vlgmr.msra.gmra.mrb[64].mxu1 %vm2565_vm4, %v5302_v15 }
0x178e   :  { %20513 = vmatprep.mubr.msk.f32.mxu1 %vm23719_vm2, %v24282_v56  ;;  %20512 = vmatpush3.msra.mxu1 %v24310_v51 }
0x178f   :  { %20516 = vmatprep.subr.mxu1 %v24282_v56 }
0x185c   :  { %v5374_v53 = vpop.f32.mrb[62].mxu1 }
0x185d   :  { %v5451_v54 = vmul.f32 0.125, %v5374_v53  ;;  %v20503_v33 = vpop.f32.mrb[63].mxu1 }
0x185f   :  { %20514 = vmatmul.mubr.msk.f32.vlgmr.msra.gmra.mrb[66].mxu1 %vm852_vm3, %v5451_v54  ;;  %v5453_v58 = vmul.f32 %v5451_v54, %v5451_v54 }
0x1860   :  { %v5447_v57 = vpop.f32.mrb[64].mxu1  ;;  %20517 = vmatpush3.msra.mxu1 %v24310_v51  ;;  %20518 = vmatprep.mubr.msk.f32.mxu1 %vm23719_vm2, %v24282_v56 }
0x1861   :  { %v5452_v59 = vmul.f32 0.125, %v5447_v57  ;;  %v20510_v60 = vpop.f32.mrb[65].mxu1  ;;  %20521 = vmatprep.subr.mxu1 %v24282_v56 }
0x1863   :  { %v5454_v62 = vsub.f32 %v5452_v59, %v5453_v58 }
0x1865   :  { %v5455_v46 = vadd.f32 1e-05, %v5454_v62 }
0x1867   :  { %23621 = vrsqrt.f32 %v5455_v46 }
0x1871   :  { %v23622_v63 = vpop.eup %23621 }
0x1872   :  { %20519 = vmatmul.mubr.msk.f32.vlgmr.msra.gmra.mrb[68].mxu1 %vm852_vm3, %v23622_v63 }
0x1873   :  { %20523 = vmatprep.mubr.msk.f32.mxu1 %vm23719_vm2, %v24282_v56 }
0x1932   :  { %v5527_v47 = vpop.f32.mrb[66].mxu1 }
0x1933   :  { %v5607_v50 = vrot.slane %v5527_v47, %v23889_v61  ;;  %v20515_v52 = vpop.f32.mrb[67].mxu1 }
0x1934   :  { %v6473_v52 = vld [vmem:[#allocation4 + $0x848] sm:$0xff] }
0x1935   :  { %v5608_v55 = vsub.f32 %v5282_v29, %v5607_v50  ;;  %v6472_v50 = vld [vmem:[#allocation4 + $0x840] sm:$0xff] }
0x1945   :  { %v5600_v6 = vpop.f32.mrb[68].mxu1 }
0x1946   :  { %v5612_v7 = vrot.slane %v5600_v6, %v23889_v61  ;;  %v20520_v37 = vpop.f32.mrb[69].mxu1  ;;  %v6396_v6 = vld [vmem:[#allocation4 + $0x828] sm:$0x3] }
0x1947   :  { %v22614_v37 = vpack.c.bf16 %v6473_v52, %v6472_v50 }
0x1948   :  { %v5613_v39 = vmul.f32 %v5612_v7, %v5608_v55  ;;  %v6319_v7 = vld [vmem:[#allocation4 + $0x820] sm:$0x3] }
0x194a   :  { %v5614_v5 = vmax.f32 %v5613_v39, 0.0  ;;  %v6470_v39 = vld [vmem:[#allocation4 + $0x830] sm:$0xff] }
0x194b   :  { %v22617_v2 = vpack.c.bf16 %v6471_v42, %v6470_v39 }
0x194c   :  { %20522 = vmatpush3.msk.msra.mxu1 %vm5620_vm7, %v5614_v5  ;;  %20536 = vmatmul.mubr.msk.f32.vlgmr.msra.gmra.mrb[62].mxu0 %vm2565_vm4, %v5614_v5 }
0x194d   :  { %20524 = vmatmul.mubr.msk.f32.vlgmr.msra.gmra.mrb[70].mxu1 %vm5616_vm8, %v5615_v11  ;;  %20526 = vmatprep.subr.mxu1 %v24282_v56 }
0x194e   :  { %20527 = vmatpush3.msk.msra.mxu1 %vm5620_vm7, %v5614_v5  ;;  %20528 = vmatprep.mubr.msk.f32.mxu1 %vm23719_vm2, %v24282_v56 }
0x194f   :  { %22603 = vmatpush3.bf16.msra.mxu0 %v22602_v13  ;;  %20542 = vmatprep.mubr.msk.f32.mxu0 %vm23719_vm2, %v24282_v56 }
0x1950   :  { %22604 = vmatprep.subr.bf16.mxu0 %v23718_v36  ;;  %22607 = vmatprep.subr.bf16.mxu1 %v23718_v36 }
0x1951   :  { %20529 = vmatmul.mubr.msk.f32.vlgmr.msra.gmra.mrb[72].mxu1 %vm5616_vm8, %v5694_v19 }
0x1952   :  { %22609 = vmatpush3.bf16.msra.mxu1 %v24296_v28  ;;  %20556 = vmatprep.mubr.msk.f32.mxu1 %vm23719_vm2, %v24282_v56 }
0x1953   :  { %22610 = vmatprep.subr.bf16.mxu1 %v23718_v36 }
0x1a20   :  { %v5690_v9 = vpop.f32.mrb[70].mxu1 }
0x1a21   :  { %v20525_v10 = vpop.f32.mrb[71].mxu1  ;;  %20543 = vmatmul.mubr.msk.f32.vlgmr.msra.gmra.mrb[62].mxu0 %vm2565_vm4, %v5690_v9 }
0x1a22   :  { %22606 = vmatpush3.bf16.msra.mxu0 %v22605_v14  ;;  %20549 = vmatprep.mubr.msk.f32.mxu0 %vm23719_vm2, %v24282_v56 }
0x1a23   :  { %20571 = vmatprep.subr.mxu0 %v24282_v56 }
0x1a24   :  { %v5764_v12 = vpop.f32.mrb[72].mxu1 }
0x1a25   :  { %v20530_v23 = vpop.f32.mrb[73].mxu1 }
0x1a29   :  { %20550 = vmatmul.mubr.msk.f32.vlgmr.msra.gmra.mrb[62].mxu0 %vm2565_vm4, %v5764_v12 }
0x1a2a   :  { %20572 = vmatpush3.msra.mxu0 %v24310_v51  ;;  %20573 = vmatprep.mubr.msk.f32.mxu0 %vm23719_vm2, %v24282_v56 }
0x1a2b   :  { %20581 = vmatprep.subr.mxu0 %v24282_v56 }
0x1afc   :  { %v5988_v25 = vpop.f32.mrb[62].mxu0 }
0x1afd   :  { %v5993_v20 = vsel %vm5287_vm6, %v5988_v25, 0.0  ;;  %v6000_v26 = vmul.f32 %v5988_v25, %v5988_v25  ;;  %v20551_v27 = vpop.f32.mrb[63].mxu0 }
0x1afe   :  { %v5994_v29 = vrot.slane %v5993_v20, 4 }
0x1aff   :  { %v6001_v30 = vsel %vm5287_vm6, %v6000_v26, 0.0 }
0x1b00   :  { %v5995_v31 = vadd.f32 %v5994_v29, %v5993_v20  ;;  %v6002_v32 = vrot.slane %v6001_v30, 4 }
0x1b02   :  { %v5996_v34 = vrot.slane %v5995_v31, 2  ;;  %v6003_v35 = vadd.f32 %v6002_v32, %v6001_v30 }
0x1b04   :  { %v5997_v38 = vadd.f32 %v5996_v34, %v5995_v31  ;;  %v6004_v40 = vrot.slane %v6003_v35, 2 }
0x1b06   :  { %v5998_v41 = vrot.slane %v5997_v38, 1  ;;  %v6005_v43 = vadd.f32 %v6004_v40, %v6003_v35 }
0x1b08   :  { %v5999_v44 = vadd.f32 %v5998_v41, %v5997_v38  ;;  %v6006_v45 = vrot.slane %v6005_v43, 1 }
0x1b0a   :  { %20557 = vmatmul.mubr.msk.f32.vlgmr.msra.gmra.mrb[74].mxu1 %vm2565_vm4, %v5999_v44  ;;  %v6007_v24 = vadd.f32 %v6006_v45, %v6005_v43 }
0x1b0b   :  { %22612 = vmatpush3.bf16.msra.mxu1 %v24296_v28  ;;  %20563 = vmatprep.mubr.msk.f32.mxu1 %vm23719_vm2, %v24282_v56 }
0x1b0c   :  { %20566 = vmatprep.subr.mxu1 %v24282_v56 }
0x1b0e   :  { %20564 = vmatmul.mubr.msk.f32.vlgmr.msra.gmra.mrb[76].mxu1 %vm2565_vm4, %v6007_v24 }
0x1b0f   :  { %20567 = vmatpush3.msra.mxu1 %v24310_v51  ;;  %20568 = vmatprep.mubr.msk.f32.mxu1 %vm23719_vm2, %v24282_v56 }
0x1b10   :  { %20576 = vmatprep.subr.mxu1 %v24282_v56 }
0x1bdd   :  { %v6077_v17 = vpop.f32.mrb[74].mxu1 }
0x1bde   :  { %v6154_v48 = vmul.f32 0.125, %v6077_v17  ;;  %v20558_v49 = vpop.f32.mrb[75].mxu1 }
0x1be0   :  { %20569 = vmatmul.mubr.msk.f32.vlgmr.msra.gmra.mrb[78].mxu1 %vm852_vm3, %v6154_v48  ;;  %v6156_v53 = vmul.f32 %v6154_v48, %v6154_v48 }
0x1be1   :  { %v6150_v15 = vpop.f32.mrb[76].mxu1  ;;  %20578 = vmatprep.mubr.msk.f32.mxu1 %vm23719_vm2, %v24282_v56 }
0x1be2   :  { %v6155_v54 = vmul.f32 0.125, %v6150_v15  ;;  %v20565_v33 = vpop.f32.mrb[77].mxu1 }
0x1be4   :  { %v6157_v57 = vsub.f32 %v6155_v54, %v6156_v53 }
0x1be6   :  { %v6158_v58 = vadd.f32 1e-05, %v6157_v57 }
0x1be8   :  { %23623 = vrsqrt.f32 %v6158_v58 }
0x1bf2   :  { %v23624_v59 = vpop.eup %23623 }
0x1bf3   :  { %20574 = vmatmul.mubr.msk.f32.vlgmr.msra.gmra.mrb[64].mxu0 %vm852_vm3, %v23624_v59 }
0x1bf4   :  { %20583 = vmatprep.mubr.msk.f32.mxu0 %vm23719_vm2, %v24282_v56 }
0x1cb3   :  { %v6229_v60 = vpop.f32.mrb[78].mxu1 }
0x1cb4   :  { %v6309_v62 = vrot.slane %v6229_v60, %v23889_v61  ;;  %v20570_v46 = vpop.f32.mrb[79].mxu1 }
0x1cb6   :  { %v6310_v63 = vsub.f32 %v5988_v25, %v6309_v62 }
0x1cc6   :  { %v6302_v1 = vpop.f32.mrb[64].mxu0 }
0x1cc7   :  { %v6314_v3 = vrot.slane %v6302_v1, %v23889_v61  ;;  %v20575_v4 = vpop.f32.mrb[65].mxu0 }
0x1cc9   :  { %v6315_v47 = vmul.f32 %v6314_v3, %v6310_v63 }
0x1ccb   :  { %v24370_v55 = vmax.f32 %v6315_v47, 0.0 }
0x1ccd   :  { %20577 = vmatpush3.msk.msra.mxu1 %vm5620_vm7, %v24370_v55  ;;  %20582 = vmatpush3.msk.msra.mxu0 %vm5620_vm7, %v24370_v55  ;;  %6318 = vst.msk [vmem:[%s25438_s2 + $0x20] sm:$0x3] %vm6317_vm9, %v24370_v55 }
0x1cce   :  { %20584 = vmatmul.mubr.msk.f32.vlgmr.msra.gmra.mrb[66].mxu0 %vm5616_vm8, %v6396_v6  ;;  %20579 = vmatmul.mubr.msk.f32.vlgmr.msra.gmra.mrb[80].mxu1 %vm5616_vm8, %v6319_v7 }
0x1ccf   :  { %22613 = vmatprep.subr.bf16.mxu1 %v23718_v36  ;;  %20590 = vmatprep.mubr.msk.f32.mxu1 %vm23719_vm2, %v24282_v56 }
0x1cd0   :  { %22615 = vmatpush3.bf16.msra.mxu1 %v22614_v37  ;;  %20600 = vmatprep.subr.mxu0 %v24282_v56 }
0x1cd1   :  { %22616 = vmatprep.subr.bf16.mxu1 %v23718_v36  ;;  %20602 = vmatprep.mubr.msk.f32.mxu0 %vm23719_vm2, %v24282_v56 }
0x1cd2   :  { %20601 = vmatpush3.msra.mxu0 %v6645_v18  ;;  %v6745_v18 = vld [vmem:[#allocation4 + $0x858] sm:$0x3] }
0x1cd3   :  { %20605 = vmatprep.subr.mxu0 %v24282_v56 }
0x1da1   :  { %v6466_v5 = vpop.f32.mrb[66].mxu0  ;;  %v6392_v11 = vpop.f32.mrb[80].mxu1 }
0x1da2   :  { %v20585_v13 = vpop.f32.mrb[67].mxu0  ;;  %20591 = vmatmul.mubr.msk.f32.vlgmr.msra.gmra.mrb[82].mxu1 %vm2565_vm4, %v6466_v5  ;;  %v20580_v19 = vpop.f32.mrb[81].mxu1 }
0x1da3   :  { %22618 = vmatpush3.bf16.msra.mxu1 %v22617_v2  ;;  %20597 = vmatprep.mubr.msk.f32.mxu1 %vm23719_vm2, %v24282_v56  ;;  %v6824_v19 = vld [vmem:[#allocation4 + $0x860] sm:$0x3] }
0x1da4   :  { %20610 = vmatprep.subr.mxu1 %v24282_v56 }
0x1daa   :  { %20598 = vmatmul.mubr.msk.f32.vlgmr.msra.gmra.mrb[82].mxu1 %vm2565_vm4, %v6392_v11 }
0x1dab   :  { %20612 = vmatprep.mubr.msk.f32.mxu1 %vm23719_vm2, %v24282_v56 }
0x1e7d   :  { %v6616_v21 = vpop.f32.mrb[82].mxu1 }
0x1e7e   :  { %v6621_v14 = vsel %vm6620_vm10, %v6616_v21, 0.0  ;;  %v6628_v9 = vmul.f32 %v6616_v21, %v6616_v21  ;;  %v20599_v10 = vpop.f32.mrb[83].mxu1 }
0x1e7f   :  { %v6622_v12 = vrot.slane %v6621_v14, 4 }
0x1e80   :  { %v6629_v23 = vsel %vm6620_vm10, %v6628_v9, 0.0  ;;  %v6972_v9 = vld [vmem:[#allocation4 + $0x870] sm:$0xff] }
0x1e81   :  { %v6623_v25 = vadd.f32 %v6622_v12, %v6621_v14  ;;  %v6630_v20 = vrot.slane %v6629_v23, 4  ;;  %v6973_v14 = vld [vmem:[#allocation4 + $0x878] sm:$0xff] }
0x1e83   :  { %v6624_v26 = vrot.slane %v6623_v25, 2  ;;  %v6631_v27 = vadd.f32 %v6630_v20, %v6629_v23 }
0x1e85   :  { %v6625_v29 = vadd.f32 %v6624_v26, %v6623_v25  ;;  %v6632_v30 = vrot.slane %v6631_v27, 2 }
0x1e87   :  { %v6626_v31 = vrot.slane %v6625_v29, 1  ;;  %v6633_v32 = vadd.f32 %v6632_v30, %v6631_v27  ;;  %v7120_v27 = vld [vmem:[#allocation4 + $0x880] sm:$0xff] }
0x1e89   :  { %v6627_v34 = vadd.f32 %v6626_v31, %v6625_v29  ;;  %v6634_v35 = vrot.slane %v6633_v32, 1 }
0x1e8b   :  { %v6635_v38 = vadd.f32 %v6634_v35, %v6633_v32  ;;  %v6636_v40 = vmul.f32 0.5, %v6627_v34 }
0x1e8d   :  { %v6637_v41 = vmul.f32 0.5, %v6635_v38  ;;  %v6638_v43 = vmul.f32 %v6636_v40, %v6636_v40  ;;  %v6642_v24 = vsub.f32 %v6616_v21, %v6636_v40  ;;  %v6898_v21 = vld [vmem:[#allocation4 + $0x868] sm:$0x3] }
0x1e8f   :  { %v6639_v44 = vsub.f32 %v6637_v41, %v6638_v43 }
0x1e91   :  { %v6640_v45 = vadd.f32 1e-05, %v6639_v44 }
0x1e93   :  { %23625 = vrsqrt.f32 %v6640_v45 }
0x1e9d   :  { %v23626_v17 = vpop.eup %23625 }
0x1e9e   :  { %v6643_v48 = vmul.f32 %v23626_v17, %v6642_v24 }
0x1ea0   :  { %v6644_v49 = vmax.f32 %v6643_v48, 0.0 }
0x1ea2   :  { %20603 = vmatmul.mubr.msk.f32.vlgmr.msra.gmra.mrb[68].mxu0 %vm852_vm3, %v6644_v49 }
0x1ea3   :  { %20607 = vmatprep.mubr.msk.f32.mxu0 %vm23719_vm2, %v24282_v56 }
0x1f75   :  { %v6715_v15 = vpop.f32.mrb[68].mxu0 }
0x1f76   :  { %v6719_v53 = vsel %vm6620_vm10, %v6715_v15, 0.0  ;;  %v6726_v54 = vmul.f32 %v6715_v15, %v6715_v15  ;;  %v20604_v33 = vpop.f32.mrb[69].mxu0 }
0x1f77   :  { %v6720_v57 = vrot.slane %v6719_v53, 4 }
0x1f78   :  { %v6727_v58 = vsel %vm6620_vm10, %v6726_v54, 0.0 }
0x1f79   :  { %v6721_v59 = vadd.f32 %v6720_v57, %v6719_v53  ;;  %v6728_v60 = vrot.slane %v6727_v58, 4 }
0x1f7b   :  { %v6722_v62 = vrot.slane %v6721_v59, 2  ;;  %v6729_v46 = vadd.f32 %v6728_v60, %v6727_v58  ;;  %v7522_v58 = vld [vmem:[#allocation4 + $0x888] sm:$0x3] }
0x1f7d   :  { %v6723_v63 = vadd.f32 %v6722_v62, %v6721_v59  ;;  %v6730_v1 = vrot.slane %v6729_v46, 2 }
0x1f7f   :  { %v6724_v3 = vrot.slane %v6723_v63, 1  ;;  %v6731_v4 = vadd.f32 %v6730_v1, %v6729_v46 }
0x1f81   :  { %v6725_v47 = vadd.f32 %v6724_v3, %v6723_v63  ;;  %v6732_v50 = vrot.slane %v6731_v4, 1  ;;  %v7596_v3 = vld [vmem:[#allocation4 + $0x890] sm:$0x3] }
0x1f83   :  { %v6733_v52 = vadd.f32 %v6732_v50, %v6731_v4  ;;  %v6734_v6 = vmul.f32 0.5, %v6725_v47  ;;  %v7670_v4 = vld [vmem:[#allocation4 + $0x898] sm:$0x3] }
0x1f85   :  { %v6735_v7 = vmul.f32 0.5, %v6733_v52  ;;  %v6736_v37 = vmul.f32 %v6734_v6, %v6734_v6  ;;  %v6740_v2 = vsub.f32 %v6715_v15, %v6734_v6 }
0x1f87   :  { %v6737_v39 = vsub.f32 %v6735_v7, %v6736_v37 }
0x1f89   :  { %v6738_v42 = vadd.f32 1e-05, %v6737_v39 }
0x1f8b   :  { %23627 = vrsqrt.f32 %v6738_v42 }
0x1f95   :  { %v23628_v5 = vpop.eup %23627 }
0x1f96   :  { %v6741_v11 = vmul.f32 %v23628_v5, %v6740_v2  ;;  %v7897_v5 = vld [vmem:[#allocation4 + $0x8c0] sm:$0xff] }
0x1f98   :  { %v6742_v13 = vmax.f32 %v6741_v11, 0.0  ;;  %v7898_v11 = vld [vmem:[#allocation4 + $0x8c8] sm:$0xff] }
0x1f9a   :  { %6744 = vst.msk [vmem:[%s25438_s2 + $0x28] sm:$0x1] %vm6743_vm11, %v6742_v13  ;;  %20606 = vmatpush3.msk.msra.mxu0 %vm6750_vm12, %v6742_v13  ;;  %20611 = vmatpush3.msk.msra.mxu1 %vm6750_vm12, %v6742_v13 }
0x1f9b   :  { %20613 = vmatmul.mubr.msk.f32.vlgmr.msra.gmra.mrb[84].mxu1 %vm6746_vm13, %v6824_v19  ;;  %20615 = vmatprep.subr.mxu0 %v24282_v56  ;;  %v24477_v19 = vld [vmem:[#allocation4 + $0x8a0] sm:$0x3] }
0x1f9c   :  { %20608 = vmatmul.mubr.msk.f32.vlgmr.msra.gmra.mrb[70].mxu0 %vm6746_vm13, %v6745_v18  ;;  %20620 = vmatprep.subr.mxu1 %v24282_v56  ;;  %v24479_v18 = vld [vmem:[#allocation4 + $0x8a8] sm:$0x3] }
0x1f9d   :  { %20616 = vmatpush3.msk.msra.mxu0 %vm6750_vm12, %v6742_v13  ;;  %20617 = vmatprep.mubr.msk.f32.mxu0 %vm23719_vm2, %v24282_v56 }
0x1f9e   :  { %20622 = vmatprep.mubr.msk.f32.mxu1 %vm23719_vm2, %v24282_v56  ;;  %22619 = vmatprep.subr.bf16.mxu0 %v23718_v36 }
0x1f9f   :  { %20621 = vmatpush3.msra.mxu1 %v6973_v14  ;;  %v7895_v14 = vld [vmem:[#allocation4 + $0x8b0] sm:$0xff] }
0x1fa0   :  { %20618 = vmatmul.mubr.msk.f32.vlgmr.msra.gmra.mrb[72].mxu0 %vm6746_vm13, %v6898_v21  ;;  %20625 = vmatprep.subr.mxu1 %v24282_v56  ;;  %v22626_v21 = vpack.c.bf16 %v7898_v11, %v7897_v5  ;;  %v8817_v11 = vld [vmem:[#allocation4 + $0x920] sm:$0xff] }
0x1fa1   :  { %22621 = vmatpush3.bf16.msra.mxu0 %v24296_v28  ;;  %20639 = vmatprep.mubr.msk.f32.mxu0 %vm23719_vm2, %v24282_v56 }
0x1fa2   :  { %22622 = vmatprep.subr.bf16.mxu0 %v23718_v36 }
0x206e   :  { %v6894_v10 = vpop.f32.mrb[84].mxu1 }
0x206f   :  { %v20614_v12 = vpop.f32.mrb[85].mxu1  ;;  %20623 = vmatmul.mubr.msk.f32.vlgmr.msra.gmra.mrb[86].mxu1 %vm852_vm3, %v6894_v10  ;;  %v6820_v23 = vpop.f32.mrb[70].mxu0 }
0x2070   :  { %20626 = vmatpush3.msra.mxu1 %v6972_v9  ;;  %v20609_v25 = vpop.f32.mrb[71].mxu0  ;;  %20627 = vmatprep.mubr.msk.f32.mxu1 %vm23719_vm2, %v24282_v56  ;;  %v7896_v9 = vld [vmem:[#allocation4 + $0x8b8] sm:$0xff] }
0x2071   :  { %20630 = vmatprep.subr.mxu1 %v24282_v56  ;;  %v22629_v10 = vpack.c.bf16 %v7896_v9, %v7895_v14 }
0x2073   :  { %v6968_v20 = vpop.f32.mrb[72].mxu0 }
0x2074   :  { %v20619_v26 = vpop.f32.mrb[73].mxu0 }
0x2075   :  { %v8045_v26 = vld [vmem:[#allocation4 + $0x8d0] sm:$0xff] }
0x2077   :  { %20628 = vmatmul.mubr.msk.f32.vlgmr.msra.gmra.mrb[86].mxu1 %vm852_vm3, %v6820_v23 }
0x2078   :  { %20631 = vmatpush3.msra.mxu1 %v7120_v27  ;;  %20632 = vmatprep.mubr.msk.f32.mxu1 %vm23719_vm2, %v24282_v56  ;;  %v8046_v27 = vld [vmem:[#allocation4 + $0x8d8] sm:$0xff] }
0x2079   :  { %20654 = vmatprep.subr.mxu1 %v24282_v56 }
0x207f   :  { %20633 = vmatmul.mubr.msk.f32.vlgmr.msra.gmra.mrb[86].mxu1 %vm852_vm3, %v6968_v20 }
0x2080   :  { %20655 = vmatpush3.msra.mxu1 %v24310_v51  ;;  %20656 = vmatprep.mubr.msk.f32.mxu1 %vm23719_vm2, %v24282_v56 }
0x2081   :  { %20664 = vmatprep.subr.mxu1 %v24282_v56 }
0x2152   :  { %v7190_v29 = vpop.f32.mrb[86].mxu1 }
0x2153   :  { %v7195_v30 = vsel %vm6317_vm9, %v7190_v29, 0.0  ;;  %v7202_v31 = vmul.f32 %v7190_v29, %v7190_v29  ;;  %v20634_v32 = vpop.f32.mrb[87].mxu1 }
0x2154   :  { %v7196_v34 = vrot.slane %v7195_v30, 4 }
0x2155   :  { %v7203_v35 = vsel %vm6317_vm9, %v7202_v31, 0.0  ;;  %v8122_v31 = vld [vmem:[#allocation4 + $0x8e8] sm:$0xff] }
0x2156   :  { %v7197_v38 = vadd.f32 %v7196_v34, %v7195_v30  ;;  %v7204_v40 = vrot.slane %v7203_v35, 4  ;;  %v8121_v30 = vld [vmem:[#allocation4 + $0x8e0] sm:$0xff]  ;;  %v8197_v34 = vld [vmem:[#allocation4 + $0x8f0] sm:$0xff] }
0x2157   :  { %v22635_v32 = vpack.c.bf16 %v8122_v31, %v8121_v30 }
0x2158   :  { %v7198_v41 = vrot.slane %v7197_v38, 2  ;;  %v7205_v43 = vadd.f32 %v7204_v40, %v7203_v35  ;;  %v8198_v35 = vld [vmem:[#allocation4 + $0x8f8] sm:$0xff] }
0x215a   :  { %v7199_v44 = vadd.f32 %v7198_v41, %v7197_v38  ;;  %v7206_v45 = vrot.slane %v7205_v43, 2  ;;  %v22638_v38 = vpack.c.bf16 %v8198_v35, %v8197_v34 }
0x215c   :  { %v7200_v24 = vrot.slane %v7199_v44, 1  ;;  %v7207_v17 = vadd.f32 %v7206_v45, %v7205_v43  ;;  %v8272_v45 = vld [vmem:[#allocation4 + $0x900] sm:$0xff] }
0x215e   :  { %v7201_v48 = vadd.f32 %v7200_v24, %v7199_v44  ;;  %v7208_v49 = vrot.slane %v7207_v17, 1  ;;  %v8273_v24 = vld [vmem:[#allocation4 + $0x908] sm:$0xff] }
0x2160   :  { %20640 = vmatmul.mubr.msk.f32.vlgmr.msra.gmra.mrb[74].mxu0 %vm2565_vm4, %v7201_v48  ;;  %v7209_v15 = vadd.f32 %v7208_v49, %v7207_v17  ;;  %v22641_v17 = vpack.c.bf16 %v8273_v24, %v8272_v45 }
0x2161   :  { %22624 = vmatpush3.bf16.msra.mxu0 %v24296_v28  ;;  %20646 = vmatprep.mubr.msk.f32.mxu0 %vm23719_vm2, %v24282_v56 }
0x2162   :  { %20649 = vmatprep.subr.mxu0 %v24282_v56 }
0x2164   :  { %20647 = vmatmul.mubr.msk.f32.vlgmr.msra.gmra.mrb[76].mxu0 %vm2565_vm4, %v7209_v15 }
0x2165   :  { %20650 = vmatpush3.msra.mxu0 %v24310_v51  ;;  %20651 = vmatprep.mubr.msk.f32.mxu0 %vm23719_vm2, %v24282_v56 }
0x2166   :  { %20659 = vmatprep.subr.mxu0 %v24282_v56 }
0x2233   :  { %v7281_v53 = vpop.f32.mrb[74].mxu0 }
0x2234   :  { %v7358_v54 = vmul.f32 0.25, %v7281_v53  ;;  %v20641_v33 = vpop.f32.mrb[75].mxu0 }
0x2236   :  { %20652 = vmatmul.mubr.msk.f32.vlgmr.msra.gmra.mrb[78].mxu0 %vm852_vm3, %v7358_v54  ;;  %v7360_v59 = vmul.f32 %v7358_v54, %v7358_v54 }
0x2237   :  { %20660 = vmatpush3.msk.msra.mxu0 %vm5620_vm7, %v24370_v55  ;;  %v7354_v57 = vpop.f32.mrb[76].mxu0  ;;  %20661 = vmatprep.mubr.msk.f32.mxu0 %vm23719_vm2, %v24282_v56 }
0x2238   :  { %v7359_v60 = vmul.f32 0.25, %v7354_v57  ;;  %v20648_v62 = vpop.f32.mrb[77].mxu0  ;;  %20669 = vmatprep.subr.mxu0 %v24282_v56 }
0x223a   :  { %v7361_v46 = vsub.f32 %v7359_v60, %v7360_v59  ;;  %20662 = vmatmul.mubr.msk.f32.vlgmr.msra.gmra.mrb[80].mxu0 %vm5616_vm8, %v7522_v58 }
0x223b   :  { %20670 = vmatpush3.msk.msra.mxu0 %vm5620_vm7, %v24370_v55  ;;  %20671 = vmatprep.mubr.msk.f32.mxu0 %vm23719_vm2, %v24282_v56 }
0x223c   :  { %v7362_v63 = vadd.f32 1e-05, %v7361_v46  ;;  %20679 = vmatprep.subr.mxu0 %v24282_v56 }
0x223e   :  { %23629 = vrsqrt.f32 %v7362_v63  ;;  %20672 = vmatmul.mubr.msk.f32.vlgmr.msra.gmra.mrb[82].mxu0 %vm5616_vm8, %v7670_v4 }
0x223f   :  { %20681 = vmatprep.mubr.msk.f32.mxu0 %vm23719_vm2, %v24282_v56 }
0x2248   :  { %v23630_v1 = vpop.eup %23629 }
0x2249   :  { %20657 = vmatmul.mubr.msk.f32.vlgmr.msra.gmra.mrb[88].mxu1 %vm852_vm3, %v23630_v1 }
0x224a   :  { %20665 = vmatpush3.msk.msra.mxu1 %vm5620_vm7, %v24370_v55  ;;  %20666 = vmatprep.mubr.msk.f32.mxu1 %vm23719_vm2, %v24282_v56 }
0x224b   :  { %20674 = vmatprep.subr.mxu1 %v24282_v56 }
0x224d   :  { %20667 = vmatmul.mubr.msk.f32.vlgmr.msra.gmra.mrb[90].mxu1 %vm5616_vm8, %v7596_v3 }
0x224e   :  { %20676 = vmatprep.mubr.msk.f32.mxu1 %vm23719_vm2, %v24282_v56 }
0x2309   :  { %v7434_v47 = vpop.f32.mrb[78].mxu0 }
0x230a   :  { %v7514_v55 = vrot.slane %v7434_v47, %v23889_v61  ;;  %v20653_v50 = vpop.f32.mrb[79].mxu0 }
0x230c   :  { %v7515_v52 = vsub.f32 %v7190_v29, %v7514_v55  ;;  %v22632_v29 = vpack.c.bf16 %v8046_v27, %v8045_v26  ;;  %v8815_v27 = vld [vmem:[#allocation4 + $0x910] sm:$0xff] }
0x230d   :  { %v7592_v6 = vpop.f32.mrb[80].mxu0 }
0x230e   :  { %v20663_v7 = vpop.f32.mrb[81].mxu0 }
0x2311   :  { %v7740_v25 = vpop.f32.mrb[82].mxu0 }
0x2312   :  { %v20673_v20 = vpop.f32.mrb[83].mxu0 }
0x231c   :  { %v7507_v37 = vpop.f32.mrb[88].mxu1 }
0x231d   :  { %v7519_v39 = vrot.slane %v7507_v37, %v23889_v61  ;;  %v20658_v42 = vpop.f32.mrb[89].mxu1 }
0x231f   :  { %v7520_v2 = vmul.f32 %v7519_v39, %v7515_v52 }
0x2320   :  { %v7666_v12 = vpop.f32.mrb[90].mxu1 }
0x2321   :  { %v7521_v13 = vmax.f32 %v7520_v2, 0.0  ;;  %v20668_v23 = vpop.f32.mrb[91].mxu1 }
0x2323   :  { %20675 = vmatpush3.msk.msra.mxu1 %vm6750_vm12, %v7521_v13  ;;  %20680 = vmatpush3.msk.msra.mxu0 %vm6750_vm12, %v7521_v13 }
0x2324   :  { %20677 = vmatmul.mubr.msk.f32.vlgmr.msra.gmra.mrb[92].mxu1 %vm6746_vm13, %v24477_v19  ;;  %20682 = vmatmul.mubr.msk.f32.vlgmr.msra.gmra.mrb[84].mxu0 %vm6746_vm13, %v24479_v18 }
0x2325   :  { %22625 = vmatprep.subr.bf16.mxu1 %v23718_v36  ;;  %20688 = vmatprep.mubr.msk.f32.mxu1 %vm23719_vm2, %v24282_v56 }
0x2326   :  { %22627 = vmatpush3.bf16.msra.mxu1 %v22626_v21  ;;  %22643 = vmatprep.subr.bf16.mxu0 %v23718_v36 }
0x2327   :  { %22628 = vmatprep.subr.bf16.mxu1 %v23718_v36  ;;  %22645 = vmatpush3.bf16.msra.mxu0 %v24296_v28 }
0x2328   :  { %20730 = vmatprep.mubr.msk.f32.mxu0 %vm23719_vm2, %v24282_v56  ;;  %22646 = vmatprep.subr.bf16.mxu0 %v23718_v36 }
0x2329   :  { %20689 = vmatmul.mubr.msk.f32.vlgmr.msra.gmra.mrb[94].mxu1 %vm2565_vm4, %v7666_v12 }
0x232a   :  { %22630 = vmatpush3.bf16.msra.mxu1 %v22629_v10  ;;  %20695 = vmatprep.mubr.msk.f32.mxu1 %vm23719_vm2, %v24282_v56 }
0x232b   :  { %22631 = vmatprep.subr.bf16.mxu1 %v23718_v36 }
0x2331   :  { %20696 = vmatmul.mubr.msk.f32.vlgmr.msra.gmra.mrb[94].mxu1 %vm2565_vm4, %v7592_v6 }
0x2332   :  { %22633 = vmatpush3.bf16.msra.mxu1 %v22632_v29  ;;  %20702 = vmatprep.mubr.msk.f32.mxu1 %vm23719_vm2, %v24282_v56  ;;  %v8816_v29 = vld [vmem:[#allocation4 + $0x918] sm:$0xff] }
0x2333   :  { %22634 = vmatprep.subr.bf16.mxu1 %v23718_v36  ;;  %v22653_v31 = vpack.c.bf16 %v8816_v29, %v8815_v27 }
0x2339   :  { %20703 = vmatmul.mubr.msk.f32.vlgmr.msra.gmra.mrb[94].mxu1 %vm2565_vm4, %v7740_v25 }
0x233a   :  { %22636 = vmatpush3.bf16.msra.mxu1 %v22635_v32  ;;  %20709 = vmatprep.mubr.msk.f32.mxu1 %vm23719_vm2, %v24282_v56  ;;  %v8965_v32 = vld [vmem:[#allocation4 + $0x938] sm:$0xff] }
0x233b   :  { %22637 = vmatprep.subr.bf16.mxu1 %v23718_v36 }
0x23f7   :  { %v7817_v40 = vpop.f32.mrb[92].mxu1  ;;  %v7891_v41 = vpop.f32.mrb[84].mxu0 }
0x23f8   :  { %v20678_v43 = vpop.f32.mrb[93].mxu1  ;;  %20710 = vmatmul.mubr.msk.f32.vlgmr.msra.gmra.mrb[94].mxu1 %vm2565_vm4, %v7817_v40  ;;  %v20683_v44 = vpop.f32.mrb[85].mxu0 }
0x23f9   :  { %22639 = vmatpush3.bf16.msra.mxu1 %v22638_v38  ;;  %20716 = vmatprep.mubr.msk.f32.mxu1 %vm23719_vm2, %v24282_v56 }
0x23fa   :  { %22640 = vmatprep.subr.bf16.mxu1 %v23718_v36 }
0x2400   :  { %20717 = vmatmul.mubr.msk.f32.vlgmr.msra.gmra.mrb[94].mxu1 %vm2565_vm4, %v7521_v13  ;;  %v8818_v13 = vld [vmem:[#allocation4 + $0x928] sm:$0xff] }
0x2401   :  { %22642 = vmatpush3.bf16.msra.mxu1 %v22641_v17  ;;  %20723 = vmatprep.mubr.msk.f32.mxu1 %vm23719_vm2, %v24282_v56  ;;  %v22650_v21 = vpack.c.bf16 %v8818_v13, %v8817_v11  ;;  %v9591_v11 = vld [vmem:[#allocation4 + $0x968] sm:$0xff]  ;;  %v9592_v13 = vld [vmem:[#allocation4 + $0x970] sm:$0xff] }
0x2402   :  { %22649 = vmatprep.subr.bf16.mxu1 %v23718_v36 }
0x2408   :  { %20724 = vmatmul.mubr.msk.f32.vlgmr.msra.gmra.mrb[94].mxu1 %vm2565_vm4, %v7891_v41  ;;  %v24569_v41 = vld [vmem:[%s25438_s2 + $0x30] sm:$0xff] }
0x2409   :  { %20764 = vmatprep.mubr.msk.f32.mxu1 %vm23719_vm2, %v24282_v56  ;;  %22651 = vmatpush3.bf16.msra.mxu1 %v22650_v21 }
0x240a   :  { %22652 = vmatprep.subr.bf16.mxu1 %v23718_v36 }
0x24db   :  { %v8343_v48 = vpop.f32.mrb[94].mxu1 }
0x24dc   :  { %v8348_v49 = vsel %vm6317_vm9, %v8343_v48, 0.0  ;;  %v8355_v15 = vmul.f32 %v8343_v48, %v8343_v48  ;;  %v20725_v53 = vpop.f32.mrb[95].mxu1 }
0x24dd   :  { %v8349_v54 = vrot.slane %v8348_v49, 4 }
0x24de   :  { %v8356_v33 = vsel %vm6317_vm9, %v8355_v15, 0.0 }
0x24df   :  { %v8350_v57 = vadd.f32 %v8349_v54, %v8348_v49  ;;  %v8357_v58 = vrot.slane %v8356_v33, 4 }
0x24e1   :  { %v8351_v59 = vrot.slane %v8350_v57, 2  ;;  %v8358_v60 = vadd.f32 %v8357_v58, %v8356_v33 }
0x24e3   :  { %v8352_v62 = vadd.f32 %v8351_v59, %v8350_v57  ;;  %v8359_v46 = vrot.slane %v8358_v60, 2 }
0x24e5   :  { %v8353_v63 = vrot.slane %v8352_v62, 1  ;;  %v8360_v1 = vadd.f32 %v8359_v46, %v8358_v60 }
0x24e7   :  { %v8354_v3 = vadd.f32 %v8353_v63, %v8352_v62  ;;  %v8361_v4 = vrot.slane %v8360_v1, 1 }
0x24e9   :  { %20731 = vmatmul.mubr.msk.f32.vlgmr.msra.gmra.mrb[86].mxu0 %vm2565_vm4, %v8354_v3  ;;  %v8362_v47 = vadd.f32 %v8361_v4, %v8360_v1 }
0x24ea   :  { %22648 = vmatpush3.bf16.msra.mxu0 %v24296_v28  ;;  %20737 = vmatprep.mubr.msk.f32.mxu0 %vm23719_vm2, %v24282_v56 }
0x24eb   :  { %20740 = vmatprep.subr.mxu0 %v24282_v56 }
0x24ed   :  { %20738 = vmatmul.mubr.msk.f32.vlgmr.msra.gmra.mrb[88].mxu0 %vm2565_vm4, %v8362_v47 }
0x24ee   :  { %20741 = vmatpush3.msra.mxu0 %v24310_v51  ;;  %20742 = vmatprep.mubr.msk.f32.mxu0 %vm23719_vm2, %v24282_v56 }
0x24ef   :  { %20745 = vmatprep.subr.mxu0 %v24282_v56 }
0x25bc   :  { %v8432_v55 = vpop.f32.mrb[86].mxu0 }
0x25bd   :  { %v8509_v50 = vmul.f32 0.25, %v8432_v55  ;;  %v20732_v52 = vpop.f32.mrb[87].mxu0 }
0x25bf   :  { %20743 = vmatmul.mubr.msk.f32.vlgmr.msra.gmra.mrb[90].mxu0 %vm852_vm3, %v8509_v50  ;;  %v8511_v7 = vmul.f32 %v8509_v50, %v8509_v50 }
0x25c0   :  { %v8505_v6 = vpop.f32.mrb[88].mxu0  ;;  %20746 = vmatpush3.msra.mxu0 %v24310_v51  ;;  %20747 = vmatprep.mubr.msk.f32.mxu0 %vm23719_vm2, %v24282_v56 }
0x25c1   :  { %v8510_v37 = vmul.f32 0.25, %v8505_v6  ;;  %v20739_v39 = vpop.f32.mrb[89].mxu0  ;;  %20750 = vmatprep.subr.mxu0 %v24282_v56 }
0x25c3   :  { %v8512_v42 = vsub.f32 %v8510_v37, %v8511_v7 }
0x25c5   :  { %v8513_v2 = vadd.f32 1e-05, %v8512_v42 }
0x25c7   :  { %23631 = vrsqrt.f32 %v8513_v2 }
0x25d1   :  { %v23632_v5 = vpop.eup %23631 }
0x25d2   :  { %20748 = vmatmul.mubr.msk.f32.vlgmr.msra.gmra.mrb[92].mxu0 %vm852_vm3, %v23632_v5 }
0x25d3   :  { %20752 = vmatprep.mubr.msk.f32.mxu0 %vm23719_vm2, %v24282_v56 }
0x2692   :  { %v8584_v14 = vpop.f32.mrb[90].mxu0 }
0x2693   :  { %v8664_v9 = vrot.slane %v8584_v14, %v23889_v61  ;;  %v20744_v10 = vpop.f32.mrb[91].mxu0  ;;  %v9441_v14 = vld [vmem:[#allocation4 + $0x948] sm:$0xf] }
0x2694   :  { %v22665_v10 = vpack.c.bf16 %v9592_v13, %v9591_v11 }
0x2695   :  { %v8665_v12 = vsub.f32 %v8343_v48, %v8664_v9  ;;  %v9364_v9 = vld [vmem:[#allocation4 + $0x940] sm:$0xf] }
0x26a5   :  { %v8657_v23 = vpop.f32.mrb[92].mxu0 }
0x26a6   :  { %v8669_v25 = vrot.slane %v8657_v23, %v23889_v61  ;;  %v20749_v20 = vpop.f32.mrb[93].mxu0  ;;  %v9589_v23 = vld [vmem:[#allocation4 + $0x958] sm:$0xff] }
0x26a8   :  { %v8670_v26 = vmul.f32 %v8669_v25, %v8665_v12  ;;  %v9515_v12 = vld [vmem:[#allocation4 + $0x950] sm:$0xf]  ;;  %v9590_v25 = vld [vmem:[#allocation4 + $0x960] sm:$0xff] }
0x26a9   :  { %v22668_v20 = vpack.c.bf16 %v9590_v25, %v9589_v23  ;;  %v10521_v25 = vld [vmem:[#allocation4 + $0x9d0] sm:$0xff] }
0x26aa   :  { %v8671_v30 = vmax.f32 %v8670_v26, 0.0 }
0x26ac   :  { %20751 = vmatpush3.msk.msra.mxu0 %vm6750_vm12, %v8671_v30  ;;  %20765 = vmatmul.mubr.msk.f32.vlgmr.msra.gmra.mrb[96].mxu1 %vm2565_vm4, %v8671_v30 }
0x26ad   :  { %20753 = vmatmul.mubr.msk.f32.vlgmr.msra.gmra.mrb[94].mxu0 %vm6746_vm13, %v24477_v19  ;;  %20755 = vmatprep.subr.mxu0 %v24282_v56  ;;  %v8964_v19 = vld [vmem:[#allocation4 + $0x930] sm:$0xff] }
0x26ae   :  { %20756 = vmatpush3.msk.msra.mxu0 %vm6750_vm12, %v8671_v30  ;;  %20757 = vmatprep.mubr.msk.f32.mxu0 %vm23719_vm2, %v24282_v56  ;;  %v22656_v34 = vpack.c.bf16 %v8965_v32, %v8964_v19  ;;  %v9740_v19 = vld [vmem:[#allocation4 + $0x980] sm:$0xff] }
0x26af   :  { %22654 = vmatpush3.bf16.msra.mxu1 %v22653_v31  ;;  %20771 = vmatprep.mubr.msk.f32.mxu1 %vm23719_vm2, %v24282_v56  ;;  %v9739_v31 = vld [vmem:[#allocation4 + $0x978] sm:$0xff] }
0x26b0   :  { %22655 = vmatprep.subr.bf16.mxu1 %v23718_v36  ;;  %22658 = vmatprep.subr.bf16.mxu0 %v23718_v36 }
0x26b1   :  { %20758 = vmatmul.mubr.msk.f32.vlgmr.msra.gmra.mrb[96].mxu0 %vm6746_vm13, %v24479_v18 }
0x26b2   :  { %22660 = vmatpush3.bf16.msra.mxu0 %v24296_v28  ;;  %20785 = vmatprep.mubr.msk.f32.mxu0 %vm23719_vm2, %v24282_v56 }
0x26b3   :  { %22661 = vmatprep.subr.bf16.mxu0 %v23718_v36 }
0x2780   :  { %v8741_v35 = vpop.f32.mrb[94].mxu0 }
0x2781   :  { %v20754_v38 = vpop.f32.mrb[95].mxu0  ;;  %20772 = vmatmul.mubr.msk.f32.vlgmr.msra.gmra.mrb[96].mxu1 %vm2565_vm4, %v8741_v35 }
0x2782   :  { %22657 = vmatpush3.bf16.msra.mxu1 %v22656_v34  ;;  %20778 = vmatprep.mubr.msk.f32.mxu1 %vm23719_vm2, %v24282_v56  ;;  %v22671_v34 = vpack.c.bf16 %v9740_v19, %v9739_v31  ;;  %v9830_v38 = vld [vmem:[#allocation4 + $0x6b8] sm:$0xff]  ;;  %v10523_v31 = vld [vmem:[#allocation4 + $0x9e0] sm:$0xff]  ;;  %v10524_v19 = vld [vmem:[#allocation4 + $0x9e8] sm:$0xff] }
0x2783   :  { %20800 = vmatprep.subr.mxu1 %v24282_v56 }
0x2784   :  { %v8811_v18 = vpop.f32.mrb[96].mxu0 }
0x2785   :  { %v20759_v40 = vpop.f32.mrb[97].mxu0 }
0x2789   :  { %20779 = vmatmul.mubr.msk.f32.vlgmr.msra.gmra.mrb[96].mxu1 %vm2565_vm4, %v8811_v18  ;;  %v9831_v18 = vld [vmem:[#allocation4 + $0x6c0] sm:$0xff] }
0x278a   :  { %20801 = vmatpush3.msra.mxu1 %v24310_v51  ;;  %20802 = vmatprep.mubr.msk.f32.mxu1 %vm23719_vm2, %v24569_v41  ;;  %v24621_v40 = vpack.c.bf16 %v9831_v18, %v9830_v38  ;;  %v10519_v18 = vld [vmem:[#allocation4 + $0x9c0] sm:$0xff] }
0x278b   :  { %20810 = vmatprep.subr.mxu1 %v24569_v41 }
0x285c   :  { %v9035_v43 = vpop.f32.mrb[96].mxu1 }
0x285d   :  { %v9040_v44 = vsel %vm6317_vm9, %v9035_v43, 0.0  ;;  %v9047_v56 = vmul.f32 %v9035_v43, %v9035_v43  ;;  %v20780_v45 = vpop.f32.mrb[97].mxu1 }
0x285e   :  { %v9041_v24 = vrot.slane %v9040_v44, 4 }
0x285f   :  { %v9048_v17 = vsel %vm6317_vm9, %v9047_v56, 0.0 }
0x2860   :  { %v9042_v48 = vadd.f32 %v9041_v24, %v9040_v44  ;;  %v9049_v49 = vrot.slane %v9048_v17, 4  ;;  %v9833_v44 = vld [vmem:[#allocation4 + $0x6d0] sm:$0xff] }
0x2862   :  { %v9043_v15 = vrot.slane %v9042_v48, 2  ;;  %v9050_v53 = vadd.f32 %v9049_v49, %v9048_v17 }
0x2864   :  { %v9044_v54 = vadd.f32 %v9043_v15, %v9042_v48  ;;  %v9051_v33 = vrot.slane %v9050_v53, 2 }
0x2866   :  { %v9045_v57 = vrot.slane %v9044_v54, 1  ;;  %v9052_v58 = vadd.f32 %v9051_v33, %v9050_v53 }
0x2868   :  { %v9046_v59 = vadd.f32 %v9045_v57, %v9044_v54  ;;  %v9053_v60 = vrot.slane %v9052_v58, 1 }
0x286a   :  { %20786 = vmatmul.mubr.msk.f32.vlgmr.msra.gmra.mrb[98].mxu0 %vm2565_vm4, %v9046_v59  ;;  %v9054_v62 = vadd.f32 %v9053_v60, %v9052_v58 }
0x286b   :  { %22663 = vmatpush3.bf16.msra.mxu0 %v24296_v28  ;;  %20792 = vmatprep.mubr.msk.f32.mxu0 %vm23719_vm2, %v24569_v41 }
0x286c   :  { %20795 = vmatprep.subr.mxu0 %v24569_v41 }
0x286e   :  { %20793 = vmatmul.mubr.msk.f32.vlgmr.msra.gmra.mrb[100].mxu0 %vm2565_vm4, %v9054_v62 }
0x286f   :  { %20796 = vmatpush3.msra.mxu0 %v24310_v51  ;;  %20797 = vmatprep.mubr.msk.f32.mxu0 %vm23719_vm2, %v24569_v41 }
0x2870   :  { %20805 = vmatprep.subr.mxu0 %v24569_v41 }
0x293d   :  { %v9124_v46 = vpop.f32.mrb[98].mxu0 }
0x293e   :  { %v9201_v63 = vmul.f32 0.25, %v9124_v46  ;;  %v20787_v1 = vpop.f32.mrb[99].mxu0 }
0x2940   :  { %20798 = vmatmul.mubr.msk.f32.vlgmr.msra.gmra.mrb[102].mxu0 %vm852_vm3, %v9201_v63  ;;  %v9203_v3 = vmul.f32 %v9201_v63, %v9201_v63 }
0x2941   :  { %v9197_v28 = vpop.f32.mrb[100].mxu0  ;;  %20807 = vmatprep.mubr.msk.f32.mxu0 %vm23719_vm2, %v24569_v41 }
0x2942   :  { %v9202_v4 = vmul.f32 0.25, %v9197_v28  ;;  %v20794_v47 = vpop.f32.mrb[101].mxu0  ;;  %v10144_v28 = vld [vmem:[#allocation4 + $0x988] sm:$0xf] }
0x2944   :  { %v9204_v55 = vsub.f32 %v9202_v4, %v9203_v3  ;;  %v24653_v3 = vld [vmem:[#allocation4 + $0x6d8] sm:$0xff] }
0x2946   :  { %v9205_v50 = vadd.f32 1e-05, %v9204_v55 }
0x2948   :  { %23633 = vrsqrt.f32 %v9205_v50 }
0x2952   :  { %v23634_v51 = vpop.eup %23633 }
0x2953   :  { %20803 = vmatmul.mubr.msk.f32.vlgmr.msra.gmra.mrb[98].mxu1 %vm852_vm3, %v23634_v51 }
0x2954   :  { %20812 = vmatprep.mubr.msk.f32.mxu1 %vm23719_vm2, %v24569_v41 }
0x2a13   :  { %v9276_v52 = vpop.f32.mrb[102].mxu0 }
0x2a14   :  { %v9356_v6 = vrot.slane %v9276_v52, %v23889_v61  ;;  %v20799_v7 = vpop.f32.mrb[103].mxu0 }
0x2a16   :  { %v9357_v37 = vsub.f32 %v9035_v43, %v9356_v6  ;;  %v9832_v43 = vld [vmem:[#allocation4 + $0x6c8] sm:$0xff] }
0x2a17   :  { %v24625_v56 = vpack.c.bf16 %v9833_v44, %v9832_v43  ;;  %v10520_v43 = vld [vmem:[#allocation4 + $0x9c8] sm:$0xff] }
0x2a26   :  { %v9349_v39 = vpop.f32.mrb[98].mxu1 }
0x2a27   :  { %v9361_v42 = vrot.slane %v9349_v39, %v23889_v61  ;;  %v20804_v2 = vpop.f32.mrb[99].mxu1 }
0x2a28   :  { %v10292_v2 = vld [vmem:[#allocation4 + $0x998] sm:$0xf] }
0x2a29   :  { %v9362_v5 = vmul.f32 %v9361_v42, %v9357_v37  ;;  %v10218_v42 = vld [vmem:[#allocation4 + $0x990] sm:$0xf] }
0x2a2b   :  { %v9363_v21 = vmax.f32 %v9362_v5, 0.0 }
0x2a2d   :  { %20806 = vmatpush3.msk.msra.mxu0 %vm6750_vm12, %v9363_v21  ;;  %20811 = vmatpush3.msk.msra.mxu1 %vm6750_vm12, %v9363_v21 }
0x2a2e   :  { %20813 = vmatmul.mubr.msk.f32.vlgmr.msra.gmra.mrb[100].mxu1 %vm6746_vm13, %v9441_v14  ;;  %20815 = vmatprep.subr.mxu0 %v24569_v41 }
0x2a2f   :  { %20808 = vmatmul.mubr.msk.f32.vlgmr.msra.gmra.mrb[104].mxu0 %vm6746_vm13, %v9364_v9  ;;  %22664 = vmatprep.subr.bf16.mxu1 %v23718_v36 }
0x2a30   :  { %20816 = vmatpush3.msk.msra.mxu0 %vm6750_vm12, %v9363_v21  ;;  %20817 = vmatprep.mubr.msk.f32.mxu0 %vm23719_vm2, %v24569_v41 }
0x2a31   :  { %22666 = vmatpush3.bf16.msra.mxu1 %v22665_v10  ;;  %20824 = vmatprep.mubr.msk.f32.mxu1 %vm23719_vm2, %v24569_v41 }
0x2a32   :  { %22667 = vmatprep.subr.bf16.mxu1 %v23718_v36  ;;  %22673 = vmatprep.subr.bf16.mxu0 %v23718_v36 }
0x2a33   :  { %20818 = vmatmul.mubr.msk.f32.vlgmr.msra.gmra.mrb[106].mxu0 %vm6746_vm13, %v9515_v12 }
0x2a34   :  { %20849 = vmatprep.mubr.msk.f32.mxu0 %vm23719_vm2, %v24569_v41  ;;  %22675 = vmatpush3.bf16.msra.mxu0 %v24621_v40 }
0x2a35   :  { %22676 = vmatprep.subr.bf16.mxu0 %v23718_v36 }
0x2a38   :  { %22678 = vmatpush3.bf16.msra.mxu0 %v24625_v56 }
0x2a39   :  { %22679 = vmatprep.subr.bf16.mxu0 %v23718_v36 }
0x2b01   :  { %v9511_v26 = vpop.f32.mrb[100].mxu1 }
0x2b02   :  { %v20814_v27 = vpop.f32.mrb[101].mxu1  ;;  %20825 = vmatmul.mubr.msk.f32.vlgmr.msra.gmra.mrb[102].mxu1 %vm2565_vm4, %v9511_v26  ;;  %v9437_v29 = vpop.f32.mrb[104].mxu0 }
0x2b03   :  { %22669 = vmatpush3.bf16.msra.mxu1 %v22668_v20  ;;  %v20809_v30 = vpop.f32.mrb[105].mxu0  ;;  %20831 = vmatprep.mubr.msk.f32.mxu1 %vm23719_vm2, %v24569_v41  ;;  %v10522_v20 = vld [vmem:[#allocation4 + $0x9d8] sm:$0xff]  ;;  %v24678_v27 = vld [vmem:[#allocation4 + $0x9a0] sm:$0xf] }
0x2b04   :  { %22670 = vmatprep.subr.bf16.mxu1 %v23718_v36  ;;  %v22686_v30 = vpack.c.bf16 %v10522_v20, %v10521_v25 }
0x2b06   :  { %v9585_v32 = vpop.f32.mrb[106].mxu0 }
0x2b07   :  { %v20819_v35 = vpop.f32.mrb[107].mxu0 }
0x2b08   :  { %v10518_v35 = vld [vmem:[#allocation4 + $0x9b8] sm:$0xff] }
0x2b0a   :  { %20832 = vmatmul.mubr.msk.f32.vlgmr.msra.gmra.mrb[102].mxu1 %vm2565_vm4, %v9437_v29  ;;  %v24680_v29 = vld [vmem:[#allocation4 + $0x9a8] sm:$0xf] }
0x2b0b   :  { %22672 = vmatpush3.bf16.msra.mxu1 %v22671_v34  ;;  %20838 = vmatprep.mubr.msk.f32.mxu1 %vm23719_vm2, %v24569_v41  ;;  %v10517_v34 = vld [vmem:[#allocation4 + $0x9b0] sm:$0xff] }
0x2b0c   :  { %20863 = vmatprep.subr.mxu1 %v24569_v41  ;;  %v22692_v38 = vpack.c.bf16 %v10518_v35, %v10517_v34 }
0x2b12   :  { %20839 = vmatmul.mubr.msk.f32.vlgmr.msra.gmra.mrb[102].mxu1 %vm2565_vm4, %v9585_v32  ;;  %v22689_v32 = vpack.c.bf16 %v10524_v19, %v10523_v31 }
0x2b13   :  { %20865 = vmatprep.mubr.msk.f32.mxu1 %vm23719_vm2, %v24569_v41  ;;  %20864 = vmatpush3.msra.mxu1 %v24653_v3 }
0x2b14   :  { %20868 = vmatprep.subr.mxu1 %v24569_v41 }
0x2be5   :  { %v24629_v45 = vpop.f32.mrb[102].mxu1 }
0x2be6   :  { %v9815_v24 = vsel %vm4831_vm5, %v24629_v45, 0.0  ;;  %v9822_v17 = vmul.f32 %v24629_v45, %v24629_v45  ;;  %v20840_v48 = vpop.f32.mrb[103].mxu1 }
0x2be7   :  { %v9816_v49 = vrot.slane %v9815_v24, 4  ;;  %v22695_v48 = vpack.c.bf16 %v10520_v43, %v10519_v18 }
0x2be8   :  { %v9823_v15 = vsel %vm4831_vm5, %v9822_v17, 0.0 }
0x2be9   :  { %v9817_v53 = vadd.f32 %v9816_v49, %v9815_v24  ;;  %v9824_v54 = vrot.slane %v9823_v15, 4  ;;  %v10671_v49 = vld [vmem:[#allocation4 + $0x9f0] sm:$0xff] }
0x2beb   :  { %v9818_v33 = vrot.slane %v9817_v53, 2  ;;  %v9825_v57 = vadd.f32 %v9824_v54, %v9823_v15  ;;  %v10672_v15 = vld [vmem:[#allocation4 + $0x9f8] sm:$0xff]  ;;  %v10673_v54 = vld [vmem:[#allocation4 + $0xa00] sm:$0xff] }
0x2bed   :  { %v9819_v58 = vadd.f32 %v9818_v33, %v9817_v53  ;;  %v9826_v59 = vrot.slane %v9825_v57, 2  ;;  %v22698_v53 = vpack.c.bf16 %v10672_v15, %v10671_v49  ;;  %v10674_v33 = vld [vmem:[#allocation4 + $0xa08] sm:$0xff] }
0x2bef   :  { %v9820_v60 = vrot.slane %v9819_v58, 1  ;;  %v9827_v46 = vadd.f32 %v9826_v59, %v9825_v57  ;;  %v22701_v57 = vpack.c.bf16 %v10674_v33, %v10673_v54  ;;  %v10750_v59 = vld [vmem:[#allocation4 + $0xa18] sm:$0xff] }
0x2bf1   :  { %v9821_v62 = vadd.f32 %v9820_v60, %v9819_v58  ;;  %v9828_v63 = vrot.slane %v9827_v46, 1  ;;  %v10749_v58 = vld [vmem:[#allocation4 + $0xa10] sm:$0xff] }
0x2bf2   :  { %v22704_v60 = vpack.c.bf16 %v10750_v59, %v10749_v58 }
0x2bf3   :  { %20850 = vmatmul.mubr.msk.f32.vlgmr.msra.gmra.mrb[108].mxu0 %vm367_vm1, %v9821_v62  ;;  %v9829_v1 = vadd.f32 %v9828_v63, %v9827_v46  ;;  %v10751_v62 = vld [vmem:[#allocation4 + $0xa20] sm:$0xff]  ;;  %v10752_v46 = vld [vmem:[#allocation4 + $0xa28] sm:$0xff] }
0x2bf4   :  { %22681 = vmatpush3.bf16.msra.mxu0 %v24621_v40  ;;  %20860 = vmatprep.mubr.msk.f32.mxu0 %vm23719_vm2, %v24569_v41  ;;  %v22707_v63 = vpack.c.bf16 %v10752_v46, %v10751_v62 }
0x2bf5   :  { %22682 = vmatprep.subr.bf16.mxu0 %v23718_v36 }
0x2bf8   :  { %22684 = vmatpush3.bf16.msra.mxu0 %v24625_v56 }
0x2bf9   :  { %20873 = vmatprep.subr.mxu0 %v24569_v41 }
0x2bfb   :  { %20861 = vmatmul.mubr.msk.f32.vlgmr.msra.gmra.mrb[110].mxu0 %vm367_vm1, %v9829_v1  ;;  %v10827_v1 = vld [vmem:[#allocation4 + $0xa30] sm:$0xff] }
0x2bfc   :  { %20874 = vmatpush3.msra.mxu0 %v24254_v0  ;;  %20875 = vmatprep.mubr.msk.f32.mxu0 %vm23719_vm2, %v24569_v41 }
0x2bfd   :  { %20883 = vmatprep.subr.mxu0 %v24569_v41 }
0x2bff   :  { %20876 = vmatmul.mubr.msk.f32.vlgmr.msra.gmra.mrb[112].mxu0 %vm852_vm3, %v10144_v28  ;;  %v10828_v28 = vld [vmem:[#allocation4 + $0xa38] sm:$0xff] }
0x2c00   :  { %20884 = vmatpush3.msra.mxu0 %v24254_v0  ;;  %20885 = vmatprep.mubr.msk.f32.mxu0 %vm23719_vm2, %v24569_v41 }
0x2c01   :  { %20893 = vmatprep.subr.mxu0 %v24569_v41 }
0x2c03   :  { %20886 = vmatmul.mubr.msk.f32.vlgmr.msra.gmra.mrb[114].mxu0 %vm852_vm3, %v10292_v2  ;;  %v10906_v2 = vld [vmem:[#allocation4 + $0xa60] sm:$0xff] }
0x2c04   :  { %20895 = vmatprep.mubr.msk.f32.mxu0 %vm23719_vm2, %v24569_v41 }
0x2cc6   :  { %v9903_v4 = vpop.f32.mrb[108].mxu0 }
0x2cc7   :  { %v9980_v47 = vmul.f32 0.0625, %v9903_v4  ;;  %v20851_v55 = vpop.f32.mrb[109].mxu0  ;;  %v22710_v4 = vpack.c.bf16 %v10828_v28, %v10827_v1  ;;  %v11454_v1 = vld [vmem:[#allocation4 + $0xa98] sm:$0xff] }
0x2cc8   :  { %v10830_v55 = vld [vmem:[#allocation4 + $0xa48] sm:$0xff] }
0x2cc9   :  { %20866 = vmatmul.mubr.msk.f32.vlgmr.msra.gmra.mrb[104].mxu1 %vm852_vm3, %v9980_v47  ;;  %v9982_v51 = vmul.f32 %v9980_v47, %v9980_v47  ;;  %v10829_v47 = vld [vmem:[#allocation4 + $0xa40] sm:$0xff] }
0x2cca   :  { %20869 = vmatpush3.msra.mxu1 %v24653_v3  ;;  %20870 = vmatprep.mubr.msk.f32.mxu1 %vm23719_vm2, %v24569_v41 }
0x2ccb   :  { %20878 = vmatprep.subr.mxu1 %v24569_v41 }
0x2cce   :  { %v9976_v50 = vpop.f32.mrb[110].mxu0 }
0x2ccf   :  { %v9981_v52 = vmul.f32 0.0625, %v9976_v50  ;;  %v20862_v6 = vpop.f32.mrb[111].mxu0 }
0x2cd1   :  { %v9983_v7 = vsub.f32 %v9981_v52, %v9982_v51 }
0x2cd2   :  { %v10214_v5 = vpop.f32.mrb[112].mxu0 }
0x2cd3   :  { %v9984_v37 = vadd.f32 1e-05, %v9983_v7  ;;  %v20877_v11 = vpop.f32.mrb[113].mxu0  ;;  %v22713_v7 = vpack.c.bf16 %v10830_v55, %v10829_v47  ;;  %v11456_v47 = vld [vmem:[#allocation4 + $0xaa8] sm:$0xff] }
0x2cd5   :  { %23635 = vrsqrt.f32 %v9984_v37  ;;  %v10904_v37 = vld [vmem:[#allocation4 + $0xa50] sm:$0xff] }
0x2cdf   :  { %v23636_v39 = vpop.eup %23635 }
0x2ce0   :  { %20871 = vmatmul.mubr.msk.f32.vlgmr.msra.gmra.mrb[106].mxu1 %vm852_vm3, %v23636_v39  ;;  %v10905_v39 = vld [vmem:[#allocation4 + $0xa58] sm:$0xff] }
0x2ce1   :  { %20879 = vmatpush3.msra.mxu1 %v24254_v0  ;;  %20880 = vmatprep.mubr.msk.f32.mxu1 %vm23719_vm2, %v24569_v41 }
0x2ce2   :  { %20888 = vmatprep.subr.mxu1 %v24569_v41 }
0x2ce4   :  { %20881 = vmatmul.mubr.msk.f32.vlgmr.msra.gmra.mrb[108].mxu1 %vm852_vm3, %v10218_v42  ;;  %v22716_v42 = vpack.c.bf16 %v10905_v39, %v10904_v37  ;;  %v11603_v37 = vld [vmem:[#allocation4 + $0xab8] sm:$0xff] }
0x2ce5   :  { %20890 = vmatprep.mubr.msk.f32.mxu1 %vm23719_vm2, %v24569_v41 }
0x2d9c   :  { %v10056_v0 = vpop.f32.mrb[104].mxu1 }
0x2d9d   :  { %v10136_v13 = vrot.slane %v10056_v0, %v23889_v61  ;;  %v20867_v21 = vpop.f32.mrb[105].mxu1 }
0x2d9f   :  { %v10137_v14 = vsub.f32 %v24629_v45, %v10136_v13  ;;  %v10362_v45 = vpop.f32.mrb[114].mxu0 }
0x2da0   :  { %v20887_v17 = vpop.f32.mrb[115].mxu0 }
0x2db3   :  { %v10129_v9 = vpop.f32.mrb[106].mxu1 }
0x2db4   :  { %v10141_v10 = vrot.slane %v10129_v9, %v23889_v61  ;;  %v20872_v12 = vpop.f32.mrb[107].mxu1 }
0x2db6   :  { %v10142_v23 = vmul.f32 %v10141_v10, %v10137_v14 }
0x2db7   :  { %v10288_v44 = vpop.f32.mrb[108].mxu1 }
0x2db8   :  { %v24676_v26 = vmax.f32 %v10142_v23, 0.0  ;;  %v20882_v24 = vpop.f32.mrb[109].mxu1 }
0x2dba   :  { %20889 = vmatpush3.msk.msra.mxu1 %vm5620_vm7, %v24676_v26  ;;  %20894 = vmatpush3.msk.msra.mxu0 %vm5620_vm7, %v24676_v26 }
0x2dbb   :  { %20891 = vmatmul.mubr.msk.f32.vlgmr.msra.gmra.mrb[110].mxu1 %vm5616_vm8, %v24678_v27  ;;  %20896 = vmatmul.mubr.msk.f32.vlgmr.msra.gmra.mrb[116].mxu0 %vm5616_vm8, %v24680_v29 }
0x2dbc   :  { %22685 = vmatprep.subr.bf16.mxu1 %v23718_v36  ;;  %20906 = vmatprep.mubr.msk.f32.mxu1 %vm23719_vm2, %v24569_v41 }
0x2dbd   :  { %22687 = vmatpush3.bf16.msra.mxu1 %v22686_v30  ;;  %22721 = vmatprep.subr.bf16.mxu0 %v23718_v36 }
0x2dbe   :  { %22688 = vmatprep.subr.bf16.mxu1 %v23718_v36  ;;  %22723 = vmatpush3.bf16.msra.mxu0 %v24621_v40 }
0x2dbf   :  { %22724 = vmatprep.subr.bf16.mxu0 %v23718_v36  ;;  %20972 = vmatprep.mubr.msk.f32.mxu0 %vm23719_vm2, %v24569_v41 }
0x2dc1   :  { %22690 = vmatpush3.bf16.msra.mxu1 %v22689_v32 }
0x2dc2   :  { %22691 = vmatprep.subr.bf16.mxu1 %v23718_v36  ;;  %22726 = vmatpush3.bf16.msra.mxu0 %v24625_v56 }
0x2dc3   :  { %22727 = vmatprep.subr.bf16.mxu0 %v23718_v36 }
0x2dc4   :  { %20907 = vmatmul.mubr.msk.f32.vlgmr.msra.gmra.mrb[112].mxu1 %vm367_vm1, %v10288_v44 }
0x2dc5   :  { %22693 = vmatpush3.bf16.msra.mxu1 %v22692_v38  ;;  %20917 = vmatprep.mubr.msk.f32.mxu1 %vm23719_vm2, %v24569_v41 }
0x2dc6   :  { %22694 = vmatprep.subr.bf16.mxu1 %v23718_v36 }
0x2dc9   :  { %22696 = vmatpush3.bf16.msra.mxu1 %v22695_v48 }
0x2dca   :  { %22697 = vmatprep.subr.bf16.mxu1 %v23718_v36 }
0x2dcc   :  { %20918 = vmatmul.mubr.msk.f32.vlgmr.msra.gmra.mrb[112].mxu1 %vm367_vm1, %v10214_v5  ;;  %v10907_v5 = vld [vmem:[#allocation4 + $0xa68] sm:$0xff] }
0x2dcd   :  { %22699 = vmatpush3.bf16.msra.mxu1 %v22698_v53  ;;  %20928 = vmatprep.mubr.msk.f32.mxu1 %vm23719_vm2, %v24569_v41  ;;  %v22719_v11 = vpack.c.bf16 %v10907_v5, %v10906_v2  ;;  %v11605_v2 = vld [vmem:[#allocation4 + $0xac8] sm:$0xff] }
0x2dce   :  { %22700 = vmatprep.subr.bf16.mxu1 %v23718_v36 }
0x2dd1   :  { %22702 = vmatpush3.bf16.msra.mxu1 %v22701_v57 }
0x2dd2   :  { %22703 = vmatprep.subr.bf16.mxu1 %v23718_v36 }
0x2dd4   :  { %20929 = vmatmul.mubr.msk.f32.vlgmr.msra.gmra.mrb[112].mxu1 %vm367_vm1, %v10362_v45 }
0x2dd5   :  { %22705 = vmatpush3.bf16.msra.mxu1 %v22704_v60  ;;  %20939 = vmatprep.mubr.msk.f32.mxu1 %vm23719_vm2, %v24569_v41 }
0x2dd6   :  { %22706 = vmatprep.subr.bf16.mxu1 %v23718_v36 }
0x2dd9   :  { %22708 = vmatpush3.bf16.msra.mxu1 %v22707_v63  ;;  %v11453_v63 = vld [vmem:[#allocation4 + $0xa90] sm:$0xff] }
0x2dda   :  { %22709 = vmatprep.subr.bf16.mxu1 %v23718_v36  ;;  %v22734_v28 = vpack.c.bf16 %v11454_v1, %v11453_v63  ;;  %v12234_v63 = vld [vmem:[#allocation4 + $0xb10] sm:$0xff] }
0x2e8e   :  { %v10439_v50 = vpop.f32.mrb[110].mxu1  ;;  %v10513_v51 = vpop.f32.mrb[116].mxu0 }
0x2e8f   :  { %v20892_v52 = vpop.f32.mrb[111].mxu1  ;;  %20940 = vmatmul.mubr.msk.f32.vlgmr.msra.gmra.mrb[112].mxu1 %vm367_vm1, %v10439_v50  ;;  %v20897_v6 = vpop.f32.mrb[117].mxu0  ;;  %v11450_v50 = vld [vmem:[#allocation4 + $0xa78] sm:$0xff] }
0x2e90   :  { %22711 = vmatpush3.bf16.msra.mxu1 %v22710_v4  ;;  %20950 = vmatprep.mubr.msk.f32.mxu1 %vm23719_vm2, %v24569_v41  ;;  %v11455_v4 = vld [vmem:[#allocation4 + $0xaa0] sm:$0xff]  ;;  %v11452_v6 = vld [vmem:[#allocation4 + $0xa88] sm:$0xff] }
0x2e91   :  { %22712 = vmatprep.subr.bf16.mxu1 %v23718_v36  ;;  %v22737_v55 = vpack.c.bf16 %v11456_v47, %v11455_v4  ;;  %v11451_v52 = vld [vmem:[#allocation4 + $0xa80] sm:$0xff]  ;;  %v12004_v4 = vld [vmem:[#allocation4 + $0xad0] sm:$0xff] }
0x2e94   :  { %22714 = vmatpush3.bf16.msra.mxu1 %v22713_v7  ;;  %v22743_v7 = vpack.c.bf16 %v11452_v6, %v11451_v52  ;;  %v12476_v52 = vld [vmem:[#allocation4 + $0x4b8] sm:$0xff]  ;;  %v12477_v6 = vld [vmem:[#allocation4 + $0x4c0] sm:$0xff] }
0x2e95   :  { %22715 = vmatprep.subr.bf16.mxu1 %v23718_v36 }
0x2e97   :  { %20951 = vmatmul.mubr.msk.f32.vlgmr.msra.gmra.mrb[112].mxu1 %vm367_vm1, %v24676_v26 }
0x2e98   :  { %22717 = vmatpush3.bf16.msra.mxu1 %v22716_v42  ;;  %20961 = vmatprep.mubr.msk.f32.mxu1 %vm23719_vm2, %v24569_v41  ;;  %v11604_v42 = vld [vmem:[#allocation4 + $0xac0] sm:$0xff] }
0x2e99   :  { %22718 = vmatprep.subr.bf16.mxu1 %v23718_v36 }
0x2e9c   :  { %22720 = vmatpush3.bf16.msra.mxu1 %v22719_v11 }
0x2e9d   :  { %22751 = vmatprep.subr.bf16.mxu1 %v23718_v36 }
0x2e9f   :  { %20962 = vmatmul.mubr.msk.f32.vlgmr.msra.gmra.mrb[112].mxu1 %vm367_vm1, %v10513_v51 }
0x2ea0   :  { %22753 = vmatpush3.bf16.msra.mxu1 %v24621_v40  ;;  %21047 = vmatprep.mubr.msk.f32.mxu1 %vm23719_vm2, %v24569_v41 }
0x2ea1   :  { %22754 = vmatprep.subr.bf16.mxu1 %v23718_v36 }
0x2ea4   :  { %22756 = vmatpush3.bf16.msra.mxu1 %v24625_v56 }
0x2ea5   :  { %22757 = vmatprep.subr.bf16.mxu1 %v23718_v36 }
0x2f72   :  { %v10977_v0 = vpop.f32.mrb[112].mxu1 }
0x2f73   :  { %v10982_v13 = vsel %vm4831_vm5, %v10977_v0, 0.0  ;;  %v10989_v21 = vmul.f32 %v10977_v0, %v10977_v0  ;;  %v20963_v14 = vpop.f32.mrb[113].mxu1 }
0x2f74   :  { %v10983_v9 = vrot.slane %v10982_v13, 4 }
0x2f75   :  { %v10990_v10 = vsel %vm4831_vm5, %v10989_v21, 0.0 }
0x2f76   :  { %v10984_v12 = vadd.f32 %v10983_v9, %v10982_v13  ;;  %v10991_v23 = vrot.slane %v10990_v10, 4 }
0x2f78   :  { %v10985_v25 = vrot.slane %v10984_v12, 2  ;;  %v10992_v20 = vadd.f32 %v10991_v23, %v10990_v10 }
0x2f7a   :  { %v10986_v26 = vadd.f32 %v10985_v25, %v10984_v12  ;;  %v10993_v30 = vrot.slane %v10992_v20, 2 }
0x2f7c   :  { %v10987_v31 = vrot.slane %v10986_v26, 1  ;;  %v10994_v32 = vadd.f32 %v10993_v30, %v10992_v20 }
0x2f7e   :  { %v10988_v19 = vadd.f32 %v10987_v31, %v10986_v26  ;;  %v10995_v34 = vrot.slane %v10994_v32, 1 }
0x2f80   :  { %20973 = vmatmul.mubr.msk.f32.vlgmr.msra.gmra.mrb[118].mxu0 %vm367_vm1, %v10988_v19  ;;  %v10996_v35 = vadd.f32 %v10995_v34, %v10994_v32 }
0x2f81   :  { %22729 = vmatpush3.bf16.msra.mxu0 %v24621_v40  ;;  %20983 = vmatprep.mubr.msk.f32.mxu0 %vm23719_vm2, %v24569_v41 }
0x2f82   :  { %22730 = vmatprep.subr.bf16.mxu0 %v23718_v36 }
0x2f85   :  { %22732 = vmatpush3.bf16.msra.mxu0 %v24625_v56 }
0x2f86   :  { %20986 = vmatprep.subr.mxu0 %v24569_v41 }
0x2f88   :  { %20984 = vmatmul.mubr.msk.f32.vlgmr.msra.gmra.mrb[120].mxu0 %vm367_vm1, %v10996_v35 }
0x2f89   :  { %20987 = vmatpush3.msra.mxu0 %v24653_v3  ;;  %20988 = vmatprep.mubr.msk.f32.mxu0 %vm23719_vm2, %v24569_v41 }
0x2f8a   :  { %20991 = vmatprep.subr.mxu0 %v24569_v41 }
0x3053   :  { %v11066_v38 = vpop.f32.mrb[118].mxu0 }
0x3054   :  { %v11143_v18 = vmul.f32 0.0625, %v11066_v38  ;;  %v20974_v43 = vpop.f32.mrb[119].mxu0 }
0x3056   :  { %20989 = vmatmul.mubr.msk.f32.vlgmr.msra.gmra.mrb[122].mxu0 %vm852_vm3, %v11143_v18  ;;  %v11145_v45 = vmul.f32 %v11143_v18, %v11143_v18 }
0x3057   :  { %20992 = vmatpush3.msra.mxu0 %v24653_v3  ;;  %20993 = vmatprep.mubr.msk.f32.mxu0 %vm23719_vm2, %v24569_v41 }
0x3058   :  { %20996 = vmatprep.subr.mxu0 %v24569_v41 }
0x305b   :  { %v11139_v44 = vpop.f32.mrb[120].mxu0 }
0x305c   :  { %v11144_v24 = vmul.f32 0.0625, %v11139_v44  ;;  %v20985_v17 = vpop.f32.mrb[121].mxu0 }
0x305e   :  { %v11146_v48 = vsub.f32 %v11144_v24, %v11145_v45 }
0x3060   :  { %v11147_v49 = vadd.f32 1e-05, %v11146_v48 }
0x3062   :  { %23637 = vrsqrt.f32 %v11147_v49 }
0x306c   :  { %v23638_v15 = vpop.eup %23637 }
0x306d   :  { %20994 = vmatmul.mubr.msk.f32.vlgmr.msra.gmra.mrb[124].mxu0 %vm852_vm3, %v23638_v15 }
0x306e   :  { %20998 = vmatprep.mubr.msk.f32.mxu0 %vm23719_vm2, %v24569_v41 }
0x3129   :  { %v11218_v53 = vpop.f32.mrb[122].mxu0 }
0x312a   :  { %v11298_v54 = vrot.slane %v11218_v53, %v23889_v61  ;;  %v20990_v33 = vpop.f32.mrb[123].mxu0 }
0x312c   :  { %v11299_v57 = vsub.f32 %v10977_v0, %v11298_v54  ;;  %v22749_v0 = vpack.c.bf16 %v11605_v2, %v11604_v42  ;;  %v12231_v42 = vld [vmem:[#allocation4 + $0xaf8] sm:$0xff]  ;;  %v12232_v2 = vld [vmem:[#allocation4 + $0xb00] sm:$0xff] }
0x3140   :  { %v11291_v58 = vpop.f32.mrb[124].mxu0 }
0x3141   :  { %v11303_v59 = vrot.slane %v11291_v58, %v23889_v61  ;;  %v20995_v60 = vpop.f32.mrb[125].mxu0 }
0x3143   :  { %v11304_v62 = vmul.f32 %v11303_v59, %v11299_v57 }
0x3145   :  { %v11305_v46 = vmax.f32 %v11304_v62, 0.0 }
0x3147   :  { %20997 = vmatpush3.msk.msra.mxu0 %vm5620_vm7, %v11305_v46 }
0x3148   :  { %20999 = vmatmul.mubr.msk.f32.vlgmr.msra.gmra.mrb[126].mxu0 %vm5616_vm8, %v24678_v27  ;;  %21001 = vmatprep.subr.mxu0 %v24569_v41  ;;  %v11449_v27 = vld [vmem:[#allocation4 + $0xa70] sm:$0xff] }
0x3149   :  { %21002 = vmatpush3.msk.msra.mxu0 %vm5620_vm7, %v11305_v46  ;;  %21003 = vmatprep.mubr.msk.f32.mxu0 %vm23719_vm2, %v24569_v41  ;;  %v22740_v51 = vpack.c.bf16 %v11450_v50, %v11449_v27  ;;  %v12236_v27 = vld [vmem:[#allocation4 + $0xb20] sm:$0xff] }
0x314a   :  { %22733 = vmatprep.subr.bf16.mxu0 %v23718_v36  ;;  %v12155_v50 = vld [vmem:[#allocation4 + $0xae0] sm:$0xff] }
0x314c   :  { %21004 = vmatmul.mubr.msk.f32.vlgmr.msra.gmra.mrb[128].mxu0 %vm5616_vm8, %v24680_v29  ;;  %v11602_v29 = vld [vmem:[#allocation4 + $0xab0] sm:$0xff] }
0x314d   :  { %22735 = vmatpush3.bf16.msra.mxu0 %v22734_v28  ;;  %21014 = vmatprep.mubr.msk.f32.mxu0 %vm23719_vm2, %v24569_v41  ;;  %v22746_v39 = vpack.c.bf16 %v11603_v37, %v11602_v29  ;;  %v12081_v28 = vld [vmem:[#allocation4 + $0xad8] sm:$0xff]  ;;  %v12229_v29 = vld [vmem:[#allocation4 + $0xae8] sm:$0xff]  ;;  %v12230_v37 = vld [vmem:[#allocation4 + $0xaf0] sm:$0xff] }
0x314e   :  { %22736 = vmatprep.subr.bf16.mxu0 %v23718_v36 }
0x3151   :  { %22738 = vmatpush3.bf16.msra.mxu0 %v22737_v55  ;;  %v12235_v55 = vld [vmem:[#allocation4 + $0xb18] sm:$0xff] }
0x3152   :  { %22739 = vmatprep.subr.bf16.mxu0 %v23718_v36 }
0x3154   :  { %21015 = vmatmul.mubr.msk.f32.vlgmr.msra.gmra.mrb[130].mxu0 %vm367_vm1, %v11305_v46  ;;  %v12233_v46 = vld [vmem:[#allocation4 + $0xb08] sm:$0xff] }
0x3155   :  { %22741 = vmatpush3.bf16.msra.mxu0 %v22740_v51  ;;  %21025 = vmatprep.mubr.msk.f32.mxu0 %vm23719_vm2, %v24569_v41  ;;  %v22764_v47 = vpack.c.bf16 %v12234_v63, %v12233_v46  ;;  %v22767_v51 = vpack.c.bf16 %v12236_v27, %v12235_v55  ;;  %v12868_v46 = vld [vmem:[#allocation4 + $0xb50] sm:$0xff] }
0x3156   :  { %22742 = vmatprep.subr.bf16.mxu0 %v23718_v36 }
0x3159   :  { %22744 = vmatpush3.bf16.msra.mxu0 %v22743_v7  ;;  %v24827_v7 = vpack.c.bf16 %v12477_v6, %v12476_v52  ;;  %v12794_v6 = vld [vmem:[#allocation4 + $0xb48] sm:$0xff] }
0x315a   :  { %22745 = vmatprep.subr.bf16.mxu0 %v23718_v36 }
0x321b   :  { %v11375_v5 = vpop.f32.mrb[126].mxu0 }
0x321c   :  { %v21000_v11 = vpop.f32.mrb[127].mxu0  ;;  %21026 = vmatmul.mubr.msk.f32.vlgmr.msra.gmra.mrb[130].mxu0 %vm367_vm1, %v11375_v5 }
0x321d   :  { %22747 = vmatpush3.bf16.msra.mxu0 %v22746_v39  ;;  %21036 = vmatprep.mubr.msk.f32.mxu0 %vm23719_vm2, %v24569_v41  ;;  %v22770_v39 = vpack.c.bf16 %v12230_v37, %v12229_v29  ;;  %v12942_v29 = vld [vmem:[#allocation4 + $0xb58] sm:$0xff] }
0x321e   :  { %22748 = vmatprep.subr.bf16.mxu0 %v23718_v36 }
0x321f   :  { %v11445_v13 = vpop.f32.mrb[128].mxu0 }
0x3220   :  { %v21005_v21 = vpop.f32.mrb[129].mxu0 }
0x3221   :  { %22750 = vmatpush3.bf16.msra.mxu0 %v22749_v0 }
0x3222   :  { %21061 = vmatprep.subr.mxu0 %v24569_v41 }
0x3224   :  { %21037 = vmatmul.mubr.msk.f32.vlgmr.msra.gmra.mrb[130].mxu0 %vm367_vm1, %v11445_v13  ;;  %v22773_v13 = vpack.c.bf16 %v12232_v2, %v12231_v42 }
0x3225   :  { %21062 = vmatpush3.msra.mxu0 %v24653_v3  ;;  %21063 = vmatprep.mubr.msk.f32.mxu0 %vm23719_vm2, %v24569_v41 }
0x3226   :  { %21066 = vmatprep.subr.mxu0 %v24569_v41 }
0x32f7   :  { %v11675_v14 = vpop.f32.mrb[130].mxu0 }
0x32f8   :  { %v11680_v9 = vsel %vm4831_vm5, %v11675_v14, 0.0  ;;  %v11687_v10 = vmul.f32 %v11675_v14, %v11675_v14  ;;  %v21038_v12 = vpop.f32.mrb[131].mxu0 }
0x32f9   :  { %v11681_v23 = vrot.slane %v11680_v9, 4 }
0x32fa   :  { %v11688_v25 = vsel %vm4831_vm5, %v11687_v10, 0.0 }
0x32fb   :  { %v11682_v20 = vadd.f32 %v11681_v23, %v11680_v9  ;;  %v11689_v26 = vrot.slane %v11688_v25, 4  ;;  %v12384_v9 = vld [vmem:[#allocation4 + $0xb30] sm:$0xff] }
0x32fd   :  { %v11683_v30 = vrot.slane %v11682_v20, 2  ;;  %v11690_v31 = vadd.f32 %v11689_v26, %v11688_v25  ;;  %v12385_v25 = vld [vmem:[#allocation4 + $0xb38] sm:$0xff] }
0x32ff   :  { %v11684_v19 = vadd.f32 %v11683_v30, %v11682_v20  ;;  %v11691_v32 = vrot.slane %v11690_v31, 2  ;;  %v12386_v20 = vld [vmem:[#allocation4 + $0xb40] sm:$0xff]  ;;  %v12478_v30 = vld [vmem:[#allocation4 + $0x4c8] sm:$0xff] }
0x3300   :  { %v22779_v26 = vpack.c.bf16 %v12386_v20, %v12385_v25  ;;  %v24918_v25 = vld [vmem:[#allocation4 + $0xb68] sm:$0xff] }
0x3301   :  { %v11685_v34 = vrot.slane %v11684_v19, 1  ;;  %v11692_v38 = vadd.f32 %v11691_v32, %v11690_v31  ;;  %v12479_v31 = vld [vmem:[#allocation4 + $0x4d0] sm:$0xff]  ;;  %v12480_v32 = vld [vmem:[#allocation4 + $0x4d8] sm:$0xff] }
0x3303   :  { %v11686_v35 = vadd.f32 %v11685_v34, %v11684_v19  ;;  %v11693_v18 = vrot.slane %v11692_v38, 1  ;;  %v24844_v19 = vpack.c.bf16 %v12479_v31, %v12478_v30  ;;  %v12481_v34 = vld [vmem:[#allocation4 + $0x4e0] sm:$0xff]  ;;  %v13175_v31 = vld [vmem:[#allocation4 + $0xbc8] sm:$0xff] }
0x3304   :  { %v13174_v30 = vld [vmem:[#allocation4 + $0xbc0] sm:$0xff] }
0x3305   :  { %21048 = vmatmul.mubr.msk.f32.vlgmr.msra.gmra.mrb[114].mxu1 %vm367_vm1, %v11686_v35  ;;  %v11694_v43 = vadd.f32 %v11693_v18, %v11692_v38  ;;  %v24848_v35 = vpack.c.bf16 %v12481_v34, %v12480_v32  ;;  %v12482_v38 = vld [vmem:[#allocation4 + $0x4e8] sm:$0xff]  ;;  %v12483_v18 = vld [vmem:[#allocation4 + $0x4f0] sm:$0xff]  ;;  %v22818_v32 = vpack.c.bf16 %v13175_v31, %v13174_v30 }
0x3306   :  { %22759 = vmatpush3.bf16.msra.mxu1 %v24621_v40  ;;  %21058 = vmatprep.mubr.msk.f32.mxu1 %vm23719_vm2, %v24569_v41  ;;  %v13176_v34 = vld [vmem:[#allocation4 + $0xbd0] sm:$0xff]  ;;  %v13493_v30 = vld [vmem:[#allocation4 + $0xc88] sm:$0xff] }
0x3307   :  { %22760 = vmatprep.subr.bf16.mxu1 %v23718_v36 }
0x330a   :  { %22762 = vmatpush3.bf16.msra.mxu1 %v24625_v56 }
0x330b   :  { %21071 = vmatprep.subr.mxu1 %v24569_v41 }
0x330d   :  { %21059 = vmatmul.mubr.msk.f32.vlgmr.msra.gmra.mrb[116].mxu1 %vm367_vm1, %v11694_v43  ;;  %v24852_v43 = vpack.c.bf16 %v12483_v18, %v12482_v38  ;;  %v13177_v38 = vld [vmem:[#allocation4 + $0xbd8] sm:$0xff] }
0x330e   :  { %21073 = vmatprep.mubr.msk.f32.mxu1 %vm23719_vm2, %v24569_v41  ;;  %v22821_v18 = vpack.c.bf16 %v13177_v38, %v13176_v34 }
0x33d8   :  { %v11764_v44 = vpop.f32.mrb[114].mxu1 }
0x33d9   :  { %v11841_v45 = vmul.f32 0.0625, %v11764_v44  ;;  %v21049_v24 = vpop.f32.mrb[115].mxu1 }
0x33db   :  { %21064 = vmatmul.mubr.msk.f32.vlgmr.msra.gmra.mrb[132].mxu0 %vm852_vm3, %v11841_v45  ;;  %v11843_v56 = vmul.f32 %v11841_v45, %v11841_v45 }
0x33dc   :  { %21067 = vmatpush3.msra.mxu0 %v24653_v3  ;;  %21068 = vmatprep.mubr.msk.f32.mxu0 %vm23719_vm2, %v24569_v41 }
0x33dd   :  { %21076 = vmatprep.subr.mxu0 %v24569_v41 }
0x33e0   :  { %v11837_v40 = vpop.f32.mrb[116].mxu1 }
0x33e1   :  { %v11842_v17 = vmul.f32 0.0625, %v11837_v40  ;;  %v21060_v48 = vpop.f32.mrb[117].mxu1 }
0x33e3   :  { %v11844_v49 = vsub.f32 %v11842_v17, %v11843_v56 }
0x33e5   :  { %v11845_v15 = vadd.f32 1e-05, %v11844_v49 }
0x33e7   :  { %23639 = vrsqrt.f32 %v11845_v15 }
0x33f1   :  { %v23640_v53 = vpop.eup %23639 }
0x33f2   :  { %21069 = vmatmul.mubr.msk.f32.vlgmr.msra.gmra.mrb[134].mxu0 %vm852_vm3, %v23640_v53 }
0x33f3   :  { %21078 = vmatprep.mubr.msk.f32.mxu0 %vm23719_vm2, %v24569_v41 }
0x34ae   :  { %v11916_v54 = vpop.f32.mrb[132].mxu0 }
0x34af   :  { %v11996_v3 = vrot.slane %v11916_v54, %v23889_v61  ;;  %v21065_v33 = vpop.f32.mrb[133].mxu0 }
0x34b0   :  { %v24868_v33 = vld [vmem:[%s25438_s2 + $0x30] sm:$0xff] }
0x34b1   :  { %v11997_v57 = vsub.f32 %v11675_v14, %v11996_v3  ;;  %v12383_v14 = vld [vmem:[#allocation4 + $0xb28] sm:$0xff] }
0x34b2   :  { %v22776_v12 = vpack.c.bf16 %v12384_v9, %v12383_v14  ;;  %v13172_v14 = vld [vmem:[#allocation4 + $0xbb0] sm:$0xff]  ;;  %v13173_v9 = vld [vmem:[#allocation4 + $0xbb8] sm:$0xff] }
0x34c5   :  { %v11989_v58 = vpop.f32.mrb[134].mxu0 }
0x34c6   :  { %v12001_v59 = vrot.slane %v11989_v58, %v23889_v61  ;;  %v21070_v60 = vpop.f32.mrb[135].mxu0 }
0x34c8   :  { %v12002_v62 = vmul.f32 %v12001_v59, %v11997_v57 }
0x34ca   :  { %v12003_v1 = vmax.f32 %v12002_v62, 0.0  ;;  %v24884_v62 = vld [vmem:[#allocation4 + $0x4f8] sm:$0xff] }
0x34cc   :  { %21072 = vmatpush3.msk.msra.mxu1 %vm5620_vm7, %v12003_v1  ;;  %21077 = vmatpush3.msk.msra.mxu0 %vm5620_vm7, %v12003_v1 }
0x34cd   :  { %21079 = vmatmul.mubr.msk.f32.vlgmr.msra.gmra.mrb[136].mxu0 %vm5616_vm8, %v12081_v28  ;;  %21081 = vmatprep.subr.mxu1 %v24569_v41 }
0x34ce   :  { %21074 = vmatmul.mubr.msk.f32.vlgmr.msra.gmra.mrb[118].mxu1 %vm5616_vm8, %v12004_v4  ;;  %22763 = vmatprep.subr.bf16.mxu0 %v23718_v36 }
0x34cf   :  { %21082 = vmatpush3.msk.msra.mxu1 %vm5620_vm7, %v12003_v1  ;;  %21083 = vmatprep.mubr.msk.f32.mxu1 %vm23719_vm2, %v24569_v41 }
0x34d0   :  { %22765 = vmatpush3.bf16.msra.mxu0 %v22764_v47  ;;  %21094 = vmatprep.mubr.msk.f32.mxu0 %vm23719_vm2, %v24569_v41 }
0x34d1   :  { %22766 = vmatprep.subr.bf16.mxu0 %v23718_v36  ;;  %22781 = vmatprep.subr.bf16.mxu1 %v23718_v36 }
0x34d2   :  { %21084 = vmatmul.mubr.msk.f32.vlgmr.msra.gmra.mrb[120].mxu1 %vm5616_vm8, %v12155_v50 }
0x34d3   :  { %21135 = vmatprep.mubr.msk.f32.mxu1 %vm23719_vm2, %v24569_v41  ;;  %22783 = vmatpush3.bf16.msra.mxu1 %v24827_v7 }
0x34d4   :  { %22768 = vmatpush3.bf16.msra.mxu0 %v22767_v51  ;;  %22784 = vmatprep.subr.bf16.mxu1 %v23718_v36 }
0x34d5   :  { %22769 = vmatprep.subr.bf16.mxu0 %v23718_v36 }
0x34d7   :  { %22786 = vmatpush3.bf16.msra.mxu1 %v24844_v19 }
0x34d8   :  { %22787 = vmatprep.subr.bf16.mxu1 %v23718_v36 }
0x34db   :  { %22789 = vmatpush3.bf16.msra.mxu1 %v24848_v35 }
0x34dc   :  { %22790 = vmatprep.subr.bf16.mxu1 %v23718_v36 }
0x34df   :  { %22792 = vmatpush3.bf16.msra.mxu1 %v24852_v43 }
0x34e0   :  { %22793 = vmatprep.subr.bf16.mxu1 %v23718_v36 }
0x35a0   :  { %v12151_v5 = vpop.f32.mrb[136].mxu0 }
0x35a1   :  { %v21080_v11 = vpop.f32.mrb[137].mxu0  ;;  %21095 = vmatmul.mubr.msk.f32.vlgmr.msra.gmra.mrb[138].mxu0 %vm367_vm1, %v12151_v5  ;;  %v12077_v0 = vpop.f32.mrb[118].mxu1 }
0x35a2   :  { %22771 = vmatpush3.bf16.msra.mxu0 %v22770_v39  ;;  %v21075_v21 = vpop.f32.mrb[119].mxu1  ;;  %21105 = vmatprep.mubr.msk.f32.mxu0 %vm23719_vm2, %v24569_v41 }
0x35a3   :  { %22772 = vmatprep.subr.bf16.mxu0 %v23718_v36 }
0x35a5   :  { %v12225_v10 = vpop.f32.mrb[120].mxu1 }
0x35a6   :  { %22774 = vmatpush3.bf16.msra.mxu0 %v22773_v13  ;;  %v21085_v23 = vpop.f32.mrb[121].mxu1 }
0x35a7   :  { %22775 = vmatprep.subr.bf16.mxu0 %v23718_v36  ;;  %v24916_v23 = vld [vmem:[#allocation4 + $0xb60] sm:$0xff] }
0x35a9   :  { %21106 = vmatmul.mubr.msk.f32.vlgmr.msra.gmra.mrb[138].mxu0 %vm367_vm1, %v12077_v0 }
0x35aa   :  { %22777 = vmatpush3.bf16.msra.mxu0 %v22776_v12  ;;  %21116 = vmatprep.mubr.msk.f32.mxu0 %vm23719_vm2, %v24569_v41 }
0x35ab   :  { %22778 = vmatprep.subr.bf16.mxu0 %v23718_v36 }
0x35ae   :  { %22780 = vmatpush3.bf16.msra.mxu0 %v22779_v26  ;;  %v22815_v26 = vpack.c.bf16 %v13173_v9, %v13172_v14  ;;  %v13490_v9 = vld [vmem:[#allocation4 + $0xc70] sm:$0xff] }
0x35af   :  { %21157 = vmatprep.subr.mxu0 %v24569_v41 }
0x35b1   :  { %21117 = vmatmul.mubr.msk.f32.vlgmr.msra.gmra.mrb[138].mxu0 %vm367_vm1, %v12225_v10 }
0x35b2   :  { %21159 = vmatprep.mubr.msk.f32.mxu0 %vm23719_vm2, %v24569_v41  ;;  %21158 = vmatpush3.msra.mxu0 %v24884_v62 }
0x35b3   :  { %21162 = vmatprep.subr.mxu0 %v24868_v33 }
0x3684   :  { %v24856_v41 = vpop.f32.mrb[138].mxu0 }
0x3685   :  { %v12461_v44 = vsel %vm59_vm0, %v24856_v41, 0.0  ;;  %v12468_v45 = vmul.f32 %v24856_v41, %v24856_v41  ;;  %v21118_v24 = vpop.f32.mrb[139].mxu0 }
0x3686   :  { %v12462_v40 = vrot.slane %v12461_v44, 4  ;;  %v13164_v24 = vld [vmem:[#allocation4 + $0xb70] sm:$0xff] }
0x3687   :  { %v12469_v17 = vsel %vm59_vm0, %v12468_v45, 0.0 }
0x3688   :  { %v12463_v56 = vadd.f32 %v12462_v40, %v12461_v44  ;;  %v12470_v15 = vrot.slane %v12469_v17, 4  ;;  %v13179_v44 = vld [vmem:[#allocation4 + $0xbe8] sm:$0xff]  ;;  %v13165_v40 = vld [vmem:[#allocation4 + $0xb78] sm:$0xff] }
0x368a   :  { %v12464_v48 = vrot.slane %v12463_v56, 2  ;;  %v12471_v3 = vadd.f32 %v12470_v15, %v12469_v17  ;;  %v13166_v17 = vld [vmem:[#allocation4 + $0xb80] sm:$0xff]  ;;  %v13168_v15 = vld [vmem:[#allocation4 + $0xb90] sm:$0xff] }
0x368c   :  { %v12465_v49 = vadd.f32 %v12464_v48, %v12463_v56  ;;  %v12472_v57 = vrot.slane %v12471_v3, 2  ;;  %v22827_v56 = vpack.c.bf16 %v13165_v40, %v13164_v24  ;;  %v13167_v48 = vld [vmem:[#allocation4 + $0xb88] sm:$0xff]  ;;  %v13496_v24 = vld [vmem:[#allocation4 + $0xca0] sm:$0xff] }
0x368d   :  { %v13497_v40 = vld [vmem:[#allocation4 + $0xca8] sm:$0xff] }
0x368e   :  { %v12466_v53 = vrot.slane %v12465_v49, 1  ;;  %v12473_v58 = vadd.f32 %v12472_v57, %v12471_v3  ;;  %v13170_v3 = vld [vmem:[#allocation4 + $0xba0] sm:$0xff]  ;;  %v13171_v57 = vld [vmem:[#allocation4 + $0xba8] sm:$0xff] }
0x3690   :  { %v12467_v54 = vadd.f32 %v12466_v53, %v12465_v49  ;;  %v12474_v59 = vrot.slane %v12473_v58, 1  ;;  %v22830_v49 = vpack.c.bf16 %v13167_v48, %v13166_v17  ;;  %v13169_v53 = vld [vmem:[#allocation4 + $0xb98] sm:$0xff]  ;;  %v13572_v17 = vld [vmem:[#allocation4 + $0xcb0] sm:$0xff] }
0x3691   :  { %v13573_v48 = vld [vmem:[#allocation4 + $0xcb8] sm:$0xff] }
0x3692   :  { %21136 = vmatmul.mubr.msk.f32.vlgmr.msra.gmra.mrb[122].mxu1 %vm59_vm0, %v12467_v54  ;;  %v12475_v60 = vadd.f32 %v12474_v59, %v12473_v58  ;;  %v22833_v54 = vpack.c.bf16 %v13169_v53, %v13168_v15  ;;  %v22836_v58 = vpack.c.bf16 %v13171_v57, %v13170_v3  ;;  %v13326_v59 = vld [vmem:[#allocation4 + $0xbf0] sm:$0xff]  ;;  %v13574_v15 = vld [vmem:[#allocation4 + $0xcc0] sm:$0xff]  ;;  %v13575_v53 = vld [vmem:[#allocation4 + $0xcc8] sm:$0xff] }
0x3693   :  { %22795 = vmatpush3.bf16.msra.mxu1 %v24827_v7  ;;  %21154 = vmatprep.mubr.msk.f32.mxu1 %vm23719_vm2, %v24868_v33  ;;  %v13576_v3 = vld [vmem:[#allocation4 + $0xcd0] sm:$0xff]  ;;  %v13577_v57 = vld [vmem:[#allocation4 + $0xcd8] sm:$0xff] }
0x3694   :  { %22796 = vmatprep.subr.bf16.mxu1 %v23718_v36 }
0x3697   :  { %22798 = vmatpush3.bf16.msra.mxu1 %v24844_v19 }
0x3698   :  { %22799 = vmatprep.subr.bf16.mxu1 %v23718_v36 }
0x369b   :  { %22801 = vmatpush3.bf16.msra.mxu1 %v24848_v35 }
0x369c   :  { %22802 = vmatprep.subr.bf16.mxu1 %v23718_v36 }
0x369f   :  { %22804 = vmatpush3.bf16.msra.mxu1 %v24852_v43 }
0x36a0   :  { %22808 = vmatprep.subr.bf16.mxu1 %v23718_v36 }
0x36a2   :  { %21155 = vmatmul.mubr.msk.f32.vlgmr.msra.gmra.mrb[124].mxu1 %vm59_vm0, %v12475_v60  ;;  %v13327_v60 = vld [vmem:[#allocation4 + $0xbf8] sm:$0xff] }
0x36a3   :  { %22810 = vmatpush3.bf16.msra.mxu1 %v24131_v22  ;;  %21178 = vmatprep.mubr.msk.f32.mxu1 %vm23719_vm2, %v24868_v33 }
0x36a4   :  { %21188 = vmatprep.subr.mxu1 %v24868_v33 }
0x36a6   :  { %21179 = vmatmul.mubr.msk.f32.vlgmr.msra.gmra.mrb[126].mxu1 %vm2565_vm4, %v12868_v46  ;;  %v22839_v46 = vpack.c.bf16 %v13327_v60, %v13326_v59  ;;  %v13578_v59 = vld [vmem:[#allocation4 + $0xce0] sm:$0xff]  ;;  %v13579_v60 = vld [vmem:[#allocation4 + $0xce8] sm:$0xff] }
0x36a7   :  { %21190 = vmatprep.mubr.msk.f32.mxu1 %vm23719_vm2, %v24868_v33 }
0x3765   :  { %v12553_v63 = vpop.f32.mrb[122].mxu1 }
0x3766   :  { %v12630_v1 = vmul.f32 0.015625, %v12553_v63  ;;  %v21137_v28 = vpop.f32.mrb[123].mxu1  ;;  %v13328_v63 = vld [vmem:[#allocation4 + $0xc00] sm:$0xff] }
0x3768   :  { %21160 = vmatmul.mubr.msk.f32.vlgmr.msra.gmra.mrb[140].mxu0 %vm852_vm3, %v12630_v1  ;;  %v12632_v47 = vmul.f32 %v12630_v1, %v12630_v1  ;;  %v13329_v1 = vld [vmem:[#allocation4 + $0xc08] sm:$0xff] }
0x3769   :  { %21163 = vmatpush3.msra.mxu0 %v24884_v62  ;;  %21164 = vmatprep.mubr.msk.f32.mxu0 %vm23719_vm2, %v24868_v33  ;;  %v22842_v28 = vpack.c.bf16 %v13329_v1, %v13328_v63 }
0x376a   :  { %22805 = vmatprep.subr.bf16.mxu0 %v23718_v36 }
0x3775   :  { %v12626_v4 = vpop.f32.mrb[124].mxu1 }
0x3776   :  { %v12631_v55 = vmul.f32 0.015625, %v12626_v4  ;;  %v21156_v27 = vpop.f32.mrb[125].mxu1  ;;  %v13330_v4 = vld [vmem:[#allocation4 + $0xc10] sm:$0xff] }
0x3777   :  { %v13332_v27 = vld [vmem:[#allocation4 + $0xc20] sm:$0xff] }
0x3778   :  { %v12633_v50 = vsub.f32 %v12631_v55, %v12632_v47  ;;  %v13331_v47 = vld [vmem:[#allocation4 + $0xc18] sm:$0xff] }
0x3779   :  { %v12938_v37 = vpop.f32.mrb[126].mxu1  ;;  %v22845_v55 = vpack.c.bf16 %v13331_v47, %v13330_v4 }
0x377a   :  { %v12634_v51 = vadd.f32 1e-05, %v12633_v50  ;;  %v21180_v39 = vpop.f32.mrb[127].mxu1  ;;  %v13333_v50 = vld [vmem:[#allocation4 + $0xc28] sm:$0xff] }
0x377b   :  { %v13411_v39 = vld [vmem:[#allocation4 + $0xc48] sm:$0xff] }
0x377c   :  { %23641 = vrsqrt.f32 %v12634_v51  ;;  %v22848_v51 = vpack.c.bf16 %v13333_v50, %v13332_v27 }
0x3786   :  { %v23642_v52 = vpop.eup %23641 }
0x3787   :  { %21165 = vmatmul.mubr.msk.f32.vlgmr.msra.gmra.mrb[142].mxu0 %vm852_vm3, %v23642_v52  ;;  %v13408_v52 = vld [vmem:[#allocation4 + $0xc30] sm:$0xff] }
0x3788   :  { %22807 = vmatpush3.bf16.msra.mxu0 %v24131_v22  ;;  %21171 = vmatprep.mubr.msk.f32.mxu0 %vm23719_vm2, %v24868_v33 }
0x3789   :  { %22811 = vmatprep.subr.bf16.mxu0 %v23718_v36 }
0x378b   :  { %21172 = vmatmul.mubr.msk.f32.vlgmr.msra.gmra.mrb[144].mxu0 %vm2565_vm4, %v12794_v6  ;;  %v13409_v6 = vld [vmem:[#allocation4 + $0xc38] sm:$0xff] }
0x378c   :  { %22813 = vmatpush3.bf16.msra.mxu0 %v24131_v22  ;;  %21185 = vmatprep.mubr.msk.f32.mxu0 %vm23719_vm2, %v24868_v33 }
0x378d   :  { %21193 = vmatprep.subr.mxu0 %v24868_v33 }
0x378f   :  { %21186 = vmatmul.mubr.msk.f32.vlgmr.msra.gmra.mrb[146].mxu0 %vm2565_vm4, %v12942_v29  ;;  %v22851_v29 = vpack.c.bf16 %v13409_v6, %v13408_v52 }
0x3790   :  { %21195 = vmatprep.mubr.msk.f32.mxu0 %vm23719_vm2, %v24868_v33 }
0x383b   :  { %v12706_v42 = vpop.f32.mrb[140].mxu0 }
0x383c   :  { %v12786_v2 = vrot.slane %v12706_v42, %v23889_v61  ;;  %v21161_v5 = vpop.f32.mrb[141].mxu0 }
0x383e   :  { %v12787_v11 = vsub.f32 %v24856_v41, %v12786_v2  ;;  %v13178_v41 = vld [vmem:[#allocation4 + $0xbe0] sm:$0xff] }
0x383f   :  { %v22824_v45 = vpack.c.bf16 %v13179_v44, %v13178_v41  ;;  %v13494_v41 = vld [vmem:[#allocation4 + $0xc90] sm:$0xff]  ;;  %v13495_v44 = vld [vmem:[#allocation4 + $0xc98] sm:$0xff] }
0x385a   :  { %v12779_v22 = vpop.f32.mrb[142].mxu0 }
0x385b   :  { %v12791_v0 = vrot.slane %v12779_v22, %v23889_v61  ;;  %v21166_v13 = vpop.f32.mrb[143].mxu0  ;;  %v13413_v22 = vld [vmem:[#allocation4 + $0xc58] sm:$0xff] }
0x385c   :  { %v13414_v13 = vld [vmem:[#allocation4 + $0xc60] sm:$0xff] }
0x385d   :  { %v12792_v21 = vmul.f32 %v12791_v0, %v12787_v11  ;;  %v13412_v11 = vld [vmem:[#allocation4 + $0xc50] sm:$0xff] }
0x385e   :  { %v24912_v10 = vpop.f32.mrb[144].mxu0  ;;  %v22857_v0 = vpack.c.bf16 %v13413_v22, %v13412_v11 }
0x385f   :  { %v24914_v12 = vmax.f32 %v12792_v21, 0.0  ;;  %v21173_v20 = vpop.f32.mrb[145].mxu0  ;;  %v13415_v21 = vld [vmem:[#allocation4 + $0xc68] sm:$0xff] }
0x3860   :  { %v22860_v14 = vpack.c.bf16 %v13415_v21, %v13414_v13 }
0x3861   :  { %21189 = vmatpush3.msra.mxu1 %v24914_v12  ;;  %21194 = vmatpush3.msra.mxu0 %v24914_v12 }
0x3862   :  { %21191 = vmatmul.mubr.msk.f32.vlgmr.msra.gmra.mrb[128].mxu1 %vm852_vm3, %v24916_v23  ;;  %21196 = vmatmul.mubr.msk.f32.vlgmr.msra.gmra.mrb[148].mxu0 %vm852_vm3, %v24918_v25  ;;  %v13012_v42 = vpop.f32.mrb[146].mxu0 }
0x3863   :  { %22814 = vmatprep.subr.bf16.mxu1 %v23718_v36  ;;  %21214 = vmatprep.mubr.msk.f32.mxu1 %vm23719_vm2, %v24868_v33  ;;  %v21187_v2 = vpop.f32.mrb[147].mxu0 }
0x3864   :  { %22816 = vmatpush3.bf16.msra.mxu1 %v22815_v26  ;;  %22886 = vmatprep.subr.bf16.mxu0 %v23718_v36  ;;  %v13492_v26 = vld [vmem:[#allocation4 + $0xc80] sm:$0xff] }
0x3865   :  { %22817 = vmatprep.subr.bf16.mxu1 %v23718_v36  ;;  %22888 = vmatpush3.bf16.msra.mxu0 %v24827_v7 }
0x3866   :  { %22889 = vmatprep.subr.bf16.mxu0 %v23718_v36  ;;  %21328 = vmatprep.mubr.msk.f32.mxu0 %vm23719_vm2, %v24868_v33 }
0x3868   :  { %22819 = vmatpush3.bf16.msra.mxu1 %v22818_v32 }
0x3869   :  { %22820 = vmatprep.subr.bf16.mxu1 %v23718_v36  ;;  %22891 = vmatpush3.bf16.msra.mxu0 %v24844_v19 }
0x386a   :  { %22892 = vmatprep.subr.bf16.mxu0 %v23718_v36 }
0x386c   :  { %22822 = vmatpush3.bf16.msra.mxu1 %v22821_v18  ;;  %v22866_v18 = vpack.c.bf16 %v13493_v30, %v13492_v26 }
0x386d   :  { %22823 = vmatprep.subr.bf16.mxu1 %v23718_v36  ;;  %22894 = vmatpush3.bf16.msra.mxu0 %v24848_v35 }
0x386e   :  { %22895 = vmatprep.subr.bf16.mxu0 %v23718_v36 }
0x3870   :  { %22825 = vmatpush3.bf16.msra.mxu1 %v22824_v45  ;;  %v22869_v45 = vpack.c.bf16 %v13495_v44, %v13494_v41 }
0x3871   :  { %22826 = vmatprep.subr.bf16.mxu1 %v23718_v36  ;;  %22897 = vmatpush3.bf16.msra.mxu0 %v24852_v43 }
0x3872   :  { %22898 = vmatprep.subr.bf16.mxu0 %v23718_v36 }
0x3873   :  { %21215 = vmatmul.mubr.msk.f32.vlgmr.msra.gmra.mrb[130].mxu1 %vm59_vm0, %v12938_v37  ;;  %v13410_v37 = vld [vmem:[#allocation4 + $0xc40] sm:$0xff] }
0x3874   :  { %22828 = vmatpush3.bf16.msra.mxu1 %v22827_v56  ;;  %21233 = vmatprep.mubr.msk.f32.mxu1 %vm23719_vm2, %v24868_v33  ;;  %v22854_v5 = vpack.c.bf16 %v13411_v39, %v13410_v37  ;;  %v22872_v56 = vpack.c.bf16 %v13497_v40, %v13496_v24  ;;  %v14127_v24 = vld [vmem:[#allocation4 + $0xd38] sm:$0xff] }
0x3875   :  { %22829 = vmatprep.subr.bf16.mxu1 %v23718_v36 }
0x3878   :  { %22831 = vmatpush3.bf16.msra.mxu1 %v22830_v49  ;;  %v22875_v49 = vpack.c.bf16 %v13573_v48, %v13572_v17  ;;  %v14129_v17 = vld [vmem:[#allocation4 + $0xd48] sm:$0xff] }
0x3879   :  { %22832 = vmatprep.subr.bf16.mxu1 %v23718_v36 }
0x387c   :  { %22834 = vmatpush3.bf16.msra.mxu1 %v22833_v54  ;;  %v22878_v54 = vpack.c.bf16 %v13575_v53, %v13574_v15  ;;  %v14132_v53 = vld [vmem:[#allocation4 + $0xd60] sm:$0xff] }
0x387d   :  { %22835 = vmatprep.subr.bf16.mxu1 %v23718_v36 }
0x3880   :  { %22837 = vmatpush3.bf16.msra.mxu1 %v22836_v58  ;;  %v22881_v58 = vpack.c.bf16 %v13577_v57, %v13576_v3  ;;  %v14119_v57 = vld [vmem:[#allocation4 + $0xcf8] sm:$0xff] }
0x3881   :  { %22838 = vmatprep.subr.bf16.mxu1 %v23718_v36 }
0x3883   :  { %21234 = vmatmul.mubr.msk.f32.vlgmr.msra.gmra.mrb[130].mxu1 %vm59_vm0, %v24912_v10  ;;  %v13491_v10 = vld [vmem:[#allocation4 + $0xc78] sm:$0xff] }
0x3884   :  { %22840 = vmatpush3.bf16.msra.mxu1 %v22839_v46  ;;  %21252 = vmatprep.mubr.msk.f32.mxu1 %vm23719_vm2, %v24868_v33  ;;  %v22863_v20 = vpack.c.bf16 %v13491_v10, %v13490_v9  ;;  %v22884_v46 = vpack.c.bf16 %v13579_v60, %v13578_v59  ;;  %v14120_v59 = vld [vmem:[#allocation4 + $0xd00] sm:$0xff]  ;;  %v14121_v60 = vld [vmem:[#allocation4 + $0xd08] sm:$0xff] }
0x3885   :  { %22841 = vmatprep.subr.bf16.mxu1 %v23718_v36 }
0x3888   :  { %22843 = vmatpush3.bf16.msra.mxu1 %v22842_v28 }
0x3889   :  { %22844 = vmatprep.subr.bf16.mxu1 %v23718_v36 }
0x388c   :  { %22846 = vmatpush3.bf16.msra.mxu1 %v22845_v55 }
0x388d   :  { %22847 = vmatprep.subr.bf16.mxu1 %v23718_v36 }
0x3890   :  { %22849 = vmatpush3.bf16.msra.mxu1 %v22848_v51 }
0x3891   :  { %22850 = vmatprep.subr.bf16.mxu1 %v23718_v36 }
0x3893   :  { %21253 = vmatmul.mubr.msk.f32.vlgmr.msra.gmra.mrb[130].mxu1 %vm59_vm0, %v13012_v42 }
0x3894   :  { %22852 = vmatpush3.bf16.msra.mxu1 %v22851_v29  ;;  %21271 = vmatprep.mubr.msk.f32.mxu1 %vm23719_vm2, %v24868_v33 }
0x3895   :  { %22853 = vmatprep.subr.bf16.mxu1 %v23718_v36 }
0x3898   :  { %22855 = vmatpush3.bf16.msra.mxu1 %v22854_v5 }
0x3899   :  { %22856 = vmatprep.subr.bf16.mxu1 %v23718_v36 }
0x389c   :  { %22858 = vmatpush3.bf16.msra.mxu1 %v22857_v0 }
0x389d   :  { %22859 = vmatprep.subr.bf16.mxu1 %v23718_v36 }
0x38a0   :  { %22861 = vmatpush3.bf16.msra.mxu1 %v22860_v14 }
0x38a1   :  { %22862 = vmatprep.subr.bf16.mxu1 %v23718_v36 }
0x3935   :  { %v13086_v31 = vpop.f32.mrb[128].mxu1  ;;  %v13160_v32 = vpop.f32.mrb[148].mxu0 }
0x3936   :  { %v21192_v34 = vpop.f32.mrb[129].mxu1  ;;  %21272 = vmatmul.mubr.msk.f32.vlgmr.msra.gmra.mrb[130].mxu1 %vm59_vm0, %v13086_v31  ;;  %v21197_v38 = vpop.f32.mrb[149].mxu0 }
0x3937   :  { %22864 = vmatpush3.bf16.msra.mxu1 %v22863_v20  ;;  %21290 = vmatprep.mubr.msk.f32.mxu1 %vm23719_vm2, %v24868_v33 }
0x3938   :  { %22865 = vmatprep.subr.bf16.mxu1 %v23718_v36 }
0x393b   :  { %22867 = vmatpush3.bf16.msra.mxu1 %v22866_v18 }
0x393c   :  { %22868 = vmatprep.subr.bf16.mxu1 %v23718_v36 }
0x393f   :  { %22870 = vmatpush3.bf16.msra.mxu1 %v22869_v45  ;;  %v14126_v45 = vld [vmem:[#allocation4 + $0xd30] sm:$0xff] }
0x3940   :  { %22871 = vmatprep.subr.bf16.mxu1 %v23718_v36  ;;  %v22911_v40 = vpack.c.bf16 %v14127_v24, %v14126_v45 }
0x3943   :  { %22873 = vmatpush3.bf16.msra.mxu1 %v22872_v56  ;;  %v14128_v56 = vld [vmem:[#allocation4 + $0xd40] sm:$0xff] }
0x3944   :  { %22874 = vmatprep.subr.bf16.mxu1 %v23718_v36  ;;  %v22914_v48 = vpack.c.bf16 %v14129_v17, %v14128_v56 }
0x3946   :  { %21291 = vmatmul.mubr.msk.f32.vlgmr.msra.gmra.mrb[130].mxu1 %vm59_vm0, %v24914_v12 }
0x3947   :  { %22876 = vmatpush3.bf16.msra.mxu1 %v22875_v49  ;;  %21309 = vmatprep.mubr.msk.f32.mxu1 %vm23719_vm2, %v24868_v33  ;;  %v14131_v49 = vld [vmem:[#allocation4 + $0xd58] sm:$0xff] }
0x3948   :  { %22877 = vmatprep.subr.bf16.mxu1 %v23718_v36 }
0x394b   :  { %22879 = vmatpush3.bf16.msra.mxu1 %v22878_v54  ;;  %v14133_v54 = vld [vmem:[#allocation4 + $0xd68] sm:$0xff] }
0x394c   :  { %22880 = vmatprep.subr.bf16.mxu1 %v23718_v36  ;;  %v22920_v3 = vpack.c.bf16 %v14133_v54, %v14132_v53  ;;  %v14769_v53 = vld [vmem:[#allocation4 + $0xdc0] sm:$0xff] }
0x394f   :  { %22882 = vmatpush3.bf16.msra.mxu1 %v22881_v58 }
0x3950   :  { %22883 = vmatprep.subr.bf16.mxu1 %v23718_v36 }
0x3953   :  { %22885 = vmatpush3.bf16.msra.mxu1 %v22884_v46  ;;  %v22926_v46 = vpack.c.bf16 %v14121_v60, %v14120_v59 }
0x3954   :  { %22946 = vmatprep.subr.bf16.mxu1 %v23718_v36 }
0x3956   :  { %21310 = vmatmul.mubr.msk.f32.vlgmr.msra.gmra.mrb[130].mxu1 %vm59_vm0, %v13160_v32 }
0x3957   :  { %22948 = vmatpush3.bf16.msra.mxu1 %v24827_v7  ;;  %21443 = vmatprep.mubr.msk.f32.mxu1 %vm23719_vm2, %v24868_v33 }
0x3958   :  { %22949 = vmatprep.subr.bf16.mxu1 %v23718_v36 }
0x395b   :  { %22951 = vmatpush3.bf16.msra.mxu1 %v24844_v19 }
0x395c   :  { %22952 = vmatprep.subr.bf16.mxu1 %v23718_v36 }
0x395f   :  { %22954 = vmatpush3.bf16.msra.mxu1 %v24848_v35 }
0x3960   :  { %22955 = vmatprep.subr.bf16.mxu1 %v23718_v36 }
0x3963   :  { %22957 = vmatpush3.bf16.msra.mxu1 %v24852_v43 }
0x3964   :  { %21465 = vmatprep.subr.mxu1 %v24868_v33 }
0x3a29   :  { %v13649_v12 = vpop.f32.mrb[130].mxu1 }
0x3a2a   :  { %v13654_v63 = vsel %vm59_vm0, %v13649_v12, 0.0  ;;  %v13661_v1 = vmul.f32 %v13649_v12, %v13649_v12  ;;  %v21311_v28 = vpop.f32.mrb[131].mxu1 }
0x3a2b   :  { %v13655_v4 = vrot.slane %v13654_v63, 4  ;;  %v14124_v28 = vld [vmem:[#allocation4 + $0xd20] sm:$0xff] }
0x3a2c   :  { %v13662_v55 = vsel %vm59_vm0, %v13661_v1, 0.0 }
0x3a2d   :  { %v13656_v47 = vadd.f32 %v13655_v4, %v13654_v63  ;;  %v13663_v51 = vrot.slane %v13662_v55, 4  ;;  %v14123_v63 = vld [vmem:[#allocation4 + $0xd18] sm:$0xff]  ;;  %v14125_v4 = vld [vmem:[#allocation4 + $0xd28] sm:$0xff] }
0x3a2f   :  { %v13657_v27 = vrot.slane %v13656_v47, 2  ;;  %v13664_v29 = vadd.f32 %v13663_v51, %v13662_v55  ;;  %v14280_v55 = vld [vmem:[#allocation4 + $0xd70] sm:$0xff]  ;;  %v14282_v51 = vld [vmem:[#allocation4 + $0xd80] sm:$0xff] }
0x3a31   :  { %v13658_v50 = vadd.f32 %v13657_v27, %v13656_v47  ;;  %v13665_v37 = vrot.slane %v13664_v29, 2  ;;  %v22932_v47 = vpack.c.bf16 %v14125_v4, %v14124_v28  ;;  %v14281_v27 = vld [vmem:[#allocation4 + $0xd78] sm:$0xff]  ;;  %v14770_v28 = vld [vmem:[#allocation4 + $0xdc8] sm:$0xff] }
0x3a33   :  { %v13659_v52 = vrot.slane %v13658_v50, 1  ;;  %v13666_v39 = vadd.f32 %v13665_v37, %v13664_v29 }
0x3a35   :  { %v13660_v6 = vadd.f32 %v13659_v52, %v13658_v50  ;;  %v13667_v42 = vrot.slane %v13666_v39, 1  ;;  %v22935_v50 = vpack.c.bf16 %v14281_v27, %v14280_v55  ;;  %v14283_v52 = vld [vmem:[#allocation4 + $0xd88] sm:$0xff]  ;;  %v14946_v55 = vld [vmem:[#allocation4 + $0xe38] sm:$0xff] }
0x3a36   :  { %v22938_v37 = vpack.c.bf16 %v14283_v52, %v14282_v51  ;;  %v14687_v27 = vld [vmem:[#allocation4 + $0xdb8] sm:$0xff]  ;;  %v14947_v52 = vld [vmem:[#allocation4 + $0xe40] sm:$0xff] }
0x3a37   :  { %21329 = vmatmul.mubr.msk.f32.vlgmr.msra.gmra.mrb[150].mxu0 %vm59_vm0, %v13660_v6  ;;  %v13668_v2 = vadd.f32 %v13667_v42, %v13666_v39  ;;  %v14284_v39 = vld [vmem:[#allocation4 + $0xd90] sm:$0xff]  ;;  %v14285_v42 = vld [vmem:[#allocation4 + $0xd98] sm:$0xff] }
0x3a38   :  { %22900 = vmatpush3.bf16.msra.mxu0 %v24827_v7  ;;  %21347 = vmatprep.mubr.msk.f32.mxu0 %vm23719_vm2, %v24868_v33 }
0x3a39   :  { %22901 = vmatprep.subr.bf16.mxu0 %v23718_v36 }
0x3a3c   :  { %22903 = vmatpush3.bf16.msra.mxu0 %v24844_v19 }
0x3a3d   :  { %22904 = vmatprep.subr.bf16.mxu0 %v23718_v36 }
0x3a40   :  { %22906 = vmatpush3.bf16.msra.mxu0 %v24848_v35 }
0x3a41   :  { %22907 = vmatprep.subr.bf16.mxu0 %v23718_v36 }
0x3a44   :  { %22909 = vmatpush3.bf16.msra.mxu0 %v24852_v43 }
0x3a45   :  { %21350 = vmatprep.subr.mxu0 %v24868_v33 }
0x3a47   :  { %21348 = vmatmul.mubr.msk.f32.vlgmr.msra.gmra.mrb[152].mxu0 %vm59_vm0, %v13668_v2 }
0x3a48   :  { %21351 = vmatpush3.msra.mxu0 %v24884_v62  ;;  %21352 = vmatprep.mubr.msk.f32.mxu0 %vm23719_vm2, %v24868_v33 }
0x3a49   :  { %21355 = vmatprep.subr.mxu0 %v24868_v33 }
0x3b0a   :  { %v13738_v5 = vpop.f32.mrb[150].mxu0 }
0x3b0b   :  { %v13815_v11 = vmul.f32 0.015625, %v13738_v5  ;;  %v21330_v22 = vpop.f32.mrb[151].mxu0 }
0x3b0c   :  { %v14286_v22 = vld [vmem:[#allocation4 + $0xda0] sm:$0xff] }
0x3b0d   :  { %21353 = vmatmul.mubr.msk.f32.vlgmr.msra.gmra.mrb[154].mxu0 %vm852_vm3, %v13815_v11  ;;  %v13817_v13 = vmul.f32 %v13815_v11, %v13815_v11  ;;  %v22941_v11 = vpack.c.bf16 %v14285_v42, %v14284_v39  ;;  %v14949_v39 = vld [vmem:[#allocation4 + $0xe50] sm:$0xff]  ;;  %v14950_v42 = vld [vmem:[#allocation4 + $0xe58] sm:$0xff] }
0x3b0e   :  { %21356 = vmatpush3.msra.mxu0 %v24884_v62  ;;  %21357 = vmatprep.mubr.msk.f32.mxu0 %vm23719_vm2, %v24868_v33 }
0x3b0f   :  { %21360 = vmatprep.subr.mxu0 %v24868_v33 }
0x3b1a   :  { %v13811_v0 = vpop.f32.mrb[152].mxu0 }
0x3b1b   :  { %v13816_v21 = vmul.f32 0.015625, %v13811_v0  ;;  %v21349_v14 = vpop.f32.mrb[153].mxu0  ;;  %v14287_v0 = vld [vmem:[#allocation4 + $0xda8] sm:$0xff] }
0x3b1d   :  { %v13818_v9 = vsub.f32 %v13816_v21, %v13817_v13  ;;  %v22944_v13 = vpack.c.bf16 %v14287_v0, %v14286_v22  ;;  %v15220_v0 = vld [vmem:[#allocation4 + $0xc0] sm:$0xff] }
0x3b1f   :  { %v13819_v10 = vadd.f32 1e-05, %v13818_v9 }
0x3b21   :  { %23643 = vrsqrt.f32 %v13819_v10 }
0x3b2b   :  { %v23644_v20 = vpop.eup %23643 }
0x3b2c   :  { %21358 = vmatmul.mubr.msk.f32.vlgmr.msra.gmra.mrb[156].mxu0 %vm852_vm3, %v23644_v20 }
0x3b2d   :  { %21362 = vmatprep.mubr.msk.f32.mxu0 %vm23719_vm2, %v24868_v33 }
0x3be0   :  { %v13890_v26 = vpop.f32.mrb[154].mxu0 }
0x3be1   :  { %v13970_v30 = vrot.slane %v13890_v26, %v23889_v61  ;;  %v21354_v31 = vpop.f32.mrb[155].mxu0 }
0x3be3   :  { %v13971_v32 = vsub.f32 %v13649_v12, %v13970_v30  ;;  %v14122_v12 = vld [vmem:[#allocation4 + $0xd10] sm:$0xff] }
0x3be4   :  { %v22929_v1 = vpack.c.bf16 %v14123_v63, %v14122_v12  ;;  %v14943_v12 = vld [vmem:[#allocation4 + $0xe20] sm:$0xff]  ;;  %v14944_v63 = vld [vmem:[#allocation4 + $0xe28] sm:$0xff] }
0x3be5   :  { %v22970_v4 = vpack.c.bf16 %v14944_v63, %v14943_v12  ;;  %v15228_v12 = vld [vmem:[#allocation4 + $0x100] sm:$0xff]  ;;  %v15229_v63 = vld [vmem:[#allocation4 + $0x108] sm:$0xff] }
0x3bff   :  { %v13963_v34 = vpop.f32.mrb[156].mxu0 }
0x3c00   :  { %v13975_v38 = vrot.slane %v13963_v34, %v23889_v61  ;;  %v21359_v18 = vpop.f32.mrb[157].mxu0 }
0x3c02   :  { %v13976_v41 = vmul.f32 %v13975_v38, %v13971_v32 }
0x3c04   :  { %v13977_v44 = vmax.f32 %v13976_v41, 0.0 }
0x3c06   :  { %21361 = vmatpush3.msra.mxu0 %v13977_v44 }
0x3c07   :  { %21363 = vmatmul.mubr.msk.f32.vlgmr.msra.gmra.mrb[158].mxu0 %vm852_vm3, %v24916_v23  ;;  %21365 = vmatprep.subr.mxu0 %v24868_v33  ;;  %v14130_v23 = vld [vmem:[#allocation4 + $0xd50] sm:$0xff] }
0x3c08   :  { %21366 = vmatpush3.msra.mxu0 %v13977_v44  ;;  %21367 = vmatprep.mubr.msk.f32.mxu0 %vm23719_vm2, %v24868_v33  ;;  %v22917_v15 = vpack.c.bf16 %v14131_v49, %v14130_v23 }
0x3c09   :  { %22910 = vmatprep.subr.bf16.mxu0 %v23718_v36 }
0x3c0b   :  { %21368 = vmatmul.mubr.msk.f32.vlgmr.msra.gmra.mrb[160].mxu0 %vm852_vm3, %v24918_v25  ;;  %v14118_v25 = vld [vmem:[#allocation4 + $0xcf0] sm:$0xff] }
0x3c0c   :  { %22912 = vmatpush3.bf16.msra.mxu0 %v22911_v40  ;;  %21386 = vmatprep.mubr.msk.f32.mxu0 %vm23719_vm2, %v24868_v33  ;;  %v22923_v58 = vpack.c.bf16 %v14119_v57, %v14118_v25 }
0x3c0d   :  { %22913 = vmatprep.subr.bf16.mxu0 %v23718_v36 }
0x3c10   :  { %22915 = vmatpush3.bf16.msra.mxu0 %v22914_v48 }
0x3c11   :  { %22916 = vmatprep.subr.bf16.mxu0 %v23718_v36 }
0x3c14   :  { %22918 = vmatpush3.bf16.msra.mxu0 %v22917_v15 }
0x3c15   :  { %22919 = vmatprep.subr.bf16.mxu0 %v23718_v36 }
0x3c18   :  { %22921 = vmatpush3.bf16.msra.mxu0 %v22920_v3 }
0x3c19   :  { %22922 = vmatprep.subr.bf16.mxu0 %v23718_v36 }
0x3c1b   :  { %21387 = vmatmul.mubr.msk.f32.vlgmr.msra.gmra.mrb[162].mxu0 %vm59_vm0, %v13977_v44 }
0x3c1c   :  { %22924 = vmatpush3.bf16.msra.mxu0 %v22923_v58  ;;  %21405 = vmatprep.mubr.msk.f32.mxu0 %vm23719_vm2, %v24868_v33 }
0x3c1d   :  { %22925 = vmatprep.subr.bf16.mxu0 %v23718_v36 }
0x3c20   :  { %22927 = vmatpush3.bf16.msra.mxu0 %v22926_v46 }
0x3c21   :  { %22928 = vmatprep.subr.bf16.mxu0 %v23718_v36 }
0x3c24   :  { %22930 = vmatpush3.bf16.msra.mxu0 %v22929_v1 }
0x3c25   :  { %22931 = vmatprep.subr.bf16.mxu0 %v23718_v36 }
0x3c28   :  { %22933 = vmatpush3.bf16.msra.mxu0 %v22932_v47  ;;  %v14945_v47 = vld [vmem:[#allocation4 + $0xe30] sm:$0xff] }
0x3c29   :  { %22934 = vmatprep.subr.bf16.mxu0 %v23718_v36  ;;  %v22974_v51 = vpack.c.bf16 %v14946_v55, %v14945_v47  ;;  %v15232_v55 = vld [vmem:[#allocation4 + $0x120] sm:$0xff] }
0x3cda   :  { %v14044_v6 = vpop.f32.mrb[158].mxu0 }
0x3cdb   :  { %v21364_v29 = vpop.f32.mrb[159].mxu0  ;;  %21406 = vmatmul.mubr.msk.f32.vlgmr.msra.gmra.mrb[162].mxu0 %vm59_vm0, %v14044_v6  ;;  %v14948_v6 = vld [vmem:[#allocation4 + $0xe48] sm:$0xff] }
0x3cdc   :  { %22936 = vmatpush3.bf16.msra.mxu0 %v22935_v50  ;;  %21424 = vmatprep.mubr.msk.f32.mxu0 %vm23719_vm2, %v24868_v33  ;;  %v14852_v50 = vld [vmem:[#allocation4 + $0xdd0] sm:$0xff]  ;;  %v14853_v29 = vld [vmem:[#allocation4 + $0xdd8] sm:$0xff] }
0x3cdd   :  { %22937 = vmatprep.subr.bf16.mxu0 %v23718_v36 }
0x3cde   :  { %v14114_v2 = vpop.f32.mrb[160].mxu0 }
0x3cdf   :  { %v21369_v5 = vpop.f32.mrb[161].mxu0 }
0x3ce0   :  { %22939 = vmatpush3.bf16.msra.mxu0 %v22938_v37  ;;  %v22978_v37 = vpack.c.bf16 %v14948_v6, %v14947_v52  ;;  %v14935_v5 = vld [vmem:[#allocation4 + $0xde0] sm:$0xff]  ;;  %v15235_v52 = vld [vmem:[#allocation4 + $0x138] sm:$0xff] }
0x3ce1   :  { %22940 = vmatprep.subr.bf16.mxu0 %v23718_v36 }
0x3ce4   :  { %22942 = vmatpush3.bf16.msra.mxu0 %v22941_v11  ;;  %v14936_v11 = vld [vmem:[#allocation4 + $0xde8] sm:$0xff] }
0x3ce5   :  { %22943 = vmatprep.subr.bf16.mxu0 %v23718_v36  ;;  %v22986_v22 = vpack.c.bf16 %v14936_v11, %v14935_v5 }
0x3ce8   :  { %22945 = vmatpush3.bf16.msra.mxu0 %v22944_v13  ;;  %v15221_v13 = vld [vmem:[#allocation4 + $0xc8] sm:$0xff] }
0x3ce9   :  { %22958 = vmatprep.subr.bf16.mxu0 %v23718_v36 }
0x3ceb   :  { %21425 = vmatmul.mubr.msk.f32.vlgmr.msra.gmra.mrb[162].mxu0 %vm59_vm0, %v14114_v2  ;;  %v22982_v2 = vpack.c.bf16 %v14950_v42, %v14949_v39 }
0x3cec   :  { %22960 = vmatpush3.bf16.msra.mxu0 %v24827_v7  ;;  %21462 = vmatprep.mubr.msk.f32.mxu0 %vm23719_vm2, %v24868_v33 }
0x3ced   :  { %22961 = vmatprep.subr.bf16.mxu0 %v23718_v36 }
0x3cf0   :  { %22963 = vmatpush3.bf16.msra.mxu0 %v24844_v19 }
0x3cf1   :  { %22964 = vmatprep.subr.bf16.mxu0 %v23718_v36 }
0x3cf4   :  { %22966 = vmatpush3.bf16.msra.mxu0 %v24848_v35 }
0x3cf5   :  { %22967 = vmatprep.subr.bf16.mxu0 %v23718_v36 }
0x3cf8   :  { %22969 = vmatpush3.bf16.msra.mxu0 %v24852_v43 }
0x3cf9   :  { %21470 = vmatprep.subr.mxu0 %v24868_v33 }
0x3dbe   :  { %v14357_v21 = vpop.f32.mrb[162].mxu0 }
0x3dbf   :  { %v14362_v7 = vsel %vm59_vm0, %v14357_v21, 0.0  ;;  %v14369_v14 = vmul.f32 %v14357_v21, %v14357_v21  ;;  %v21426_v9 = vpop.f32.mrb[163].mxu0 }
0x3dc0   :  { %v14363_v10 = vrot.slane %v14362_v7, 4 }
0x3dc1   :  { %v14370_v20 = vsel %vm59_vm0, %v14369_v14, 0.0  ;;  %v15223_v14 = vld [vmem:[#allocation4 + $0xd8] sm:$0xff] }
0x3dc2   :  { %v14364_v26 = vadd.f32 %v14363_v10, %v14362_v7  ;;  %v14371_v19 = vrot.slane %v14370_v20, 4  ;;  %v25082_v7 = vpack.c.bf16 %v15221_v13, %v15220_v0  ;;  %v15225_v10 = vld [vmem:[#allocation4 + $0xe8] sm:$0xff] }
0x3dc4   :  { %v14365_v30 = vrot.slane %v14364_v26, 2  ;;  %v14372_v31 = vadd.f32 %v14371_v19, %v14370_v20  ;;  %v15227_v19 = vld [vmem:[#allocation4 + $0xf8] sm:$0xff] }
0x3dc6   :  { %v14366_v32 = vadd.f32 %v14365_v30, %v14364_v26  ;;  %v14373_v35 = vrot.slane %v14372_v31, 2  ;;  %v15226_v26 = vld [vmem:[#allocation4 + $0xf0] sm:$0xff] }
0x3dc7   :  { %v25093_v30 = vpack.c.bf16 %v15227_v19, %v15226_v26 }
0x3dc8   :  { %v14367_v34 = vrot.slane %v14366_v32, 1  ;;  %v14374_v38 = vadd.f32 %v14373_v35, %v14372_v31  ;;  %v14937_v31 = vld [vmem:[#allocation4 + $0xdf0] sm:$0xff] }
0x3dca   :  { %v14368_v18 = vadd.f32 %v14367_v34, %v14366_v32  ;;  %v14375_v43 = vrot.slane %v14374_v38, 1  ;;  %v14938_v32 = vld [vmem:[#allocation4 + $0xdf8] sm:$0xff] }
0x3dcc   :  { %v14376_v41 = vadd.f32 %v14375_v43, %v14374_v38  ;;  %21444 = vmatmul.mubr.msk.f32.vlgmr.msra.gmra.mrb[132].mxu1 %vm59_vm0, %v14368_v18  ;;  %v22990_v38 = vpack.c.bf16 %v14938_v32, %v14937_v31  ;;  %v14939_v43 = vld [vmem:[#allocation4 + $0xe00] sm:$0xff] }
0x3dcd   :  { %21466 = vmatpush3.msra.mxu1 %v24884_v62  ;;  %21467 = vmatprep.mubr.msk.f32.mxu1 %vm23719_vm2, %v24868_v33 }
0x3dce   :  { %21463 = vmatmul.mubr.msk.f32.vlgmr.msra.gmra.mrb[164].mxu0 %vm59_vm0, %v14376_v41  ;;  %v14940_v41 = vld [vmem:[#allocation4 + $0xe08] sm:$0xff] }
0x3dcf   :  { %21471 = vmatpush3.msra.mxu0 %v24884_v62  ;;  %21472 = vmatprep.mubr.msk.f32.mxu0 %vm23719_vm2, %v24868_v33  ;;  %v14686_v62 = vld [vmem:[#allocation4 + $0xdb0] sm:$0xff] }
0x3e9f   :  { %v14446_v44 = vpop.f32.mrb[132].mxu1 }
0x3ea0   :  { %v14523_v45 = vmul.f32 0.015625, %v14446_v44  ;;  %v21445_v24 = vpop.f32.mrb[133].mxu1 }
0x3ea1   :  { %v14519_v40 = vpop.f32.mrb[164].mxu0 }
0x3ea2   :  { %v14525_v56 = vmul.f32 %v14523_v45, %v14523_v45  ;;  %v14524_v17 = vmul.f32 0.015625, %v14519_v40  ;;  %v21464_v48 = vpop.f32.mrb[165].mxu0  ;;  %21468 = vmatmul.mubr.msk.f32.vlgmr.msra.gmra.mrb[134].mxu1 %vm852_vm3, %v14523_v45  ;;  %v22994_v45 = vpack.c.bf16 %v14940_v41, %v14939_v43  ;;  %v14941_v40 = vld [vmem:[#allocation4 + $0xe10] sm:$0xff] }
0x3ea3   :  { %21477 = vmatprep.mubr.msk.f32.mxu1 %vm852_vm3, %v14686_v62  ;;  %v15116_v62 = vld [vmem:[#allocation4 + $0xe78] sm:$0xff] }
0x3ea4   :  { %v14526_v23 = vsub.f32 %v14524_v17, %v14525_v56  ;;  %v14942_v56 = vld [vmem:[#allocation4 + $0xe18] sm:$0xff] }
0x3ea5   :  { %v22998_v48 = vpack.c.bf16 %v14942_v56, %v14941_v40  ;;  %v15543_v56 = vld [vmem:[#allocation4 + $0xea0] sm:$0xff] }
0x3ea6   :  { %v14527_v49 = vadd.f32 1e-05, %v14526_v23  ;;  %v15113_v23 = vld [vmem:[#allocation4 + $0xe60] sm:$0xff] }
0x3ea8   :  { %23645 = vrsqrt.f32 %v14527_v49  ;;  %v15114_v49 = vld [vmem:[#allocation4 + $0xe68] sm:$0xff] }
0x3eb2   :  { %v23646_v15 = vpop.eup %23645 }
0x3eb3   :  { %21473 = vmatmul.mubr.msk.f32.vlgmr.msra.gmra.mrb[166].mxu0 %vm852_vm3, %v23646_v15  ;;  %v23002_v15 = vpack.c.bf16 %v15114_v49, %v15113_v23  ;;  %v15626_v23 = vld [vmem:[#allocation4 + $0xeb0] sm:$0xff]  ;;  %v15627_v49 = vld [vmem:[#allocation4 + $0xeb8] sm:$0xff] }
0x3eb4   :  { %21482 = vmatprep.mubr.msk.f32.mxu0 %vm852_vm3, %v14769_v53  ;;  %v15115_v53 = vld [vmem:[#allocation4 + $0xe70] sm:$0xff] }
0x3f75   :  { %v14598_v54 = vpop.f32.mrb[134].mxu1 }
0x3f76   :  { %v14678_v3 = vrot.slane %v14598_v54, %v23889_v61  ;;  %v21469_v25 = vpop.f32.mrb[135].mxu1  ;;  %v23006_v54 = vpack.c.bf16 %v15116_v62, %v15115_v53  ;;  %v15710_v53 = vld [vmem:[#allocation4 + $0xec8] sm:$0xff]  ;;  %v25182_v62 = vld [vmem:[#allocation4 + $0xed0] sm:$0xff] }
0x3f77   :  { %v15118_v25 = vld [vmem:[#allocation4 + $0xe88] sm:$0xff] }
0x3f78   :  { %v14679_v57 = vsub.f32 %v14357_v21, %v14678_v3  ;;  %v15222_v21 = vld [vmem:[#allocation4 + $0xd0] sm:$0xff]  ;;  %v15117_v3 = vld [vmem:[#allocation4 + $0xe80] sm:$0xff] }
0x3f79   :  { %v25085_v9 = vpack.c.bf16 %v15223_v14, %v15222_v21 }
0x3f86   :  { %v14671_v58 = vpop.f32.mrb[166].mxu0 }
0x3f87   :  { %v14683_v59 = vrot.slane %v14671_v58, %v23889_v61  ;;  %v21474_v60 = vpop.f32.mrb[167].mxu0  ;;  %v15119_v58 = vld [vmem:[#allocation4 + $0xe90] sm:$0xff] }
0x3f89   :  { %v14684_v46 = vmul.f32 %v14683_v59, %v14679_v57  ;;  %v23010_v57 = vpack.c.bf16 %v15118_v25, %v15117_v3  ;;  %v15120_v59 = vld [vmem:[#allocation4 + $0xe98] sm:$0xff] }
0x3f8a   :  { %v23014_v60 = vpack.c.bf16 %v15120_v59, %v15119_v58 }
0x3f8b   :  { %v14685_v1 = vmax.f32 %v14684_v46, 0.0  ;;  %v25106_v46 = vld [vmem:[%s25438_s2 + $0x30] sm:$0xff] }
0x3f8d   :  { %21475 = vmatprep.subr.mxu1 %v14685_v1  ;;  %21480 = vmatprep.subr.mxu0 %v14685_v1 }
0x3f8e   :  { %21476 = vmatpush3.msra.mxu1 %v14685_v1  ;;  %21481 = vmatpush3.msra.mxu0 %v14685_v1 }
0x3f8f   :  { %21483 = vmatmul.mubr.msk.f32.vlgmr.msra.gmra.mrb[168].mxu0 %vm852_vm3, %v14770_v28  ;;  %21485 = vmatprep.subr.mxu1 %v14685_v1  ;;  %v15230_v28 = vld [vmem:[#allocation4 + $0x110] sm:$0xff] }
0x3f90   :  { %21478 = vmatmul.mubr.msk.f32.vlgmr.msra.gmra.mrb[136].mxu1 %vm852_vm3, %v14687_v27  ;;  %22971 = vmatprep.subr.bf16.mxu0 %v22970_v4  ;;  %v15233_v27 = vld [vmem:[#allocation4 + $0x128] sm:$0xff] }
0x3f91   :  { %21486 = vmatpush3.msra.mxu1 %v14685_v1  ;;  %21487 = vmatprep.mubr.msk.f32.mxu1 %vm852_vm3, %v14852_v50  ;;  %v25112_v1 = vpack.c.bf16 %v15229_v63, %v15228_v12  ;;  %v25120_v50 = vpack.c.bf16 %v15233_v27, %v15232_v55  ;;  %v16006_v55 = vld [vmem:[#allocation4 + $0x1070] sm:$0xff]  ;;  %v16007_v27 = vld [vmem:[#allocation4 + $0x1078] sm:$0xff] }
0x3f92   :  { %22973 = vmatpush3.bf16.msra.mxu0 %v22970_v4  ;;  %23018 = vmatprep.subr.bf16.mxu1 %v23718_v36  ;;  %v15231_v4 = vld [vmem:[#allocation4 + $0x118] sm:$0xff] }
0x3f93   :  { %22975 = vmatprep.subr.bf16.mxu0 %v22974_v51  ;;  %v25116_v47 = vpack.c.bf16 %v15231_v4, %v15230_v28  ;;  %v15974_v28 = vld [vmem:[#allocation4 + $0xf70] sm:$0xff]  ;;  %v15975_v4 = vld [vmem:[#allocation4 + $0xf78] sm:$0xff] }
0x3f94   :  { %21488 = vmatmul.mubr.msk.f32.vlgmr.msra.gmra.mrb[138].mxu1 %vm852_vm3, %v14853_v29 }
0x3f95   :  { %21579 = vmatprep.mubr.msk.f32.mxu1 %vm23719_vm2, %v24868_v33  ;;  %23020 = vmatpush3.bf16.msra.mxu1 %v25082_v7  ;;  %v15224_v33 = vld [vmem:[#allocation4 + $0xe0] sm:$0xff] }
0x3f96   :  { %22977 = vmatpush3.bf16.msra.mxu0 %v22974_v51  ;;  %23021 = vmatprep.subr.bf16.mxu1 %v23718_v36  ;;  %v25089_v20 = vpack.c.bf16 %v15225_v10, %v15224_v33  ;;  %v15234_v51 = vld [vmem:[#allocation4 + $0x130] sm:$0xff] }
0x3f97   :  { %22979 = vmatprep.subr.bf16.mxu0 %v22978_v37  ;;  %v25124_v6 = vpack.c.bf16 %v15235_v52, %v15234_v51 }
0x3f99   :  { %23023 = vmatpush3.bf16.msra.mxu1 %v25085_v9 }
0x3f9a   :  { %22981 = vmatpush3.bf16.msra.mxu0 %v22978_v37  ;;  %23024 = vmatprep.subr.bf16.mxu1 %v23718_v36 }
0x3f9b   :  { %22983 = vmatprep.subr.bf16.mxu0 %v22982_v2 }
0x3f9d   :  { %23026 = vmatpush3.bf16.msra.mxu1 %v25089_v20 }
0x3f9e   :  { %22985 = vmatpush3.bf16.msra.mxu0 %v22982_v2  ;;  %23027 = vmatprep.subr.bf16.mxu1 %v23718_v36 }
0x3f9f   :  { %22987 = vmatprep.subr.bf16.mxu0 %v22986_v22 }
0x3fa1   :  { %23029 = vmatpush3.bf16.msra.mxu1 %v25093_v30 }
0x3fa2   :  { %23030 = vmatprep.subr.bf16.mxu1 %v23718_v36 }
0x3fa5   :  { %23032 = vmatpush3.bf16.msra.mxu1 %v25112_v1 }
0x3fa6   :  { %23033 = vmatprep.subr.bf16.mxu1 %v23718_v36 }
0x3fa9   :  { %23035 = vmatpush3.bf16.msra.mxu1 %v25116_v47 }
0x3faa   :  { %23036 = vmatprep.subr.bf16.mxu1 %v23718_v36 }
0x3fad   :  { %23038 = vmatpush3.bf16.msra.mxu1 %v25120_v50 }
0x3fae   :  { %23039 = vmatprep.subr.bf16.mxu1 %v23718_v36 }
0x3fb1   :  { %23041 = vmatpush3.bf16.msra.mxu1 %v25124_v6 }
0x3fb2   :  { %23042 = vmatprep.subr.bf16.mxu1 %v23718_v36 }
0x4062   :  { %v21484_v35 = vpop.f32.mrb[168].mxu0 }
0x4063   :  { %v14843_v34 = vpop.f32.mrb[169].mxu0  ;;  %v21479_v18 = vpop.f32.mrb[136].mxu1 }
0x4064   :  { %21506 = vmatprep.mubr.msk.f32.mxu0 %vm59_vm0, %v14843_v34  ;;  %v14760_v44 = vpop.f32.mrb[137].mxu1 }
0x4065   :  { %21507 = vmatmul.mubr.msk.f32.vlgmr.msra.gmra.mrb[170].mxu0 %vm59_vm0, %v21484_v35  ;;  %v25159_v35 = vld [vmem:[#allocation4 + $0x140] sm:$0xff] }
0x4066   :  { %22989 = vmatpush3.bf16.msra.mxu0 %v22986_v22  ;;  %21525 = vmatprep.mubr.msk.f32.mxu0 %vm59_vm0, %v14760_v44 }
0x4067   :  { %22991 = vmatprep.subr.bf16.mxu0 %v22990_v38  ;;  %v21489_v24 = vpop.f32.mrb[138].mxu1 }
0x4068   :  { %v14926_v17 = vpop.f32.mrb[139].mxu1 }
0x406a   :  { %22993 = vmatpush3.bf16.msra.mxu0 %v22990_v38 }
0x406b   :  { %22995 = vmatprep.subr.bf16.mxu0 %v22994_v45 }
0x406e   :  { %22997 = vmatpush3.bf16.msra.mxu0 %v22994_v45 }
0x406f   :  { %22999 = vmatprep.subr.bf16.mxu0 %v22998_v48 }
0x4072   :  { %23001 = vmatpush3.bf16.msra.mxu0 %v22998_v48  ;;  %v15544_v48 = vld [vmem:[#allocation4 + $0xea8] sm:$0xff] }
0x4073   :  { %23003 = vmatprep.subr.bf16.mxu0 %v23002_v15 }
0x4075   :  { %21526 = vmatmul.mubr.msk.f32.vlgmr.msra.gmra.mrb[170].mxu0 %vm59_vm0, %v21479_v18 }
0x4076   :  { %23005 = vmatpush3.bf16.msra.mxu0 %v23002_v15  ;;  %21544 = vmatprep.mubr.msk.f32.mxu0 %vm59_vm0, %v14926_v17  ;;  %v15709_v15 = vld [vmem:[#allocation4 + $0xec0] sm:$0xff] }
0x4077   :  { %23007 = vmatprep.subr.bf16.mxu0 %v23006_v54 }
0x407a   :  { %23009 = vmatpush3.bf16.msra.mxu0 %v23006_v54  ;;  %v25184_v54 = vld [vmem:[#allocation4 + $0xee0] sm:$0xff] }
0x407b   :  { %23011 = vmatprep.subr.bf16.mxu0 %v23010_v57 }
0x407e   :  { %23013 = vmatpush3.bf16.msra.mxu0 %v23010_v57 }
0x407f   :  { %23015 = vmatprep.subr.bf16.mxu0 %v23014_v60 }
0x4082   :  { %23017 = vmatpush3.bf16.msra.mxu0 %v23014_v60 }
0x4083   :  { %21617 = vmatprep.subr.mxu0 %v25106_v46 }
0x4085   :  { %21545 = vmatmul.mubr.msk.f32.vlgmr.msra.gmra.mrb[170].mxu0 %vm59_vm0, %v21489_v24 }
0x4086   :  { %21619 = vmatprep.mubr.msk.f32.mxu0 %vm23719_vm2, %v25106_v46  ;;  %21618 = vmatpush3.msra.mxu0 %v25159_v35 }
0x4087   :  { %21622 = vmatprep.subr.mxu0 %v25106_v46 }
0x4158   :  { %v25128_v29 = vpop.f32.mrb[170].mxu0 }
0x4159   :  { %v15212_v37 = vmul.f32 %v25128_v29, %v25128_v29  ;;  %v25132_v39 = vpop.f32.mrb[171].mxu0 }
0x415a   :  { %v15204_v42 = vadd.f32 %v25128_v29, %v25132_v39  ;;  %v15211_v2 = vmul.f32 %v25132_v39, %v25132_v39 }
0x415c   :  { %v15205_v5 = vrot.slane %v15204_v42, 4  ;;  %v15213_v11 = vadd.f32 %v15212_v37, %v15211_v2  ;;  %v15958_v37 = vld [vmem:[#allocation4 + $0xef0] sm:$0xff]  ;;  %v15976_v2 = vld [vmem:[#allocation4 + $0xf80] sm:$0xff] }
0x415e   :  { %v15206_v22 = vadd.f32 %v15205_v5, %v15204_v42  ;;  %v15214_v33 = vrot.slane %v15213_v11, 4  ;;  %v23098_v42 = vpack.c.bf16 %v15975_v4, %v15974_v28  ;;  %v23130_v5 = vpack.c.bf16 %v16007_v27, %v16006_v55  ;;  %v15982_v55 = vld [vmem:[#allocation4 + $0xfb0] sm:$0xff] }
0x4160   :  { %v15207_v0 = vrot.slane %v15206_v22, 2  ;;  %v15215_v10 = vadd.f32 %v15214_v33, %v15213_v11  ;;  %v15990_v11 = vld [vmem:[#allocation4 + $0xff0] sm:$0xff]  ;;  %v25206_v33 = vld [vmem:[#allocation4 + $0xed8] sm:$0xff] }
0x4162   :  { %v15208_v13 = vadd.f32 %v15207_v0, %v15206_v22  ;;  %v15216_v26 = vrot.slane %v15215_v10, 2  ;;  %v15991_v22 = vld [vmem:[#allocation4 + $0xff8] sm:$0xff]  ;;  %v15977_v0 = vld [vmem:[#allocation4 + $0xf88] sm:$0xff] }
0x4164   :  { %v15209_v21 = vrot.slane %v15208_v13, 1  ;;  %v15217_v19 = vadd.f32 %v15216_v26, %v15215_v10  ;;  %v25210_v26 = vld [vmem:[#allocation4 + $0xee8] sm:$0xff] }
0x4166   :  { %v15210_v14 = vadd.f32 %v15209_v21, %v15208_v13  ;;  %v15218_v31 = vrot.slane %v15217_v19, 1  ;;  %v16008_v21 = vld [vmem:[#allocation4 + $0x1080] sm:$0xff] }
0x4168   :  { %21580 = vmatmul.mubr.f32.vlgmr.msra.gmra.mrb[140].mxu1 %v15210_v14  ;;  %v15219_v32 = vadd.f32 %v15218_v31, %v15217_v19  ;;  %v16009_v14 = vld [vmem:[#allocation4 + $0x1088] sm:$0xff]  ;;  %v15960_v31 = vld [vmem:[#allocation4 + $0xf00] sm:$0xff] }
0x4169   :  { %23044 = vmatpush3.bf16.msra.mxu1 %v25082_v7  ;;  %21614 = vmatprep.mubr.msk.f32.mxu1 %vm23719_vm2, %v25106_v46 }
0x416a   :  { %23045 = vmatprep.subr.bf16.mxu1 %v23718_v36 }
0x416d   :  { %23047 = vmatpush3.bf16.msra.mxu1 %v25085_v9 }
0x416e   :  { %23048 = vmatprep.subr.bf16.mxu1 %v23718_v36 }
0x4171   :  { %23050 = vmatpush3.bf16.msra.mxu1 %v25089_v20 }
0x4172   :  { %23051 = vmatprep.subr.bf16.mxu1 %v23718_v36 }
0x4175   :  { %23053 = vmatpush3.bf16.msra.mxu1 %v25093_v30 }
0x4176   :  { %23054 = vmatprep.subr.bf16.mxu1 %v23718_v36 }
0x4179   :  { %23056 = vmatpush3.bf16.msra.mxu1 %v25112_v1 }
0x417a   :  { %23057 = vmatprep.subr.bf16.mxu1 %v23718_v36 }
0x417d   :  { %23059 = vmatpush3.bf16.msra.mxu1 %v25116_v47 }
0x417e   :  { %23060 = vmatprep.subr.bf16.mxu1 %v23718_v36 }
0x4181   :  { %23062 = vmatpush3.bf16.msra.mxu1 %v25120_v50 }
0x4182   :  { %23063 = vmatprep.subr.bf16.mxu1 %v23718_v36 }
0x4185   :  { %23065 = vmatpush3.bf16.msra.mxu1 %v25124_v6 }
0x4186   :  { %23083 = vmatprep.subr.bf16.mxu1 %v23994_v8 }
0x4188   :  { %21615 = vmatmul.mubr.f32.vlgmr.msra.gmra.mrb[142].mxu1 %v15219_v32  ;;  %v15961_v32 = vld [vmem:[#allocation4 + $0xf08] sm:$0xff] }
0x4189   :  { %23085 = vmatpush3.bf16.msra.mxu1 %v23994_v8  ;;  %21657 = vmatprep.mubr.msk.f32.mxu1 %vm367_vm1, %v15709_v15  ;;  %v15980_v15 = vld [vmem:[#allocation4 + $0xfa0] sm:$0xff] }
0x418a   :  { %23087 = vmatprep.subr.bf16.mxu1 %v23996_v16 }
0x418d   :  { %23089 = vmatpush3.bf16.msra.mxu1 %v23996_v16 }
0x4190   :  { %21658 = vmatmul.mubr.msk.f32.vlgmr.msra.gmra.mrb[144].mxu1 %vm367_vm1, %v15710_v53 }
0x4191   :  { %21671 = vmatprep.mubr.msk.f32.mxu1 %vm2565_vm4, %v25184_v54 }
0x423b   :  { %v15302_v34 = vpop.f32.mrb[140].mxu1 }
0x423c   :  { %v15376_v38 = vmul.f32 0.00390625, %v15302_v34  ;;  %v21581_v18 = vpop.f32.mrb[141].mxu1  ;;  %v23132_v34 = vpack.c.bf16 %v15991_v22, %v15990_v11  ;;  %v15966_v11 = vld [vmem:[#allocation4 + $0xf30] sm:$0xff]  ;;  %v15967_v22 = vld [vmem:[#allocation4 + $0xf38] sm:$0xff] }
0x423d   :  { %v15978_v18 = vld [vmem:[#allocation4 + $0xf90] sm:$0xff] }
0x423e   :  { %21620 = vmatmul.mubr.msk.f32.vlgmr.msra.gmra.mrb[172].mxu0 %vm852_vm3, %v15376_v38  ;;  %v15378_v41 = vmul.f32 %v15376_v38, %v15376_v38  ;;  %v23102_v38 = vpack.c.bf16 %v15977_v0, %v15976_v2  ;;  %v16015_v2 = vld [vmem:[#allocation4 + $0x10b8] sm:$0xff] }
0x423f   :  { %21623 = vmatpush3.msra.mxu0 %v25159_v35  ;;  %21624 = vmatprep.mubr.msk.f32.mxu0 %vm23719_vm2, %v25106_v46 }
0x4240   :  { %23067 = vmatprep.subr.bf16.mxu0 %v23994_v8 }
0x425b   :  { %v15372_v43 = vpop.f32.mrb[142].mxu1 }
0x425c   :  { %v15377_v44 = vmul.f32 0.00390625, %v15372_v43  ;;  %v21616_v45 = vpop.f32.mrb[143].mxu1  ;;  %v23134_v43 = vpack.c.bf16 %v16009_v14, %v16008_v21  ;;  %v15984_v14 = vld [vmem:[#allocation4 + $0xfc0] sm:$0xff] }
0x425d   :  { %v15979_v45 = vld [vmem:[#allocation4 + $0xf98] sm:$0xff] }
0x425e   :  { %v15379_v24 = vsub.f32 %v15377_v44, %v15378_v41  ;;  %v15992_v41 = vld [vmem:[#allocation4 + $0x1000] sm:$0xff]  ;;  %v15993_v44 = vld [vmem:[#allocation4 + $0x1008] sm:$0xff] }
0x4260   :  { %v15380_v40 = vadd.f32 1e-05, %v15379_v24  ;;  %v16010_v24 = vld [vmem:[#allocation4 + $0x1090] sm:$0xff] }
0x4262   :  { %23647 = vrsqrt.f32 %v15380_v40  ;;  %v16011_v40 = vld [vmem:[#allocation4 + $0x1098] sm:$0xff] }
0x4263   :  { %v23138_v53 = vpack.c.bf16 %v16011_v40, %v16010_v24  ;;  %v15986_v40 = vld [vmem:[#allocation4 + $0xfd0] sm:$0xff] }
0x426c   :  { %v23648_v17 = vpop.eup %23647 }
0x426d   :  { %21625 = vmatmul.mubr.msk.f32.vlgmr.msra.gmra.mrb[174].mxu0 %vm852_vm3, %v23648_v17  ;;  %v15962_v17 = vld [vmem:[#allocation4 + $0xf10] sm:$0xff] }
0x426e   :  { %23069 = vmatpush3.bf16.msra.mxu0 %v23994_v8  ;;  %21635 = vmatprep.mubr.msk.f32.mxu0 %vm367_vm1, %v15543_v56  ;;  %v23104_v56 = vpack.c.bf16 %v15961_v32, %v15960_v31  ;;  %v15998_v31 = vld [vmem:[#allocation4 + $0x1030] sm:$0xff]  ;;  %v15999_v32 = vld [vmem:[#allocation4 + $0x1038] sm:$0xff] }
0x426f   :  { %23071 = vmatprep.subr.bf16.mxu0 %v23996_v16 }
0x4272   :  { %23073 = vmatpush3.bf16.msra.mxu0 %v23996_v16 }
0x4273   :  { %23075 = vmatprep.subr.bf16.mxu0 %v23994_v8 }
0x4275   :  { %21636 = vmatmul.mubr.msk.f32.vlgmr.msra.gmra.mrb[176].mxu0 %vm367_vm1, %v15544_v48  ;;  %v15963_v48 = vld [vmem:[#allocation4 + $0xf18] sm:$0xff] }
0x4276   :  { %23077 = vmatpush3.bf16.msra.mxu0 %v23994_v8  ;;  %21646 = vmatprep.mubr.msk.f32.mxu0 %vm367_vm1, %v15626_v23  ;;  %v23136_v23 = vpack.c.bf16 %v15993_v44, %v15992_v41  ;;  %v15968_v41 = vld [vmem:[#allocation4 + $0xf40] sm:$0xff]  ;;  %v15969_v44 = vld [vmem:[#allocation4 + $0xf48] sm:$0xff] }
0x4277   :  { %23079 = vmatprep.subr.bf16.mxu0 %v23996_v16 }
0x427a   :  { %23081 = vmatpush3.bf16.msra.mxu0 %v23996_v16 }
0x427d   :  { %21647 = vmatmul.mubr.msk.f32.vlgmr.msra.gmra.mrb[178].mxu0 %vm367_vm1, %v15627_v49  ;;  %v23106_v49 = vpack.c.bf16 %v15979_v45, %v15978_v18  ;;  %v16017_v18 = vld [vmem:[#allocation4 + $0x10c8] sm:$0xff]  ;;  %v23148_v45 = vpack.c.bf16 %v15999_v32, %v15998_v31 }
0x427e   :  { %21664 = vmatprep.mubr.msk.f32.mxu0 %vm2565_vm4, %v25182_v62  ;;  %v16041_v31 = vld [vmem:[#allocation4 + $0x1188] sm:$0xff] }
0x4311   :  { %v15452_v8 = vpop.f32.mrb[172].mxu0 }
0x4312   :  { %v15532_v16 = vrot.slane %v15452_v8, %v23889_v61  ;;  %v21621_v3 = vpop.f32.mrb[173].mxu0  ;;  %v15994_v8 = vld [vmem:[#allocation4 + $0x1010] sm:$0xff] }
0x4313   :  { %v15981_v3 = vld [vmem:[#allocation4 + $0xfa8] sm:$0xff] }
0x4314   :  { %v15533_v25 = vsub.f32 %v25132_v39, %v15532_v16  ;;  %v15534_v57 = vsub.f32 %v25128_v29, %v15532_v16  ;;  %v15959_v39 = vld [vmem:[#allocation4 + $0xef8] sm:$0xff]  ;;  %v23110_v4 = vpack.c.bf16 %v15981_v3, %v15980_v15 }
0x4315   :  { %v23100_v19 = vpack.c.bf16 %v15959_v39, %v15958_v37  ;;  %v15995_v16 = vld [vmem:[#allocation4 + $0x1018] sm:$0xff]  ;;  %v15996_v37 = vld [vmem:[#allocation4 + $0x1020] sm:$0xff]  ;;  %v15997_v39 = vld [vmem:[#allocation4 + $0x1028] sm:$0xff] }
0x4316   :  { %v23140_v28 = vpack.c.bf16 %v15995_v16, %v15994_v8  ;;  %v23144_v0 = vpack.c.bf16 %v15997_v39, %v15996_v37  ;;  %v16019_v15 = vld [vmem:[#allocation4 + $0x10d8] sm:$0xff]  ;;  %v15970_v8 = vld [vmem:[#allocation4 + $0xf50] sm:$0xff] }
0x4317   :  { %v15971_v16 = vld [vmem:[#allocation4 + $0xf58] sm:$0xff] }
0x4340   :  { %v15525_v58 = vpop.f32.mrb[174].mxu0 }
0x4341   :  { %v15538_v59 = vrot.slane %v15525_v58, %v23889_v61  ;;  %v21626_v60 = vpop.f32.mrb[175].mxu0  ;;  %v23108_v58 = vpack.c.bf16 %v15963_v48, %v15962_v17  ;;  %v16000_v17 = vld [vmem:[#allocation4 + $0x1040] sm:$0xff]  ;;  %v16001_v48 = vld [vmem:[#allocation4 + $0x1048] sm:$0xff] }
0x4342   :  { %v15965_v60 = vld [vmem:[#allocation4 + $0xf28] sm:$0xff]  ;;  %v23152_v3 = vpack.c.bf16 %v16001_v48, %v16000_v17  ;;  %v16027_v17 = vld [vmem:[#allocation4 + $0x1118] sm:$0xff]  ;;  %v16044_v48 = vld [vmem:[#allocation4 + $0x11a0] sm:$0xff] }
0x4343   :  { %v25194_v12 = vmul.f32 %v15538_v59, %v15533_v25  ;;  %v25196_v63 = vmul.f32 %v15538_v59, %v15534_v57  ;;  %v16012_v25 = vld [vmem:[#allocation4 + $0x10a0] sm:$0xff]  ;;  %v16013_v57 = vld [vmem:[#allocation4 + $0x10a8] sm:$0xff] }
0x4344   :  { %v15964_v59 = vld [vmem:[#allocation4 + $0xf20] sm:$0xff]  ;;  %v23142_v27 = vpack.c.bf16 %v16013_v57, %v16012_v25 }
0x4345   :  { %v15541_v51 = vmax.f32 %v25194_v12, 0.0  ;;  %v15542_v52 = vmax.f32 %v25196_v63, 0.0  ;;  %v15988_v57 = vld [vmem:[#allocation4 + $0xfe0] sm:$0xff] }
0x4347   :  { %v23090_v29 = vpack.c.bf16 %v15542_v52, %v15541_v51 }
0x4348   :  { %v25204_v13 = vpop.f32.mrb[176].mxu0 }
0x4349   :  { %23091 = vmatprep.subr.bf16.mxu0 %v23090_v29  ;;  %23095 = vmatprep.subr.bf16.mxu1 %v23090_v29  ;;  %v25208_v10 = vpop.f32.mrb[177].mxu0 }
0x434a   :  { %23093 = vmatpush3.bf16.msra.mxu0 %v23090_v29  ;;  %23097 = vmatpush3.bf16.msra.mxu1 %v23090_v29  ;;  %v15983_v29 = vld [vmem:[#allocation4 + $0xfb8] sm:$0xff] }
0x434b   :  { %23099 = vmatprep.subr.bf16.mxu0 %v23098_v42  ;;  %23131 = vmatprep.subr.bf16.mxu1 %v23130_v5  ;;  %v16014_v42 = vld [vmem:[#allocation4 + $0x10b0] sm:$0xff]  ;;  %v23112_v5 = vpack.c.bf16 %v15965_v60, %v15964_v59  ;;  %v23114_v21 = vpack.c.bf16 %v15983_v29, %v15982_v55  ;;  %v16003_v60 = vld [vmem:[#allocation4 + $0x1058] sm:$0xff]  ;;  %v16021_v55 = vld [vmem:[#allocation4 + $0x10e8] sm:$0xff] }
0x434c   :  { %v16002_v59 = vld [vmem:[#allocation4 + $0x1050] sm:$0xff]  ;;  %v15972_v29 = vld [vmem:[#allocation4 + $0xf60] sm:$0xff] }
0x434d   :  { %21665 = vmatmul.mubr.msk.f32.vlgmr.msra.gmra.mrb[180].mxu0 %vm2565_vm4, %v25206_v33  ;;  %21672 = vmatmul.mubr.msk.f32.vlgmr.msra.gmra.mrb[146].mxu1 %vm2565_vm4, %v25210_v26  ;;  %v23156_v37 = vpack.c.bf16 %v16003_v60, %v16002_v59  ;;  %v16048_v59 = vld [vmem:[#allocation4 + $0x11c0] sm:$0xff]  ;;  %v16049_v60 = vld [vmem:[#allocation4 + $0x11c8] sm:$0xff] }
0x434e   :  { %23101 = vmatpush3.bf16.msra.mxu0 %v23100_v19  ;;  %23133 = vmatpush3.bf16.msra.mxu1 %v23132_v34  ;;  %v23146_v19 = vpack.c.bf16 %v16015_v2, %v16014_v42  ;;  %v15985_v34 = vld [vmem:[#allocation4 + $0xfc8] sm:$0xff] }
0x434f   :  { %23103 = vmatprep.subr.bf16.mxu0 %v23102_v38  ;;  %23135 = vmatprep.subr.bf16.mxu1 %v23134_v43  ;;  %v16016_v38 = vld [vmem:[#allocation4 + $0x10c0] sm:$0xff]  ;;  %v23116_v43 = vpack.c.bf16 %v15967_v22, %v15966_v11  ;;  %v23118_v24 = vpack.c.bf16 %v15985_v34, %v15984_v14  ;;  %v15973_v42 = vld [vmem:[#allocation4 + $0xf68] sm:$0xff]  ;;  %v16039_v11 = vld [vmem:[#allocation4 + $0x1178] sm:$0xff] }
0x4350   :  { %v23128_v22 = vpack.c.bf16 %v15973_v42, %v15972_v29  ;;  %v16023_v14 = vld [vmem:[#allocation4 + $0x10f8] sm:$0xff]  ;;  %v21648_v32 = vpop.f32.mrb[178].mxu0  ;;  %v16034_v42 = vld [vmem:[#allocation4 + $0x1150] sm:$0xff] }
0x4351   :  { %v15700_v34 = vpop.f32.mrb[179].mxu0 }
0x4352   :  { %23105 = vmatpush3.bf16.msra.mxu0 %v23104_v56  ;;  %23137 = vmatpush3.bf16.msra.mxu1 %v23136_v23  ;;  %v23150_v56 = vpack.c.bf16 %v16017_v18, %v16016_v38  ;;  %v15987_v23 = vld [vmem:[#allocation4 + $0xfd8] sm:$0xff] }
0x4353   :  { %23107 = vmatprep.subr.bf16.mxu0 %v23106_v49  ;;  %23139 = vmatprep.subr.bf16.mxu1 %v23138_v53  ;;  %v16018_v49 = vld [vmem:[#allocation4 + $0x10d0] sm:$0xff]  ;;  %v23120_v53 = vpack.c.bf16 %v15969_v44, %v15968_v41  ;;  %v23122_v25 = vpack.c.bf16 %v15987_v23, %v15986_v40  ;;  %v16025_v41 = vld [vmem:[#allocation4 + $0x1108] sm:$0xff] }
0x4354   :  { %16118 = vmatprep.mubr.f32.mxu0 %v15700_v34  ;;  %v16042_v44 = vld [vmem:[#allocation4 + $0x1190] sm:$0xff]  ;;  %v16045_v23 = vld [vmem:[#allocation4 + $0x11a8] sm:$0xff] }
0x4356   :  { %23109 = vmatpush3.bf16.msra.mxu0 %v23108_v58  ;;  %23141 = vmatpush3.bf16.msra.mxu1 %v23140_v28  ;;  %v23154_v58 = vpack.c.bf16 %v16019_v15, %v16018_v49  ;;  %v15989_v28 = vld [vmem:[#allocation4 + $0xfe8] sm:$0xff]  ;;  %v23174_v15 = vpack.c.bf16 %v16045_v23, %v16044_v48 }
0x4357   :  { %23111 = vmatprep.subr.bf16.mxu0 %v23110_v4  ;;  %23143 = vmatprep.subr.bf16.mxu1 %v23142_v27  ;;  %v16020_v4 = vld [vmem:[#allocation4 + $0x10e0] sm:$0xff]  ;;  %v23124_v27 = vpack.c.bf16 %v15971_v16, %v15970_v8  ;;  %v23126_v39 = vpack.c.bf16 %v15989_v28, %v15988_v57  ;;  %v16029_v8 = vld [vmem:[#allocation4 + $0x1128] sm:$0xff]  ;;  %v16046_v16 = vld [vmem:[#allocation4 + $0x11b0] sm:$0xff] }
0x4358   :  { %v23158_v2 = vpack.c.bf16 %v16021_v55, %v16020_v4  ;;  %v16030_v57 = vld [vmem:[#allocation4 + $0x1130] sm:$0xff]  ;;  %v16032_v4 = vld [vmem:[#allocation4 + $0x1140] sm:$0xff]  ;;  %v16033_v55 = vld [vmem:[#allocation4 + $0x1148] sm:$0xff] }
0x435a   :  { %23113 = vmatpush3.bf16.msra.mxu0 %v23112_v5  ;;  %23145 = vmatpush3.bf16.msra.mxu1 %v23144_v0  ;;  %v16038_v5 = vld [vmem:[#allocation4 + $0x1170] sm:$0xff] }
0x435b   :  { %23115 = vmatprep.subr.bf16.mxu0 %v23114_v21  ;;  %23147 = vmatprep.subr.bf16.mxu1 %v23146_v19  ;;  %v23162_v0 = vpack.c.bf16 %v16039_v11, %v16038_v5  ;;  %v16022_v21 = vld [vmem:[#allocation4 + $0x10f0] sm:$0xff]  ;;  %v16040_v19 = vld [vmem:[#allocation4 + $0x1180] sm:$0xff]  ;;  %v16053_v11 = vld [vmem:[#allocation4 + $0x11e8] sm:$0xff] }
0x435c   :  { %v23164_v38 = vpack.c.bf16 %v16023_v14, %v16022_v21  ;;  %v23166_v18 = vpack.c.bf16 %v16041_v31, %v16040_v19  ;;  %v16052_v5 = vld [vmem:[#allocation4 + $0x11e0] sm:$0xff]  ;;  %v21659_v21 = vpop.f32.mrb[144].mxu1  ;;  %v16005_v31 = vld [vmem:[#allocation4 + $0x1068] sm:$0xff] }
0x435d   :  { %v15783_v14 = vpop.f32.mrb[145].mxu1  ;;  %v16004_v19 = vld [vmem:[#allocation4 + $0x1060] sm:$0xff] }
0x435e   :  { %23117 = vmatpush3.bf16.msra.mxu0 %v23116_v43  ;;  %23149 = vmatpush3.bf16.msra.mxu1 %v23148_v45  ;;  %v16024_v43 = vld [vmem:[#allocation4 + $0x1100] sm:$0xff]  ;;  %v16043_v45 = vld [vmem:[#allocation4 + $0x1198] sm:$0xff]  ;;  %v23160_v34 = vpack.c.bf16 %v16005_v31, %v16004_v19 }
0x435f   :  { %23119 = vmatprep.subr.bf16.mxu0 %v23118_v24  ;;  %23151 = vmatprep.subr.bf16.mxu1 %v23150_v56  ;;  %v23168_v24 = vpack.c.bf16 %v16025_v41, %v16024_v43  ;;  %v23170_v40 = vpack.c.bf16 %v16043_v45, %v16042_v44  ;;  %v16026_v56 = vld [vmem:[#allocation4 + $0x1110] sm:$0xff] }
0x4360   :  { %v23172_v49 = vpack.c.bf16 %v16027_v17, %v16026_v56 }
0x4362   :  { %23121 = vmatpush3.bf16.msra.mxu0 %v23120_v53  ;;  %23153 = vmatpush3.bf16.msra.mxu1 %v23152_v3  ;;  %v16028_v53 = vld [vmem:[#allocation4 + $0x1120] sm:$0xff]  ;;  %v16047_v3 = vld [vmem:[#allocation4 + $0x11b8] sm:$0xff] }
0x4363   :  { %23123 = vmatprep.subr.bf16.mxu0 %v23122_v25  ;;  %23155 = vmatprep.subr.bf16.mxu1 %v23154_v58  ;;  %v23178_v25 = vpack.c.bf16 %v16047_v3, %v16046_v16  ;;  %v16031_v58 = vld [vmem:[#allocation4 + $0x1138] sm:$0xff] }
0x4364   :  { %v23180_v28 = vpack.c.bf16 %v16031_v58, %v16030_v57 }
0x4366   :  { %23125 = vmatpush3.bf16.msra.mxu0 %v23124_v27  ;;  %23157 = vmatpush3.bf16.msra.mxu1 %v23156_v37  ;;  %v16050_v27 = vld [vmem:[#allocation4 + $0x11d0] sm:$0xff]  ;;  %v16051_v37 = vld [vmem:[#allocation4 + $0x11d8] sm:$0xff] }
0x4367   :  { %23127 = vmatprep.subr.bf16.mxu0 %v23126_v39  ;;  %23159 = vmatprep.subr.bf16.mxu1 %v23158_v2  ;;  %v23184_v39 = vpack.c.bf16 %v16033_v55, %v16032_v4  ;;  %v23186_v29 = vpack.c.bf16 %v16051_v37, %v16050_v27  ;;  %v16035_v2 = vld [vmem:[#allocation4 + $0x1158] sm:$0xff] }
0x436a   :  { %23129 = vmatpush3.bf16.msra.mxu0 %v23128_v22  ;;  %v23188_v22 = vpack.c.bf16 %v16035_v2, %v16034_v42  ;;  %23161 = vmatpush3.bf16.msra.mxu1 %v23160_v34 }
0x436b   :  { %23163 = vmatprep.subr.bf16.mxu0 %v23162_v0  ;;  %v23190_v0 = vpack.c.bf16 %v16053_v11, %v16052_v5  ;;  %23194 = vmatprep.subr.bf16.mxu1 %v23718_v36 }
0x436d   :  { %16119 = vmatmul.mubr.f32.vlgmr.msra.gmra.mrb[182].mxu0 %v25208_v10  ;;  %v23176_v10 = vpack.c.bf16 %v16029_v8, %v16028_v53 }
0x436e   :  { %16123 = vmatprep.mubr.f32.mxu0 %v21648_v32  ;;  %23165 = vmatpush3.bf16.msra.mxu0 %v23164_v38  ;;  %v16036_v32 = vld [vmem:[#allocation4 + $0x1160] sm:$0xff]  ;;  %v16037_v38 = vld [vmem:[#allocation4 + $0x1168] sm:$0xff] }
0x436f   :  { %23167 = vmatprep.subr.bf16.mxu0 %v23166_v18  ;;  %v23192_v18 = vpack.c.bf16 %v16037_v38, %v16036_v32 }
0x4371   :  { %16124 = vmatmul.mubr.f32.gmra.mrb[184].mxu0 %v25204_v13  ;;  %v23182_v13 = vpack.c.bf16 %v16049_v60, %v16048_v59 }
0x4372   :  { %23169 = vmatpush3.bf16.msra.mxu0 %v23168_v24 }
0x4373   :  { %23171 = vmatprep.subr.bf16.mxu0 %v23170_v40 }
0x4376   :  { %23173 = vmatpush3.bf16.msra.mxu0 %v23172_v49 }
0x4377   :  { %23175 = vmatprep.subr.bf16.mxu0 %v23174_v15 }
0x437a   :  { %23177 = vmatpush3.bf16.msra.mxu0 %v23176_v10 }
0x437b   :  { %23179 = vmatprep.subr.bf16.mxu0 %v23178_v25 }
0x437e   :  { %23181 = vmatpush3.bf16.msra.mxu0 %v23180_v28 }
0x437f   :  { %23183 = vmatprep.subr.bf16.mxu0 %v23182_v13 }
0x4382   :  { %23185 = vmatpush3.bf16.msra.mxu0 %v23184_v39 }
0x4383   :  { %23187 = vmatprep.subr.bf16.mxu0 %v23186_v29 }
0x4386   :  { %23189 = vmatpush3.bf16.msra.mxu0 %v23188_v22 }
0x4387   :  { %23191 = vmatprep.subr.bf16.mxu0 %v23190_v0 }
0x438a   :  { %23193 = vmatpush3.bf16.msra.mxu0 %v23192_v18 }
0x438b   :  { %23218 = vmatprep.subr.bf16.mxu0 %v23718_v36 }
0x4420   :  { %v21666_v43 = vpop.f32.mrb[180].mxu0  ;;  %v21673_v41 = vpop.f32.mrb[146].mxu1 }
0x4421   :  { %v15866_v44 = vpop.f32.mrb[181].mxu0  ;;  %v15949_v45 = vpop.f32.mrb[147].mxu1 }
0x4422   :  { %16193 = vmatprep.mubr.f32.mxu1 %v15866_v44  ;;  %16268 = vmatprep.mubr.f32.mxu0 %v15949_v45 }
0x4423   :  { %16194 = vmatmul.mubr.f32.vlgmr.msra.gmra.mrb[148].mxu1 %v15783_v14  ;;  %16269 = vmatmul.mubr.f32.vlgmr.msra.gmra.mrb[186].mxu0 %v15541_v51 }
0x4424   :  { %16198 = vmatprep.mubr.f32.mxu1 %v21666_v43  ;;  %16273 = vmatprep.mubr.f32.mxu0 %v21673_v41 }
0x4425   :  { %23196 = vmatpush3.bf16.msra.mxu1 %v25082_v7  ;;  %23220 = vmatpush3.bf16.msra.mxu0 %v25082_v7 }
0x4426   :  { %23197 = vmatprep.subr.bf16.mxu1 %v23718_v36  ;;  %23221 = vmatprep.subr.bf16.mxu0 %v23718_v36 }
0x4427   :  { %16199 = vmatmul.mubr.f32.gmra.mrb[150].mxu1 %v21659_v21  ;;  %16274 = vmatmul.mubr.f32.gmra.mrb[188].mxu0 %v15542_v52 }
0x4428   :  { %21706 = vmatprep.mubr.msk.f32.mxu1 %vm23719_vm2, %v25106_v46  ;;  %21741 = vmatprep.mubr.msk.f32.mxu0 %vm23719_vm2, %v25106_v46 }
0x4429   :  { %23199 = vmatpush3.bf16.msra.mxu1 %v25085_v9  ;;  %23223 = vmatpush3.bf16.msra.mxu0 %v25085_v9 }
0x442a   :  { %23200 = vmatprep.subr.bf16.mxu1 %v23718_v36  ;;  %23224 = vmatprep.subr.bf16.mxu0 %v23718_v36 }
0x442d   :  { %23202 = vmatpush3.bf16.msra.mxu1 %v25089_v20  ;;  %23226 = vmatpush3.bf16.msra.mxu0 %v25089_v20 }
0x442e   :  { %23203 = vmatprep.subr.bf16.mxu1 %v23718_v36  ;;  %23227 = vmatprep.subr.bf16.mxu0 %v23718_v36 }
0x4431   :  { %23205 = vmatpush3.bf16.msra.mxu1 %v25093_v30  ;;  %23229 = vmatpush3.bf16.msra.mxu0 %v25093_v30 }
0x4432   :  { %23206 = vmatprep.subr.bf16.mxu1 %v23718_v36  ;;  %23230 = vmatprep.subr.bf16.mxu0 %v23718_v36 }
0x4435   :  { %23208 = vmatpush3.bf16.msra.mxu1 %v25112_v1  ;;  %23232 = vmatpush3.bf16.msra.mxu0 %v25112_v1 }
0x4436   :  { %23209 = vmatprep.subr.bf16.mxu1 %v23718_v36  ;;  %23233 = vmatprep.subr.bf16.mxu0 %v23718_v36 }
0x4439   :  { %23211 = vmatpush3.bf16.msra.mxu1 %v25116_v47  ;;  %23235 = vmatpush3.bf16.msra.mxu0 %v25116_v47 }
0x443a   :  { %23212 = vmatprep.subr.bf16.mxu1 %v23718_v36  ;;  %23236 = vmatprep.subr.bf16.mxu0 %v23718_v36 }
0x443d   :  { %23214 = vmatpush3.bf16.msra.mxu1 %v25120_v50  ;;  %23238 = vmatpush3.bf16.msra.mxu0 %v25120_v50 }
0x443e   :  { %23215 = vmatprep.subr.bf16.mxu1 %v23718_v36  ;;  %23239 = vmatprep.subr.bf16.mxu0 %v23718_v36 }
0x4440   :  { %v19353_v12 = vpop.f32.mrb[182].mxu0 }
0x4441   :  { %v19354_v63 = vpop.f32.mrb[183].mxu0  ;;  %23217 = vmatpush3.bf16.msra.mxu1 %v25124_v6  ;;  %23241 = vmatpush3.bf16.msra.mxu0 %v25124_v6 }
0x4442   :  { %v19355_v51 = vadd.f32 %v19354_v63, %v19353_v12  ;;  %21744 = vmatprep.subr.mxu1 %v25106_v46  ;;  %v16783_v12 = vld [vmem:[#allocation4 + $0x12f0] sm:$0xff]  ;;  %v16784_v63 = vld [vmem:[#allocation4 + $0x12f8] sm:$0xff] }
0x4444   :  { %v19356_v52 = vpop.f32.mrb[184].mxu0 }
0x4445   :  { %v19357_v24 = vpop.f32.mrb[185].mxu0 }
0x4446   :  { %v19358_v40 = vadd.f32 %v19357_v24, %v19356_v52  ;;  %v16785_v52 = vld [vmem:[#allocation4 + $0x1300] sm:$0xff]  ;;  %v16786_v24 = vld [vmem:[#allocation4 + $0x1308] sm:$0xff] }
0x44f6   :  { %v19391_v56 = vpop.f32.mrb[148].mxu1  ;;  %v19429_v17 = vpop.f32.mrb[186].mxu0 }
0x44f7   :  { %v19392_v48 = vpop.f32.mrb[149].mxu1  ;;  %v19430_v23 = vpop.f32.mrb[187].mxu0 }
0x44f8   :  { %v19393_v49 = vadd.f32 %v19392_v48, %v19391_v56  ;;  %v19431_v15 = vadd.f32 %v19430_v23, %v19429_v17  ;;  %v16789_v17 = vld [vmem:[#allocation4 + $0x1320] sm:$0xff]  ;;  %v16790_v48 = vld [vmem:[#allocation4 + $0x1328] sm:$0xff] }
0x44f9   :  { %v23294_v23 = vpack.c.bf16 %v16790_v48, %v16789_v17  ;;  %v16777_v17 = vld [vmem:[#allocation4 + $0x12c0] sm:$0xff]  ;;  %v16778_v48 = vld [vmem:[#allocation4 + $0x12c8] sm:$0xff] }
0x44fa   :  { %v16196_v53 = vadd.f32 %v19393_v49, %v19355_v51  ;;  %v19394_v8 = vpop.f32.mrb[150].mxu1  ;;  %v19432_v16 = vpop.f32.mrb[188].mxu0  ;;  %v23282_v51 = vpack.c.bf16 %v16784_v63, %v16783_v12  ;;  %v16792_v49 = vld [vmem:[#allocation4 + $0x1338] sm:$0xff]  ;;  %v16774_v12 = vld [vmem:[#allocation4 + $0x12a8] sm:$0xff] }
0x44fb   :  { %v19395_v3 = vpop.f32.mrb[151].mxu1  ;;  %v19433_v10 = vpop.f32.mrb[189].mxu0 }
0x44fc   :  { %v25259_v25 = vadd.f32 %v19431_v15, %v16196_v53  ;;  %v19396_v57 = vadd.f32 %v19395_v3, %v19394_v8  ;;  %v19434_v58 = vadd.f32 %v19433_v10, %v19432_v16  ;;  %23283 = vmatprep.subr.bf16.mxu0 %v23282_v51  ;;  %v16793_v53 = vld [vmem:[#allocation4 + $0x1340] sm:$0xff]  ;;  %v16794_v8 = vld [vmem:[#allocation4 + $0x1348] sm:$0xff]  ;;  %v16795_v3 = vld [vmem:[#allocation4 + $0x1350] sm:$0xff] }
0x44fd   :  { %v23302_v16 = vpack.c.bf16 %v16794_v8, %v16793_v53  ;;  %v16796_v10 = vld [vmem:[#allocation4 + $0x1358] sm:$0xff]  ;;  %v16779_v53 = vld [vmem:[#allocation4 + $0x12d0] sm:$0xff] }
0x44fe   :  { %v16201_v59 = vadd.f32 %v19396_v57, %v19358_v40  ;;  %v16286_v28 = vmul.f32 %v25259_v25, %v25259_v25  ;;  %v16788_v40 = vld [vmem:[#allocation4 + $0x1318] sm:$0xff]  ;;  %v23306_v57 = vpack.c.bf16 %v16796_v10, %v16795_v3  ;;  %v16763_v10 = vld [vmem:[#allocation4 + $0x1250] sm:$0xff] }
0x44ff   :  { %v16780_v8 = vld [vmem:[#allocation4 + $0x12d8] sm:$0xff] }
0x4500   :  { %v25261_v60 = vadd.f32 %v19434_v58, %v16201_v59  ;;  %v23274_v3 = vpack.c.bf16 %v16780_v8, %v16779_v53 }
0x4502   :  { %v16279_v13 = vadd.f32 %v25261_v60, %v25259_v25  ;;  %v16287_v4 = vmul.f32 %v25261_v60, %v25261_v60 }
0x4504   :  { %v16280_v55 = vrot.slane %v16279_v13, 4  ;;  %v16288_v27 = vadd.f32 %v16287_v4, %v16286_v28 }
0x4506   :  { %v16281_v37 = vadd.f32 %v16280_v55, %v16279_v13  ;;  %v16289_v39 = vrot.slane %v16288_v27, 4 }
0x4508   :  { %v16282_v29 = vrot.slane %v16281_v37, 2  ;;  %v16290_v42 = vadd.f32 %v16289_v39, %v16288_v27 }
0x450a   :  { %v16283_v2 = vadd.f32 %v16282_v29, %v16281_v37  ;;  %v16291_v5 = vrot.slane %v16290_v42, 2 }
0x450c   :  { %v16284_v11 = vrot.slane %v16283_v2, 1  ;;  %v16292_v22 = vadd.f32 %v16291_v5, %v16290_v42 }
0x450e   :  { %v16285_v0 = vadd.f32 %v16284_v11, %v16283_v2  ;;  %v16293_v21 = vrot.slane %v16292_v22, 1  ;;  %v16767_v11 = vld [vmem:[#allocation4 + $0x1270] sm:$0xff] }
0x4510   :  { %21707 = vmatmul.mubr.f32.vlgmr.msra.gmra.mrb[152].mxu1 %v16285_v0  ;;  %v16294_v14 = vadd.f32 %v16293_v21, %v16292_v22  ;;  %v16768_v22 = vld [vmem:[#allocation4 + $0x1278] sm:$0xff]  ;;  %v16751_v0 = vld [vmem:[#allocation4 + $0x11f0] sm:$0xff]  ;;  %v16769_v21 = vld [vmem:[#allocation4 + $0x1280] sm:$0xff] }
0x4511   :  { %21745 = vmatpush3.msra.mxu1 %v25159_v35  ;;  %21746 = vmatprep.mubr.msk.f32.mxu1 %vm23719_vm2, %v25106_v46 }
0x4512   :  { %21742 = vmatmul.mubr.f32.vlgmr.msra.gmra.mrb[190].mxu0 %v16294_v14  ;;  %21749 = vmatprep.subr.mxu1 %v25106_v46  ;;  %v16770_v14 = vld [vmem:[#allocation4 + $0x1288] sm:$0xff] }
0x4513   :  { %23285 = vmatpush3.bf16.msra.mxu0 %v23282_v51  ;;  %v16757_v51 = vld [vmem:[#allocation4 + $0x1220] sm:$0xff] }
0x45e3   :  { %v16361_v19 = vpop.f32.mrb[152].mxu1 }
0x45e4   :  { %v16435_v31 = vmul.f32 0.00390625, %v16361_v19  ;;  %v21708_v32 = vpop.f32.mrb[153].mxu1 }
0x45e5   :  { %v16431_v34 = vpop.f32.mrb[190].mxu0  ;;  %v16753_v32 = vld [vmem:[#allocation4 + $0x1200] sm:$0xff] }
0x45e6   :  { %v16437_v38 = vmul.f32 %v16435_v31, %v16435_v31  ;;  %v16436_v18 = vmul.f32 0.00390625, %v16431_v34  ;;  %v21743_v43 = vpop.f32.mrb[191].mxu0  ;;  %21747 = vmatmul.mubr.msk.f32.vlgmr.msra.gmra.mrb[154].mxu1 %vm852_vm3, %v16435_v31  ;;  %v23254_v31 = vpack.c.bf16 %v16770_v14, %v16769_v21  ;;  %v16754_v34 = vld [vmem:[#allocation4 + $0x1208] sm:$0xff] }
0x45e7   :  { %21750 = vmatpush3.msra.mxu1 %v25159_v35  ;;  %21751 = vmatprep.mubr.msk.f32.mxu1 %vm23719_vm2, %v25106_v46  ;;  %v23286_v35 = vpack.c.bf16 %v16786_v24, %v16785_v52  ;;  %v16787_v46 = vld [vmem:[#allocation4 + $0x1310] sm:$0xff]  ;;  %v23256_v43 = vpack.c.bf16 %v16754_v34, %v16753_v32  ;;  %v16758_v52 = vld [vmem:[#allocation4 + $0x1228] sm:$0xff] }
0x45e8   :  { %v16438_v41 = vsub.f32 %v16436_v18, %v16437_v38  ;;  %v23290_v56 = vpack.c.bf16 %v16788_v40, %v16787_v46  ;;  %v16771_v38 = vld [vmem:[#allocation4 + $0x1290] sm:$0xff]  ;;  %v16772_v18 = vld [vmem:[#allocation4 + $0x1298] sm:$0xff]  ;;  %v23264_v46 = vpack.c.bf16 %v16758_v52, %v16757_v51 }
0x45e9   :  { %23287 = vmatprep.subr.bf16.mxu0 %v23286_v35  ;;  %v16775_v24 = vld [vmem:[#allocation4 + $0x12b0] sm:$0xff] }
0x45ea   :  { %v16439_v44 = vadd.f32 1e-05, %v16438_v41  ;;  %23289 = vmatpush3.bf16.msra.mxu0 %v23286_v35  ;;  %v23258_v41 = vpack.c.bf16 %v16772_v18, %v16771_v38  ;;  %v16776_v35 = vld [vmem:[#allocation4 + $0x12b8] sm:$0xff]  ;;  %v16759_v40 = vld [vmem:[#allocation4 + $0x1230] sm:$0xff] }
0x45eb   :  { %23291 = vmatprep.subr.bf16.mxu0 %v23290_v56 }
0x45ec   :  { %23649 = vrsqrt.f32 %v16439_v44  ;;  %v16756_v44 = vld [vmem:[#allocation4 + $0x1218] sm:$0xff] }
0x45ee   :  { %23293 = vmatpush3.bf16.msra.mxu0 %v23290_v56  ;;  %v16760_v56 = vld [vmem:[#allocation4 + $0x1238] sm:$0xff] }
0x45ef   :  { %23295 = vmatprep.subr.bf16.mxu0 %v23294_v23 }
0x45f2   :  { %23297 = vmatpush3.bf16.msra.mxu0 %v23294_v23  ;;  %v23268_v23 = vpack.c.bf16 %v16760_v56, %v16759_v40  ;;  %v25349_v56 = vld [vmem:[#allocation4 + $0x140] sm:$0xff] }
0x45f6   :  { %v23650_v45 = vpop.eup %23649 }
0x45f7   :  { %21752 = vmatmul.mubr.msk.f32.vlgmr.msra.gmra.mrb[156].mxu1 %vm852_vm3, %v23650_v45  ;;  %v16773_v45 = vld [vmem:[#allocation4 + $0x12a0] sm:$0xff] }
0x45f8   :  { %21758 = vmatprep.mubr.msk.f32.mxu1 %vm2565_vm4, %v25182_v62  ;;  %v16791_v62 = vld [vmem:[#allocation4 + $0x1330] sm:$0xff]  ;;  %v23262_v63 = vpack.c.bf16 %v16774_v12, %v16773_v45 }
0x45f9   :  { %v23298_v15 = vpack.c.bf16 %v16792_v49, %v16791_v62  ;;  %v23270_v62 = vpack.c.bf16 %v16778_v48, %v16777_v17  ;;  %v16761_v49 = vld [vmem:[#allocation4 + $0x1240] sm:$0xff] }
0x45fb   :  { %23299 = vmatprep.subr.bf16.mxu0 %v23298_v15 }
0x45fc   :  { %23301 = vmatpush3.bf16.msra.mxu0 %v23298_v15  ;;  %v16762_v15 = vld [vmem:[#allocation4 + $0x1248] sm:$0xff] }
0x45fd   :  { %23303 = vmatprep.subr.bf16.mxu0 %v23302_v16 }
0x4600   :  { %23305 = vmatpush3.bf16.msra.mxu0 %v23302_v16  ;;  %v23272_v16 = vpack.c.bf16 %v16762_v15, %v16761_v49 }
0x4601   :  { %23307 = vmatprep.subr.bf16.mxu0 %v23306_v57 }
0x4604   :  { %23309 = vmatpush3.bf16.msra.mxu0 %v23306_v57  ;;  %v16764_v57 = vld [vmem:[#allocation4 + $0x1258] sm:$0xff] }
0x46b9   :  { %v16510_v58 = vpop.f32.mrb[154].mxu1 }
0x46ba   :  { %v21748_v59 = vpop.f32.mrb[155].mxu1  ;;  %v16590_v28 = vrot.slane %v16510_v58, %v23889_v61  ;;  %v16781_v58 = vld [vmem:[#allocation4 + $0x12e0] sm:$0xff] }
0x46bb   :  { %v16782_v59 = vld [vmem:[#allocation4 + $0x12e8] sm:$0xff] }
0x46bc   :  { %v16591_v4 = vsub.f32 %v25259_v25, %v16590_v28  ;;  %v16592_v55 = vsub.f32 %v25261_v60, %v16590_v28  ;;  %v23250_v25 = vpack.c.bf16 %v16768_v22, %v16767_v11  ;;  %v16752_v60 = vld [vmem:[#allocation4 + $0x11f8] sm:$0xff]  ;;  %v23276_v28 = vpack.c.bf16 %v16764_v57, %v16763_v10  ;;  %v23662_v10 = vld [vmem:[#allocation4 + $0xed0] sm:$0xff] }
0x46bd   :  { %v23252_v19 = vpack.c.bf16 %v16752_v60, %v16751_v0  ;;  %v17437_v57 = vld [vmem:[#allocation4 + $0x13f0] sm:$0xff] }
0x46ca   :  { %v16583_v13 = vpop.f32.mrb[156].mxu1 }
0x46cb   :  { %v16596_v27 = vrot.slane %v16583_v13, %v23889_v61  ;;  %v21753_v37 = vpop.f32.mrb[157].mxu1  ;;  %v23278_v13 = vpack.c.bf16 %v16782_v59, %v16781_v58  ;;  %v17438_v58 = vld [vmem:[#allocation4 + $0x13f8] sm:$0xff]  ;;  %v17421_v59 = vld [vmem:[#allocation4 + $0x1370] sm:$0xff] }
0x46cc   :  { %v16797_v37 = vld [vmem:[#allocation4 + $0x1360] sm:$0xff] }
0x46cd   :  { %v16597_v39 = vmul.f32 %v16596_v27, %v16591_v4  ;;  %v25284_v29 = vmul.f32 %v16596_v27, %v16592_v55  ;;  %v16765_v4 = vld [vmem:[#allocation4 + $0x1260] sm:$0xff]  ;;  %v16766_v55 = vld [vmem:[#allocation4 + $0x1268] sm:$0xff] }
0x46ce   :  { %v23280_v27 = vpack.c.bf16 %v16766_v55, %v16765_v4  ;;  %v17439_v4 = vld [vmem:[#allocation4 + $0x1400] sm:$0xff]  ;;  %v17440_v55 = vld [vmem:[#allocation4 + $0x1408] sm:$0xff] }
0x46cf   :  { %v16599_v42 = vmax.f32 %v16597_v39, 0.0  ;;  %v16600_v2 = vmax.f32 %v25284_v29, 0.0  ;;  %v16798_v39 = vld [vmem:[#allocation4 + $0x1368] sm:$0xff]  ;;  %v25308_v29 = vld [vmem:[%s25438_s2 + $0x30] sm:$0xff] }
0x46d1   :  { %v23242_v5 = vpack.c.bf16 %v16600_v2, %v16599_v42 }
0x46d3   :  { %23243 = vmatprep.subr.bf16.mxu1 %v23242_v5 }
0x46d4   :  { %23245 = vmatpush3.bf16.msra.mxu1 %v23242_v5 }
0x46d5   :  { %23247 = vmatprep.subr.bf16.mxu1 %v23242_v5 }
0x46d7   :  { %21759 = vmatmul.mubr.msk.f32.vlgmr.msra.gmra.mrb[158].mxu1 %vm2565_vm4, %v25206_v33  ;;  %v16755_v33 = vld [vmem:[#allocation4 + $0x1210] sm:$0xff] }
0x46d8   :  { %23249 = vmatpush3.bf16.msra.mxu1 %v23242_v5  ;;  %21765 = vmatprep.mubr.msk.f32.mxu1 %vm2565_vm4, %v25184_v54  ;;  %v23260_v54 = vpack.c.bf16 %v16756_v44, %v16755_v33 }
0x46d9   :  { %23251 = vmatprep.subr.bf16.mxu1 %v23250_v25 }
0x46db   :  { %21766 = vmatmul.mubr.msk.f32.vlgmr.msra.gmra.mrb[160].mxu1 %vm2565_vm4, %v25210_v26  ;;  %v23266_v26 = vpack.c.bf16 %v16776_v35, %v16775_v24 }
0x46dc   :  { %16863 = vmatprep.mubr.f32.mxu1 %v16599_v42  ;;  %23253 = vmatpush3.bf16.msra.mxu1 %v23252_v19  ;;  %v23310_v42 = vpack.c.bf16 %v16798_v39, %v16797_v37  ;;  %v23374_v37 = vpack.c.bf16 %v17440_v55, %v17439_v4  ;;  %v17423_v39 = vld [vmem:[#allocation4 + $0x1380] sm:$0xff] }
0x46dd   :  { %23255 = vmatprep.subr.bf16.mxu1 %v23254_v31 }
0x46de   :  { %23311 = vmatprep.subr.bf16.mxu0 %v23310_v42 }
0x46df   :  { %23313 = vmatpush3.bf16.msra.mxu0 %v23310_v42  ;;  %v17424_v42 = vld [vmem:[#allocation4 + $0x1388] sm:$0xff] }
0x46e0   :  { %23257 = vmatpush3.bf16.msra.mxu1 %v23256_v43  ;;  %23338 = vmatprep.subr.bf16.mxu0 %v23718_v36 }
0x46e1   :  { %23259 = vmatprep.subr.bf16.mxu1 %v23258_v41 }
0x46e4   :  { %23261 = vmatpush3.bf16.msra.mxu1 %v23260_v54 }
0x46e5   :  { %23263 = vmatprep.subr.bf16.mxu1 %v23262_v63 }
0x46e8   :  { %23265 = vmatpush3.bf16.msra.mxu1 %v23264_v46 }
0x46e9   :  { %23267 = vmatprep.subr.bf16.mxu1 %v23266_v26 }
0x46ec   :  { %23269 = vmatpush3.bf16.msra.mxu1 %v23268_v23 }
0x46ed   :  { %23271 = vmatprep.subr.bf16.mxu1 %v23270_v62 }
0x46f0   :  { %23273 = vmatpush3.bf16.msra.mxu1 %v23272_v16 }
0x46f1   :  { %23275 = vmatprep.subr.bf16.mxu1 %v23274_v3 }
0x46f4   :  { %23277 = vmatpush3.bf16.msra.mxu1 %v23276_v28  ;;  %v23370_v28 = vpack.c.bf16 %v17438_v58, %v17437_v57 }
0x46f5   :  { %23279 = vmatprep.subr.bf16.mxu1 %v23278_v13  ;;  %v17422_v13 = vld [vmem:[#allocation4 + $0x1378] sm:$0xff] }
0x46f8   :  { %23281 = vmatpush3.bf16.msra.mxu1 %v23280_v27  ;;  %v23372_v27 = vpack.c.bf16 %v17422_v13, %v17421_v59 }
0x46f9   :  { %23314 = vmatprep.subr.bf16.mxu1 %v23718_v36 }
0x47aa   :  { %v21760_v5 = vpop.f32.mrb[158].mxu1 }
0x47ab   :  { %v16667_v11 = vpop.f32.mrb[159].mxu1 }
0x47ac   :  { %16864 = vmatmul.mubr.f32.vlgmr.msra.gmra.mrb[162].mxu1 %v16667_v11  ;;  %v17442_v11 = vld [vmem:[#allocation4 + $0x1418] sm:$0xff] }
0x47ad   :  { %16868 = vmatprep.mubr.f32.mxu1 %v16600_v2  ;;  %23316 = vmatpush3.bf16.msra.mxu1 %v25082_v7 }
0x47ae   :  { %v21767_v22 = vpop.f32.mrb[160].mxu1  ;;  %23317 = vmatprep.subr.bf16.mxu1 %v23718_v36 }
0x47af   :  { %v16742_v25 = vpop.f32.mrb[161].mxu1 }
0x47b0   :  { %16869 = vmatmul.mubr.f32.gmra.mrb[164].mxu1 %v21760_v5  ;;  %21800 = vmatprep.mubr.f32.mxu0 %v16742_v25  ;;  %v17441_v5 = vld [vmem:[#allocation4 + $0x1410] sm:$0xff] }
0x47b1   :  { %21801 = vmatmul.mubr.f32.vlgmr.msra.gmra.mrb[192].mxu0 %v21767_v22  ;;  %23319 = vmatpush3.bf16.msra.mxu1 %v25085_v9  ;;  %v23376_v22 = vpack.c.bf16 %v17424_v42, %v17423_v39  ;;  %v23378_v25 = vpack.c.bf16 %v17442_v11, %v17441_v5  ;;  %v17453_v5 = vld [vmem:[#allocation4 + $0x1470] sm:$0xff]  ;;  %v17454_v11 = vld [vmem:[#allocation4 + $0x1478] sm:$0xff] }
0x47b2   :  { %23340 = vmatpush3.bf16.msra.mxu0 %v25082_v7  ;;  %23320 = vmatprep.subr.bf16.mxu1 %v23718_v36 }
0x47b3   :  { %23341 = vmatprep.subr.bf16.mxu0 %v23718_v36  ;;  %21835 = vmatprep.mubr.msk.f32.mxu1 %vm23719_vm2, %v25308_v29 }
0x47b4   :  { %21870 = vmatprep.mubr.msk.f32.mxu0 %vm23719_vm2, %v25308_v29 }
0x47b5   :  { %23322 = vmatpush3.bf16.msra.mxu1 %v25089_v20 }
0x47b6   :  { %23343 = vmatpush3.bf16.msra.mxu0 %v25085_v9  ;;  %23323 = vmatprep.subr.bf16.mxu1 %v23718_v36 }
0x47b7   :  { %23344 = vmatprep.subr.bf16.mxu0 %v23718_v36 }
0x47b9   :  { %23325 = vmatpush3.bf16.msra.mxu1 %v25093_v30 }
0x47ba   :  { %23346 = vmatpush3.bf16.msra.mxu0 %v25089_v20  ;;  %23326 = vmatprep.subr.bf16.mxu1 %v23718_v36 }
0x47bb   :  { %23347 = vmatprep.subr.bf16.mxu0 %v23718_v36 }
0x47bd   :  { %23328 = vmatpush3.bf16.msra.mxu1 %v25112_v1 }
0x47be   :  { %23349 = vmatpush3.bf16.msra.mxu0 %v25093_v30  ;;  %23329 = vmatprep.subr.bf16.mxu1 %v23718_v36 }
0x47bf   :  { %23350 = vmatprep.subr.bf16.mxu0 %v23718_v36 }
0x47c1   :  { %23331 = vmatpush3.bf16.msra.mxu1 %v25116_v47 }
0x47c2   :  { %23352 = vmatpush3.bf16.msra.mxu0 %v25112_v1  ;;  %23332 = vmatprep.subr.bf16.mxu1 %v23718_v36 }
0x47c3   :  { %23353 = vmatprep.subr.bf16.mxu0 %v23718_v36 }
0x47c5   :  { %23334 = vmatpush3.bf16.msra.mxu1 %v25120_v50 }
0x47c6   :  { %23355 = vmatpush3.bf16.msra.mxu0 %v25116_v47  ;;  %23335 = vmatprep.subr.bf16.mxu1 %v23718_v36 }
0x47c7   :  { %23356 = vmatprep.subr.bf16.mxu0 %v23718_v36 }
0x47c9   :  { %23337 = vmatpush3.bf16.msra.mxu1 %v25124_v6 }
0x47ca   :  { %23358 = vmatpush3.bf16.msra.mxu0 %v25120_v50  ;;  %21873 = vmatprep.subr.mxu1 %v25308_v29 }
0x47cb   :  { %23359 = vmatprep.subr.bf16.mxu0 %v23718_v36 }
0x47ce   :  { %23361 = vmatpush3.bf16.msra.mxu0 %v25124_v6 }
0x47cf   :  { %23371 = vmatprep.subr.bf16.mxu0 %v23370_v28 }
0x487f   :  { %v19513_v2 = vpop.f32.mrb[162].mxu1 }
0x4880   :  { %v19514_v0 = vpop.f32.mrb[163].mxu1 }
0x4881   :  { %v19515_v60 = vadd.f32 %v19514_v0, %v19513_v2  ;;  %v17425_v2 = vld [vmem:[#allocation4 + $0x1390] sm:$0xff]  ;;  %v17426_v0 = vld [vmem:[#allocation4 + $0x1398] sm:$0xff] }
0x4883   :  { %v19516_v21 = vpop.f32.mrb[164].mxu1 }
0x4884   :  { %v19517_v14 = vpop.f32.mrb[165].mxu1  ;;  %v21802_v19 = vpop.f32.mrb[192].mxu0 }
0x4885   :  { %v19518_v31 = vadd.f32 %v19517_v14, %v19516_v21  ;;  %v16940_v32 = vpop.f32.mrb[193].mxu0  ;;  %v17444_v21 = vld [vmem:[#allocation4 + $0x1428] sm:$0xff]  ;;  %v23380_v14 = vpack.c.bf16 %v17426_v0, %v17425_v2 }
0x4886   :  { %v25339_v34 = vadd.f32 %v19515_v60, %v16940_v32  ;;  %v17443_v60 = vld [vmem:[#allocation4 + $0x1420] sm:$0xff]  ;;  %v17428_v32 = vld [vmem:[#allocation4 + $0x13a8] sm:$0xff] }
0x4887   :  { %v25341_v38 = vadd.f32 %v21802_v19, %v19518_v31  ;;  %v23382_v19 = vpack.c.bf16 %v17444_v21, %v17443_v60  ;;  %v17427_v31 = vld [vmem:[#allocation4 + $0x13a0] sm:$0xff]  ;;  %v17456_v2 = vld [vmem:[#allocation4 + $0x1488] sm:$0xff]  ;;  %v17457_v60 = vld [vmem:[#allocation4 + $0x1490] sm:$0xff] }
0x4888   :  { %v16956_v18 = vmul.f32 %v25339_v34, %v25339_v34  ;;  %v17458_v21 = vld [vmem:[#allocation4 + $0x1498] sm:$0xff] }
0x4889   :  { %v16957_v43 = vmul.f32 %v25341_v38, %v25341_v38  ;;  %v16949_v41 = vadd.f32 %v25341_v38, %v25339_v34 }
0x488b   :  { %v16950_v33 = vrot.slane %v16949_v41, 4  ;;  %v16958_v44 = vadd.f32 %v16957_v43, %v16956_v18  ;;  %v17445_v18 = vld [vmem:[#allocation4 + $0x1430] sm:$0xff]  ;;  %v17446_v43 = vld [vmem:[#allocation4 + $0x1438] sm:$0xff] }
0x488d   :  { %v16951_v45 = vadd.f32 %v16950_v33, %v16949_v41  ;;  %v16959_v12 = vrot.slane %v16958_v44, 4  ;;  %v23384_v41 = vpack.c.bf16 %v17428_v32, %v17427_v31  ;;  %v23386_v33 = vpack.c.bf16 %v17446_v43, %v17445_v18  ;;  %v17459_v31 = vld [vmem:[#allocation4 + $0x14a0] sm:$0xff]  ;;  %v17460_v32 = vld [vmem:[#allocation4 + $0x14a8] sm:$0xff]  ;;  %v17461_v43 = vld [vmem:[#allocation4 + $0x14b0] sm:$0xff] }
0x488e   :  { %v23414_v18 = vpack.c.bf16 %v17460_v32, %v17459_v31  ;;  %v17947_v32 = vld [vmem:[#allocation4 + $0x1520] sm:$0xff] }
0x488f   :  { %v16952_v54 = vrot.slane %v16951_v45, 2  ;;  %v16960_v63 = vadd.f32 %v16959_v12, %v16958_v44  ;;  %v17429_v44 = vld [vmem:[#allocation4 + $0x13b0] sm:$0xff]  ;;  %v17447_v12 = vld [vmem:[#allocation4 + $0x1440] sm:$0xff] }
0x4891   :  { %v16953_v51 = vadd.f32 %v16952_v54, %v16951_v45  ;;  %v16961_v52 = vrot.slane %v16960_v63, 2  ;;  %v17430_v45 = vld [vmem:[#allocation4 + $0x13b8] sm:$0xff]  ;;  %v17448_v54 = vld [vmem:[#allocation4 + $0x1448] sm:$0xff] }
0x4893   :  { %v16954_v24 = vrot.slane %v16953_v51, 1  ;;  %v16962_v35 = vadd.f32 %v16961_v52, %v16960_v63  ;;  %v23388_v63 = vpack.c.bf16 %v17430_v45, %v17429_v44  ;;  %v17431_v52 = vld [vmem:[#allocation4 + $0x13c0] sm:$0xff]  ;;  %v17464_v45 = vld [vmem:[#allocation4 + $0x14c8] sm:$0xff] }
0x4894   :  { %v17463_v44 = vld [vmem:[#allocation4 + $0x14c0] sm:$0xff] }
0x4895   :  { %v16955_v46 = vadd.f32 %v16954_v24, %v16953_v51  ;;  %v16963_v26 = vrot.slane %v16962_v35, 1  ;;  %v23390_v51 = vpack.c.bf16 %v17448_v54, %v17447_v12  ;;  %v17432_v24 = vld [vmem:[#allocation4 + $0x13c8] sm:$0xff]  ;;  %v23422_v12 = vpack.c.bf16 %v17464_v45, %v17463_v44  ;;  %v17465_v54 = vld [vmem:[#allocation4 + $0x14d0] sm:$0xff]  ;;  %v17951_v45 = vld [vmem:[#allocation4 + $0x1540] sm:$0xff] }
0x4897   :  { %21836 = vmatmul.mubr.f32.vlgmr.msra.gmra.mrb[166].mxu1 %v16955_v46  ;;  %v16964_v40 = vadd.f32 %v16963_v26, %v16962_v35  ;;  %v17449_v35 = vld [vmem:[#allocation4 + $0x1450] sm:$0xff]  ;;  %v17450_v46 = vld [vmem:[#allocation4 + $0x1458] sm:$0xff]  ;;  %v23392_v26 = vpack.c.bf16 %v17432_v24, %v17431_v52  ;;  %v17467_v52 = vld [vmem:[#allocation4 + $0x14e0] sm:$0xff] }
0x4898   :  { %21874 = vmatpush3.msra.mxu1 %v25349_v56  ;;  %21875 = vmatprep.mubr.msk.f32.mxu1 %vm23719_vm2, %v25308_v29  ;;  %v17468_v24 = vld [vmem:[#allocation4 + $0x14e8] sm:$0xff] }
0x4899   :  { %21871 = vmatmul.mubr.f32.vlgmr.msra.gmra.mrb[194].mxu0 %v16964_v40  ;;  %21878 = vmatprep.subr.mxu1 %v25308_v29  ;;  %v23394_v40 = vpack.c.bf16 %v17450_v46, %v17449_v35  ;;  %v23430_v35 = vpack.c.bf16 %v17468_v24, %v17467_v52  ;;  %v17955_v24 = vld [vmem:[#allocation4 + $0x1560] sm:$0xff] }
0x489a   :  { %23373 = vmatpush3.bf16.msra.mxu0 %v23372_v27 }
0x489b   :  { %23375 = vmatprep.subr.bf16.mxu0 %v23374_v37 }
0x489e   :  { %23377 = vmatpush3.bf16.msra.mxu0 %v23376_v22  ;;  %v23402_v22 = vpack.c.bf16 %v17454_v11, %v17453_v5  ;;  %v17944_v5 = vld [vmem:[#allocation4 + $0x1508] sm:$0xff] }
0x489f   :  { %23379 = vmatprep.subr.bf16.mxu0 %v23378_v25  ;;  %v17455_v25 = vld [vmem:[#allocation4 + $0x1480] sm:$0xff] }
0x48a0   :  { %v23406_v0 = vpack.c.bf16 %v17456_v2, %v17455_v25 }
0x48a2   :  { %23381 = vmatpush3.bf16.msra.mxu0 %v23380_v14  ;;  %v23665_v14 = vld [vmem:[#allocation4 + $0xee8] sm:$0xff] }
0x48a3   :  { %23383 = vmatprep.subr.bf16.mxu0 %v23382_v19  ;;  %v23410_v19 = vpack.c.bf16 %v17458_v21, %v17457_v60 }
0x48a6   :  { %23385 = vmatpush3.bf16.msra.mxu0 %v23384_v41  ;;  %v17462_v41 = vld [vmem:[#allocation4 + $0x14b8] sm:$0xff] }
0x48a7   :  { %23387 = vmatprep.subr.bf16.mxu0 %v23386_v33  ;;  %v23418_v33 = vpack.c.bf16 %v17462_v41, %v17461_v43  ;;  %v17949_v43 = vld [vmem:[#allocation4 + $0x1530] sm:$0xff] }
0x48aa   :  { %23389 = vmatpush3.bf16.msra.mxu0 %v23388_v63  ;;  %v17466_v63 = vld [vmem:[#allocation4 + $0x14d8] sm:$0xff] }
0x48ab   :  { %23391 = vmatprep.subr.bf16.mxu0 %v23390_v51  ;;  %v23426_v51 = vpack.c.bf16 %v17466_v63, %v17465_v54  ;;  %v17953_v63 = vld [vmem:[#allocation4 + $0x1550] sm:$0xff] }
0x48ae   :  { %23393 = vmatpush3.bf16.msra.mxu0 %v23392_v26 }
0x48af   :  { %23395 = vmatprep.subr.bf16.mxu0 %v23394_v40 }
0x496a   :  { %v17031_v17 = vpop.f32.mrb[166].mxu1 }
0x496b   :  { %v17105_v48 = vmul.f32 0.00390625, %v17031_v17  ;;  %v21837_v23 = vpop.f32.mrb[167].mxu1  ;;  %v17433_v17 = vld [vmem:[#allocation4 + $0x13d0] sm:$0xff] }
0x496c   :  { %v17101_v62 = vpop.f32.mrb[194].mxu0  ;;  %v17451_v23 = vld [vmem:[#allocation4 + $0x1460] sm:$0xff] }
0x496d   :  { %v17107_v49 = vmul.f32 %v17105_v48, %v17105_v48  ;;  %v17106_v15 = vmul.f32 0.00390625, %v17101_v62  ;;  %v21872_v53 = vpop.f32.mrb[195].mxu0  ;;  %21876 = vmatmul.mubr.msk.f32.vlgmr.msra.gmra.mrb[168].mxu1 %vm852_vm3, %v17105_v48  ;;  %v17434_v48 = vld [vmem:[#allocation4 + $0x13d8] sm:$0xff]  ;;  %v17452_v62 = vld [vmem:[#allocation4 + $0x1468] sm:$0xff] }
0x496e   :  { %21879 = vmatpush3.msra.mxu1 %v25349_v56  ;;  %21880 = vmatprep.mubr.msk.f32.mxu1 %vm23719_vm2, %v25308_v29  ;;  %v17435_v53 = vld [vmem:[#allocation4 + $0x13e0] sm:$0xff] }
0x496f   :  { %v17108_v8 = vsub.f32 %v17106_v15, %v17107_v49  ;;  %v23396_v49 = vpack.c.bf16 %v17434_v48, %v17433_v17  ;;  %v23398_v15 = vpack.c.bf16 %v17452_v62, %v17451_v23 }
0x4971   :  { %v17109_v16 = vadd.f32 1e-05, %v17108_v8  ;;  %v17436_v8 = vld [vmem:[#allocation4 + $0x13e8] sm:$0xff]  ;;  %23397 = vmatpush3.bf16.msra.mxu0 %v23396_v49 }
0x4972   :  { %23399 = vmatprep.subr.bf16.mxu0 %v23398_v15 }
0x4973   :  { %23651 = vrsqrt.f32 %v17109_v16  ;;  %v23400_v16 = vpack.c.bf16 %v17436_v8, %v17435_v53 }
0x4975   :  { %23401 = vmatpush3.bf16.msra.mxu0 %v23400_v16 }
0x4976   :  { %23434 = vmatprep.subr.bf16.mxu0 %v23718_v36 }
0x497d   :  { %v23652_v3 = vpop.eup %23651 }
0x497e   :  { %21881 = vmatmul.mubr.msk.f32.vlgmr.msra.gmra.mrb[170].mxu1 %vm852_vm3, %v23652_v3 }
0x497f   :  { %21887 = vmatprep.mubr.msk.f32.mxu1 %vm2565_vm4, %v23662_v10 }
0x4a40   :  { %v17180_v3 = vpop.f32.mrb[168].mxu1 }
0x4a41   :  { %v21877_v10 = vpop.f32.mrb[169].mxu1  ;;  %v17260_v57 = vrot.slane %v17180_v3, %v23889_v61 }
0x4a43   :  { %v17261_v59 = vsub.f32 %v25339_v34, %v17260_v57  ;;  %v17262_v28 = vsub.f32 %v25341_v38, %v17260_v57  ;;  %v23663_v34 = vld [vmem:[#allocation4 + $0xed8] sm:$0xff]  ;;  %v23664_v38 = vld [vmem:[#allocation4 + $0xee0] sm:$0xff] }
0x4a51   :  { %v17253_v58 = vpop.f32.mrb[170].mxu1 }
0x4a52   :  { %v17266_v13 = vrot.slane %v17253_v58, %v23889_v61  ;;  %v21882_v4 = vpop.f32.mrb[171].mxu1 }
0x4a54   :  { %v17267_v55 = vmul.f32 %v17266_v13, %v17261_v59  ;;  %v17268_v27 = vmul.f32 %v17266_v13, %v17262_v28 }
0x4a56   :  { %v17269_v37 = vmax.f32 %v17267_v55, 0.0  ;;  %v17270_v39 = vmax.f32 %v17268_v27, 0.0  ;;  %v17941_v27 = vld [vmem:[#allocation4 + $0x14f0] sm:$0xff] }
0x4a58   :  { %v23362_v42 = vpack.c.bf16 %v17270_v39, %v17269_v37  ;;  %17533 = vmatprep.mubr.f32.mxu0 %v17269_v37  ;;  %v17942_v37 = vld [vmem:[#allocation4 + $0x14f8] sm:$0xff] }
0x4a5a   :  { %23363 = vmatprep.subr.bf16.mxu1 %v23362_v42 }
0x4a5b   :  { %23365 = vmatpush3.bf16.msra.mxu1 %v23362_v42 }
0x4a5c   :  { %23367 = vmatprep.subr.bf16.mxu1 %v23362_v42 }
0x4a5e   :  { %21888 = vmatmul.mubr.msk.f32.vlgmr.msra.gmra.mrb[172].mxu1 %vm2565_vm4, %v23663_v34 }
0x4a5f   :  { %23369 = vmatpush3.bf16.msra.mxu1 %v23362_v42  ;;  %21894 = vmatprep.mubr.msk.f32.mxu1 %vm2565_vm4, %v23664_v38  ;;  %v17943_v42 = vld [vmem:[#allocation4 + $0x1500] sm:$0xff] }
0x4a60   :  { %23403 = vmatprep.subr.bf16.mxu1 %v23402_v22  ;;  %v23486_v2 = vpack.c.bf16 %v17944_v5, %v17943_v42 }
0x4a62   :  { %21895 = vmatmul.mubr.msk.f32.vlgmr.msra.gmra.mrb[174].mxu1 %vm2565_vm4, %v23665_v14  ;;  %v17945_v14 = vld [vmem:[#allocation4 + $0x1510] sm:$0xff] }
0x4a63   :  { %23405 = vmatpush3.bf16.msra.mxu1 %v23402_v22 }
0x4a64   :  { %23407 = vmatprep.subr.bf16.mxu1 %v23406_v0 }
0x4a67   :  { %23409 = vmatpush3.bf16.msra.mxu1 %v23406_v0 }
0x4a68   :  { %23411 = vmatprep.subr.bf16.mxu1 %v23410_v19 }
0x4a6b   :  { %23413 = vmatpush3.bf16.msra.mxu1 %v23410_v19  ;;  %v17946_v19 = vld [vmem:[#allocation4 + $0x1518] sm:$0xff] }
0x4a6c   :  { %23415 = vmatprep.subr.bf16.mxu1 %v23414_v18  ;;  %v23490_v31 = vpack.c.bf16 %v17946_v19, %v17945_v14 }
0x4a6f   :  { %23417 = vmatpush3.bf16.msra.mxu1 %v23414_v18  ;;  %v17948_v18 = vld [vmem:[#allocation4 + $0x1528] sm:$0xff] }
0x4a70   :  { %23419 = vmatprep.subr.bf16.mxu1 %v23418_v33  ;;  %v23494_v41 = vpack.c.bf16 %v17948_v18, %v17947_v32 }
0x4a73   :  { %23421 = vmatpush3.bf16.msra.mxu1 %v23418_v33  ;;  %v17950_v33 = vld [vmem:[#allocation4 + $0x1538] sm:$0xff] }
0x4a74   :  { %23423 = vmatprep.subr.bf16.mxu1 %v23422_v12  ;;  %v23498_v44 = vpack.c.bf16 %v17950_v33, %v17949_v43 }
0x4a77   :  { %23425 = vmatpush3.bf16.msra.mxu1 %v23422_v12  ;;  %v17952_v12 = vld [vmem:[#allocation4 + $0x1548] sm:$0xff] }
0x4a78   :  { %23427 = vmatprep.subr.bf16.mxu1 %v23426_v51  ;;  %v23502_v54 = vpack.c.bf16 %v17952_v12, %v17951_v45 }
0x4a7b   :  { %23429 = vmatpush3.bf16.msra.mxu1 %v23426_v51  ;;  %v17954_v51 = vld [vmem:[#allocation4 + $0x1558] sm:$0xff] }
0x4a7c   :  { %23431 = vmatprep.subr.bf16.mxu1 %v23430_v35  ;;  %v23506_v52 = vpack.c.bf16 %v17954_v51, %v17953_v63 }
0x4a7f   :  { %23433 = vmatpush3.bf16.msra.mxu1 %v23430_v35  ;;  %v17956_v35 = vld [vmem:[#allocation4 + $0x1568] sm:$0xff] }
0x4a80   :  { %23458 = vmatprep.subr.bf16.mxu1 %v23718_v36 }
0x4b31   :  { %v21889_v46 = vpop.f32.mrb[172].mxu1 }
0x4b32   :  { %v17337_v26 = vpop.f32.mrb[173].mxu1 }
0x4b33   :  { %17534 = vmatmul.mubr.f32.vlgmr.msra.gmra.mrb[196].mxu0 %v17337_v26 }
0x4b34   :  { %17538 = vmatprep.mubr.f32.mxu0 %v17270_v39  ;;  %23436 = vmatpush3.bf16.msra.mxu0 %v25082_v7  ;;  %v23482_v39 = vpack.c.bf16 %v17942_v37, %v17941_v27 }
0x4b35   :  { %v21896_v40 = vpop.f32.mrb[174].mxu1  ;;  %23437 = vmatprep.subr.bf16.mxu0 %v23718_v36 }
0x4b36   :  { %v17412_v17 = vpop.f32.mrb[175].mxu1 }
0x4b37   :  { %17539 = vmatmul.mubr.f32.gmra.mrb[198].mxu0 %v21889_v46  ;;  %21929 = vmatprep.mubr.f32.mxu1 %v17412_v17  ;;  %v23510_v46 = vpack.c.bf16 %v17956_v35, %v17955_v24 }
0x4b38   :  { %21930 = vmatmul.mubr.f32.vlgmr.msra.gmra.mrb[176].mxu1 %v21896_v40  ;;  %23439 = vmatpush3.bf16.msra.mxu0 %v25085_v9 }
0x4b39   :  { %23460 = vmatpush3.bf16.msra.mxu1 %v25082_v7  ;;  %23440 = vmatprep.subr.bf16.mxu0 %v23718_v36 }
0x4b3a   :  { %23461 = vmatprep.subr.bf16.mxu1 %v23718_v36  ;;  %21964 = vmatprep.mubr.msk.f32.mxu0 %vm23719_vm2, %v25308_v29 }
0x4b3b   :  { %21999 = vmatprep.mubr.msk.f32.mxu1 %vm23719_vm2, %v25308_v29 }
0x4b3c   :  { %23442 = vmatpush3.bf16.msra.mxu0 %v25089_v20 }
0x4b3d   :  { %23463 = vmatpush3.bf16.msra.mxu1 %v25085_v9  ;;  %23443 = vmatprep.subr.bf16.mxu0 %v23718_v36 }
0x4b3e   :  { %23464 = vmatprep.subr.bf16.mxu1 %v23718_v36 }
0x4b40   :  { %23445 = vmatpush3.bf16.msra.mxu0 %v25093_v30 }
0x4b41   :  { %23466 = vmatpush3.bf16.msra.mxu1 %v25089_v20  ;;  %23446 = vmatprep.subr.bf16.mxu0 %v23718_v36 }
0x4b42   :  { %23467 = vmatprep.subr.bf16.mxu1 %v23718_v36 }
0x4b44   :  { %23448 = vmatpush3.bf16.msra.mxu0 %v25112_v1 }
0x4b45   :  { %23469 = vmatpush3.bf16.msra.mxu1 %v25093_v30  ;;  %23449 = vmatprep.subr.bf16.mxu0 %v23718_v36 }
0x4b46   :  { %23470 = vmatprep.subr.bf16.mxu1 %v23718_v36 }
0x4b48   :  { %23451 = vmatpush3.bf16.msra.mxu0 %v25116_v47 }
0x4b49   :  { %23472 = vmatpush3.bf16.msra.mxu1 %v25112_v1  ;;  %23452 = vmatprep.subr.bf16.mxu0 %v23718_v36 }
0x4b4a   :  { %23473 = vmatprep.subr.bf16.mxu1 %v23718_v36 }
0x4b4c   :  { %23454 = vmatpush3.bf16.msra.mxu0 %v25120_v50 }
0x4b4d   :  { %23475 = vmatpush3.bf16.msra.mxu1 %v25116_v47  ;;  %23455 = vmatprep.subr.bf16.mxu0 %v23718_v36 }
0x4b4e   :  { %23476 = vmatprep.subr.bf16.mxu1 %v23718_v36 }
0x4b50   :  { %23457 = vmatpush3.bf16.msra.mxu0 %v25124_v6 }
0x4b51   :  { %23478 = vmatpush3.bf16.msra.mxu1 %v25120_v50  ;;  %22002 = vmatprep.subr.mxu0 %v25308_v29 }
0x4b52   :  { %23479 = vmatprep.subr.bf16.mxu1 %v23718_v36 }
0x4b55   :  { %23481 = vmatpush3.bf16.msra.mxu1 %v25124_v6 }
0x4b56   :  { %22007 = vmatprep.subr.mxu1 %v25308_v29 }
0x4c06   :  { %v19615_v7 = vpop.f32.mrb[196].mxu0 }
0x4c07   :  { %v19616_v9 = vpop.f32.mrb[197].mxu0 }
0x4c08   :  { %v19617_v20 = vadd.f32 %v19616_v9, %v19615_v7 }
0x4c0a   :  { %v19618_v30 = vpop.f32.mrb[198].mxu0 }
0x4c0b   :  { %v19619_v1 = vpop.f32.mrb[199].mxu0  ;;  %v21931_v47 = vpop.f32.mrb[176].mxu1 }
0x4c0c   :  { %v19620_v48 = vadd.f32 %v19619_v1, %v19618_v30  ;;  %v17610_v23 = vpop.f32.mrb[177].mxu1 }
0x4c0d   :  { %v25406_v62 = vadd.f32 %v19617_v20, %v17610_v23 }
0x4c0e   :  { %v25408_v49 = vadd.f32 %v21931_v47, %v19620_v48 }
0x4c0f   :  { %v17626_v50 = vmul.f32 %v25406_v62, %v25406_v62 }
0x4c10   :  { %v17627_v36 = vmul.f32 %v25408_v49, %v25408_v49  ;;  %v17619_v6 = vadd.f32 %v25408_v49, %v25406_v62 }
0x4c12   :  { %v17620_v15 = vrot.slane %v17619_v6, 4  ;;  %v17628_v53 = vadd.f32 %v17627_v36, %v17626_v50  ;;  %v18312_v36 = vld [vmem:[#allocation4 + $0x1570] ss:$0 sm:$0xff] }
0x4c14   :  { %v17621_v8 = vadd.f32 %v17620_v15, %v17619_v6  ;;  %v17629_v16 = vrot.slane %v17628_v53, 4 }
0x4c16   :  { %v17622_v3 = vrot.slane %v17621_v8, 2  ;;  %v17630_v10 = vadd.f32 %v17629_v16, %v17628_v53 }
0x4c18   :  { %v17623_v57 = vadd.f32 %v17622_v3, %v17621_v8  ;;  %v17631_v58 = vrot.slane %v17630_v10, 2 }
0x4c1a   :  { %v17624_v59 = vrot.slane %v17623_v57, 1  ;;  %v17632_v28 = vadd.f32 %v17631_v58, %v17630_v10 }
0x4c1c   :  { %v17625_v13 = vadd.f32 %v17624_v59, %v17623_v57  ;;  %v17633_v4 = vrot.slane %v17632_v28, 1 }
0x4c1e   :  { %21965 = vmatmul.mubr.f32.vlgmr.msra.gmra.mrb[200].mxu0 %v17625_v13  ;;  %v17634_v55 = vadd.f32 %v17633_v4, %v17632_v28 }
0x4c1f   :  { %22003 = vmatpush3.msra.mxu0 %v25349_v56  ;;  %22004 = vmatprep.mubr.msk.f32.mxu0 %vm23719_vm2, %v25308_v29 }
0x4c20   :  { %22000 = vmatmul.mubr.f32.vlgmr.msra.gmra.mrb[178].mxu1 %v17634_v55  ;;  %23483 = vmatprep.subr.bf16.mxu0 %v23482_v39 }
0x4c21   :  { %22008 = vmatpush3.msra.mxu1 %v25349_v56  ;;  %22009 = vmatprep.mubr.msk.f32.mxu1 %vm23719_vm2, %v25308_v29 }
0x4cf1   :  { %v17701_v11 = vpop.f32.mrb[200].mxu0 }
0x4cf2   :  { %v17775_v22 = vmul.f32 0.00390625, %v17701_v11  ;;  %v21966_v25 = vpop.f32.mrb[201].mxu0 }
0x4cf3   :  { %v17771_v34 = vpop.f32.mrb[178].mxu1 }
0x4cf4   :  { %v17777_v38 = vmul.f32 %v17775_v22, %v17775_v22  ;;  %v17776_v0 = vmul.f32 0.00390625, %v17771_v34  ;;  %v22001_v60 = vpop.f32.mrb[179].mxu1  ;;  %22005 = vmatmul.mubr.msk.f32.vlgmr.msra.gmra.mrb[202].mxu0 %vm852_vm3, %v17775_v22 }
0x4cf5   :  { %23485 = vmatpush3.bf16.msra.mxu0 %v23482_v39 }
0x4cf6   :  { %v17778_v56 = vsub.f32 %v17776_v0, %v17777_v38  ;;  %23487 = vmatprep.subr.bf16.mxu0 %v23486_v2 }
0x4cf8   :  { %v17779_v29 = vadd.f32 1e-05, %v17778_v56 }
0x4cf9   :  { %23489 = vmatpush3.bf16.msra.mxu0 %v23486_v2 }
0x4cfa   :  { %23653 = vrsqrt.f32 %v17779_v29  ;;  %23491 = vmatprep.subr.bf16.mxu0 %v23490_v31 }
0x4cfd   :  { %23493 = vmatpush3.bf16.msra.mxu0 %v23490_v31 }
0x4cfe   :  { %23495 = vmatprep.subr.bf16.mxu0 %v23494_v41 }
0x4d01   :  { %23497 = vmatpush3.bf16.msra.mxu0 %v23494_v41 }
0x4d02   :  { %23499 = vmatprep.subr.bf16.mxu0 %v23498_v44 }
0x4d04   :  { %v23654_v21 = vpop.eup %23653 }
0x4d05   :  { %22010 = vmatmul.mubr.msk.f32.vlgmr.msra.gmra.mrb[180].mxu1 %vm852_vm3, %v23654_v21  ;;  %23501 = vmatpush3.bf16.msra.mxu0 %v23498_v44 }
0x4d06   :  { %23503 = vmatprep.subr.bf16.mxu0 %v23502_v54 }
0x4d09   :  { %23505 = vmatpush3.bf16.msra.mxu0 %v23502_v54 }
0x4d0a   :  { %23507 = vmatprep.subr.bf16.mxu0 %v23506_v52 }
0x4d0d   :  { %23509 = vmatpush3.bf16.msra.mxu0 %v23506_v52 }
0x4d0e   :  { %23511 = vmatprep.subr.bf16.mxu0 %v23510_v46 }
0x4d11   :  { %23513 = vmatpush3.bf16.msra.mxu0 %v23510_v46 }
0x4dc7   :  { %v17850_v26 = vpop.f32.mrb[202].mxu0 }
0x4dc8   :  { %v22006_v40 = vpop.f32.mrb[203].mxu0  ;;  %v17930_v17 = vrot.slane %v17850_v26, %v23889_v61 }
0x4dca   :  { %v17931_v9 = vsub.f32 %v25406_v62, %v17930_v17  ;;  %v17932_v20 = vsub.f32 %v25408_v49, %v17930_v17 }
0x4dd8   :  { %v17923_v7 = vpop.f32.mrb[180].mxu1 }
0x4dd9   :  { %v17936_v30 = vrot.slane %v17923_v7, %v23889_v61  ;;  %v22011_v1 = vpop.f32.mrb[181].mxu1 }
0x4ddb   :  { %v17937_v47 = vmul.f32 %v17936_v30, %v17931_v9  ;;  %v17938_v48 = vmul.f32 %v17936_v30, %v17932_v20 }
0x4ddd   :  { %v17939_v23 = vmax.f32 %v17937_v47, 0.0  ;;  %v17940_v50 = vmax.f32 %v17938_v48, 0.0 }
0x4ddf   :  { %22044 = vmatprep.mubr.f32.mxu0 %v17939_v23 }
0x4de0   :  { %22045 = vmatmul.mubr.f32.vlgmr.msra.gmra.mrb[204].mxu0 %v17940_v50 }
0x4eb3   :  { %v22046_v6 = vpop.f32.mrb[204].mxu0 }
0x4eb4   :  { %v18034_v15 = vadd.f32 %v22046_v6, %v18312_v36  ;;  %v18028_v53 = vpop.f32.mrb[205].mxu0 }
0x4eb5   :  { %v18029_v8 = vadd.f32 %v18312_v36, %v18028_v53 }
0x4eb6   :  { %18038 = vst.msk [vmem:[%s25438_s2 + $0x38] sm:$0xff] %vm2565_vm4, %v18034_v15 }
0x4eb7   :  { %18037 = vst.msk [vmem:[%s25438_s2 + $0x30] sm:$0xff] %vm2565_vm4, %v18029_v8 }
0x4eb8   :  { %18043 = vsyncpa [#allocation3], 1 }
0x4eb9   :  { %18044 = vsyncpa [#allocation5], 1 }

</bundles_post_ra>
